<compile_context>
chip_gen: v6e
topology: v6e:2x2x1
jax: 0.10.0
libtpu: 0.0.40
codegen_flags: <defaults>
</compile_context>

<pallas_src>
import jax
import jax.numpy as jnp
from jax.experimental import pallas as pl
from jax.experimental.pallas import tpu as pltpu

# ---------------------------------------------------------------- problem sizes
C_IN = 128
C_OUT = 64
K = 4
STRIDE = 2
PADDING = 1
OUT_PADDING = 2

H_IN = W_IN = 16
H_OUT = (H_IN - 1) * STRIDE - 2 * PADDING + K + OUT_PADDING   # 34
W_OUT = H_OUT                                                 # 34

# parity-decomposition sizes
HALF = H_OUT // STRIDE          # 17 output rows / cols per parity class
H_PAD = H_IN + 3                # 19 = input rows padded by (1 low, 2 high)
W_PAD = W_IN + 3                # 19
N_PAD = 24                      # 17 padded to a multiple of 8 (sublane tile) for flattening
M_FLAT = HALF * N_PAD           # 408 matmul rows per (row-parity, dh) tap
K_TAPS = 3                      # width taps covering BOTH width parities (dw in {0,1}, pw in {0,1})
K_DIM = K_TAPS * C_IN           # 384 contraction dim
N_DIM = 2 * C_OUT               # 128 output lanes: [pw=0 | pw=1]

# reference (zero-insertion) sizes
H_UP = (H_IN - 1) * STRIDE + 1              # 31
PAD_LO = K - 1 - PADDING                    # 2
PAD_HI = K - 1 - PADDING + OUT_PADDING      # 4


# ------------------------------------------------------------------ the kernel
def convt_silu_kernel(xp_ref, w_ref, b_ref, o_ref, g_ref):
    # xp_ref: (19, 19, 128)   padded HWC input, xp[p, q, ci] = x[p-1, q-1] (zeros outside)
    # w_ref : (2, 2, 384, 128) [ph, dh, t*C_IN + ci, pw*C_OUT + co]  (zero taps pre-packed)
    # b_ref : (1, 128)         [pw*C_OUT + co]
    # o_ref : (2, 408, 128)    [ph, m*N_PAD + n, pw*C_OUT + co]
    # g_ref : VMEM scratch (19, 24, 384): g[h, n, t*C_IN+ci] = xp[h, n+t, ci] for n<17, else 0

    # --- in-kernel width-tap gather (shared by all 4 matmuls) -------------------
    g_ref[...] = jnp.zeros((H_PAD, N_PAD, K_DIM), jnp.float32)
    for t in range(K_TAPS):
        g_ref[:, 0:HALF, t * C_IN:(t + 1) * C_IN] = xp_ref[:, t:t + HALF, :]

    bias = b_ref[...]                                      # (1, 128), broadcast on add
    # --- one lane-dense (408, 128) slab per output-row parity -------------------
    for ph in range(2):
        acc = jnp.zeros((M_FLAT, N_DIM), jnp.float32)
        for dh in range(2):
            # static row window [ph+dh, ph+dh+17) of the gathered slab, flattened (17*24, 384)
            lhs = g_ref[pl.ds(ph + dh, HALF), :, :].reshape(M_FLAT, K_DIM)
            acc = acc + jnp.dot(lhs, w_ref[ph, dh],
                                preferred_element_type=jnp.float32)
        v1 = acc + bias
        o_ref[ph] = (v1 * jax.nn.sigmoid(v1)).astype(o_ref.dtype)   # SiLU, f32


def convt_silu_pallas(xp, wf, bias2):
    return pl.pallas_call(
        convt_silu_kernel,
        out_shape=jax.ShapeDtypeStruct((2, M_FLAT, N_DIM), jnp.float32),
        grid=(1,),                                         # single step: no per-step overhead
        in_specs=[
            pl.BlockSpec((H_PAD, W_PAD, C_IN), lambda i: (0, 0, 0)),
            pl.BlockSpec((2, 2, K_DIM, N_DIM), lambda i: (0, 0, 0, 0)),
            pl.BlockSpec((1, N_DIM), lambda i: (0, 0)),
        ],
        out_specs=pl.BlockSpec((2, M_FLAT, N_DIM), lambda i: (0, 0, 0)),
        scratch_shapes=[pltpu.VMEM((H_PAD, N_PAD, K_DIM), jnp.float32)],
        compiler_params=pltpu.CompilerParams(
            dimension_semantics=("arbitrary",)),
    )(xp, wf, bias2)


# ------------------------------------------------------- one-time parameter prep
def prepare_params(w_t, b):
    """Hoisted weight/bias prep (run once, not per forward).

    w_t: (C_IN, C_OUT, 4, 4) torch ConvTranspose2d layout; b: (C_OUT,).
    Returns wf (2, 2, 384, 128) packed RHS and bias2 (1, 128).
    """
    # ConvTranspose weights -> flipped regular-conv weights: W_flip[kh,kw,ci,co]
    w_flip = jnp.transpose(w_t[:, :, ::-1, ::-1], (2, 3, 0, 1))      # (4, 4, Cin, Cout)
    # kh = 2*dh + ph, kw = 2*dw + pw
    w6 = w_flip.reshape(2, 2, 2, 2, C_IN, C_OUT)                     # [dh, ph, dw, pw, ci, co]
    # Pack both width parities into one N=128 RHS with 3 zero-padded width taps:
    #   pw=0 uses taps t = dw      (t in {0,1}), tap 2 zero
    #   pw=1 uses taps t = dw + 1  (t in {1,2}), tap 0 zero
    wf = jnp.zeros((2, 2, K_TAPS, C_IN, 2, C_OUT), jnp.float32)      # [ph, dh, t, ci, pw, co]
    for ph in range(2):
        for dh in range(2):
            for dw in range(2):
                wf = wf.at[ph, dh, dw, :, 0, :].set(w6[dh, ph, dw, 0])
                wf = wf.at[ph, dh, dw + 1, :, 1, :].set(w6[dh, ph, dw, 1])
    wf = wf.reshape(2, 2, K_DIM, N_DIM)
    bias2 = jnp.concatenate([b, b]).reshape(1, N_DIM)                # [pw*C_OUT + co]
    return wf, bias2


# ----------------------------------------------------------------- module glue
@jax.jit
def model_forward(x_nchw, wf, bias2):
    """x_nchw: (1, C_IN, 16, 16); wf/bias2 from prepare_params."""
    # NCHW -> HWC, pad H/W by (1 low, 2 high):  xp[p, q] = x[p-1, q-1] (zeros outside)
    x_hwc = jnp.transpose(x_nchw[0], (1, 2, 0))                      # (16, 16, 128)
    xp = jnp.pad(x_hwc, ((1, 2), (1, 2), (0, 0)))                    # (19, 19, 128)

    out_k = convt_silu_pallas(xp, wf, bias2)                         # (2, 408, 128)

    # De-interleave parities:  out[c, 2m+ph, 2n+pw] = out_k[ph, m*24+n, pw*64+c]
    out5 = out_k.reshape(2, HALF, N_PAD, 2, C_OUT)[:, :, :HALF]      # (2, 17, 17, 2, 64)
    out_chw = jnp.transpose(out5, (4, 1, 0, 2, 3)).reshape(C_OUT, H_OUT, W_OUT)
    return out_chw[None]                                             # (1, 64, 34, 34)


# ----------------------------------------------------------------- pure-JAX ref
def model_forward_ref(x_nchw, w_t, b):
    x_hwc = jnp.transpose(x_nchw[0], (1, 2, 0))
    x_up = jnp.zeros((H_UP, H_UP, C_IN), x_hwc.dtype)
    x_up = x_up.at[::STRIDE, ::STRIDE].set(x_hwc)
    x_pad = jnp.pad(x_up, ((PAD_LO, PAD_HI), (PAD_LO, PAD_HI), (0, 0)))
    w_conv = jnp.transpose(w_t[:, :, ::-1, ::-1], (2, 3, 0, 1))
    v1 = jax.lax.conv_general_dilated(
        x_pad[None], w_conv, window_strides=(1, 1), padding="VALID",
        dimension_numbers=("NHWC", "HWIO", "NHWC"))[0] + b[None, None, :]
    v3 = v1 * jax.nn.sigmoid(v1)
    return jnp.transpose(v3, (2, 0, 1))[None]


if __name__ == "__main__":
    key = jax.random.PRNGKey(0)
    kx, kw, kb = jax.random.split(key, 3)

    x = jax.random.normal(kx, (1, C_IN, H_IN, W_IN), dtype=jnp.float32)
    # deterministic synthetic parameters (ConvTranspose2d weight layout: (in, out, kH, kW))
    w_t = jax.random.normal(kw, (C_IN, C_OUT, K, K), dtype=jnp.float32) * 0.05
    b = jax.random.normal(kb, (C_OUT,), dtype=jnp.float32) * 0.05

    # one-time weight/bias prep (hoisted out of the forward pass)
    wf, bias2 = prepare_params(w_t, b)
    wf = jax.block_until_ready(wf)
    bias2 = jax.block_until_ready(bias2)

    out = jax.block_until_ready(model_forward(x, wf, bias2))
    ref = jax.block_until_ready(model_forward_ref(x, w_t, b))

    assert out.shape == (1, C_OUT, H_OUT, W_OUT), out.shape
    err = float(jnp.max(jnp.abs(out - ref)))
    assert jnp.allclose(out, ref, atol=1e-3, rtol=1e-3), err
    print("KERNEL_OK")
</pallas_src>

<mosaic_0001>
module attributes {stable_mosaic.version = 11 : i64} {
  func.func @convt_silu_kernel(%arg0: i32, %arg1: memref<19x19x128xf32, #tpu.memory_space<vmem>>, %arg2: memref<2x2x384x128xf32, #tpu.memory_space<vmem>>, %arg3: memref<1x128xf32, #tpu.memory_space<vmem>>, %arg4: memref<2x408x128xf32, #tpu.memory_space<vmem>>, %arg5: memref<19x24x384xf32, #tpu.memory_space<vmem>>) attributes {dimension_semantics = [#tpu.dimension_semantics<arbitrary>], iteration_bounds = array<i64: 1>, scalar_prefetch = 0 : i64, scratch_operands = 1 : i64, tpu.core_type = #tpu.core_type<tc>, window_params = [{pipeline_mode = #tpu.pipeline_mode<synchronous>, transform_indices = @transform_0, window_bounds = array<i64: 19, 19, 128>}, {pipeline_mode = #tpu.pipeline_mode<synchronous>, transform_indices = @transform_1, window_bounds = array<i64: 2, 2, 384, 128>}, {pipeline_mode = #tpu.pipeline_mode<synchronous>, transform_indices = @transform_2, window_bounds = array<i64: 1, 128>}, {pipeline_mode = #tpu.pipeline_mode<synchronous>, transform_indices = @transform_3, window_bounds = array<i64: 2, 408, 128>}]} {
    %cst = arith.constant 0.000000e+00 : f32
    %0 = vector.broadcast %cst : f32 to vector<19x24x384xf32>
    %c0 = arith.constant 0 : index
    %c0_0 = arith.constant 0 : index
    %c0_1 = arith.constant 0 : index
    %1 = vector.load %arg5[%c0, %c0_0, %c0_1] : memref<19x24x384xf32, #tpu.memory_space<vmem>>, vector<19x24x384xf32>
    tpu.vector_store %arg5[%c0, %c0_0, %c0_1], %0 {strides = array<i32>} : memref<19x24x384xf32, #tpu.memory_space<vmem>>, vector<19x24x384xf32>,
    %c0_2 = arith.constant 0 : index
    %c0_3 = arith.constant 0 : index
    %c0_4 = arith.constant 0 : index
    %2 = vector.load %arg1[%c0_2, %c0_3, %c0_4] : memref<19x19x128xf32, #tpu.memory_space<vmem>>, vector<19x17x128xf32>
    %c0_5 = arith.constant 0 : index
    %c0_6 = arith.constant 0 : index
    %c0_7 = arith.constant 0 : index
    %3 = vector.load %arg5[%c0_5, %c0_6, %c0_7] : memref<19x24x384xf32, #tpu.memory_space<vmem>>, vector<19x17x128xf32>
    tpu.vector_store %arg5[%c0_5, %c0_6, %c0_7], %2 {strides = array<i32>} : memref<19x24x384xf32, #tpu.memory_space<vmem>>, vector<19x17x128xf32>,
    %c0_8 = arith.constant 0 : index
    %c1 = arith.constant 1 : index
    %c0_9 = arith.constant 0 : index
    %4 = vector.load %arg1[%c0_8, %c1, %c0_9] : memref<19x19x128xf32, #tpu.memory_space<vmem>>, vector<19x17x128xf32>
    %c0_10 = arith.constant 0 : index
    %c0_11 = arith.constant 0 : index
    %c128 = arith.constant 128 : index
    %5 = vector.load %arg5[%c0_10, %c0_11, %c128] : memref<19x24x384xf32, #tpu.memory_space<vmem>>, vector<19x17x128xf32>
    tpu.vector_store %arg5[%c0_10, %c0_11, %c128], %4 {strides = array<i32>} : memref<19x24x384xf32, #tpu.memory_space<vmem>>, vector<19x17x128xf32>,
    %c0_12 = arith.constant 0 : index
    %c2 = arith.constant 2 : index
    %c0_13 = arith.constant 0 : index
    %6 = vector.load %arg1[%c0_12, %c2, %c0_13] : memref<19x19x128xf32, #tpu.memory_space<vmem>>, vector<19x17x128xf32>
    %c0_14 = arith.constant 0 : index
    %c0_15 = arith.constant 0 : index
    %c256 = arith.constant 256 : index
    %7 = vector.load %arg5[%c0_14, %c0_15, %c256] : memref<19x24x384xf32, #tpu.memory_space<vmem>>, vector<19x17x128xf32>
    tpu.vector_store %arg5[%c0_14, %c0_15, %c256], %6 {strides = array<i32>} : memref<19x24x384xf32, #tpu.memory_space<vmem>>, vector<19x17x128xf32>,
    %c0_16 = arith.constant 0 : index
    %c0_17 = arith.constant 0 : index
    %8 = vector.load %arg3[%c0_16, %c0_17] : memref<1x128xf32, #tpu.memory_space<vmem>>, vector<1x128xf32>
    %cst_18 = arith.constant 0.000000e+00 : f32
    %9 = vector.broadcast %cst_18 : f32 to vector<408x128xf32>
    %c0_19 = arith.constant 0 : index
    %c0_20 = arith.constant 0 : index
    %c0_21 = arith.constant 0 : index
    %10 = vector.load %arg5[%c0_19, %c0_20, %c0_21] : memref<19x24x384xf32, #tpu.memory_space<vmem>>, vector<17x24x384xf32>
    %11 = vector.shape_cast %10 : vector<17x24x384xf32> to vector<408x384xf32>
    %c0_22 = arith.constant 0 : index
    %c0_23 = arith.constant 0 : index
    %c0_24 = arith.constant 0 : index
    %c0_25 = arith.constant 0 : index
    %12 = vector.load %arg2[%c0_22, %c0_23, %c0_24, %c0_25] : memref<2x2x384x128xf32, #tpu.memory_space<vmem>>, vector<1x1x384x128xf32>
    %13 = vector.shape_cast %12 : vector<1x1x384x128xf32> to vector<384x128xf32>
    %cst_26 = arith.constant dense<0.000000e+00> : vector<408x128xf32>
    %14 = tpu.matmul %11, %13, %cst_26 {dimension_numbers = #tpu.dot_dimension_numbers<[1], [0], [0], [1], [0, 0, 1, 1], [], []>} : vector<408x384xf32>, vector<384x128xf32>, vector<408x128xf32> -> vector<408x128xf32>
    %15 = arith.addf %9, %14 : vector<408x128xf32>
    %c1_27 = arith.constant 1 : index
    %c0_28 = arith.constant 0 : index
    %c0_29 = arith.constant 0 : index
    %16 = vector.load %arg5[%c1_27, %c0_28, %c0_29] : memref<19x24x384xf32, #tpu.memory_space<vmem>>, vector<17x24x384xf32>
    %17 = vector.shape_cast %16 : vector<17x24x384xf32> to vector<408x384xf32>
    %c0_30 = arith.constant 0 : index
    %c1_31 = arith.constant 1 : index
    %c0_32 = arith.constant 0 : index
    %c0_33 = arith.constant 0 : index
    %18 = vector.load %arg2[%c0_30, %c1_31, %c0_32, %c0_33] : memref<2x2x384x128xf32, #tpu.memory_space<vmem>>, vector<1x1x384x128xf32>
    %19 = vector.shape_cast %18 : vector<1x1x384x128xf32> to vector<384x128xf32>
    %cst_34 = arith.constant dense<0.000000e+00> : vector<408x128xf32>
    %20 = tpu.matmul %17, %19, %cst_34 {dimension_numbers = #tpu.dot_dimension_numbers<[1], [0], [0], [1], [0, 0, 1, 1], [], []>} : vector<408x384xf32>, vector<384x128xf32>, vector<408x128xf32> -> vector<408x128xf32>
    %21 = arith.addf %15, %20 : vector<408x128xf32>
    %22 = vector.broadcast %8 : vector<1x128xf32> to vector<408x128xf32>
    %23 = arith.addf %21, %22 : vector<408x128xf32>
    %24 = arith.negf %23 : vector<408x128xf32>
    %25 = math.exp %24 : vector<408x128xf32>
    %cst_35 = arith.constant 1.000000e+00 : f32
    %26 = vector.broadcast %cst_35 : f32 to vector<408x128xf32>
    %27 = arith.addf %26, %25 : vector<408x128xf32>
    %28 = arith.divf %26, %27 : vector<408x128xf32>
    %29 = arith.mulf %23, %28 : vector<408x128xf32>
    %c0_36 = arith.constant 0 : index
    %c0_37 = arith.constant 0 : index
    %c0_38 = arith.constant 0 : index
    %30 = vector.load %arg4[%c0_36, %c0_37, %c0_38] : memref<2x408x128xf32, #tpu.memory_space<vmem>>, vector<1x408x128xf32>
    %31 = vector.shape_cast %30 : vector<1x408x128xf32> to vector<408x128xf32>
    %32 = vector.shape_cast %29 : vector<408x128xf32> to vector<1x408x128xf32>
    tpu.vector_store %arg4[%c0_36, %c0_37, %c0_38], %32 {strides = array<i32>} : memref<2x408x128xf32, #tpu.memory_space<vmem>>, vector<1x408x128xf32>,
    %cst_39 = arith.constant 0.000000e+00 : f32
    %33 = vector.broadcast %cst_39 : f32 to vector<408x128xf32>
    %c1_40 = arith.constant 1 : index
    %c0_41 = arith.constant 0 : index
    %c0_42 = arith.constant 0 : index
    %34 = vector.load %arg5[%c1_40, %c0_41, %c0_42] : memref<19x24x384xf32, #tpu.memory_space<vmem>>, vector<17x24x384xf32>
    %35 = vector.shape_cast %34 : vector<17x24x384xf32> to vector<408x384xf32>
    %c1_43 = arith.constant 1 : index
    %c0_44 = arith.constant 0 : index
    %c0_45 = arith.constant 0 : index
    %c0_46 = arith.constant 0 : index
    %36 = vector.load %arg2[%c1_43, %c0_44, %c0_45, %c0_46] : memref<2x2x384x128xf32, #tpu.memory_space<vmem>>, vector<1x1x384x128xf32>
    %37 = vector.shape_cast %36 : vector<1x1x384x128xf32> to vector<384x128xf32>
    %cst_47 = arith.constant dense<0.000000e+00> : vector<408x128xf32>
    %38 = tpu.matmul %35, %37, %cst_47 {dimension_numbers = #tpu.dot_dimension_numbers<[1], [0], [0], [1], [0, 0, 1, 1], [], []>} : vector<408x384xf32>, vector<384x128xf32>, vector<408x128xf32> -> vector<408x128xf32>
    %39 = arith.addf %33, %38 : vector<408x128xf32>
    %c2_48 = arith.constant 2 : index
    %c0_49 = arith.constant 0 : index
    %c0_50 = arith.constant 0 : index
    %40 = vector.load %arg5[%c2_48, %c0_49, %c0_50] : memref<19x24x384xf32, #tpu.memory_space<vmem>>, vector<17x24x384xf32>
    %41 = vector.shape_cast %40 : vector<17x24x384xf32> to vector<408x384xf32>
    %c1_51 = arith.constant 1 : index
    %c1_52 = arith.constant 1 : index
    %c0_53 = arith.constant 0 : index
    %c0_54 = arith.constant 0 : index
    %42 = vector.load %arg2[%c1_51, %c1_52, %c0_53, %c0_54] : memref<2x2x384x128xf32, #tpu.memory_space<vmem>>, vector<1x1x384x128xf32>
    %43 = vector.shape_cast %42 : vector<1x1x384x128xf32> to vector<384x128xf32>
    %cst_55 = arith.constant dense<0.000000e+00> : vector<408x128xf32>
    %44 = tpu.matmul %41, %43, %cst_55 {dimension_numbers = #tpu.dot_dimension_numbers<[1], [0], [0], [1], [0, 0, 1, 1], [], []>} : vector<408x384xf32>, vector<384x128xf32>, vector<408x128xf32> -> vector<408x128xf32>
    %45 = arith.addf %39, %44 : vector<408x128xf32>
    %46 = vector.broadcast %8 : vector<1x128xf32> to vector<408x128xf32>
    %47 = arith.addf %45, %46 : vector<408x128xf32>
    %48 = arith.negf %47 : vector<408x128xf32>
    %49 = math.exp %48 : vector<408x128xf32>
    %cst_56 = arith.constant 1.000000e+00 : f32
    %50 = vector.broadcast %cst_56 : f32 to vector<408x128xf32>
    %51 = arith.addf %50, %49 : vector<408x128xf32>
    %52 = arith.divf %50, %51 : vector<408x128xf32>
    %53 = arith.mulf %47, %52 : vector<408x128xf32>
    %c1_57 = arith.constant 1 : index
    %c0_58 = arith.constant 0 : index
    %c0_59 = arith.constant 0 : index
    %54 = vector.load %arg4[%c1_57, %c0_58, %c0_59] : memref<2x408x128xf32, #tpu.memory_space<vmem>>, vector<1x408x128xf32>
    %55 = vector.shape_cast %54 : vector<1x408x128xf32> to vector<408x128xf32>
    %56 = vector.shape_cast %53 : vector<408x128xf32> to vector<1x408x128xf32>
    tpu.vector_store %arg4[%c1_57, %c0_58, %c0_59], %56 {strides = array<i32>} : memref<2x408x128xf32, #tpu.memory_space<vmem>>, vector<1x408x128xf32>,
    return
  }
  func.func @transform_0(%arg0: i32) -> (i32, i32, i32) {
    %c0_i32 = arith.constant 0 : i32
    %c0_i32_0 = arith.constant 0 : i32
    %c0_i32_1 = arith.constant 0 : i32
    %c0_i32_2 = arith.constant 0 : i32
    return %c0_i32, %c0_i32_0, %c0_i32_1 : i32, i32, i32
  }
  func.func @transform_1(%arg0: i32) -> (i32, i32, i32, i32) {
    %c0_i32 = arith.constant 0 : i32
    %c0_i32_0 = arith.constant 0 : i32
    %c0_i32_1 = arith.constant 0 : i32
    %c0_i32_2 = arith.constant 0 : i32
    %c0_i32_3 = arith.constant 0 : i32
    return %c0_i32, %c0_i32_0, %c0_i32_1, %c0_i32_2 : i32, i32, i32, i32
  }
  func.func @transform_2(%arg0: i32) -> (i32, i32) {
    %c0_i32 = arith.constant 0 : i32
    %c0_i32_0 = arith.constant 0 : i32
    %c0_i32_1 = arith.constant 0 : i32
    return %c0_i32, %c0_i32_0 : i32, i32
  }
  func.func @transform_3(%arg0: i32) -> (i32, i32, i32) {
    %c0_i32 = arith.constant 0 : i32
    %c0_i32_0 = arith.constant 0 : i32
    %c0_i32_1 = arith.constant 0 : i32
    %c0_i32_2 = arith.constant 0 : i32
    return %c0_i32, %c0_i32_0, %c0_i32_1 : i32, i32, i32
  }
}

</mosaic_0001>

<bundles_post_ra>
// kernel: model_forward.1
= control target key start
LH: loop header
LB: loop body
LE: loop exit
PB: predicated region body
PF: predicated region fallthrough
CT: control target
= control target key end

     0   :  { %8 = vsyncpa [#allocation4], 0  ;;  %s6500_s12 = smov [#allocation3]   ;;  %s9904_s0 = inlined_call_operand.vmem [shape: f32[19,19,128], index: 0, kind: input, shape index: {}]   ;;  %s9905_s1 = inlined_call_operand.hbm [shape: f32[2,2,384,128], index: 1, kind: input, shape index: {}]   ;;  %s9906_s2 = inlined_call_operand.vmem [shape: f32[1,128], index: 2, kind: input, shape index: {}]   ;;  %s9907_s3 = inlined_call_operand.vmem [shape: f32[2,408,128], index: 3, kind: output, shape index: {}]  }
   0x1   :  { %s16_s13 = sshll.u32 %s6500_s12, 4  ;;  %s17_s13 = int_to_ptr.vmem [resolvable:$true] %s16_s13 }
   0x2   :  { %s6486_s14 = scalar_lea.vmem %s17_s13, 24576  ;;  %p6491_p1 = scmp.lt.s32.totalorder %s17_s13, %s17_s13 }
   0x3   :  { %p6487_p0 = scmp.ne.s32.totalorder %s17_s13, %s6486_s14  ;;  %p6492_p2 = scmp.lt.s32.totalorder %s6486_s14, %s6486_s14 }
   0x5   :  { %p6493_p3 = por %p6492_p2, %p6491_p1 }
   0x7   :  { %p6494_p4 = pnand %p6493_p3, %p6487_p0 }
   0x9   :  { %6497 = shalt.err (!%p6494_p4)
}
   0xa   :  { %s6501_s15 = smov 128   ;;  %s6502_s16 = smov 8  }
   0xb   :  { %22 = dma.hbm_to_vmem [thread:$0]  %s9905_s1, 24576, %s17_s13, [#allocation4], %s6501_s15, %s6501_s15, %s6502_s16  }
   0xc   :  { %6498 = dma.done.wait [#allocation4], 24576  }
   0xd   :  { %6499 = vsyncadd [#allocation4], 4294942720  ;;  %v9909_v0 = vmov 0.0   ;;  %vm6504_vm0 = vmmov 0   ;;  %v913_v1 = vld [vmem:[#allocation3 + $0x1f8] sm:$0xff]  ;;  %v912_v3 = vld [vmem:[#allocation3 + $0x1f0] sm:$0xff] }
   0xe   :  { %946 = vmatprep.subr.mxu0 %v9909_v0  ;;  %34 = vst [vmem:[#allocation2 + $0x440] sm:$0xff] %v9909_v0  ;;  %35 = vst [vmem:[#allocation2 + $0x378] sm:$0xff] %v9909_v0  ;;  %5263 = vmatprep.subr.mxu1 %v9909_v0  ;;  %v945_v2 = vld [vmem:[#allocation3 + $0x2f8] sm:$0xff]  ;;  %v944_v4 = vld [vmem:[#allocation3 + $0x2f0] sm:$0xff] }
   0xf   :  { %36 = vst [vmem:[#allocation2 + $0x108] sm:$0xff] %v9909_v0  ;;  %43 = vst [vmem:[#allocation2 + $0x2b8] sm:$0xff] %v9909_v0  ;;  %5295 = vmatprep.mubr.msk.f32.mxu1 %vm6504_vm0, %v9909_v0  ;;  %947 = vmatpush1.msra.mxu0 %v913_v1  ;;  %v911_v5 = vld [vmem:[#allocation3 + $0x1e8] sm:$0xff]  ;;  %v910_v7 = vld [vmem:[#allocation3 + $0x1e0] sm:$0xff] }
  0x10   :  { %44 = vst [vmem:[#allocation2 + $0x530] sm:$0xff] %v9909_v0  ;;  %45 = vst [vmem:[#allocation2 + $0x8] sm:$0xff] %v9909_v0  ;;  %5264 = vmatpush3.msra.mxu1 %v945_v2  ;;  %948 = vmatprep.subr.mxu0 %v9909_v0  ;;  %v943_v6 = vld [vmem:[#allocation3 + $0x2e8] sm:$0xff]  ;;  %v942_v8 = vld [vmem:[#allocation3 + $0x2e0] sm:$0xff] }
  0x11   :  { %52 = vst [vmem:[#allocation2 + $0x38] sm:$0xff] %v9909_v0  ;;  %53 = vst [vmem:[#allocation2 + $0x48] sm:$0xff] %v9909_v0  ;;  %5265 = vmatprep.subr.mxu1 %v9909_v0  ;;  %949 = vmatpush1.msra.mxu0 %v912_v3  ;;  %v909_v9 = vld [vmem:[#allocation3 + $0x1d8] sm:$0xff]  ;;  %v908_v11 = vld [vmem:[#allocation3 + $0x1d0] sm:$0xff] }
  0x12   :  { %54 = vst [vmem:[#allocation2 + $0x398] sm:$0xff] %v9909_v0  ;;  %61 = vst [vmem:[#allocation2 + $0x1c0] sm:$0xff] %v9909_v0  ;;  %5266 = vmatpush3.msra.mxu1 %v944_v4  ;;  %950 = vmatprep.subr.mxu0 %v9909_v0  ;;  %v941_v10 = vld [vmem:[#allocation3 + $0x2d8] sm:$0xff]  ;;  %v940_v12 = vld [vmem:[#allocation3 + $0x2d0] sm:$0xff] }
  0x13   :  { %62 = vst [vmem:[#allocation2 + $0x78] sm:$0xff] %v9909_v0  ;;  %63 = vst [vmem:[#allocation2 + $0x390] sm:$0xff] %v9909_v0  ;;  %5267 = vmatprep.subr.mxu1 %v9909_v0  ;;  %951 = vmatpush1.msra.mxu0 %v911_v5  ;;  %v907_v13 = vld [vmem:[#allocation3 + $0x1c8] sm:$0xff]  ;;  %v906_v16 = vld [vmem:[#allocation3 + $0x1c0] sm:$0xff] }
  0x14   :  { %70 = vst [vmem:[#allocation2 + $0x2e8] sm:$0xff] %v9909_v0  ;;  %71 = vst [vmem:[#allocation2 + $0x50] sm:$0xff] %v9909_v0  ;;  %5268 = vmatpush3.msra.mxu1 %v943_v6  ;;  %952 = vmatprep.subr.mxu0 %v9909_v0  ;;  %v939_v14 = vld [vmem:[#allocation3 + $0x2c8] sm:$0xff]  ;;  %v938_v17 = vld [vmem:[#allocation3 + $0x2c0] sm:$0xff] }
  0x15   :  { %72 = vst [vmem:[#allocation2 + $0x200] sm:$0xff] %v9909_v0  ;;  %79 = vst [vmem:[#allocation2 + $0x248] sm:$0xff] %v9909_v0  ;;  %5269 = vmatprep.subr.mxu1 %v9909_v0  ;;  %953 = vmatpush1.msra.mxu0 %v910_v7  ;;  %v6602_v15 = vld [vmem:[%s9904_s0 + $0x1a] sm:$0xff]  ;;  %v6610_v18 = vld [vmem:[%s9904_s0 + $0x22] sm:$0xff] }
  0x16   :  { %80 = vst [vmem:[#allocation2 + $0x550] sm:$0xff] %v9909_v0  ;;  %81 = vst [vmem:[#allocation2 + $0x1a0] sm:$0xff] %v9909_v0  ;;  %5270 = vmatpush3.msra.mxu1 %v942_v8  ;;  %954 = vmatprep.subr.mxu0 %v9909_v0  ;;  %v432_v19 = vld [vmem:[%s9904_s0 + $0x2a] sm:$0x1]  ;;  %v905_v20 = vld [vmem:[#allocation3 + $0x1b8] sm:$0xff] }
  0x17   :  { %88 = vst [vmem:[#allocation2 + $0x3f8] sm:$0xff] %v9909_v0  ;;  %89 = vst [vmem:[#allocation2 + $0x350] sm:$0xff] %v9909_v0  ;;  %5271 = vmatprep.subr.mxu1 %v9909_v0  ;;  %955 = vmatpush1.msra.mxu0 %v909_v9  ;;  %v937_v21 = vld [vmem:[#allocation3 + $0x2b8] sm:$0xff]  ;;  %v6627_v23 = vld [vmem:[%s9904_s0 + $0x3a] sm:$0xff] }
  0x18   :  { %90 = vst [vmem:[#allocation2 + $0x250] sm:$0xff] %v9909_v0  ;;  %97 = vst [vmem:[#allocation2 + $0x348] sm:$0xff] %v9909_v0  ;;  %5272 = vmatpush3.msra.mxu1 %v941_v10  ;;  %956 = vmatprep.subr.mxu0 %v9909_v0  ;;  %v6621_v22 = vld [vmem:[%s9904_s0 + $0x32] sm:$0xff]  ;;  %v904_v24 = vld [vmem:[#allocation3 + $0x1b0] sm:$0xff] }
  0x19   :  { %98 = vst [vmem:[#allocation2 + $0xf8] sm:$0xff] %v9909_v0  ;;  %99 = vst [vmem:[#allocation2 + $0x460] sm:$0xff] %v9909_v0  ;;  %5273 = vmatprep.subr.mxu1 %v9909_v0  ;;  %957 = vmatpush1.msra.mxu0 %v908_v11  ;;  %v936_v25 = vld [vmem:[#allocation3 + $0x2b0] sm:$0xff]  ;;  %v435_v26 = vld [vmem:[%s9904_s0 + $0x42] sm:$0x1] }
  0x1a   :  { %106 = vst [vmem:[#allocation2 + $0x4e8] sm:$0xff] %v9909_v0  ;;  %107 = vst [vmem:[#allocation2 + $0x10] sm:$0xff] %v9909_v0  ;;  %5274 = vmatpush3.msra.mxu1 %v940_v12  ;;  %958 = vmatprep.subr.mxu0 %v9909_v0  ;;  %v903_v27 = vld [vmem:[#allocation3 + $0x1a8] sm:$0xff]  ;;  %v6640_v29 = vld [vmem:[%s9904_s0 + $0x4a] sm:$0xff] }
  0x1b   :  { %108 = vst [vmem:[#allocation2 + $0x418] sm:$0xff] %v9909_v0  ;;  %115 = vst [vmem:[#allocation2 + $0x458] sm:$0xff] %v9909_v0  ;;  %5275 = vmatprep.subr.mxu1 %v9909_v0  ;;  %959 = vmatpush1.msra.mxu0 %v907_v13  ;;  %v935_v28 = vld [vmem:[#allocation3 + $0x2a8] sm:$0xff]  ;;  %v902_v30 = vld [vmem:[#allocation3 + $0x1a0] sm:$0xff] }
  0x1c   :  { %116 = vst [vmem:[#allocation2 + $0x2c0] sm:$0xff] %v9909_v0  ;;  %117 = vst [vmem:[#allocation2 + $0x2e0] sm:$0xff] %v9909_v0  ;;  %5276 = vmatpush3.msra.mxu1 %v939_v14  ;;  %960 = vmatprep.subr.mxu0 %v9909_v0  ;;  %v6646_v31 = vld [vmem:[%s9904_s0 + $0x52] sm:$0xff]  ;;  %v438_v37 = vld [vmem:[%s9904_s0 + $0x5a] sm:$0x1] }
  0x1d   :  { %124 = vst [vmem:[#allocation2 + $0x158] sm:$0xff] %v9909_v0  ;;  %125 = vst [vmem:[#allocation2 + $0x1f8] sm:$0xff] %v9909_v0  ;;  %5277 = vmatprep.subr.mxu1 %v9909_v0  ;;  %961 = vmatpush1.msra.mxu0 %v906_v16  ;;  %v934_v32 = vld [vmem:[#allocation3 + $0x2a0] sm:$0xff]  ;;  %v901_v35 = vld [vmem:[#allocation3 + $0x198] sm:$0xff] }
  0x1e   :  { %126 = vst [vmem:[#allocation2 + $0x90] sm:$0xff] %v9909_v0  ;;  %133 = vst [vmem:[#allocation2 + $0x308] sm:$0xff] %v9909_v0  ;;  %5278 = vmatpush3.msra.mxu1 %v938_v17  ;;  %962 = vmatprep.subr.mxu0 %v9909_v0  ;;  %v6654_v33 = vld [vmem:[%s9904_s0 + $0x19] sm:$0xff]  ;;  %v933_v36 = vld [vmem:[#allocation3 + $0x298] sm:$0xff] }
  0x1f   :  { %134 = vst [vmem:[#allocation2 + $0x410] sm:$0xff] %v9909_v0  ;;  %135 = vst [vmem:[#allocation2 + $0x3e0] sm:$0xff] %v9909_v0  ;;  %5279 = vmatprep.subr.mxu1 %v9909_v0  ;;  %963 = vmatpush1.msra.mxu0 %v905_v20  ;;  %v6659_v34 = vld [vmem:[%s9904_s0 + $0x18] sm:$0xff]  ;;  %v900_v38 = vld [vmem:[#allocation3 + $0x190] sm:$0xff] }
  0x20   :  { %142 = vst [vmem:[#allocation2 + $0xc0] sm:$0xff] %v9909_v0  ;;  %143 = vst [vmem:[#allocation2 + $0x3e8] sm:$0xff] %v9909_v0  ;;  %5280 = vmatpush3.msra.mxu1 %v937_v21  ;;  %964 = vmatprep.subr.mxu0 %v9909_v0  ;;  %v6671_v39 = vld [vmem:[%s9904_s0 + $0x21] sm:$0xff]  ;;  %v318_v42 = vld [vmem:[%s9904_s0 + $0x29] sm:$0x1] }
  0x21   :  { %144 = vst [vmem:[#allocation2 + $0x218] sm:$0xff] %v9909_v0  ;;  %151 = vst [vmem:[#allocation2 + $0x4e0] sm:$0xff] %v9909_v0  ;;  %5281 = vmatprep.subr.mxu1 %v9909_v0  ;;  %965 = vmatpush1.msra.mxu0 %v904_v24  ;;  %v6676_v40 = vld [vmem:[%s9904_s0 + $0x20] sm:$0xff]  ;;  %v204_v43 = vld [vmem:[%s9904_s0 + $0x28] sm:$0x1] }
  0x22   :  { %152 = vst [vmem:[#allocation2 + $0xe8] sm:$0xff] %v9909_v0  ;;  %153 = vst [vmem:[#allocation2 + $0x40] sm:$0xff] %v9909_v0  ;;  %5282 = vmatpush3.msra.mxu1 %v936_v25  ;;  %966 = vmatprep.subr.mxu0 %v9909_v0  ;;  %v6683_v41 = vld [vmem:[%s9904_s0 + $0x62] sm:$0xff]  ;;  %v6697_v46 = vld [vmem:[%s9904_s0 + $0x6a] sm:$0xff] }
  0x23   :  { %160 = vst [vmem:[#allocation2 + $0x408] sm:$0xff] %v9909_v0  ;;  %161 = vst [vmem:[#allocation2 + $0x220] sm:$0xff] %v9909_v0  ;;  %5283 = vmatprep.subr.mxu1 %v9909_v0  ;;  %967 = vmatpush1.msra.mxu0 %v903_v27  ;;  %v932_v44 = vld [vmem:[#allocation3 + $0x290] sm:$0xff]  ;;  %v899_v45 = vld [vmem:[#allocation3 + $0x188] sm:$0xff] }
  0x24   :  { %162 = vst [vmem:[#allocation2 + $0x190] sm:$0xff] %v9909_v0  ;;  %169 = vst [vmem:[#allocation2 + $0x4c8] sm:$0xff] %v9909_v0  ;;  %5284 = vmatpush3.msra.mxu1 %v935_v28  ;;  %968 = vmatprep.subr.mxu0 %v9909_v0  ;;  %v6703_v47 = vld [vmem:[%s9904_s0 + $0x31] sm:$0xff]  ;;  %v931_v50 = vld [vmem:[#allocation3 + $0x288] sm:$0xff] }
  0x25   :  { %170 = vst [vmem:[#allocation2 + $0x4d0] sm:$0xff] %v9909_v0  ;;  %171 = vst [vmem:[#allocation2 + $0x4a8] sm:$0xff] %v9909_v0  ;;  %5285 = vmatprep.subr.mxu1 %v9909_v0  ;;  %969 = vmatpush1.msra.mxu0 %v902_v30  ;;  %v6708_v48 = vld [vmem:[%s9904_s0 + $0x30] sm:$0xff]  ;;  %v898_v51 = vld [vmem:[#allocation3 + $0x180] sm:$0xff] }
  0x26   :  { %178 = vst [vmem:[#allocation2 + $0x508] sm:$0xff] %v9909_v0  ;;  %179 = vst [vmem:[#allocation2 + $0x80] sm:$0xff] %v9909_v0  ;;  %5286 = vmatpush3.msra.mxu1 %v934_v32  ;;  %970 = vmatprep.subr.mxu0 %v9909_v0  ;;  %v441_v49 = vld [vmem:[%s9904_s0 + $0x72] sm:$0x1]  ;;  %v6720_v52 = vld [vmem:[%s9904_s0 + $0x39] sm:$0xff] }
  0x27   :  { %180 = vst [vmem:[#allocation2 + $0x120] sm:$0xff] %v9909_v0  ;;  %187 = vst [vmem:[#allocation2 + $0x2f0] sm:$0xff] %v9909_v0  ;;  %5287 = vmatprep.subr.mxu1 %v9909_v0  ;;  %971 = vmatpush1.msra.mxu0 %v901_v35  ;;  %v6726_v53 = vld [vmem:[%s9904_s0 + $0x38] sm:$0xff]  ;;  %v321_v55 = vld [vmem:[%s9904_s0 + $0x41] sm:$0x1] }
  0x28   :  { %188 = vst [vmem:[#allocation2 + $0x1b0] sm:$0xff] %v9909_v0  ;;  %189 = vst [vmem:[#allocation2 + $0x258] sm:$0xff] %v9909_v0  ;;  %5288 = vmatpush3.msra.mxu1 %v933_v36  ;;  %972 = vmatprep.subr.mxu0 %v9909_v0  ;;  %v6731_v54 = vld [vmem:[%s9904_s0 + $0x7a] sm:$0xff]  ;;  %v6746_v58 = vld [vmem:[%s9904_s0 + $0x82] sm:$0xff] }
  0x29   :  { %196 = vst [vmem:[#allocation2 + $0x280] sm:$0xff] %v9909_v0  ;;  %197 = vst [vmem:[#allocation2 + $0x208] sm:$0xff] %v9909_v0  ;;  %5289 = vmatprep.subr.mxu1 %v9909_v0  ;;  %973 = vmatpush1.msra.mxu0 %v900_v38  ;;  %v930_v56 = vld [vmem:[#allocation3 + $0x280] sm:$0xff]  ;;  %v207_v57 = vld [vmem:[%s9904_s0 + $0x40] sm:$0x1] }
  0x2a   :  { %198 = vst [vmem:[#allocation2 + $0x518] sm:$0xff] %v9909_v0  ;;  %487 = vst [vmem:[#allocation2 + $0x318] sm:$0xff] %v6602_v15  ;;  %5290 = vmatpush3.msra.mxu1 %v932_v44  ;;  %974 = vmatprep.subr.mxu0 %v9909_v0  ;;  %v6752_v59 = vld [vmem:[%s9904_s0 + $0x49] sm:$0xff]  ;;  %v6769_v63 = vld [vmem:[%s9904_s0 + $0x51] sm:$0xff] }
  0x2b   :  { %488 = vst [vmem:[#allocation2 + $0x58] sm:$0xff] %v6610_v18  ;;  %489 = vst [vmem:[#allocation2 + $0x8] sm:$0x1] %v432_v19  ;;  %5291 = vmatprep.subr.mxu1 %v9909_v0  ;;  %975 = vmatpush1.msra.mxu0 %v899_v45  ;;  %v6757_v60 = vld [vmem:[%s9904_s0 + $0x48] sm:$0xff]  ;;  %v929_v61 = vld [vmem:[#allocation3 + $0x278] sm:$0xff] }
  0x2c   :  { %490 = vst [vmem:[#allocation2 + $0x3a0] sm:$0xff] %v6621_v22  ;;  %491 = vst [vmem:[#allocation2 + $0xb8] sm:$0xff] %v6627_v23  ;;  %5292 = vmatpush3.msra.mxu1 %v931_v50  ;;  %976 = vmatprep.subr.mxu0 %v9909_v0  ;;  %v444_v62 = vld [vmem:[%s9904_s0 + $0x8a] sm:$0x1]  ;;  %v710_v1 = vld [vmem:[#allocation3 + $0x78] sm:$0xff] }
  0x2d   :  { %492 = vst [vmem:[#allocation2 + $0x398] sm:$0x1] %v435_v26  ;;  %493 = vst [vmem:[#allocation2 + $0x3a8] sm:$0xff] %v6640_v29  ;;  %5293 = vmatprep.subr.mxu1 %v9909_v0  ;;  %977 = vmatpush1.msra.mxu0 %v898_v51  ;;  %v928_v2 = vld [vmem:[#allocation3 + $0x270] sm:$0xff]  ;;  %v6777_v3 = vld [vmem:[%s9904_s0 + $0x50] sm:$0xff] }
  0x2e   :  { %494 = vst [vmem:[#allocation2 + $0x498] sm:$0xff] %v6646_v31  ;;  %373 = vst [vmem:[#allocation2 + $0x490] sm:$0xff] %v6654_v33  ;;  %5294 = vmatpush3.msra.mxu1 %v930_v56  ;;  %978 = vmatprep.subr.mxu0 %v9909_v0  ;;  %v6782_v4 = vld [vmem:[%s9904_s0 + $0x92] sm:$0xff]  ;;  %v6796_v7 = vld [vmem:[%s9904_s0 + $0x9a] sm:$0xff] }
  0x2f   :  { %259 = vst [vmem:[#allocation2 + $0x510] sm:$0xff] %v6659_v34  ;;  %495 = vst [vmem:[#allocation2 + $0x390] sm:$0x1] %v438_v37  ;;  %5296 = vmatmul.mubr.f32.vlgmr.msra.gmra.mxu1 %v6602_v15  ;;  %v324_v5 = vld [vmem:[%s9904_s0 + $0x59] sm:$0x1]  ;;  %1586 = vmatprep.subr.mxu1 %v9909_v0  ;;  %v927_v8 = vld [vmem:[#allocation3 + $0x268] sm:$0xff] }
  0x30   :  { %374 = vst [vmem:[#allocation2 + $0x500] sm:$0xff] %v6671_v39  ;;  %260 = vst [vmem:[#allocation2 + $0x548] sm:$0xff] %v6676_v40  ;;  %979 = vmatpush2.msra.mxu0 %v929_v61  ;;  %v210_v6 = vld [vmem:[%s9904_s0 + $0x58] sm:$0x1]  ;;  %1587 = vmatpush1.msra.mxu1 %v710_v1  ;;  %v6803_v9 = vld [vmem:[%s9904_s0 + $0x61] sm:$0xff] }
  0x31   :  { %496 = vst [vmem:[#allocation2 + $0x268] sm:$0xff] %v6683_v41  ;;  %375 = vst [vmem:[#allocation2 + $0x530] sm:$0x1] %v318_v42  ;;  %980 = vmatprep.subr.mxu0 %v9909_v0  ;;  %v6808_v10 = vld [vmem:[%s9904_s0 + $0x60] sm:$0xff]  ;;  %5298 = vmatprep.mubr.msk.f32.mxu1 %vm6504_vm0, %v9909_v0  ;;  %v926_v11 = vld [vmem:[#allocation3 + $0x260] sm:$0xff] }
  0x32   :  { %261 = vst [vmem:[#allocation2 + $0x2b8] sm:$0x1] %v204_v43  ;;  %497 = vst [vmem:[#allocation2 + $0xd8] sm:$0xff] %v6697_v46  ;;  %981 = vmatpush2.msra.mxu0 %v928_v2  ;;  %v447_v12 = vld [vmem:[%s9904_s0 + $0xa2] sm:$0x1]  ;;  %v6820_v13 = vld [vmem:[%s9904_s0 + $0x69] sm:$0xff]  ;;  %1588 = vmatprep.subr.mxu1 %v9909_v0 }
  0x33   :  { %376 = vst [vmem:[#allocation2 + $0xf0] sm:$0xff] %v6703_v47  ;;  %262 = vst [vmem:[#allocation2 + $0x320] sm:$0xff] %v6708_v48  ;;  %982 = vmatprep.subr.mxu0 %v9909_v0  ;;  %5299 = vmatmul.mubr.f32.gmra.mxu1 %v6610_v18  ;;  %v709_v14 = vld [vmem:[#allocation3 + $0x70] sm:$0xff]  ;;  %v327_v18 = vld [vmem:[%s9904_s0 + $0x71] sm:$0x1] }
  0x34   :  { %498 = vst [vmem:[#allocation2 + $0x200] sm:$0x1] %v441_v49  ;;  %377 = vst [vmem:[#allocation2 + $0x238] sm:$0xff] %v6720_v52  ;;  %v6828_v15 = vld [vmem:[%s9904_s0 + $0x68] sm:$0xff]  ;;  %983 = vmatpush2.msra.mxu0 %v927_v8  ;;  %5301 = vmatprep.mubr.msk.f32.mxu1 %vm6504_vm0, %v9909_v0  ;;  %v925_v19 = vld [vmem:[#allocation3 + $0x258] sm:$0xff] }
  0x35   :  { %263 = vst [vmem:[#allocation2 + $0x178] sm:$0xff] %v6726_v53  ;;  %499 = vst [vmem:[#allocation2 + $0x4c0] sm:$0xff] %v6731_v54  ;;  %v6833_v16 = vld [vmem:[%s9904_s0 + $0xaa] sm:$0xff]  ;;  %984 = vmatprep.subr.mxu0 %v9909_v0  ;;  %v6850_v21 = vld [vmem:[%s9904_s0 + $0xb2] sm:$0xff]  ;;  %1589 = vmatpush1.msra.mxu1 %v709_v14 }
  0x36   :  { %378 = vst [vmem:[#allocation2 + $0x48] sm:$0x1] %v321_v55  ;;  %264 = vst [vmem:[#allocation2 + $0x38] sm:$0x1] %v207_v57  ;;  %v752_v17 = vld [vmem:[#allocation2 + $0x8] sm:$0xff]  ;;  %985 = vmatpush2.msra.mxu0 %v926_v11  ;;  %v6856_v25 = vld [vmem:[%s9904_s0 + $0x79] sm:$0xff]  ;;  %1590 = vmatprep.subr.mxu1 %v9909_v0 }
  0x37   :  { %500 = vst [vmem:[#allocation2 + $0x240] sm:$0xff] %v6746_v58  ;;  %379 = vst [vmem:[#allocation2 + $0x4b8] sm:$0xff] %v6752_v59  ;;  %v213_v20 = vld [vmem:[%s9904_s0 + $0x70] sm:$0x1]  ;;  %v924_v24 = vld [vmem:[#allocation3 + $0x250] sm:$0xff]  ;;  %986 = vmatprep.subr.mxu0 %v9909_v0  ;;  %5302 = vmatmul.mubr.f32.gmra.mxu1 %v752_v17 }
  0x38   :  { %265 = vst [vmem:[#allocation2 + $0x470] sm:$0xff] %v6757_v60  ;;  %501 = vst [vmem:[#allocation2 + $0x1a0] sm:$0x1] %v444_v62  ;;  %v6861_v26 = vld [vmem:[%s9904_s0 + $0x78] sm:$0xff]  ;;  %v708_v27 = vld [vmem:[#allocation3 + $0x68] sm:$0xff]  ;;  %987 = vmatpush2.msra.mxu0 %v925_v19  ;;  %5304 = vmatprep.mubr.msk.f32.mxu1 %vm6504_vm0, %v9909_v0 }
  0x39   :  { %380 = vst [vmem:[#allocation2 + $0x288] sm:$0xff] %v6769_v63  ;;  %266 = vst [vmem:[#allocation2 + $0xd0] sm:$0xff] %v6777_v3  ;;  %v450_v28 = vld [vmem:[%s9904_s0 + $0xba] sm:$0x1]  ;;  %v6872_v30 = vld [vmem:[%s9904_s0 + $0x81] sm:$0xff]  ;;  %988 = vmatprep.subr.mxu0 %v9909_v0  ;;  %1591 = vmatpush1.msra.mxu1 %v708_v27 }
  0x3a   :  { %502 = vst [vmem:[#allocation2 + $0x298] sm:$0xff] %v6782_v4  ;;  %381 = vst [vmem:[#allocation2 + $0x78] sm:$0x1] %v324_v5  ;;  %v6880_v32 = vld [vmem:[%s9904_s0 + $0x80] sm:$0xff]  ;;  %v330_v37 = vld [vmem:[%s9904_s0 + $0x89] sm:$0x1]  ;;  %989 = vmatpush2.msra.mxu0 %v924_v24  ;;  %1592 = vmatprep.subr.mxu1 %v9909_v0 }
  0x3b   :  { %267 = vst [vmem:[#allocation2 + $0x1c0] sm:$0x1] %v210_v6  ;;  %503 = vst [vmem:[#allocation2 + $0xa8] sm:$0xff] %v6796_v7  ;;  %v6885_v35 = vld [vmem:[%s9904_s0 + $0xc2] sm:$0xff]  ;;  %v922_v38 = vld [vmem:[#allocation3 + $0x240] sm:$0xff]  ;;  %990 = vmatprep.subr.mxu0 %v9909_v0  ;;  %5305 = vmatmul.mubr.f32.gmra.mxu1 %v6621_v22 }
  0x3c   :  { %382 = vst [vmem:[#allocation2 + $0x30] sm:$0xff] %v6803_v9  ;;  %268 = vst [vmem:[#allocation2 + $0x2f8] sm:$0xff] %v6808_v10  ;;  %v923_v36 = vld [vmem:[#allocation3 + $0x248] sm:$0xff]  ;;  %v216_v42 = vld [vmem:[%s9904_s0 + $0x88] sm:$0x1]  ;;  %5307 = vmatprep.mubr.msk.f32.mxu1 %vm6504_vm0, %v9909_v0  ;;  %1010 = vmatprep.mubr.f32.mxu0 %v6654_v33 }
  0x3d   :  { %504 = vst [vmem:[#allocation2 + $0x250] sm:$0x1] %v447_v12  ;;  %383 = vst [vmem:[#allocation2 + $0x98] sm:$0xff] %v6820_v13  ;;  %v6900_v43 = vld [vmem:[%s9904_s0 + $0xca] sm:$0xff]  ;;  %v707_v44 = vld [vmem:[#allocation3 + $0x60] sm:$0xff]  ;;  %991 = vmatpush2.msra.mxu0 %v923_v36 }
  0x3e   :  { %269 = vst [vmem:[#allocation2 + $0xa0] sm:$0xff] %v6828_v15  ;;  %505 = vst [vmem:[#allocation2 + $0x138] sm:$0xff] %v6833_v16  ;;  %v6908_v45 = vld [vmem:[%s9904_s0 + $0x91] sm:$0xff]  ;;  %v6925_v50 = vld [vmem:[%s9904_s0 + $0x99] sm:$0xff]  ;;  %992 = vmatprep.subr.mxu0 %v9909_v0  ;;  %1593 = vmatpush1.msra.mxu1 %v707_v44 }
  0x3f   :  { %384 = vst [vmem:[#allocation2 + $0x50] sm:$0x1] %v327_v18  ;;  %270 = vst [vmem:[#allocation2 + $0x2e8] sm:$0x1] %v213_v20  ;;  %v6913_v49 = vld [vmem:[%s9904_s0 + $0x90] sm:$0xff]  ;;  %v6933_v55 = vld [vmem:[%s9904_s0 + $0x98] sm:$0xff]  ;;  %993 = vmatpush2.msra.mxu0 %v922_v38  ;;  %5308 = vmatmul.mubr.f32.gmra.mxu1 %v6627_v23 }
  0x40   :  { %506 = vst [vmem:[#allocation2 + $0x228] sm:$0xff] %v6850_v21  ;;  %385 = vst [vmem:[#allocation2 + $0x1d8] sm:$0xff] %v6856_v25  ;;  %v453_v22 = vld [vmem:[%s9904_s0 + $0xd2] sm:$0x1]  ;;  %v6938_v56 = vld [vmem:[%s9904_s0 + $0xda] sm:$0xff]  ;;  %994 = vmatprep.subr.mxu0 %v9909_v0  ;;  %5310 = vmatprep.mubr.msk.f32.mxu1 %vm6504_vm0, %v9909_v0 }
  0x41   :  { %271 = vst [vmem:[#allocation2 + $0x150] sm:$0xff] %v6861_v26  ;;  %507 = vst [vmem:[#allocation2 + $0x460] sm:$0x1] %v450_v28  ;;  %v921_v51 = vld [vmem:[#allocation3 + $0x238] sm:$0xff]  ;;  %v920_v57 = vld [vmem:[#allocation3 + $0x230] sm:$0xff]  ;;  %1594 = vmatprep.subr.mxu1 %v9909_v0 }
  0x42   :  { %386 = vst [vmem:[#allocation2 + $0x2d0] sm:$0xff] %v6872_v30  ;;  %272 = vst [vmem:[#allocation2 + $0x1e0] sm:$0xff] %v6880_v32  ;;  %v333_v61 = vld [vmem:[%s9904_s0 + $0xa1] sm:$0x1]  ;;  %v706_v62 = vld [vmem:[#allocation3 + $0x58] sm:$0xff]  ;;  %995 = vmatpush2.msra.mxu0 %v921_v51 }
  0x43   :  { %508 = vst [vmem:[#allocation2 + $0x160] sm:$0xff] %v6885_v35  ;;  %387 = vst [vmem:[#allocation2 + $0x550] sm:$0x1] %v330_v37  ;;  %v219_v1 = vld [vmem:[%s9904_s0 + $0xa0] sm:$0x1]  ;;  %v6953_v2 = vld [vmem:[%s9904_s0 + $0xe2] sm:$0xff]  ;;  %996 = vmatprep.subr.mxu0 %v9909_v0  ;;  %1595 = vmatpush1.msra.mxu1 %v706_v62 }
  0x44   :  { %273 = vst [vmem:[#allocation2 + $0x248] sm:$0x1] %v216_v42  ;;  %509 = vst [vmem:[#allocation2 + $0x3b8] sm:$0xff] %v6900_v43  ;;  %v761_v5 = vld [vmem:[#allocation2 + $0x398] sm:$0xff]  ;;  %v6961_v23 = vld [vmem:[%s9904_s0 + $0xa9] sm:$0xff]  ;;  %997 = vmatpush2.msra.mxu0 %v920_v57  ;;  %1596 = vmatprep.subr.mxu1 %v9909_v0 }
  0x45   :  { %388 = vst [vmem:[#allocation2 + $0x3c0] sm:$0xff] %v6908_v45  ;;  %274 = vst [vmem:[#allocation2 + $0x110] sm:$0xff] %v6913_v49  ;;  %v6966_v6 = vld [vmem:[%s9904_s0 + $0xa8] sm:$0xff]  ;;  %v919_v8 = vld [vmem:[#allocation3 + $0x228] sm:$0xff]  ;;  %998 = vmatprep.subr.mxu0 %v9909_v0  ;;  %5311 = vmatmul.mubr.f32.gmra.mxu1 %v761_v5 }
  0x46   :  { %510 = vst [vmem:[#allocation2 + $0x418] sm:$0x1] %v453_v22  ;;  %389 = vst [vmem:[#allocation2 + $0x68] sm:$0xff] %v6925_v50  ;;  %v456_v11 = vld [vmem:[%s9904_s0 + $0xea] sm:$0x1]  ;;  %v6978_v12 = vld [vmem:[%s9904_s0 + $0xb1] sm:$0xff]  ;;  %999 = vmatpush2.msra.mxu0 %v919_v8  ;;  %5313 = vmatprep.mubr.msk.f32.mxu1 %vm6504_vm0, %v9909_v0 }
  0x47   :  { %275 = vst [vmem:[#allocation2 + $0x118] sm:$0xff] %v6933_v55  ;;  %511 = vst [vmem:[#allocation2 + $0x88] sm:$0xff] %v6938_v56  ;;  %v6984_v14 = vld [vmem:[%s9904_s0 + $0xb0] sm:$0xff]  ;;  %v918_v18 = vld [vmem:[#allocation3 + $0x220] sm:$0xff]  ;;  %1000 = vmatprep.subr.mxu0 %v9909_v0 }
  0x48   :  { %390 = vst [vmem:[#allocation2 + $0x350] sm:$0x1] %v333_v61  ;;  %276 = vst [vmem:[#allocation2 + $0x3f8] sm:$0x1] %v219_v1  ;;  %v6989_v17 = vld [vmem:[%s9904_s0 + $0xf2] sm:$0xff]  ;;  %v7005_v27 = vld [vmem:[%s9904_s0 + $0xfa] sm:$0xff]  ;;  %1001 = vmatpush2.msra.mxu0 %v918_v18 }
  0x49   :  { %512 = vst [vmem:[#allocation2 + $0x140] sm:$0xff] %v6953_v2  ;;  %391 = vst [vmem:[#allocation2 + $0x70] sm:$0xff] %v6961_v23  ;;  %v336_v19 = vld [vmem:[%s9904_s0 + $0xb9] sm:$0x1]  ;;  %v917_v20 = vld [vmem:[#allocation3 + $0x218] sm:$0xff]  ;;  %1002 = vmatprep.subr.mxu0 %v9909_v0  ;;  %5314 = vmatmul.mubr.f32.gmra.mxu1 %v6640_v29 }
  0x4a   :  { %277 = vst [vmem:[#allocation2 + $0x180] sm:$0xff] %v6966_v6  ;;  %513 = vst [vmem:[#allocation2 + $0x2e0] sm:$0x1] %v456_v11  ;;  %v222_v24 = vld [vmem:[%s9904_s0 + $0xb8] sm:$0x1]  ;;  %v7013_v28 = vld [vmem:[%s9904_s0 + $0xc1] sm:$0xff]  ;;  %1003 = vmatpush2.msra.mxu0 %v917_v20  ;;  %5316 = vmatprep.mubr.msk.f32.mxu1 %vm6504_vm0, %v9909_v0 }
  0x4b   :  { %392 = vst [vmem:[#allocation2 + $0x400] sm:$0xff] %v6978_v12  ;;  %278 = vst [vmem:[#allocation2 + $0x380] sm:$0xff] %v6984_v14  ;;  %v7018_v36 = vld [vmem:[%s9904_s0 + $0xc0] sm:$0xff]  ;;  %v705_v33 = vld [vmem:[#allocation3 + $0x50] sm:$0xff]  ;;  %1004 = vmatprep.subr.mxu0 %v9909_v0 }
  0x4c   :  { %514 = vst [vmem:[#allocation2 + $0x100] sm:$0xff] %v6989_v17  ;;  %393 = vst [vmem:[#allocation2 + $0xf8] sm:$0x1] %v336_v19  ;;  %v459_v37 = vld [vmem:[%s9904_s0 + $0x102] sm:$0x1]  ;;  %v7029_v38 = vld [vmem:[%s9904_s0 + $0xc9] sm:$0xff]  ;;  %1597 = vmatpush1.msra.mxu1 %v705_v33 }
  0x4d   :  { %279 = vst [vmem:[#allocation2 + $0x348] sm:$0x1] %v222_v24  ;;  %515 = vst [vmem:[#allocation2 + $0x20] sm:$0xff] %v7005_v27  ;;  %v916_v42 = vld [vmem:[#allocation3 + $0x210] sm:$0xff]  ;;  %v915_v51 = vld [vmem:[#allocation3 + $0x208] sm:$0xff]  ;;  %1598 = vmatprep.subr.mxu1 %v9909_v0  ;;  %5317 = vmatmul.mubr.f32.gmra.mxu1 %v6646_v31 }
  0x4e   :  { %394 = vst [vmem:[#allocation2 + $0x170] sm:$0xff] %v7013_v28  ;;  %280 = vst [vmem:[#allocation2 + $0x4b0] sm:$0xff] %v7018_v36  ;;  %v7037_v44 = vld [vmem:[%s9904_s0 + $0xc8] sm:$0xff]  ;;  %v339_v29 = vld [vmem:[%s9904_s0 + $0xd1] sm:$0x1]  ;;  %1005 = vmatpush2.msra.mxu0 %v916_v42  ;;  %5319 = vmatprep.mubr.msk.f32.mxu1 %vm6504_vm0, %v9909_v0 }
  0x4f   :  { %516 = vst [vmem:[#allocation2 + $0x90] sm:$0x1] %v459_v37  ;;  %395 = vst [vmem:[#allocation2 + $0x260] sm:$0xff] %v7029_v38  ;;  %v7042_v22 = vld [vmem:[%s9904_s0 + $0x10a] sm:$0xff]  ;;  %v704_v57 = vld [vmem:[#allocation3 + $0x48] sm:$0xff]  ;;  %1006 = vmatprep.subr.mxu0 %v9909_v0 }
  0x50   :  { %281 = vst [vmem:[#allocation2 + $0x310] sm:$0xff] %v7037_v44  ;;  %517 = vst [vmem:[#allocation2 + $0x370] sm:$0xff] %v7042_v22  ;;  %v225_v61 = vld [vmem:[%s9904_s0 + $0xd0] sm:$0x1]  ;;  %v7058_v62 = vld [vmem:[%s9904_s0 + $0x112] sm:$0xff]  ;;  %1007 = vmatpush2.msra.mxu0 %v915_v51  ;;  %1599 = vmatpush1.msra.mxu1 %v704_v57 }
  0x51   :  { %396 = vst [vmem:[#allocation2 + $0x10] sm:$0x1] %v339_v29  ;;  %282 = vst [vmem:[#allocation2 + $0x4e8] sm:$0x1] %v225_v61  ;;  %v7065_v1 = vld [vmem:[%s9904_s0 + $0xd9] sm:$0xff]  ;;  %v7082_v18 = vld [vmem:[%s9904_s0 + $0xe1] sm:$0xff]  ;;  %1008 = vmatprep.subr.mxu0 %v9909_v0  ;;  %1600 = vmatprep.subr.mxu1 %v9909_v0 }
  0x52   :  { %518 = vst [vmem:[#allocation2 + $0x4f0] sm:$0xff] %v7058_v62  ;;  %v7070_v5 = vld [vmem:[%s9904_s0 + $0xd8] sm:$0xff]  ;;  %397 = vst [vmem:[#allocation2 + $0x358] sm:$0xff] %v7065_v1  ;;  %v770_v19 = vld [vmem:[#allocation2 + $0x390] sm:$0xff] }
  0x53   :  { %v462_v8 = vld [vmem:[%s9904_s0 + $0x11a] sm:$0x1]  ;;  %283 = vst [vmem:[#allocation2 + $0x338] sm:$0xff] %v7070_v5  ;;  %398 = vst [vmem:[#allocation2 + $0x520] sm:$0xff] %v7082_v18  ;;  %v7090_v31 = vld [vmem:[%s9904_s0 + $0xe0] sm:$0xff]  ;;  %5320 = vmatmul.mubr.f32.gmra.mxu1 %v770_v19 }
  0x54   :  { %v914_v11 = vld [vmem:[#allocation3 + $0x200] sm:$0xff]  ;;  %519 = vst [vmem:[#allocation2 + $0x3e0] sm:$0x1] %v462_v8  ;;  %v7095_v20 = vld [vmem:[%s9904_s0 + $0x122] sm:$0xff]  ;;  %v742_v24 = vld [vmem:[#allocation3 + $0x178] sm:$0xff]  ;;  %5322 = vmatprep.mubr.msk.f32.mxu1 %vm6504_vm0, %v9909_v0 }
  0x55   :  { %284 = vst [vmem:[#allocation2 + $0x528] sm:$0xff] %v7090_v31  ;;  %520 = vst [vmem:[#allocation2 + $0x468] sm:$0xff] %v7095_v20  ;;  %v342_v37 = vld [vmem:[%s9904_s0 + $0xe9] sm:$0x1]  ;;  %1009 = vmatpush2.msra.mxu0 %v914_v11  ;;  %v703_v33 = vld [vmem:[#allocation3 + $0x40] sm:$0xff] }
  0x56   :  { %399 = vst [vmem:[#allocation2 + $0x2c0] sm:$0x1] %v342_v37  ;;  %v228_v42 = vld [vmem:[%s9904_s0 + $0xe8] sm:$0x1]  ;;  %v7110_v51 = vld [vmem:[%s9904_s0 + $0x12a] sm:$0xff]  ;;  %1011 = vmatmul.mubr.f32.vlgmr.msra.gmra.mxu0 %v6659_v34  ;;  %5448 = vmatprep.subr.mxu0 %v9909_v0  ;;  %v7134_v34 = vld [vmem:[%s9904_s0 + $0xf9] sm:$0xff] }
  0x57   :  { %285 = vst [vmem:[#allocation2 + $0x458] sm:$0x1] %v228_v42  ;;  %521 = vst [vmem:[#allocation2 + $0x28] sm:$0xff] %v7110_v51  ;;  %v7117_v29 = vld [vmem:[%s9904_s0 + $0xf1] sm:$0xff]  ;;  %1015 = vmatprep.mubr.f32.mxu0 %v6671_v39  ;;  %5449 = vmatpush3.msra.mxu0 %v742_v24  ;;  %v7147_v11 = vld [vmem:[%s9904_s0 + $0x13a] sm:$0xff] }
  0x58   :  { %v7122_v57 = vld [vmem:[%s9904_s0 + $0xf0] sm:$0xff]  ;;  %400 = vst [vmem:[#allocation2 + $0x488] sm:$0xff] %v7117_v29  ;;  %401 = vst [vmem:[#allocation2 + $0x60] sm:$0xff] %v7134_v34  ;;  %v7142_v39 = vld [vmem:[%s9904_s0 + $0xf8] sm:$0xff]  ;;  %5450 = vmatprep.subr.mxu0 %v9909_v0  ;;  %1601 = vmatpush1.msra.mxu1 %v703_v33 }
  0x59   :  { %v465_v61 = vld [vmem:[%s9904_s0 + $0x132] sm:$0x1]  ;;  %286 = vst [vmem:[#allocation2 + $0x270] sm:$0xff] %v7122_v57  ;;  %v741_v19 = vld [vmem:[#allocation3 + $0x170] sm:$0xff]  ;;  %287 = vst [vmem:[#allocation2 + $0xb0] sm:$0xff] %v7142_v39  ;;  %5323 = vmatmul.mubr.f32.gmra.mxu1 %v6683_v41  ;;  %1602 = vmatprep.subr.mxu1 %v9909_v0 }
  0x5a   :  { %522 = vst [vmem:[#allocation2 + $0x218] sm:$0x1] %v465_v61  ;;  %v751_v8 = vld [vmem:[#allocation2 + $0x530] sm:$0xff]  ;;  %523 = vst [vmem:[#allocation2 + $0x540] sm:$0xff] %v7147_v11  ;;  %v345_v24 = vld [vmem:[%s9904_s0 + $0x101] sm:$0x1]  ;;  %1016 = vmatmul.mubr.f32.gmra.mxu0 %v6676_v40  ;;  %5325 = vmatprep.mubr.msk.f32.mxu1 %vm6504_vm0, %v9909_v0 }
  0x5b   :  { %v231_v37 = vld [vmem:[%s9904_s0 + $0x100] sm:$0x1]  ;;  %v750_v42 = vld [vmem:[#allocation2 + $0x2b8] sm:$0xff]  ;;  %v702_v61 = vld [vmem:[#allocation3 + $0x38] sm:$0xff]  ;;  %402 = vst [vmem:[#allocation2 + $0x1f8] sm:$0x1] %v345_v24  ;;  %1020 = vmatprep.mubr.f32.mxu0 %v751_v8  ;;  %5451 = vmatpush3.msra.mxu0 %v741_v19 }
  0x5c   :  { %288 = vst [vmem:[#allocation2 + $0x158] sm:$0x1] %v231_v37  ;;  %v7163_v33 = vld [vmem:[%s9904_s0 + $0x142] sm:$0xff]  ;;  %v468_v24 = vld [vmem:[%s9904_s0 + $0x14a] sm:$0x1]  ;;  %v7187_v8 = vld [vmem:[%s9904_s0 + $0x111] sm:$0xff]  ;;  %1603 = vmatpush1.msra.mxu1 %v702_v61  ;;  %5452 = vmatprep.subr.mxu0 %v9909_v0 }
  0x5d   :  { %524 = vst [vmem:[#allocation2 + $0x168] sm:$0xff] %v7163_v33  ;;  %v7171_v40 = vld [vmem:[%s9904_s0 + $0x109] sm:$0xff]  ;;  %525 = vst [vmem:[#allocation2 + $0x40] sm:$0x1] %v468_v24  ;;  %v740_v37 = vld [vmem:[#allocation3 + $0x168] sm:$0xff]  ;;  %5326 = vmatmul.mubr.f32.gmra.mxu1 %v6697_v46 }
  0x5e   :  { %v7176_v41 = vld [vmem:[%s9904_s0 + $0x108] sm:$0xff]  ;;  %403 = vst [vmem:[#allocation2 + $0x2a8] sm:$0xff] %v7171_v40  ;;  %9921 = vst [vmem:[#allocation7_spill] sm:$0xff] %v7187_v8  ;;  %v7194_v19 = vld [vmem:[%s9904_s0 + $0x110] sm:$0xff]  ;;  %1021 = vmatmul.mubr.f32.gmra.mxu0 %v750_v42 }
  0x5f   :  { %9920 = vst [vmem:[#allocation6_spill] sm:$0xff] %v7176_v41  ;;  %289 = vst [vmem:[#allocation2 + $0x3c8] sm:$0xff] %v7176_v41  ;;  %v7199_v24 = vld [vmem:[%s9904_s0 + $0x152] sm:$0xff]  ;;  %v701_v41 = vld [vmem:[#allocation3 + $0x30] sm:$0xff]  ;;  %1025 = vmatprep.mubr.f32.mxu0 %v6703_v47  ;;  %5453 = vmatpush3.msra.mxu0 %v740_v37 }
  0x60   :  { %404 = vst [vmem:[#allocation2 + $0x3d0] sm:$0xff] %v7187_v8  ;;  %9922 = vst [vmem:[#allocation8_spill] sm:$0xff] %v7199_v24  ;;  %v348_v61 = vld [vmem:[%s9904_s0 + $0x119] sm:$0x1]  ;;  %v234_v0 = vld [vmem:[%s9904_s0 + $0x118] sm:$0x1] }
  0x61   :  { %290 = vst [vmem:[#allocation2 + $0x128] sm:$0xff] %v7194_v19  ;;  %526 = vst [vmem:[#allocation2 + $0x538] sm:$0xff] %v7199_v24  ;;  %v9923_v8 = vmov 0.0   ;;  %v779_v42 = vld [vmem:[#allocation2 + $0x200] sm:$0xff]  ;;  %v739_v37 = vld [vmem:[#allocation3 + $0x160] sm:$0xff] }
  0x62   :  { %5328 = vmatprep.mubr.msk.f32.mxu1 %vm6504_vm0, %v9923_v8  ;;  %405 = vst [vmem:[#allocation2 + $0x410] sm:$0x1] %v348_v61  ;;  %291 = vst [vmem:[#allocation2 + $0x308] sm:$0x1] %v234_v0  ;;  %v7216_v46 = vld [vmem:[%s9904_s0 + $0x15a] sm:$0xff]  ;;  %1604 = vmatprep.subr.mxu1 %v9923_v8 }
  0x63   :  { %9924 = vst [vmem:[#allocation9_spill] sm:$0xff] %v7216_v46  ;;  %527 = vst [vmem:[#allocation2 + $0x480] sm:$0xff] %v7216_v46  ;;  %v7223_v47 = vld [vmem:[%s9904_s0 + $0x121] sm:$0xff]  ;;  %1605 = vmatpush1.msra.mxu1 %v701_v41  ;;  %5454 = vmatprep.subr.mxu0 %v9923_v8  ;;  %v7239_v46 = vld [vmem:[%s9904_s0 + $0x129] sm:$0xff] }
  0x64   :  { %v7228_v61 = vld [vmem:[%s9904_s0 + $0x120] sm:$0xff]  ;;  %406 = vst [vmem:[#allocation2 + $0x478] sm:$0xff] %v7223_v47  ;;  %9925 = vst [vmem:[#allocation10_spill] sm:$0xff] %v7239_v46  ;;  %1026 = vmatmul.mubr.f32.gmra.mxu0 %v6708_v48  ;;  %5329 = vmatmul.mubr.f32.gmra.mxu1 %v779_v42  ;;  %v7246_v41 = vld [vmem:[%s9904_s0 + $0x128] sm:$0xff] }
  0x65   :  { %v471_v0 = vld [vmem:[%s9904_s0 + $0x162] sm:$0x1]  ;;  %292 = vst [vmem:[#allocation2 + $0x210] sm:$0xff] %v7228_v61  ;;  %407 = vst [vmem:[#allocation2] sm:$0xff] %v7239_v46  ;;  %1030 = vmatprep.mubr.f32.mxu0 %v6720_v52  ;;  %5331 = vmatprep.mubr.msk.f32.mxu1 %vm6504_vm0, %v9923_v8  ;;  %v351_v48 = vld [vmem:[%s9904_s0 + $0x131] sm:$0x1] }
  0x66   :  { %528 = vst [vmem:[#allocation2 + $0x190] sm:$0x1] %v471_v0  ;;  %v700_v24 = vld [vmem:[#allocation3 + $0x28] sm:$0xff]  ;;  %9926 = vst [vmem:[#allocation11_spill] sm:$0xff] %v7246_v41  ;;  %v7251_v0 = vld [vmem:[%s9904_s0 + $0x16a] sm:$0xff]  ;;  %1606 = vmatprep.subr.mxu1 %v9923_v8  ;;  %5455 = vmatpush3.msra.mxu0 %v739_v37 }
  0x67   :  { %9927 = vst [vmem:[#allocation12_spill] sm:$0xff] %v7251_v0  ;;  %293 = vst [vmem:[#allocation2 + $0x4a0] sm:$0xff] %v7246_v41  ;;  %v237_v42 = vld [vmem:[%s9904_s0 + $0x130] sm:$0x1]  ;;  %v760_v46 = vld [vmem:[#allocation2 + $0x48] sm:$0xff]  ;;  %1607 = vmatpush1.msra.mxu1 %v700_v24 }
  0x68   :  { %529 = vst [vmem:[#allocation2 + $0x230] sm:$0xff] %v7251_v0  ;;  %v738_v52 = vld [vmem:[#allocation3 + $0x158] sm:$0xff]  ;;  %408 = vst [vmem:[#allocation2 + $0x3e8] sm:$0x1] %v351_v48  ;;  %v7270_v0 = vld [vmem:[#allocation2 + $0x440] sm:$0xff]  ;;  %1031 = vmatmul.mubr.f32.gmra.mxu0 %v6726_v53  ;;  %5332 = vmatmul.mubr.f32.gmra.mxu1 %v6731_v54 }
  0x69   :  { %294 = vst [vmem:[#allocation2 + $0xc0] sm:$0x1] %v237_v42  ;;  %v7268_v41 = vld [vmem:[%s9904_s0 + $0x172] sm:$0xff]  ;;  %5456 = vmatprep.subr.mxu0 %v7270_v0  ;;  %v474_v24 = vld [vmem:[%s9904_s0 + $0x17a] sm:$0x1]  ;;  %1035 = vmatprep.mubr.f32.mxu0 %v760_v46  ;;  %v7302_v53 = vld [vmem:[%s9904_s0 + $0x140] sm:$0xff] }
  0x6a   :  { %9928 = vst [vmem:[#allocation13_spill] sm:$0xff] %v7268_v41  ;;  %530 = vst [vmem:[#allocation2 + $0x4f8] sm:$0xff] %v7268_v41  ;;  %v7277_v8 = vld [vmem:[%s9904_s0 + $0x139] sm:$0xff]  ;;  %v7294_v41 = vld [vmem:[%s9904_s0 + $0x141] sm:$0xff]  ;;  %5334 = vmatprep.mubr.msk.f32.mxu1 %vm6504_vm0, %v7270_v0  ;;  %1608 = vmatprep.subr.mxu1 %v7270_v0 }
  0x6b   :  { %v7282_v37 = vld [vmem:[%s9904_s0 + $0x138] sm:$0xff]  ;;  %409 = vst [vmem:[#allocation2 + $0x388] sm:$0xff] %v7277_v8  ;;  %531 = vst [vmem:[#allocation2 + $0x4a8] sm:$0x1] %v474_v24  ;;  %v354_v54 = vld [vmem:[%s9904_s0 + $0x149] sm:$0x1]  ;;  %5457 = vmatpush3.msra.mxu0 %v738_v52 }
  0x6c   :  { %9929 = vst [vmem:[#allocation14_spill] sm:$0xff] %v7282_v37  ;;  %v759_v48 = vld [vmem:[#allocation2 + $0x38] sm:$0xff]  ;;  %295 = vst [vmem:[#allocation2 + $0x1c8] sm:$0xff] %v7282_v37  ;;  %v240_v24 = vld [vmem:[%s9904_s0 + $0x148] sm:$0x1]  ;;  %5458 = vmatprep.subr.mxu0 %v7270_v0  ;;  %5335 = vmatmul.mubr.f32.gmra.mxu1 %v6746_v58 }
  0x6d   :  { %v699_v42 = vld [vmem:[#allocation3 + $0x20] sm:$0xff]  ;;  %9930 = vst [vmem:[#allocation15_spill] sm:$0xff] %v7294_v41  ;;  %410 = vst [vmem:[#allocation2 + $0x290] sm:$0xff] %v7294_v41  ;;  %v737_v46 = vld [vmem:[#allocation3 + $0x150] sm:$0xff]  ;;  %1036 = vmatmul.mubr.f32.gmra.mxu0 %v759_v48  ;;  %5337 = vmatprep.mubr.msk.f32.mxu1 %vm6504_vm0, %v7270_v0 }
  0x6e   :  { %296 = vst [vmem:[#allocation2 + $0x2c8] sm:$0xff] %v7302_v53  ;;  %411 = vst [vmem:[#allocation2 + $0xe8] sm:$0x1] %v354_v54  ;;  %1609 = vmatpush1.msra.mxu1 %v699_v42  ;;  %v7316_v41 = vld [vmem:[%s9904_s0 + $0x182] sm:$0xff]  ;;  %v477_v37 = vld [vmem:[%s9904_s0 + $0x192] sm:$0x1]  ;;  %1040 = vmatprep.mubr.f32.mxu0 %v6752_v59 }
  0x6f   :  { %297 = vst [vmem:[#allocation2 + $0x4e0] sm:$0x1] %v240_v24  ;;  %v698_v52 = vld [vmem:[#allocation3 + $0x18] sm:$0xff]  ;;  %532 = vst [vmem:[#allocation2 + $0x430] sm:$0xff] %v7316_v41  ;;  %v788_v42 = vld [vmem:[#allocation2 + $0x1a0] sm:$0xff]  ;;  %1610 = vmatprep.subr.mxu1 %v7270_v0  ;;  %5459 = vmatpush3.msra.mxu0 %v737_v46 }
  0x70   :  { %534 = vst [vmem:[#allocation2 + $0x120] sm:$0x1] %v477_v37  ;;  %1611 = vmatpush1.msra.mxu1 %v698_v52  ;;  %5460 = vmatprep.subr.mxu0 %v7270_v0  ;;  %v736_v54 = vld [vmem:[#allocation3 + $0x148] sm:$0xff]  ;;  %v7331_v58 = vld [vmem:[%s9904_s0 + $0x18a] sm:$0xff]  ;;  %v769_v48 = vld [vmem:[#allocation2 + $0x78] sm:$0xff] }
  0x71   :  { %1041 = vmatmul.mubr.f32.gmra.mxu0 %v6757_v60  ;;  %5338 = vmatmul.mubr.f32.gmra.mxu1 %v788_v42  ;;  %v697_v59 = vld [vmem:[#allocation3 + $0x10] sm:$0xff]  ;;  %533 = vst [vmem:[#allocation2 + $0x428] sm:$0xff] %v7331_v58  ;;  %v7338_v37 = vld [vmem:[%s9904_s0 + $0x151] sm:$0xff]  ;;  %v243_v46 = vld [vmem:[%s9904_s0 + $0x160] sm:$0x1] }
  0x72   :  { %1045 = vmatprep.mubr.f32.mxu0 %v6769_v63  ;;  %5340 = vmatprep.mubr.msk.f32.mxu1 %vm6504_vm0, %v7270_v0  ;;  %412 = vst [vmem:[#allocation2 + $0x420] sm:$0xff] %v7338_v37  ;;  %v7347_v60 = vld [vmem:[%s9904_s0 + $0x150] sm:$0xff]  ;;  %v357_v63 = vld [vmem:[%s9904_s0 + $0x161] sm:$0x1]  ;;  %v735_v24 = vld [vmem:[#allocation3 + $0x140] sm:$0xff] }
  0x73   :  { %1612 = vmatprep.subr.mxu1 %v7270_v0  ;;  %5461 = vmatpush3.msra.mxu0 %v736_v54  ;;  %298 = vst [vmem:[#allocation2 + $0x1b8] sm:$0xff] %v7347_v60  ;;  %414 = vst [vmem:[#allocation2 + $0x220] sm:$0x1] %v357_v63  ;;  %v696_v52 = vld [vmem:[#allocation3 + $0x8] sm:$0xff]  ;;  %v695_v63 = vld [vmem:[#allocation3] sm:$0xff] }
  0x74   :  { %1613 = vmatpush1.msra.mxu1 %v697_v59  ;;  %5462 = vmatprep.subr.mxu0 %v7270_v0  ;;  %v7363_v42 = vld [vmem:[%s9904_s0 + $0x159] sm:$0xff]  ;;  %300 = vst [vmem:[#allocation2 + $0x408] sm:$0x1] %v243_v46  ;;  %v733_v46 = vld [vmem:[#allocation3 + $0x130] sm:$0xff] }
  0x75   :  { %1046 = vmatmul.mubr.f32.gmra.mxu0 %v6777_v3  ;;  %5341 = vmatmul.mubr.f32.gmra.mxu1 %v6782_v4  ;;  %v768_v54 = vld [vmem:[#allocation2 + $0x1c0] sm:$0xff]  ;;  %413 = vst [vmem:[#allocation2 + $0x360] sm:$0xff] %v7363_v42  ;;  %v7371_v3 = vld [vmem:[%s9904_s0 + $0x158] sm:$0xff]  ;;  %v734_v4 = vld [vmem:[#allocation3 + $0x138] sm:$0xff] }
  0x76   :  { %1050 = vmatprep.mubr.f32.mxu0 %v769_v48  ;;  %5343 = vmatprep.mubr.msk.f32.mxu1 %vm6504_vm0, %v7270_v0  ;;  %299 = vst [vmem:[#allocation2 + $0x1f0] sm:$0xff] %v7371_v3  ;;  %v7379_v59 = vld [vmem:[%s9904_s0 + $0x19a] sm:$0xff]  ;;  %v480_v48 = vld [vmem:[%s9904_s0 + $0x1aa] sm:$0x1] }
  0x77   :  { %1614 = vmatprep.subr.mxu1 %v7270_v0  ;;  %5463 = vmatpush3.msra.mxu0 %v735_v24  ;;  %535 = vst [vmem:[#allocation2 + $0x368] sm:$0xff] %v7379_v59  ;;  %537 = vst [vmem:[#allocation2 + $0x258] sm:$0x1] %v480_v48  ;;  %v797_v24 = vld [vmem:[#allocation2 + $0x250] sm:$0xff]  ;;  %v725_v48 = vld [vmem:[#allocation3 + $0xf0] sm:$0xff] }
  0x78   :  { %1615 = vmatpush1.msra.mxu1 %v696_v52  ;;  %5464 = vmatprep.subr.mxu0 %v7270_v0  ;;  %v778_v52 = vld [vmem:[#allocation2 + $0x50] sm:$0xff] }
  0x79   :  { %1051 = vmatmul.mubr.f32.gmra.mxu0 %v768_v54  ;;  %5344 = vmatmul.mubr.f32.gmra.mxu1 %v6796_v7  ;;  %v7394_v7 = vld [vmem:[%s9904_s0 + $0x1a2] sm:$0xff] }
  0x7a   :  { %1055 = vmatprep.mubr.f32.mxu0 %v6803_v9  ;;  %5346 = vmatprep.mubr.msk.f32.mxu1 %vm6504_vm0, %v7270_v0  ;;  %v726_v9 = vld [vmem:[#allocation3 + $0xf8] sm:$0xff]  ;;  %536 = vst [vmem:[#allocation2 + $0x188] sm:$0xff] %v7394_v7 }
  0x7b   :  { %1616 = vmatprep.subr.mxu1 %v7270_v0  ;;  %5465 = vmatpush3.msra.mxu0 %v734_v4  ;;  %v7405_v54 = vld [vmem:[%s9904_s0 + $0x169] sm:$0xff]  ;;  %v360_v4 = vld [vmem:[%s9904_s0 + $0x179] sm:$0x1] }
  0x7c   :  { %1617 = vmatpush1.msra.mxu1 %v695_v63  ;;  %5466 = vmatprep.subr.mxu0 %v7270_v0  ;;  %415 = vst [vmem:[#allocation2 + $0xc8] sm:$0xff] %v7405_v54  ;;  %417 = vst [vmem:[#allocation2 + $0x4d0] sm:$0x1] %v360_v4  ;;  %v246_v63 = vld [vmem:[%s9904_s0 + $0x178] sm:$0x1] }
  0x7d   :  { %1056 = vmatmul.mubr.f32.gmra.mxu0 %v6808_v10  ;;  %5347 = vmatmul.mubr.f32.gmra.mxu1 %v797_v24  ;;  %v732_v10 = vld [vmem:[#allocation3 + $0x128] sm:$0xff]  ;;  %v777_v24 = vld [vmem:[#allocation2 + $0x2e8] sm:$0xff]  ;;  %303 = vst [vmem:[#allocation2 + $0x4c8] sm:$0x1] %v246_v63  ;;  %v201_v4 = vld [vmem:[%s9904_s0 + $0x10] sm:$0x1] }
  0x7e   :  { %1060 = vmatprep.mubr.f32.mxu0 %v6820_v13  ;;  %5349 = vmatprep.mubr.msk.f32.mxu1 %vm6504_vm0, %v7270_v0  ;;  %v7412_v13 = vld [vmem:[%s9904_s0 + $0x168] sm:$0xff]  ;;  %258 = vst [vmem:[#allocation2 + $0x440] sm:$0x1] %v201_v4  ;;  %v806_v63 = vld [vmem:[#allocation2 + $0x460] sm:$0xff] }
  0x7f   :  { %1618 = vmatprep.subr.mxu1 %v7270_v0  ;;  %5467 = vmatpush3.msra.mxu0 %v733_v46  ;;  %301 = vst [vmem:[#allocation2 + $0x1e8] sm:$0xff] %v7412_v13  ;;  %v731_v46 = vld [vmem:[#allocation3 + $0x120] sm:$0xff]  ;;  %v729_v4 = vld [vmem:[#allocation3 + $0x110] sm:$0xff] }
  0x80   :  { %1619 = vmatpush2.msra.mxu1 %v726_v9  ;;  %5468 = vmatprep.subr.mxu0 %v7270_v0  ;;  %v7439_v9 = vld [vmem:[%s9904_s0 + $0x170] sm:$0xff] }
  0x81   :  { %1061 = vmatmul.mubr.f32.gmra.mxu0 %v6828_v15  ;;  %5350 = vmatmul.mubr.f32.gmra.mxu1 %v6833_v16  ;;  %v7429_v15 = vld [vmem:[%s9904_s0 + $0x171] sm:$0xff]  ;;  %v7434_v16 = vld [vmem:[%s9904_s0 + $0x1] sm:$0xff]  ;;  %302 = vst [vmem:[#allocation2 + $0x1d0] sm:$0xff] %v7439_v9 }
  0x82   :  { %1065 = vmatprep.mubr.f32.mxu0 %v778_v52  ;;  %5352 = vmatprep.mubr.msk.f32.mxu1 %vm6504_vm0, %v7270_v0  ;;  %416 = vst [vmem:[#allocation2 + $0x198] sm:$0xff] %v7429_v15  ;;  %v7447_v52 = vld [vmem:[%s9904_s0] sm:$0xff] }
  0x83   :  { %1620 = vmatprep.subr.mxu1 %v7270_v0  ;;  %5469 = vmatpush3.msra.mxu0 %v732_v10  ;;  %9931 = vst [vmem:[#allocation16_spill] sm:$0xff] %v7447_v52  ;;  %v315_v10 = vld [vmem:[%s9904_s0 + $0x11] sm:$0x1]  ;;  %v7463_v52 = vld [vmem:[%s9904_s0 + $0x9] sm:$0xff] }
  0x84   :  { %1621 = vmatpush2.msra.mxu1 %v725_v48  ;;  %5470 = vmatprep.subr.mxu0 %v7270_v0  ;;  %v724_v48 = vld [vmem:[#allocation3 + $0xe8] sm:$0xff]  ;;  %372 = vst [vmem:[#allocation2 + $0x378] sm:$0x1] %v315_v10 }
  0x85   :  { %1066 = vmatmul.mubr.f32.gmra.mxu0 %v777_v24  ;;  %5353 = vmatmul.mubr.f32.gmra.mxu1 %v6850_v21  ;;  %v730_v21 = vld [vmem:[#allocation3 + $0x118] sm:$0xff]  ;;  %v723_v24 = vld [vmem:[#allocation3 + $0xe0] sm:$0xff]  ;;  %v7479_v10 = vld [vmem:[%s9904_s0 + $0x181] sm:$0xff] }
  0x86   :  { %1070 = vmatprep.mubr.f32.mxu0 %v6856_v25  ;;  %5355 = vmatprep.mubr.msk.f32.mxu1 %vm6504_vm0, %v7270_v0  ;;  %v7469_v25 = vld [vmem:[%s9904_s0 + $0x8] sm:$0xff]  ;;  %418 = vst [vmem:[#allocation2 + $0x448] sm:$0xff] %v7479_v10 }
  0x87   :  { %1622 = vmatprep.subr.mxu1 %v7270_v0  ;;  %5471 = vmatpush3.msra.mxu0 %v731_v46  ;;  %v787_v46 = vld [vmem:[#allocation2 + $0x550] sm:$0xff] }
  0x88   :  { %1623 = vmatpush2.msra.mxu1 %v724_v48  ;;  %5472 = vmatprep.subr.mxu0 %v7270_v0  ;;  %v249_v48 = vld [vmem:[%s9904_s0 + $0x190] sm:$0x1] }
  0x89   :  { %1071 = vmatmul.mubr.f32.gmra.mxu0 %v6861_v26  ;;  %5356 = vmatmul.mubr.f32.gmra.mxu1 %v806_v63  ;;  %v7484_v26 = vld [vmem:[%s9904_s0 + $0x180] sm:$0xff]  ;;  %v722_v63 = vld [vmem:[#allocation3 + $0xd8] sm:$0xff]  ;;  %306 = vst [vmem:[#allocation2 + $0x508] sm:$0x1] %v249_v48  ;;  %v366_v48 = vld [vmem:[%s9904_s0 + $0x1a9] sm:$0x1] }
  0x8a   :  { %1075 = vmatprep.mubr.f32.mxu0 %v6872_v30  ;;  %5358 = vmatprep.mubr.msk.f32.mxu1 %vm6504_vm0, %v7270_v0  ;;  %v363_v30 = vld [vmem:[%s9904_s0 + $0x191] sm:$0x1]  ;;  %304 = vst [vmem:[#allocation2 + $0x148] sm:$0xff] %v7484_v26  ;;  %423 = vst [vmem:[#allocation2 + $0x1b0] sm:$0x1] %v366_v48 }
  0x8b   :  { %1624 = vmatprep.subr.mxu1 %v7270_v0  ;;  %5473 = vmatpush3.msra.mxu0 %v730_v21  ;;  %420 = vst [vmem:[#allocation2 + $0x80] sm:$0x1] %v363_v30  ;;  %v786_v21 = vld [vmem:[#allocation2 + $0x248] sm:$0xff]  ;;  %v815_v30 = vld [vmem:[#allocation2 + $0x418] sm:$0xff] }
  0x8c   :  { %1625 = vmatpush2.msra.mxu1 %v723_v24  ;;  %5474 = vmatprep.subr.mxu0 %v7270_v0  ;;  %v7503_v24 = vld [vmem:[%s9904_s0 + $0x189] sm:$0xff] }
  0x8d   :  { %1076 = vmatmul.mubr.f32.gmra.mxu0 %v6880_v32  ;;  %5359 = vmatmul.mubr.f32.gmra.mxu1 %v6885_v35  ;;  %v7508_v32 = vld [vmem:[%s9904_s0 + $0x188] sm:$0xff]  ;;  %v728_v35 = vld [vmem:[#allocation3 + $0x108] sm:$0xff]  ;;  %419 = vst [vmem:[#allocation2 + $0x1a8] sm:$0xff] %v7503_v24 }
  0x8e   :  { %1080 = vmatprep.mubr.f32.mxu0 %v787_v46  ;;  %5361 = vmatprep.mubr.msk.f32.mxu1 %vm6504_vm0, %v7270_v0  ;;  %305 = vst [vmem:[#allocation2 + $0x300] sm:$0xff] %v7508_v32  ;;  %v721_v46 = vld [vmem:[#allocation3 + $0xd0] sm:$0xff] }
  0x8f   :  { %1626 = vmatprep.subr.mxu1 %v7270_v0  ;;  %5475 = vmatpush3.msra.mxu0 %v729_v4  ;;  %v720_v4 = vld [vmem:[#allocation3 + $0xc8] sm:$0xff]  ;;  %v7586_v48 = vld [vmem:[%s9904_s0 + $0xa] sm:$0xff] }
  0x90   :  { %1627 = vmatpush2.msra.mxu1 %v722_v63  ;;  %5476 = vmatprep.subr.mxu0 %v7270_v0  ;;  %v719_v63 = vld [vmem:[#allocation3 + $0xc0] sm:$0xff] }
  0x91   :  { %1081 = vmatmul.mubr.f32.gmra.mxu0 %v786_v21  ;;  %5362 = vmatmul.mubr.f32.gmra.mxu1 %v6900_v43  ;;  %v796_v43 = vld [vmem:[#allocation2 + $0x350] sm:$0xff]  ;;  %v795_v21 = vld [vmem:[#allocation2 + $0x3f8] sm:$0xff] }
  0x92   :  { %1085 = vmatprep.mubr.f32.mxu0 %v6908_v45  ;;  %5364 = vmatprep.mubr.msk.f32.mxu1 %vm6504_vm0, %v7270_v0  ;;  %v7527_v45 = vld [vmem:[%s9904_s0 + $0x199] sm:$0xff] }
  0x93   :  { %1628 = vmatprep.subr.mxu1 %v7270_v0  ;;  %5477 = vmatpush3.msra.mxu0 %v728_v35  ;;  %421 = vst [vmem:[#allocation2 + $0x438] sm:$0xff] %v7527_v45  ;;  %v727_v35 = vld [vmem:[#allocation3 + $0x100] sm:$0xff] }
  0x94   :  { %1629 = vmatpush2.msra.mxu1 %v721_v46  ;;  %5478 = vmatprep.subr.mxu0 %v7270_v0  ;;  %v7550_v46 = vld [vmem:[%s9904_s0 + $0x1a1] sm:$0xff] }
  0x95   :  { %1086 = vmatmul.mubr.f32.gmra.mxu0 %v6913_v49  ;;  %5365 = vmatmul.mubr.f32.gmra.mxu1 %v815_v30  ;;  %v7536_v49 = vld [vmem:[%s9904_s0 + $0x198] sm:$0xff]  ;;  %422 = vst [vmem:[#allocation2 + $0xe0] sm:$0xff] %v7550_v46  ;;  %v824_v30 = vld [vmem:[#allocation2 + $0x2e0] sm:$0xff] }
  0x96   :  { %1090 = vmatprep.mubr.f32.mxu0 %v6925_v50  ;;  %5367 = vmatprep.mubr.msk.f32.mxu1 %vm6504_vm0, %v7270_v0  ;;  %v252_v50 = vld [vmem:[%s9904_s0 + $0x1a8] sm:$0x1]  ;;  %307 = vst [vmem:[#allocation2 + $0x278] sm:$0xff] %v7536_v49 }
  0x97   :  { %1630 = vmatprep.subr.mxu1 %v7270_v0  ;;  %309 = vst [vmem:[#allocation2 + $0x2f0] sm:$0x1] %v252_v50  ;;  %5479 = vmatpush3.msra.mxu0 %v727_v35  ;;  %v714_v50 = vld [vmem:[#allocation3 + $0x98] sm:$0xff] }
  0x98   :  { %1631 = vmatpush2.msra.mxu1 %v720_v4  ;;  %5633 = vmatprep.subr.mxu0 %v7270_v0  ;;  %v717_v4 = vld [vmem:[#allocation3 + $0xb0] sm:$0xff]  ;;  %v9939_v35 = vld [vmem:[#allocation13_spill] sm:$0xff] }
  0x99   :  { %1091 = vmatmul.mubr.f32.gmra.mxu0 %v6933_v55  ;;  %5368 = vmatmul.mubr.f32.gmra.mxu1 %v6938_v56  ;;  %v7556_v55 = vld [vmem:[%s9904_s0 + $0x1a0] sm:$0xff]  ;;  %v718_v56 = vld [vmem:[#allocation3 + $0xb8] sm:$0xff] }
  0x9a   :  { %1095 = vmatprep.mubr.f32.mxu0 %v796_v43  ;;  %5370 = vmatprep.mubr.msk.f32.mxu1 %vm6504_vm0, %v7270_v0  ;;  %308 = vst [vmem:[#allocation2 + $0x2d8] sm:$0xff] %v7556_v55  ;;  %v804_v43 = vld [vmem:[#allocation2 + $0x348] sm:$0xff] }
  0x9b   :  { %1632 = vmatprep.subr.mxu1 %v7270_v0 }
  0x9c   :  { %1633 = vmatpush2.msra.mxu1 %v719_v63  ;;  %v9937_v63 = vld [vmem:[#allocation11_spill] sm:$0xff] }
  0x9d   :  { %1096 = vmatmul.mubr.f32.gmra.mxu0 %v795_v21  ;;  %5371 = vmatmul.mubr.f32.gmra.mxu1 %v6953_v2  ;;  %v805_v2 = vld [vmem:[#allocation2 + $0xf8] sm:$0xff]  ;;  %v9938_v21 = vld [vmem:[#allocation12_spill] sm:$0xff] }
  0x9e   :  { %1100 = vmatprep.mubr.f32.mxu0 %v6961_v23  ;;  %5373 = vmatprep.mubr.msk.f32.mxu1 %vm6504_vm0, %v7270_v0  ;;  %v7573_v23 = vld [vmem:[%s9904_s0 + $0x2] sm:$0xff] }
  0x9f   :  { %1634 = vmatprep.subr.mxu1 %v7270_v0 }
  0xa0   :  { %1635 = vmatpush2.msra.mxu1 %v718_v56  ;;  %v9940_v56 = vld [vmem:[#allocation14_spill] sm:$0xff] }
  0xa1   :  { %1101 = vmatmul.mubr.f32.gmra.mxu0 %v6966_v6  ;;  %5374 = vmatmul.mubr.f32.gmra.mxu1 %v824_v30  ;;  %v429_v6 = vld [vmem:[%s9904_s0 + $0x12] sm:$0x1]  ;;  %v9941_v30 = vld [vmem:[#allocation15_spill] sm:$0xff] }
  0xa2   :  { %1105 = vmatprep.mubr.f32.mxu0 %v6978_v12  ;;  %5376 = vmatprep.mubr.msk.f32.mxu1 %vm6504_vm0, %v7270_v0  ;;  %v716_v12 = vld [vmem:[#allocation3 + $0xa8] sm:$0xff]  ;;  %486 = vst [vmem:[#allocation2 + $0x108] sm:$0x1] %v429_v6 }
  0xa3   :  { %1636 = vmatprep.subr.mxu1 %v7270_v0 }
  0xa4   :  { %1637 = vmatpush2.msra.mxu1 %v717_v4  ;;  %v859_v4 = vld [vmem:[#allocation2 + $0xe8] sm:$0xff] }
  0xa5   :  { %1106 = vmatmul.mubr.f32.gmra.mxu0 %v6984_v14  ;;  %5377 = vmatmul.mubr.f32.gmra.mxu1 %v6989_v17  ;;  %v715_v14 = vld [vmem:[#allocation3 + $0xa0] sm:$0xff]  ;;  %v833_v17 = vld [vmem:[#allocation2 + $0x90] sm:$0xff] }
  0xa6   :  { %1110 = vmatprep.mubr.f32.mxu0 %v805_v2  ;;  %5379 = vmatprep.mubr.msk.f32.mxu1 %vm6504_vm0, %v7270_v0  ;;  %v887_v2 = vld [vmem:[#allocation2 + $0x120] sm:$0xff] }
  0xa7   :  { %1638 = vmatprep.subr.mxu1 %v7270_v0 }
  0xa8   :  { %1639 = vmatpush2.msra.mxu1 %v716_v12  ;;  %v3063_v12 = vld [vmem:[#allocation3 + $0x4f8] sm:$0xff] }
  0xa9   :  { %1111 = vmatmul.mubr.f32.gmra.mxu0 %v804_v43  ;;  %5380 = vmatmul.mubr.f32.gmra.mxu1 %v7005_v27  ;;  %v814_v27 = vld [vmem:[#allocation2 + $0x10] sm:$0xff] }
  0xaa   :  { %1115 = vmatprep.mubr.f32.mxu0 %v7013_v28  ;;  %5382 = vmatprep.mubr.msk.f32.mxu1 %vm6504_vm0, %v7270_v0  ;;  %v713_v28 = vld [vmem:[#allocation3 + $0x90] sm:$0xff]  ;;  %v877_v43 = vld [vmem:[#allocation2 + $0x4d0] sm:$0xff] }
  0xab   :  { %1640 = vmatprep.subr.mxu1 %v7270_v0 }
  0xac   :  { %1641 = vmatpush2.msra.mxu1 %v715_v14  ;;  %v3062_v14 = vld [vmem:[#allocation3 + $0x4f0] sm:$0xff] }
  0xad   :  { %1116 = vmatmul.mubr.f32.gmra.mxu0 %v7018_v36  ;;  %5383 = vmatmul.mubr.f32.gmra.mxu1 %v833_v17  ;;  %v813_v36 = vld [vmem:[#allocation2 + $0x4e8] sm:$0xff] }
  0xae   :  { %1120 = vmatprep.mubr.f32.mxu0 %v7029_v38  ;;  %5385 = vmatprep.mubr.msk.f32.mxu1 %vm6504_vm0, %v7270_v0  ;;  %v712_v38 = vld [vmem:[#allocation3 + $0x88] sm:$0xff] }
  0xaf   :  { %1642 = vmatprep.subr.mxu1 %v7270_v0 }
  0xb0   :  { %1643 = vmatpush2.msra.mxu1 %v714_v50  ;;  %v549_v50 = vld [vmem:[#allocation2 + $0x378] sm:$0xff] }
  0xb1   :  { %1121 = vmatmul.mubr.f32.gmra.mxu0 %v7037_v44  ;;  %5386 = vmatmul.mubr.f32.gmra.mxu1 %v7042_v22  ;;  %v842_v44 = vld [vmem:[#allocation2 + $0x3e0] sm:$0xff]  ;;  %v711_v22 = vld [vmem:[#allocation3 + $0x80] sm:$0xff] }
  0xb2   :  { %1125 = vmatprep.mubr.f32.mxu0 %v814_v27  ;;  %5388 = vmatprep.mubr.msk.f32.mxu1 %vm6504_vm0, %v7270_v0 }
  0xb3   :  { %1644 = vmatprep.subr.mxu1 %v7270_v0 }
  0xb4   :  { %1645 = vmatpush2.msra.mxu1 %v713_v28  ;;  %v552_v28 = vld [vmem:[#allocation2 + $0x490] sm:$0xff] }
  0xb5   :  { %1126 = vmatmul.mubr.f32.gmra.mxu0 %v813_v36  ;;  %5389 = vmatmul.mubr.f32.gmra.mxu1 %v7058_v62  ;;  %v823_v62 = vld [vmem:[#allocation2 + $0x2c0] sm:$0xff]  ;;  %v3060_v36 = vld [vmem:[#allocation3 + $0x4e0] sm:$0xff] }
  0xb6   :  { %1130 = vmatprep.mubr.f32.mxu0 %v7065_v1  ;;  %5391 = vmatprep.mubr.msk.f32.mxu1 %vm6504_vm0, %v7270_v0  ;;  %v822_v1 = vld [vmem:[#allocation2 + $0x458] sm:$0xff] }
  0xb7   :  { %1646 = vmatprep.subr.mxu1 %v7270_v0 }
  0xb8   :  { %1647 = vmatpush2.msra.mxu1 %v712_v38 }
  0xb9   :  { %1131 = vmatmul.mubr.f32.gmra.mxu0 %v7070_v5  ;;  %5392 = vmatmul.mubr.f32.gmra.mxu1 %v842_v44  ;;  %v851_v5 = vld [vmem:[#allocation2 + $0x218] sm:$0xff]  ;;  %v886_v44 = vld [vmem:[#allocation2 + $0x80] sm:$0xff] }
  0xba   :  { %1135 = vmatprep.mubr.f32.mxu0 %v7082_v18  ;;  %5394 = vmatprep.mubr.msk.f32.mxu1 %vm6504_vm0, %v7270_v0  ;;  %v832_v18 = vld [vmem:[#allocation2 + $0x1f8] sm:$0xff] }
  0xbb   :  { %1648 = vmatprep.subr.mxu1 %v7270_v0 }
  0xbc   :  { %1649 = vmatpush2.msra.mxu1 %v711_v22 }
  0xbd   :  { %1136 = vmatmul.mubr.f32.gmra.mxu0 %v7090_v31  ;;  %5395 = vmatmul.mubr.f32.gmra.mxu1 %v7095_v20  ;;  %v831_v31 = vld [vmem:[#allocation2 + $0x158] sm:$0xff]  ;;  %v860_v20 = vld [vmem:[#allocation2 + $0x40] sm:$0xff] }
  0xbe   :  { %1140 = vmatprep.mubr.f32.mxu0 %v823_v62  ;;  %5397 = vmatprep.mubr.msk.f32.mxu1 %vm6504_vm0, %v7270_v0  ;;  %v885_v62 = vld [vmem:[#allocation2 + $0x508] sm:$0xff] }
  0xbf   :  { %3096 = vmatprep.subr.mxu1 %v7270_v0 }
  0xc1   :  { %1141 = vmatmul.mubr.f32.gmra.mxu0 %v822_v1  ;;  %5398 = vmatmul.mubr.f32.gmra.mxu1 %v7110_v51  ;;  %v9932_v51 = vld [vmem:[#allocation6_spill] sm:$0xff]  ;;  %v554_v1 = vld [vmem:[#allocation2 + $0x548] sm:$0xff] }
  0xc2   :  { %1145 = vmatprep.mubr.f32.mxu0 %v7117_v29  ;;  %5400 = vmatprep.mubr.msk.f32.mxu1 %vm6504_vm0, %v7270_v0  ;;  %v9933_v29 = vld [vmem:[#allocation7_spill] sm:$0xff] }
  0xc5   :  { %1146 = vmatmul.mubr.f32.gmra.mxu0 %v7122_v57  ;;  %5401 = vmatmul.mubr.f32.gmra.mxu1 %v851_v5  ;;  %v841_v57 = vld [vmem:[#allocation2 + $0x410] sm:$0xff] }
  0xc6   :  { %1150 = vmatprep.mubr.f32.mxu0 %v7134_v34  ;;  %5403 = vmatprep.mubr.msk.f32.mxu1 %vm6504_vm0, %v7270_v0  ;;  %v9934_v34 = vld [vmem:[#allocation8_spill] sm:$0xff] }
  0xc9   :  { %1151 = vmatmul.mubr.f32.gmra.mxu0 %v7142_v39  ;;  %5404 = vmatmul.mubr.f32.gmra.mxu1 %v7147_v11  ;;  %v840_v39 = vld [vmem:[#allocation2 + $0x308] sm:$0xff]  ;;  %v9935_v11 = vld [vmem:[#allocation9_spill] sm:$0xff] }
  0xca   :  { %1155 = vmatprep.mubr.f32.mxu0 %v832_v18  ;;  %5406 = vmatprep.mubr.msk.f32.mxu1 %vm6504_vm0, %v7270_v0 }
  0xcd   :  { %1156 = vmatmul.mubr.f32.gmra.mxu0 %v831_v31  ;;  %5407 = vmatmul.mubr.f32.gmra.mxu1 %v7163_v33  ;;  %v869_v33 = vld [vmem:[#allocation2 + $0x190] sm:$0xff]  ;;  %v3058_v31 = vld [vmem:[#allocation3 + $0x4d0] sm:$0xff] }
  0xce   :  { %1160 = vmatprep.mubr.f32.mxu0 %v7171_v40  ;;  %5409 = vmatprep.mubr.msk.f32.mxu1 %vm6504_vm0, %v7270_v0  ;;  %v9936_v40 = vld [vmem:[#allocation10_spill] sm:$0xff] }
  0xd1   :  { %1161 = vmatmul.mubr.f32.gmra.mxu0 %v9932_v51  ;;  %5410 = vmatmul.mubr.f32.gmra.mxu1 %v860_v20  ;;  %v561_v51 = vld [vmem:[#allocation2 + $0xf0] sm:$0xff] }
  0xd2   :  { %1165 = vmatprep.mubr.f32.mxu0 %v9933_v29  ;;  %5412 = vmatprep.mubr.msk.f32.mxu1 %vm6504_vm0, %v7270_v0 }
  0xd5   :  { %1166 = vmatmul.mubr.f32.gmra.mxu0 %v7194_v19  ;;  %5413 = vmatmul.mubr.f32.gmra.mxu1 %v9934_v34  ;;  %v850_v19 = vld [vmem:[#allocation2 + $0x3e8] sm:$0xff]  ;;  %v3057_v34 = vld [vmem:[#allocation3 + $0x4c8] sm:$0xff] }
  0xd6   :  { %1170 = vmatprep.mubr.f32.mxu0 %v841_v57  ;;  %5415 = vmatprep.mubr.msk.f32.mxu1 %vm6504_vm0, %v7270_v0 }
  0xd9   :  { %1171 = vmatmul.mubr.f32.gmra.mxu0 %v840_v39  ;;  %5416 = vmatmul.mubr.f32.gmra.mxu1 %v9935_v11 }
  0xda   :  { %1175 = vmatprep.mubr.f32.mxu0 %v7223_v47  ;;  %5418 = vmatprep.mubr.msk.f32.mxu1 %vm6504_vm0, %v7270_v0  ;;  %v849_v47 = vld [vmem:[#allocation2 + $0xc0] sm:$0xff] }
  0xdd   :  { %1176 = vmatmul.mubr.f32.gmra.mxu0 %v7228_v61  ;;  %5419 = vmatmul.mubr.f32.gmra.mxu1 %v869_v33  ;;  %v878_v61 = vld [vmem:[#allocation2 + $0x4a8] sm:$0xff] }
  0xde   :  { %1180 = vmatprep.mubr.f32.mxu0 %v9936_v40  ;;  %5421 = vmatprep.mubr.msk.f32.mxu1 %vm6504_vm0, %v7270_v0  ;;  %v895_v40 = vld [vmem:[#allocation2 + $0x1b0] sm:$0xff] }
  0xe1   :  { %1181 = vmatmul.mubr.f32.gmra.mxu0 %v9937_v63  ;;  %5422 = vmatmul.mubr.f32.gmra.mxu1 %v9938_v21  ;;  %v3056_v21 = vld [vmem:[#allocation3 + $0x4c0] sm:$0xff] }
  0xe2   :  { %1185 = vmatprep.mubr.f32.mxu0 %v850_v19  ;;  %5424 = vmatprep.mubr.msk.f32.mxu1 %vm6504_vm0, %v7270_v0  ;;  %v564_v19 = vld [vmem:[#allocation2 + $0x238] sm:$0xff] }
  0xe5   :  { %1186 = vmatmul.mubr.f32.gmra.mxu0 %v849_v47  ;;  %5425 = vmatmul.mubr.f32.gmra.mxu1 %v9939_v35  ;;  %v563_v35 = vld [vmem:[#allocation2 + $0x178] sm:$0xff] }
  0xe6   :  { %1190 = vmatprep.mubr.f32.mxu0 %v7277_v8  ;;  %5427 = vmatprep.mubr.msk.f32.mxu1 %vm6504_vm0, %v7270_v0  ;;  %v858_v8 = vld [vmem:[#allocation2 + $0x4e0] sm:$0xff] }
  0xe9   :  { %1191 = vmatmul.mubr.f32.gmra.mxu0 %v9940_v56  ;;  %5428 = vmatmul.mubr.f32.gmra.mxu1 %v878_v61 }
  0xea   :  { %1195 = vmatprep.mubr.f32.mxu0 %v9941_v30  ;;  %5430 = vmatprep.mubr.msk.f32.mxu1 %vm6504_vm0, %v7270_v0  ;;  %v567_v30 = vld [vmem:[#allocation2 + $0x48] sm:$0xff] }
  0xed   :  { %1196 = vmatmul.mubr.f32.gmra.mxu0 %v7302_v53  ;;  %5431 = vmatmul.mubr.f32.gmra.mxu1 %v7316_v41  ;;  %v868_v41 = vld [vmem:[#allocation2 + $0x220] sm:$0xff] }
  0xee   :  { %1200 = vmatprep.mubr.f32.mxu0 %v859_v4  ;;  %5433 = vmatprep.mubr.msk.f32.mxu1 %vm6504_vm0, %v7270_v0 }
  0xef   :  { %v7675_v53 = vpop.f32.mrf.mxu1 }
  0xf1   :  { %1201 = vmatmul.mubr.f32.gmra.mxu0 %v858_v8  ;;  %5434 = vmatmul.mubr.f32.gmra.mxu1 %v7331_v58  ;;  %v867_v58 = vld [vmem:[#allocation2 + $0x408] sm:$0xff]  ;;  %v3055_v8 = vld [vmem:[#allocation3 + $0x4b8] sm:$0xff] }
  0xf2   :  { %1205 = vmatprep.mubr.f32.mxu0 %v7338_v37  ;;  %5436 = vmatprep.mubr.msk.f32.mxu1 %vm6504_vm0, %v7270_v0  ;;  %v5297_v37 = vpop.f32.mrf.mxu1 }
  0xf3   :  { %v3095_v37 = vld [vmem:[#allocation3 + $0x5f8] sm:$0xff] }
  0xf5   :  { %1206 = vmatmul.mubr.f32.gmra.mxu0 %v7347_v60  ;;  %5437 = vmatmul.mubr.f32.gmra.mxu1 %v887_v2  ;;  %v7680_v60 = vpop.f32.mrf.mxu1 }
  0xf6   :  { %1210 = vmatprep.mubr.f32.mxu0 %v7363_v42  ;;  %5439 = vmatprep.mubr.msk.f32.mxu1 %vm6504_vm0, %v7270_v0  ;;  %v896_v42 = vld [vmem:[#allocation2 + $0x258] sm:$0xff] }
  0xf9   :  { %1211 = vmatmul.mubr.f32.gmra.mxu0 %v7371_v3  ;;  %5440 = vmatmul.mubr.f32.gmra.mxu1 %v7379_v59  ;;  %v5300_v3 = vpop.f32.mrf.mxu1 }
  0xfa   :  { %1215 = vmatprep.mubr.f32.mxu0 %v868_v41  ;;  %5442 = vmatprep.mubr.msk.f32.mxu1 %vm6504_vm0, %v7270_v0  ;;  %v566_v41 = vld [vmem:[#allocation2 + $0x38] sm:$0xff] }
  0xfb   :  { %v7687_v59 = vpop.f32.mrf.mxu1 }
  0xfd   :  { %1216 = vmatmul.mubr.f32.gmra.mxu0 %v867_v58  ;;  %5443 = vmatmul.mubr.f32.gmra.mxu1 %v7394_v7  ;;  %v5303_v6 = vpop.f32.mrf.mxu1 }
  0xfe   :  { %1220 = vmatprep.mubr.f32.mxu0 %v7405_v54  ;;  %5445 = vmatprep.mubr.msk.f32.mxu1 %vm6504_vm0, %v7270_v0  ;;  %v9942_v54 = vld [vmem:[#allocation16_spill] sm:$0xff] }
  0xff   :  { %v7692_v7 = vpop.f32.mrf.mxu1 }
 0x101   :  { %1221 = vmatmul.mubr.f32.gmra.mxu0 %v7412_v13  ;;  %5446 = vmatmul.mubr.f32.gmra.mxu1 %v896_v42  ;;  %v876_v13 = vld [vmem:[#allocation2 + $0x4c8] sm:$0xff]  ;;  %v5306_v17 = vpop.f32.mrf.mxu1 }
 0x102   :  { %1225 = vmatprep.mubr.f32.mxu0 %v7429_v15  ;;  %1650 = vmatprep.mubr.f32.mxu1 %v7434_v16  ;;  %v3061_v16 = vld [vmem:[#allocation3 + $0x4e8] sm:$0xff] }
 0x103   :  { %v7697_v15 = vpop.f32.mrf.mxu1 }
 0x105   :  { %1226 = vmatmul.mubr.f32.gmra.mxu0 %v7439_v9  ;;  %1651 = vmatmul.mubr.f32.vlgmr.msra.gmra.mxu1 %v9942_v54  ;;  %v548_v9 = vld [vmem:[#allocation2 + $0x440] sm:$0xff]  ;;  %v5309_v27 = vpop.f32.mrf.mxu1 }
 0x106   :  { %3097 = vmatpush1.msra.mxu1 %v3063_v12  ;;  %1230 = vmatprep.mubr.f32.mxu0 %v877_v43  ;;  %v569_v12 = vld [vmem:[#allocation2 + $0x470] sm:$0xff] }
 0x107   :  { %1655 = vmatprep.mubr.f32.mxu1 %v7463_v52  ;;  %3098 = vmatprep.subr.mxu1 %v7270_v0  ;;  %v7703_v52 = vpop.f32.mrf.mxu1 }
 0x108   :  { %3099 = vmatpush1.msra.mxu1 %v3062_v14  ;;  %v573_v14 = vld [vmem:[#allocation2 + $0x288] sm:$0xff] }
 0x109   :  { %1231 = vmatmul.mubr.f32.gmra.mxu0 %v876_v13  ;;  %1656 = vmatmul.mubr.f32.gmra.mxu1 %v7469_v25  ;;  %v551_v25 = vld [vmem:[#allocation2 + $0x510] sm:$0xff]  ;;  %v5312_v38 = vpop.f32.mrf.mxu1  ;;  %v7747_v13 = vld [vmem:[#allocation2 + $0x280] sm:$0xff] }
 0x10a   :  { %1235 = vmatprep.mubr.f32.mxu0 %v7479_v10  ;;  %1660 = vmatprep.mubr.f32.mxu1 %v549_v50  ;;  %v555_v10 = vld [vmem:[#allocation2 + $0x500] sm:$0xff] }
 0x10b   :  { %3100 = vmatprep.subr.mxu1 %v7270_v0  ;;  %v7708_v22 = vpop.f32.mrf.mxu1  ;;  %v3093_v50 = vld [vmem:[#allocation3 + $0x5e8] sm:$0xff] }
 0x10c   :  { %3101 = vmatpush1.msra.mxu1 %v3061_v16 }
 0x10d   :  { %1236 = vmatmul.mubr.f32.gmra.mxu0 %v7484_v26  ;;  %1661 = vmatmul.mubr.f32.gmra.mxu1 %v548_v9  ;;  %v3059_v26 = vld [vmem:[#allocation3 + $0x4d8] sm:$0xff]  ;;  %v5315_v5 = vpop.f32.mrf.mxu1  ;;  %v550_v9 = vld [vmem:[#allocation2 + $0x108] sm:$0xff] }
 0x10e   :  { %1240 = vmatprep.mubr.f32.mxu0 %v7503_v24  ;;  %1665 = vmatprep.mubr.f32.mxu1 %v552_v28  ;;  %v558_v24 = vld [vmem:[#allocation2 + $0x530] sm:$0xff] }
 0x10f   :  { %3102 = vmatprep.subr.mxu1 %v7270_v0  ;;  %v7711_v18 = vpop.f32.mrf.mxu1  ;;  %v579_v5 = vld [vmem:[#allocation2 + $0x30] sm:$0xff] }
 0x110   :  { %3103 = vmatpush1.msra.mxu1 %v3060_v36  ;;  %v576_v36 = vld [vmem:[#allocation2 + $0x78] sm:$0xff] }
 0x111   :  { %1241 = vmatmul.mubr.f32.gmra.mxu0 %v7508_v32  ;;  %1666 = vmatmul.mubr.f32.gmra.mxu1 %v551_v25  ;;  %v557_v32 = vld [vmem:[#allocation2 + $0x2b8] sm:$0xff]  ;;  %v5318_v20 = vpop.f32.mrf.mxu1 }
 0x112   :  { %1245 = vmatprep.mubr.f32.mxu0 %v886_v44  ;;  %1670 = vmatprep.mubr.f32.mxu1 %v555_v10  ;;  %v575_v10 = vld [vmem:[#allocation2 + $0x1c0] sm:$0xff] }
 0x113   :  { %3104 = vmatprep.subr.mxu1 %v7270_v0  ;;  %v7716_v57 = vpop.f32.mrf.mxu1 }
 0x114   :  { %3105 = vmatpush1.msra.mxu1 %v3059_v26  ;;  %v553_v26 = vld [vmem:[#allocation2 + $0x318] sm:$0xff] }
 0x115   :  { %1246 = vmatmul.mubr.f32.gmra.mxu0 %v885_v62  ;;  %1671 = vmatmul.mubr.f32.gmra.mxu1 %v554_v1  ;;  %v5321_v33 = vpop.f32.mrf.mxu1 }
 0x116   :  { %1250 = vmatprep.mubr.f32.mxu0 %v7527_v45  ;;  %1675 = vmatprep.mubr.f32.mxu1 %v558_v24  ;;  %v1012_v29 = vpop.f32.mrf.mxu0  ;;  %v560_v45 = vld [vmem:[#allocation2 + $0x320] sm:$0xff]  ;;  %v3052_v24 = vld [vmem:[#allocation3 + $0x4a0] sm:$0xff]  ;;  %v3051_v33 = vld [vmem:[#allocation3 + $0x498] sm:$0xff] }
 0x117   :  { %3106 = vmatprep.subr.mxu1 %v7270_v0  ;;  %v7719_v39 = vadd.f32 %v7675_v53, %v1012_v29  ;;  %v556_v29 = vld [vmem:[#allocation2 + $0x58] sm:$0xff] }
 0x118   :  { %3107 = vmatpush1.msra.mxu1 %v3058_v31  ;;  %v1014_v11 = vpop.f32.mrf.mxu0 }
 0x119   :  { %1251 = vmatmul.mubr.f32.gmra.mxu0 %v7536_v49  ;;  %1676 = vmatmul.mubr.f32.gmra.mxu1 %v557_v32  ;;  %v7724_v49 = vpop.f32.mrf.mxu1  ;;  %v582_v11 = vld [vmem:[#allocation2 + $0x98] sm:$0xff] }
 0x11a   :  { %1255 = vmatprep.mubr.f32.mxu0 %v7550_v46  ;;  %1680 = vmatprep.mubr.f32.mxu1 %v561_v51  ;;  %v1017_v63 = vpop.f32.mrf.mxu0  ;;  %v894_v46 = vld [vmem:[#allocation2 + $0x2f0] sm:$0xff]  ;;  %v578_v51 = vld [vmem:[#allocation2 + $0x2f8] sm:$0xff] }
 0x11b   :  { %3108 = vmatprep.subr.mxu1 %v7270_v0  ;;  %v7727_v47 = vadd.f32 %v7680_v60, %v1017_v63  ;;  %v5324_v56 = vpop.f32.mrf.mxu1  ;;  %v570_v60 = vld [vmem:[#allocation2 + $0x4b8] sm:$0xff] }
 0x11c   :  { %3109 = vmatpush1.msra.mxu1 %v3057_v34  ;;  %v1019_v61 = vpop.f32.mrf.mxu0  ;;  %v585_v56 = vld [vmem:[#allocation2 + $0x50] sm:$0xff] }
 0x11d   :  { %1256 = vmatmul.mubr.f32.gmra.mxu0 %v7556_v55  ;;  %1681 = vmatmul.mubr.f32.gmra.mxu1 %v560_v45  ;;  %v7730_v55 = vpop.f32.mrf.mxu1 }
 0x11e   :  { %1260 = vmatprep.mubr.f32.mxu0 %v895_v40  ;;  %1685 = vmatprep.mubr.f32.mxu1 %v564_v19  ;;  %v1022_v4 = vpop.f32.mrf.mxu0 }
 0x11f   :  { %3110 = vmatprep.subr.mxu1 %v7270_v0  ;;  %v7733_v2 = vadd.f32 %v7687_v59, %v1022_v4  ;;  %v5327_v58 = vpop.f32.mrf.mxu1  ;;  %v3094_v59 = vld [vmem:[#allocation3 + $0x5f0] sm:$0xff] }
 0x120   :  { %3111 = vmatpush1.msra.mxu1 %v3056_v21  ;;  %v1024_v53 = vpop.f32.mrf.mxu0  ;;  %v581_v21 = vld [vmem:[#allocation2 + $0xa0] sm:$0xff] }
 0x121   :  { %1261 = vmatmul.mubr.f32.gmra.mxu0 %v894_v46  ;;  %1686 = vmatmul.mubr.f32.gmra.mxu1 %v563_v35  ;;  %v559_v46 = vld [vmem:[#allocation2 + $0x8] sm:$0xff]  ;;  %v562_v58 = vld [vmem:[#allocation2 + $0x3a0] sm:$0xff] }
 0x122   :  { %1690 = vmatprep.mubr.f32.mxu1 %v567_v30  ;;  %5480 = vmatprep.mubr.msk.f32.mxu0 %vm6504_vm0, %v7270_v0  ;;  %v3050_v30 = vld [vmem:[#allocation3 + $0x490] sm:$0xff] }
 0x123   :  { %3112 = vmatprep.subr.mxu1 %v7270_v0  ;;  %v584_v53 = vld [vmem:[#allocation2 + $0x2e8] sm:$0xff] }
 0x124   :  { %3113 = vmatpush1.msra.mxu1 %v3055_v8  ;;  %v1027_v42 = vpop.f32.mrf.mxu0  ;;  %v7738_v3 = vpop.f32.mrf.mxu1 }
 0x125   :  { %1691 = vmatmul.mubr.f32.gmra.mxu1 %v566_v41  ;;  %5481 = vmatmul.mubr.f32.vlgmr.msra.gmra.mxu0 %v7573_v23  ;;  %v7742_v6 = vadd.f32 %v7692_v7, %v1027_v42  ;;  %v3054_v23 = vld [vmem:[#allocation3 + $0x4b0] sm:$0xff]  ;;  %v588_v42 = vld [vmem:[#allocation2 + $0x1d8] sm:$0xff] }
 0x126   :  { %5634 = vmatpush3.msra.mxu0 %v3095_v37  ;;  %1695 = vmatprep.mubr.f32.mxu1 %v570_v60  ;;  %v1029_v43 = vpop.f32.mrf.mxu0  ;;  %v5330_v54 = vpop.f32.mrf.mxu1 }
 0x127   :  { %5483 = vmatprep.mubr.msk.f32.mxu0 %vm6504_vm0, %v7270_v0  ;;  %5635 = vmatprep.subr.mxu0 %v7270_v0  ;;  %v572_v0 = vld [vmem:[#allocation2 + $0xd0] sm:$0xff] }
 0x128   :  { %5636 = vmatpush3.msra.mxu0 %v3094_v59  ;;  %3114 = vmatprep.subr.mxu1 %v7747_v13  ;;  %v1032_v17 = vpop.f32.mrf.mxu0  ;;  %v7750_v7 = vpop.f32.mrf.mxu1  ;;  %v3049_v59 = vld [vmem:[#allocation3 + $0x488] sm:$0xff] }
 0x129   :  { %1696 = vmatmul.mubr.f32.gmra.mxu1 %v569_v12  ;;  %5484 = vmatmul.mubr.f32.gmra.mxu0 %v7586_v48  ;;  %v7754_v16 = vadd.f32 %v7697_v15, %v1032_v17  ;;  %v3053_v48 = vld [vmem:[#allocation3 + $0x4a8] sm:$0xff]  ;;  %v3092_v15 = vld [vmem:[#allocation3 + $0x5e0] sm:$0xff] }
 0x12a   :  { %1700 = vmatprep.mubr.f32.mxu1 %v573_v14  ;;  %5486 = vmatprep.mubr.msk.f32.mxu0 %vm6504_vm0, %v7747_v13  ;;  %v1034_v27 = vpop.f32.mrf.mxu0  ;;  %v5333_v28 = vpop.f32.mrf.mxu1  ;;  %v587_v14 = vld [vmem:[#allocation2 + $0x150] sm:$0xff] }
 0x12b   :  { %5637 = vmatprep.subr.mxu0 %v7747_v13  ;;  %3115 = vmatpush1.msra.mxu1 %v3054_v23  ;;  %v565_v23 = vld [vmem:[#allocation2 + $0xb8] sm:$0xff] }
 0x12c   :  { %5638 = vmatpush3.msra.mxu0 %v3093_v50  ;;  %3116 = vmatprep.subr.mxu1 %v7747_v13  ;;  %v7760_v38 = vpop.f32.mrf.mxu1 }
 0x12d   :  { %v1037_v25 = vpop.f32.mrf.mxu0  ;;  %1701 = vmatmul.mubr.f32.gmra.mxu1 %v572_v0  ;;  %5487 = vmatmul.mubr.f32.gmra.mxu0 %v550_v9  ;;  %v591_v0 = vld [vmem:[#allocation2 + $0x2d0] sm:$0xff]  ;;  %v3048_v9 = vld [vmem:[#allocation3 + $0x480] sm:$0xff] }
 0x12e   :  { %v7763_v44 = vadd.f32 %v7703_v52, %v1037_v25  ;;  %1705 = vmatprep.mubr.f32.mxu1 %v576_v36  ;;  %5489 = vmatprep.mubr.msk.f32.mxu0 %vm6504_vm0, %v7747_v13  ;;  %v5336_v1 = vpop.f32.mrf.mxu1  ;;  %v3091_v52 = vld [vmem:[#allocation3 + $0x5d8] sm:$0xff]  ;;  %v568_v25 = vld [vmem:[#allocation2 + $0x398] sm:$0xff] }
 0x12f   :  { %v1039_v62 = vpop.f32.mrf.mxu0  ;;  %3117 = vmatpush1.msra.mxu1 %v3053_v48  ;;  %5639 = vmatprep.subr.mxu0 %v7747_v13  ;;  %v590_v48 = vld [vmem:[#allocation2 + $0x1e0] sm:$0xff] }
 0x130   :  { %3118 = vmatprep.subr.mxu1 %v7747_v13  ;;  %5640 = vmatpush3.msra.mxu0 %v3092_v15  ;;  %v3079_v62 = vld [vmem:[#allocation3 + $0x578] sm:$0xff] }
 0x131   :  { %v1042_v31 = vpop.f32.mrf.mxu0  ;;  %v7769_v32 = vpop.f32.mrf.mxu1  ;;  %1706 = vmatmul.mubr.f32.gmra.mxu1 %v575_v10  ;;  %5490 = vmatmul.mubr.f32.gmra.mxu0 %v553_v26  ;;  %v594_v26 = vld [vmem:[#allocation2 + $0x550] sm:$0xff] }
 0x132   :  { %v7772_v20 = vadd.f32 %v7708_v22, %v1042_v31  ;;  %1710 = vmatprep.mubr.f32.mxu1 %v579_v5  ;;  %5492 = vmatprep.mubr.msk.f32.mxu0 %vm6504_vm0, %v7747_v13  ;;  %v3090_v22 = vld [vmem:[#allocation3 + $0x5d0] sm:$0xff] }
 0x133   :  { %v1044_v34 = vpop.f32.mrf.mxu0  ;;  %v5339_v45 = vpop.f32.mrf.mxu1  ;;  %3119 = vmatpush1.msra.mxu1 %v3052_v24  ;;  %5641 = vmatprep.subr.mxu0 %v7747_v13  ;;  %v593_v31 = vld [vmem:[#allocation2 + $0x248] sm:$0xff] }
 0x134   :  { %3120 = vmatprep.subr.mxu1 %v7747_v13  ;;  %5642 = vmatpush3.msra.mxu0 %v3091_v52  ;;  %v571_v52 = vld [vmem:[#allocation2 + $0x3a8] sm:$0xff]  ;;  %v597_v34 = vld [vmem:[#allocation2 + $0x3c0] sm:$0xff] }
 0x135   :  { %v1047_v40 = vpop.f32.mrf.mxu0  ;;  %v7778_v19 = vpop.f32.mrf.mxu1  ;;  %1711 = vmatmul.mubr.f32.gmra.mxu1 %v578_v51  ;;  %5493 = vmatmul.mubr.f32.gmra.mxu0 %v556_v29  ;;  %v3078_v45 = vld [vmem:[#allocation3 + $0x570] sm:$0xff] }
 0x136   :  { %v7781_v63 = vadd.f32 %v7711_v18, %v1047_v40  ;;  %1715 = vmatprep.mubr.f32.mxu1 %v582_v11  ;;  %5495 = vmatprep.mubr.msk.f32.mxu0 %vm6504_vm0, %v7747_v13  ;;  %v3089_v18 = vld [vmem:[#allocation3 + $0x5c8] sm:$0xff] }
 0x137   :  { %v1049_v35 = vpop.f32.mrf.mxu0  ;;  %v5342_v61 = vpop.f32.mrf.mxu1  ;;  %3121 = vmatpush1.msra.mxu1 %v3051_v33  ;;  %5643 = vmatprep.subr.mxu0 %v7747_v13 }
 0x138   :  { %3122 = vmatprep.subr.mxu1 %v7747_v13  ;;  %5644 = vmatpush3.msra.mxu0 %v3090_v22  ;;  %v596_v22 = vld [vmem:[#allocation2 + $0x110] sm:$0xff]  ;;  %v600_v61 = vld [vmem:[#allocation2 + $0x68] sm:$0xff] }
 0x139   :  { %v1052_v4 = vpop.f32.mrf.mxu0  ;;  %v7787_v8 = vpop.f32.mrf.mxu1  ;;  %1716 = vmatmul.mubr.f32.gmra.mxu1 %v581_v21  ;;  %5496 = vmatmul.mubr.f32.gmra.mxu0 %v559_v46  ;;  %v574_v21 = vld [vmem:[#allocation2 + $0x498] sm:$0xff] }
 0x13a   :  { %v7790_v41 = vadd.f32 %v7716_v57, %v1052_v4  ;;  %1720 = vmatprep.mubr.f32.mxu1 %v585_v56  ;;  %5498 = vmatprep.mubr.msk.f32.mxu0 %vm6504_vm0, %v7747_v13  ;;  %v3088_v57 = vld [vmem:[#allocation3 + $0x5c0] sm:$0xff]  ;;  %v3077_v56 = vld [vmem:[#allocation3 + $0x568] sm:$0xff] }
 0x13b   :  { %v1054_v37 = vpop.f32.mrf.mxu0  ;;  %v5345_v60 = vpop.f32.mrf.mxu1  ;;  %3123 = vmatpush1.msra.mxu1 %v3050_v30  ;;  %5645 = vmatprep.subr.mxu0 %v7747_v13 }
 0x13c   :  { %3124 = vmatprep.subr.mxu1 %v7747_v13  ;;  %5646 = vmatpush3.msra.mxu0 %v3089_v18 }
 0x13d   :  { %v1057_v12 = vpop.f32.mrf.mxu0  ;;  %v7796_v43 = vpop.f32.mrf.mxu1  ;;  %1721 = vmatmul.mubr.f32.gmra.mxu1 %v584_v53  ;;  %5499 = vmatmul.mubr.f32.gmra.mxu0 %v562_v58  ;;  %v599_v53 = vld [vmem:[#allocation2 + $0x118] sm:$0xff]  ;;  %v577_v58 = vld [vmem:[#allocation2 + $0x390] sm:$0xff] }
 0x13e   :  { %v7799_v54 = vadd.f32 %v7724_v49, %v1057_v12  ;;  %1725 = vmatprep.mubr.f32.mxu1 %v588_v42  ;;  %5501 = vmatprep.mubr.msk.f32.mxu0 %vm6504_vm0, %v7747_v13  ;;  %v3087_v49 = vld [vmem:[#allocation3 + $0x5b8] sm:$0xff] }
 0x13f   :  { %v1059_v17 = vpop.f32.mrf.mxu0  ;;  %v5348_v50 = vpop.f32.mrf.mxu1  ;;  %3125 = vmatpush1.msra.mxu1 %v3049_v59  ;;  %5647 = vmatprep.subr.mxu0 %v7747_v13  ;;  %v603_v42 = vld [vmem:[#allocation2 + $0x350] sm:$0xff]  ;;  %v3076_v59 = vld [vmem:[#allocation3 + $0x560] sm:$0xff] }
 0x140   :  { %3126 = vmatprep.subr.mxu1 %v7747_v13  ;;  %5648 = vmatpush3.msra.mxu0 %v3088_v57  ;;  %v580_v17 = vld [vmem:[#allocation2 + $0x268] sm:$0xff] }
 0x141   :  { %v1062_v27 = vpop.f32.mrf.mxu0  ;;  %v7805_v28 = vpop.f32.mrf.mxu1  ;;  %1726 = vmatmul.mubr.f32.gmra.mxu1 %v587_v14  ;;  %5502 = vmatmul.mubr.f32.gmra.mxu0 %v565_v23  ;;  %v602_v23 = vld [vmem:[#allocation2 + $0x3f8] sm:$0xff] }
 0x142   :  { %v7808_v36 = vadd.f32 %v7730_v55, %v1062_v27  ;;  %1730 = vmatprep.mubr.f32.mxu1 %v591_v0  ;;  %5504 = vmatprep.mubr.msk.f32.mxu0 %vm6504_vm0, %v7747_v13  ;;  %v3086_v55 = vld [vmem:[#allocation3 + $0x5b0] sm:$0xff]  ;;  %v3075_v27 = vld [vmem:[#allocation3 + $0x558] sm:$0xff] }
 0x143   :  { %v1064_v15 = vpop.f32.mrf.mxu0  ;;  %v5351_v10 = vpop.f32.mrf.mxu1  ;;  %3127 = vmatpush1.msra.mxu1 %v3048_v9  ;;  %5649 = vmatprep.subr.mxu0 %v7747_v13  ;;  %v606_v9 = vld [vmem:[#allocation2 + $0x70] sm:$0xff] }
 0x144   :  { %3128 = vmatprep.subr.mxu1 %v7747_v13  ;;  %5650 = vmatpush3.msra.mxu0 %v3087_v49  ;;  %v605_v15 = vld [vmem:[#allocation2 + $0x180] sm:$0xff]  ;;  %v583_v10 = vld [vmem:[#allocation2 + $0xd8] sm:$0xff] }
 0x145   :  { %v1067_v1 = vpop.f32.mrf.mxu0  ;;  %v7814_v5 = vpop.f32.mrf.mxu1  ;;  %1731 = vmatmul.mubr.f32.gmra.mxu1 %v590_v48  ;;  %5505 = vmatmul.mubr.f32.gmra.mxu0 %v568_v25 }
 0x146   :  { %v7817_v24 = vadd.f32 %v7738_v3, %v1067_v1  ;;  %1735 = vmatprep.mubr.f32.mxu1 %v594_v26  ;;  %5507 = vmatprep.mubr.msk.f32.mxu0 %vm6504_vm0, %v7747_v13  ;;  %v3085_v3 = vld [vmem:[#allocation3 + $0x5a8] sm:$0xff] }
 0x147   :  { %v1069_v51 = vpop.f32.mrf.mxu0  ;;  %v5354_v29 = vpop.f32.mrf.mxu1  ;;  %3129 = vmatpush2.msra.mxu1 %v3079_v62  ;;  %5651 = vmatprep.subr.mxu0 %v7747_v13  ;;  %v609_v1 = vld [vmem:[#allocation2 + $0x400] sm:$0xff] }
 0x148   :  { %3130 = vmatprep.subr.mxu1 %v7747_v13  ;;  %5652 = vmatpush3.msra.mxu0 %v3086_v55  ;;  %v3074_v55 = vld [vmem:[#allocation3 + $0x550] sm:$0xff]  ;;  %v608_v51 = vld [vmem:[#allocation2 + $0x380] sm:$0xff] }
 0x149   :  { %v1072_v11 = vpop.f32.mrf.mxu0  ;;  %v7823_v33 = vpop.f32.mrf.mxu1  ;;  %1736 = vmatmul.mubr.f32.gmra.mxu1 %v593_v31  ;;  %5508 = vmatmul.mubr.f32.gmra.mxu0 %v571_v52  ;;  %v586_v29 = vld [vmem:[#allocation2 + $0x200] sm:$0xff] }
 0x14a   :  { %v7826_v40 = vadd.f32 %v7750_v7, %v1072_v11  ;;  %1740 = vmatprep.mubr.f32.mxu1 %v597_v34  ;;  %5510 = vmatprep.mubr.msk.f32.mxu0 %vm6504_vm0, %v7747_v13  ;;  %v3084_v7 = vld [vmem:[#allocation3 + $0x5a0] sm:$0xff]  ;;  %v3081_v34 = vld [vmem:[#allocation3 + $0x588] sm:$0xff] }
 0x14b   :  { %v1074_v46 = vpop.f32.mrf.mxu0  ;;  %v5357_v35 = vpop.f32.mrf.mxu1  ;;  %3131 = vmatpush2.msra.mxu1 %v3078_v45  ;;  %5653 = vmatprep.subr.mxu0 %v7747_v13 }
 0x14c   :  { %3132 = vmatprep.subr.mxu1 %v7747_v13  ;;  %5654 = vmatpush3.msra.mxu0 %v3085_v3  ;;  %v612_v3 = vld [vmem:[#allocation2 + $0xf8] sm:$0xff]  ;;  %v611_v35 = vld [vmem:[#allocation2 + $0x348] sm:$0xff] }
 0x14d   :  { %v1077_v30 = vpop.f32.mrf.mxu0  ;;  %v7832_v4 = vpop.f32.mrf.mxu1  ;;  %1741 = vmatmul.mubr.f32.gmra.mxu1 %v596_v22  ;;  %5511 = vmatmul.mubr.f32.gmra.mxu0 %v574_v21  ;;  %v3073_v22 = vld [vmem:[#allocation3 + $0x548] sm:$0xff] }
 0x14e   :  { %v7835_v18 = vadd.f32 %v7760_v38, %v1077_v30  ;;  %1745 = vmatprep.mubr.f32.mxu1 %v600_v61  ;;  %5513 = vmatprep.mubr.msk.f32.mxu0 %vm6504_vm0, %v7747_v13  ;;  %v3083_v38 = vld [vmem:[#allocation3 + $0x598] sm:$0xff]  ;;  %v589_v61 = vld [vmem:[#allocation2 + $0x4c0] sm:$0xff] }
 0x14f   :  { %v1079_v37 = vpop.f32.mrf.mxu0  ;;  %v5360_v60 = vpop.f32.mrf.mxu1  ;;  %3133 = vmatpush2.msra.mxu1 %v3077_v56  ;;  %5655 = vmatprep.subr.mxu0 %v7747_v13 }
 0x150   :  { %3134 = vmatprep.subr.mxu1 %v7747_v13  ;;  %5656 = vmatpush3.msra.mxu0 %v3084_v7  ;;  %v615_v7 = vld [vmem:[#allocation2 + $0x170] sm:$0xff] }
 0x151   :  { %v1082_v12 = vpop.f32.mrf.mxu0  ;;  %v7841_v57 = vpop.f32.mrf.mxu1  ;;  %1746 = vmatmul.mubr.f32.gmra.mxu1 %v599_v53  ;;  %5514 = vmatmul.mubr.f32.gmra.mxu0 %v577_v58  ;;  %v3072_v53 = vld [vmem:[#allocation3 + $0x540] sm:$0xff]  ;;  %v614_v60 = vld [vmem:[#allocation2 + $0x4b0] sm:$0xff] }
 0x152   :  { %v7844_v14 = vadd.f32 %v7769_v32, %v1082_v12  ;;  %1750 = vmatprep.mubr.f32.mxu1 %v603_v42  ;;  %5516 = vmatprep.mubr.msk.f32.mxu0 %vm6504_vm0, %v7747_v13  ;;  %v3082_v32 = vld [vmem:[#allocation3 + $0x590] sm:$0xff]  ;;  %v592_v42 = vld [vmem:[#allocation2 + $0x240] sm:$0xff] }
 0x153   :  { %v1084_v50 = vpop.f32.mrf.mxu0  ;;  %v5363_v0 = vpop.f32.mrf.mxu1  ;;  %3135 = vmatpush2.msra.mxu1 %v3076_v59  ;;  %5657 = vmatprep.subr.mxu0 %v7747_v13 }
 0x154   :  { %3136 = vmatprep.subr.mxu1 %v7747_v13  ;;  %5658 = vmatpush3.msra.mxu0 %v3083_v38  ;;  %v618_v38 = vld [vmem:[#allocation2 + $0x260] sm:$0xff]  ;;  %v617_v0 = vld [vmem:[#allocation2 + $0x310] sm:$0xff] }
 0x155   :  { %v1087_v49 = vpop.f32.mrf.mxu0  ;;  %v7850_v48 = vpop.f32.mrf.mxu1  ;;  %1751 = vmatmul.mubr.f32.gmra.mxu1 %v602_v23  ;;  %5517 = vmatmul.mubr.f32.gmra.mxu0 %v580_v17  ;;  %v3071_v23 = vld [vmem:[#allocation3 + $0x538] sm:$0xff] }
 0x156   :  { %v7853_v25 = vadd.f32 %v7778_v19, %v1087_v49  ;;  %1755 = vmatprep.mubr.f32.mxu1 %v606_v9  ;;  %5519 = vmatprep.mubr.msk.f32.mxu0 %vm6504_vm0, %v7747_v13  ;;  %v595_v9 = vld [vmem:[#allocation2 + $0x1a0] sm:$0xff] }
 0x157   :  { %v1089_v26 = vpop.f32.mrf.mxu0  ;;  %v5366_v62 = vpop.f32.mrf.mxu1  ;;  %3137 = vmatpush2.msra.mxu1 %v3075_v27  ;;  %5659 = vmatprep.subr.mxu0 %v7747_v13 }
 0x158   :  { %3138 = vmatprep.subr.mxu1 %v7747_v13  ;;  %5660 = vmatpush3.msra.mxu0 %v3082_v32  ;;  %v621_v32 = vld [vmem:[#allocation2 + $0x10] sm:$0xff]  ;;  %v620_v62 = vld [vmem:[#allocation2 + $0x4e8] sm:$0xff] }
 0x159   :  { %v1092_v31 = vpop.f32.mrf.mxu0  ;;  %v7859_v52 = vpop.f32.mrf.mxu1  ;;  %1756 = vmatmul.mubr.f32.gmra.mxu1 %v605_v15  ;;  %5520 = vmatmul.mubr.f32.gmra.mxu0 %v583_v10  ;;  %v3070_v15 = vld [vmem:[#allocation3 + $0x530] sm:$0xff] }
 0x15a   :  { %v7862_v19 = vadd.f32 %v7787_v8, %v1092_v31  ;;  %1760 = vmatprep.mubr.f32.mxu1 %v609_v1  ;;  %5522 = vmatprep.mubr.msk.f32.mxu0 %vm6504_vm0, %v7747_v13  ;;  %v598_v1 = vld [vmem:[#allocation2 + $0x298] sm:$0xff] }
 0x15b   :  { %v1094_v45 = vpop.f32.mrf.mxu0  ;;  %v5369_v11 = vpop.f32.mrf.mxu1  ;;  %3139 = vmatpush2.msra.mxu1 %v3074_v55  ;;  %5661 = vmatprep.subr.mxu0 %v7747_v13 }
 0x15c   :  { %3140 = vmatprep.subr.mxu1 %v7747_v13  ;;  %5662 = vmatpush3.msra.mxu0 %v3081_v34  ;;  %v623_v11 = vld [vmem:[#allocation2 + $0x338] sm:$0xff] }
 0x15d   :  { %v1097_v21 = vpop.f32.mrf.mxu0  ;;  %v7868_v8 = vpop.f32.mrf.mxu1  ;;  %1761 = vmatmul.mubr.f32.gmra.mxu1 %v608_v51  ;;  %5523 = vmatmul.mubr.f32.gmra.mxu0 %v586_v29  ;;  %v624_v51 = vld [vmem:[#allocation2 + $0x358] sm:$0xff]  ;;  %v3069_v29 = vld [vmem:[#allocation3 + $0x528] sm:$0xff] }
 0x15e   :  { %v7871_v46 = vadd.f32 %v7796_v43, %v1097_v21  ;;  %1765 = vmatprep.mubr.f32.mxu1 %v612_v3  ;;  %5525 = vmatprep.mubr.msk.f32.mxu0 %vm6504_vm0, %v7747_v13  ;;  %v601_v3 = vld [vmem:[#allocation2 + $0xa8] sm:$0xff] }
 0x15f   :  { %v1099_v56 = vpop.f32.mrf.mxu0  ;;  %v5372_v30 = vpop.f32.mrf.mxu1  ;;  %3141 = vmatpush2.msra.mxu1 %v3073_v22  ;;  %5663 = vmatprep.subr.mxu0 %v7747_v13 }
 0x160   :  { %3142 = vmatprep.subr.mxu1 %v7747_v13  ;;  %v3068_v56 = vld [vmem:[#allocation3 + $0x520] sm:$0xff] }
 0x161   :  { %v1102_v58 = vpop.f32.mrf.mxu0  ;;  %v7877_v37 = vpop.f32.mrf.mxu1  ;;  %1766 = vmatmul.mubr.f32.gmra.mxu1 %v611_v35  ;;  %5526 = vmatmul.mubr.f32.gmra.mxu0 %v589_v61  ;;  %v627_v35 = vld [vmem:[#allocation2 + $0x520] sm:$0xff]  ;;  %v3080_v61 = vld [vmem:[#allocation3 + $0x580] sm:$0xff] }
 0x162   :  { %v7880_v43 = vadd.f32 %v7805_v28, %v1102_v58  ;;  %1770 = vmatprep.mubr.f32.mxu1 %v615_v7  ;;  %5528 = vmatprep.mubr.msk.f32.mxu0 %vm6504_vm0, %v7747_v13  ;;  %v604_v58 = vld [vmem:[#allocation2 + $0x250] sm:$0xff] }
 0x163   :  { %v1104_v59 = vpop.f32.mrf.mxu0  ;;  %v5375_v12 = vpop.f32.mrf.mxu1  ;;  %3143 = vmatpush2.msra.mxu1 %v3072_v53  ;;  %5664 = vmatpush3.msra.mxu0 %v3080_v61  ;;  %v626_v53 = vld [vmem:[#allocation2 + $0x528] sm:$0xff]  ;;  %v639_v61 = vld [vmem:[#allocation2 + $0x1f8] sm:$0xff] }
 0x164   :  { %3144 = vmatprep.subr.mxu1 %v7747_v13  ;;  %v630_v59 = vld [vmem:[#allocation2 + $0x2c0] sm:$0xff]  ;;  %5818 = vmatprep.subr.mxu0 %v7747_v13  ;;  %v3067_v12 = vld [vmem:[#allocation3 + $0x518] sm:$0xff] }
 0x165   :  { %v1107_v17 = vpop.f32.mrf.mxu0  ;;  %v7885_v50 = vpop.f32.mrf.mxu1  ;;  %1771 = vmatmul.mubr.f32.gmra.mxu1 %v614_v60  ;;  %5529 = vmatmul.mubr.f32.gmra.mxu0 %v592_v42 }
 0x166   :  { %v7888_v28 = vadd.f32 %v7814_v5, %v1107_v17  ;;  %1775 = vmatprep.mubr.f32.mxu1 %v618_v38  ;;  %5531 = vmatprep.mubr.msk.f32.mxu0 %vm6504_vm0, %v7747_v13  ;;  %v629_v17 = vld [vmem:[#allocation2 + $0x458] sm:$0xff] }
 0x167   :  { %v1109_v27 = vpop.f32.mrf.mxu0  ;;  %v5378_v49 = vpop.f32.mrf.mxu1  ;;  %3145 = vmatpush2.msra.mxu1 %v3071_v23 }
 0x168   :  { %3146 = vmatprep.subr.mxu1 %v7747_v13  ;;  %v633_v49 = vld [vmem:[#allocation2 + $0x488] sm:$0xff] }
 0x169   :  { %v1112_v10 = vpop.f32.mrf.mxu0  ;;  %v7893_v26 = vpop.f32.mrf.mxu1  ;;  %1776 = vmatmul.mubr.f32.gmra.mxu1 %v617_v0  ;;  %5532 = vmatmul.mubr.f32.gmra.mxu0 %v595_v9  ;;  %v607_v0 = vld [vmem:[#allocation2 + $0x138] sm:$0xff] }
 0x16a   :  { %v7896_v5 = vadd.f32 %v7823_v33, %v1112_v10  ;;  %1780 = vmatprep.mubr.f32.mxu1 %v621_v32  ;;  %5534 = vmatprep.mubr.msk.f32.mxu0 %vm6504_vm0, %v7747_v13  ;;  %v3066_v32 = vld [vmem:[#allocation3 + $0x510] sm:$0xff] }
 0x16b   :  { %v1114_v55 = vpop.f32.mrf.mxu0  ;;  %v5381_v31 = vpop.f32.mrf.mxu1  ;;  %3147 = vmatpush2.msra.mxu1 %v3070_v15 }
 0x16c   :  { %3148 = vmatprep.subr.mxu1 %v7747_v13 }
 0x16d   :  { %v1117_v34 = vpop.f32.mrf.mxu0  ;;  %v7901_v45 = vpop.f32.mrf.mxu1  ;;  %1781 = vmatmul.mubr.f32.gmra.mxu1 %v620_v62  ;;  %5535 = vmatmul.mubr.f32.gmra.mxu0 %v598_v1  ;;  %v632_v62 = vld [vmem:[#allocation2 + $0x270] sm:$0xff]  ;;  %v610_v1 = vld [vmem:[#allocation2 + $0x228] sm:$0xff] }
 0x16e   :  { %v7904_v33 = vadd.f32 %v7832_v4, %v1117_v34  ;;  %1785 = vmatprep.mubr.f32.mxu1 %v624_v51  ;;  %5537 = vmatprep.mubr.msk.f32.mxu0 %vm6504_vm0, %v7747_v13  ;;  %v636_v51 = vld [vmem:[#allocation2 + $0x60] sm:$0xff] }
 0x16f   :  { %v1119_v22 = vpop.f32.mrf.mxu0  ;;  %v5384_v21 = vpop.f32.mrf.mxu1  ;;  %3149 = vmatpush2.msra.mxu1 %v3069_v29  ;;  %v3065_v29 = vld [vmem:[#allocation3 + $0x508] sm:$0xff] }
 0x170   :  { %3150 = vmatprep.subr.mxu1 %v7747_v13  ;;  %v613_v22 = vld [vmem:[#allocation2 + $0x460] sm:$0xff] }
 0x171   :  { %v1122_v30 = vpop.f32.mrf.mxu0  ;;  %v7909_v7 = vpop.f32.mrf.mxu1  ;;  %1786 = vmatmul.mubr.f32.gmra.mxu1 %v623_v11  ;;  %5538 = vmatmul.mubr.f32.gmra.mxu0 %v601_v3  ;;  %v635_v3 = vld [vmem:[#allocation2 + $0xb0] sm:$0xff] }
 0x172   :  { %v7912_v4 = vadd.f32 %v7841_v57, %v1122_v30  ;;  %1790 = vmatprep.mubr.f32.mxu1 %v627_v35  ;;  %5540 = vmatprep.mubr.msk.f32.mxu0 %vm6504_vm0, %v7747_v13 }
 0x173   :  { %v1124_v60 = vpop.f32.mrf.mxu0  ;;  %v5387_v42 = vpop.f32.mrf.mxu1  ;;  %3151 = vmatpush2.msra.mxu1 %v3068_v56  ;;  %v3064_v56 = vld [vmem:[#allocation3 + $0x500] sm:$0xff] }
 0x174   :  { %3152 = vmatprep.subr.mxu1 %v7747_v13  ;;  %v616_v60 = vld [vmem:[#allocation2 + $0x160] sm:$0xff] }
 0x175   :  { %v1127_v38 = vpop.f32.mrf.mxu0  ;;  %v7918_v23 = vpop.f32.mrf.mxu1  ;;  %1791 = vmatmul.mubr.f32.gmra.mxu1 %v626_v53  ;;  %5541 = vmatmul.mubr.f32.gmra.mxu0 %v604_v58  ;;  %v638_v58 = vld [vmem:[#allocation2 + $0x158] sm:$0xff] }
 0x176   :  { %v7921_v57 = vadd.f32 %v7850_v48, %v1127_v38  ;;  %1795 = vmatprep.mubr.f32.mxu1 %v630_v59  ;;  %5543 = vmatprep.mubr.msk.f32.mxu0 %vm6504_vm0, %v7747_v13 }
 0x177   :  { %v1129_v9 = vpop.f32.mrf.mxu0  ;;  %v5390_v27 = vpop.f32.mrf.mxu1  ;;  %3153 = vmatpush2.msra.mxu1 %v3067_v12  ;;  %v642_v12 = vld [vmem:[#allocation2 + $0x2a8] sm:$0xff] }
 0x178   :  { %3154 = vmatprep.subr.mxu1 %v7747_v13  ;;  %v619_v9 = vld [vmem:[#allocation2 + $0x3b8] sm:$0xff] }
 0x179   :  { %v1132_v15 = vpop.f32.mrf.mxu0  ;;  %v7926_v10 = vpop.f32.mrf.mxu1  ;;  %1796 = vmatmul.mubr.f32.gmra.mxu1 %v629_v17  ;;  %5544 = vmatmul.mubr.f32.gmra.mxu0 %v607_v0  ;;  %v641_v0 = vld [vmem:[#allocation2 + $0x3c8] sm:$0xff] }
 0x17a   :  { %v7929_v48 = vadd.f32 %v7859_v52, %v1132_v15  ;;  %1800 = vmatprep.mubr.f32.mxu1 %v633_v49  ;;  %5546 = vmatprep.mubr.msk.f32.mxu0 %vm6504_vm0, %v7747_v13 }
 0x17b   :  { %v1134_v55 = vpop.f32.mrf.mxu0  ;;  %v5393_v31 = vpop.f32.mrf.mxu1  ;;  %3155 = vmatpush2.msra.mxu1 %v3066_v32  ;;  %v645_v32 = vld [vmem:[#allocation2 + $0x3d0] sm:$0xff] }
 0x17c   :  { %3156 = vmatprep.subr.mxu1 %v7747_v13  ;;  %v622_v55 = vld [vmem:[#allocation2 + $0x418] sm:$0xff] }
 0x17d   :  { %v1137_v34 = vpop.f32.mrf.mxu0  ;;  %v7934_v11 = vpop.f32.mrf.mxu1  ;;  %1801 = vmatmul.mubr.f32.gmra.mxu1 %v632_v62  ;;  %5547 = vmatmul.mubr.f32.gmra.mxu0 %v610_v1 }
 0x17e   :  { %v7937_v52 = vadd.f32 %v7868_v8, %v1137_v34  ;;  %1805 = vmatprep.mubr.f32.mxu1 %v636_v51  ;;  %5549 = vmatprep.mubr.msk.f32.mxu0 %vm6504_vm0, %v7747_v13 }
 0x17f   :  { %v1139_v21 = vpop.f32.mrf.mxu0  ;;  %v5396_v35 = vpop.f32.mrf.mxu1  ;;  %3157 = vmatpush2.msra.mxu1 %v3065_v29  ;;  %v648_v29 = vld [vmem:[#allocation2 + $0x410] sm:$0xff] }
 0x180   :  { %3158 = vmatprep.subr.mxu1 %v7747_v13  ;;  %v625_v21 = vld [vmem:[#allocation2 + $0x88] sm:$0xff] }
 0x181   :  { %v1142_v30 = vpop.f32.mrf.mxu0  ;;  %v7942_v53 = vpop.f32.mrf.mxu1  ;;  %1806 = vmatmul.mubr.f32.gmra.mxu1 %v635_v3  ;;  %5550 = vmatmul.mubr.f32.gmra.mxu0 %v613_v22 }
 0x182   :  { %v7945_v8 = vadd.f32 %v7877_v37, %v1142_v30  ;;  %1810 = vmatprep.mubr.f32.mxu1 %v639_v61  ;;  %5552 = vmatprep.mubr.msk.f32.mxu0 %vm6504_vm0, %v7747_v13 }
 0x183   :  { %v1144_v42 = vpop.f32.mrf.mxu0  ;;  %v5399_v59 = vpop.f32.mrf.mxu1  ;;  %3159 = vmatpush2.msra.mxu1 %v3064_v56  ;;  %v651_v56 = vld [vmem:[#allocation2 + $0x478] sm:$0xff] }
 0x184   :  { %3736 = vmatprep.subr.mxu1 %v7747_v13  ;;  %v628_v42 = vld [vmem:[#allocation2 + $0x140] sm:$0xff] }
 0x185   :  { %v1147_v38 = vpop.f32.mrf.mxu0  ;;  %v7950_v17 = vpop.f32.mrf.mxu1  ;;  %1811 = vmatmul.mubr.f32.gmra.mxu1 %v638_v58  ;;  %5553 = vmatmul.mubr.f32.gmra.mxu0 %v616_v60 }
 0x186   :  { %v7953_v37 = vadd.f32 %v7885_v50, %v1147_v38  ;;  %1815 = vmatprep.mubr.f32.mxu1 %v642_v12  ;;  %5555 = vmatprep.mubr.msk.f32.mxu0 %vm6504_vm0, %v7747_v13  ;;  %v644_v50 = vld [vmem:[#allocation2 + $0x128] sm:$0xff]  ;;  %v654_v38 = vld [vmem:[#allocation2] sm:$0xff] }
 0x187   :  { %v1149_v27 = vpop.f32.mrf.mxu0  ;;  %v5402_v49 = vpop.f32.mrf.mxu1 }
 0x188   :  { %v631_v49 = vld [vmem:[#allocation2 + $0x2e0] sm:$0xff] }
 0x189   :  { %v1152_v15 = vpop.f32.mrf.mxu0  ;;  %v7957_v62 = vpop.f32.mrf.mxu1  ;;  %1816 = vmatmul.mubr.f32.gmra.mxu1 %v641_v0  ;;  %5556 = vmatmul.mubr.f32.gmra.mxu0 %v619_v9 }
 0x18a   :  { %v7960_v1 = vadd.f32 %v7893_v26, %v1152_v15  ;;  %1820 = vmatprep.mubr.f32.mxu1 %v645_v32  ;;  %5558 = vmatprep.mubr.msk.f32.mxu0 %vm6504_vm0, %v7747_v13  ;;  %v647_v26 = vld [vmem:[#allocation2 + $0x308] sm:$0xff] }
 0x18b   :  { %v1154_v31 = vpop.f32.mrf.mxu0  ;;  %v5405_v51 = vpop.f32.mrf.mxu1 }
 0x18d   :  { %v1157_v34 = vpop.f32.mrf.mxu0  ;;  %v7964_v3 = vpop.f32.mrf.mxu1  ;;  %1821 = vmatmul.mubr.f32.gmra.mxu1 %v644_v50  ;;  %5559 = vmatmul.mubr.f32.gmra.mxu0 %v622_v55  ;;  %v657_v50 = vld [vmem:[#allocation2 + $0x3e8] sm:$0xff] }
 0x18e   :  { %v7967_v22 = vadd.f32 %v7901_v45, %v1157_v34  ;;  %1825 = vmatprep.mubr.f32.mxu1 %v648_v29  ;;  %5561 = vmatprep.mubr.msk.f32.mxu0 %vm6504_vm0, %v7747_v13  ;;  %v650_v45 = vld [vmem:[#allocation2 + $0x210] sm:$0xff]  ;;  %v634_v29 = vld [vmem:[#allocation2 + $0x100] sm:$0xff] }
 0x18f   :  { %v1159_v35 = vpop.f32.mrf.mxu0  ;;  %v5408_v61 = vpop.f32.mrf.mxu1 }
 0x191   :  { %v1162_v30 = vpop.f32.mrf.mxu0  ;;  %v7971_v58 = vpop.f32.mrf.mxu1  ;;  %1826 = vmatmul.mubr.f32.gmra.mxu1 %v647_v26  ;;  %5562 = vmatmul.mubr.f32.gmra.mxu0 %v625_v21  ;;  %v660_v21 = vld [vmem:[#allocation2 + $0x388] sm:$0xff] }
 0x192   :  { %v7974_v60 = vadd.f32 %v7909_v7, %v1162_v30  ;;  %1830 = vmatprep.mubr.f32.mxu1 %v651_v56  ;;  %5564 = vmatprep.mubr.msk.f32.mxu0 %vm6504_vm0, %v7747_v13  ;;  %v653_v7 = vld [vmem:[#allocation2 + $0x4a0] sm:$0xff] }
 0x193   :  { %v1164_v59 = vpop.f32.mrf.mxu0  ;;  %v5411_v12 = vpop.f32.mrf.mxu1  ;;  %v637_v30 = vld [vmem:[#allocation2 + $0x20] sm:$0xff] }
 0x194   :  { %v663_v59 = vld [vmem:[#allocation2 + $0x290] sm:$0xff] }
 0x195   :  { %v1167_v0 = vpop.f32.mrf.mxu0  ;;  %v7978_v9 = vpop.f32.mrf.mxu1  ;;  %1831 = vmatmul.mubr.f32.gmra.mxu1 %v650_v45  ;;  %5565 = vmatmul.mubr.f32.gmra.mxu0 %v628_v42 }
 0x196   :  { %v7981_v27 = vadd.f32 %v7918_v23, %v1167_v0  ;;  %1835 = vmatprep.mubr.f32.mxu1 %v654_v38  ;;  %5567 = vmatprep.mubr.msk.f32.mxu0 %vm6504_vm0, %v7747_v13  ;;  %v656_v23 = vld [vmem:[#allocation2 + $0xc0] sm:$0xff] }
 0x197   :  { %v1169_v32 = vpop.f32.mrf.mxu0  ;;  %v5414_v15 = vpop.f32.mrf.mxu1 }
 0x198   :  { %v666_v15 = vld [vmem:[#allocation2 + $0xe8] sm:$0xff] }
 0x199   :  { %v1172_v55 = vpop.f32.mrf.mxu0  ;;  %v7985_v31 = vpop.f32.mrf.mxu1  ;;  %1836 = vmatmul.mubr.f32.gmra.mxu1 %v653_v7  ;;  %5568 = vmatmul.mubr.f32.gmra.mxu0 %v631_v49  ;;  %v640_v7 = vld [vmem:[#allocation2 + $0x90] sm:$0xff] }
 0x19a   :  { %v7988_v51 = vadd.f32 %v7926_v10, %v1172_v55  ;;  %1840 = vmatprep.mubr.f32.mxu1 %v657_v50  ;;  %5570 = vmatprep.mubr.msk.f32.mxu0 %vm6504_vm0, %v7747_v13  ;;  %v659_v10 = vld [vmem:[#allocation2 + $0x1c8] sm:$0xff] }
 0x19b   :  { %v1174_v34 = vpop.f32.mrf.mxu0  ;;  %v5417_v26 = vpop.f32.mrf.mxu1 }
 0x19d   :  { %v1177_v35 = vpop.f32.mrf.mxu0  ;;  %v7992_v61 = vpop.f32.mrf.mxu1  ;;  %1841 = vmatmul.mubr.f32.gmra.mxu1 %v656_v23  ;;  %5571 = vmatmul.mubr.f32.gmra.mxu0 %v634_v29  ;;  %v643_v29 = vld [vmem:[#allocation2 + $0x370] sm:$0xff] }
 0x19e   :  { %v7995_v56 = vadd.f32 %v7934_v11, %v1177_v35  ;;  %1845 = vmatprep.mubr.f32.mxu1 %v660_v21  ;;  %5573 = vmatprep.mubr.msk.f32.mxu0 %vm6504_vm0, %v7747_v13  ;;  %v662_v11 = vld [vmem:[#allocation2 + $0x2c8] sm:$0xff]  ;;  %v669_v21 = vld [vmem:[#allocation2 + $0x420] sm:$0xff] }
 0x19f   :  { %v1179_v45 = vpop.f32.mrf.mxu0  ;;  %v5420_v42 = vpop.f32.mrf.mxu1 }
 0x1a0   :  { %v646_v45 = vld [vmem:[#allocation2 + $0x4f0] sm:$0xff] }
 0x1a1   :  { %v1182_v12 = vpop.f32.mrf.mxu0  ;;  %v7999_v38 = vpop.f32.mrf.mxu1  ;;  %1846 = vmatmul.mubr.f32.gmra.mxu1 %v659_v10  ;;  %5574 = vmatmul.mubr.f32.gmra.mxu0 %v637_v30 }
 0x1a2   :  { %v8002_v0 = vadd.f32 %v7942_v53, %v1182_v12  ;;  %1850 = vmatprep.mubr.f32.mxu1 %v663_v59  ;;  %5576 = vmatprep.mubr.msk.f32.mxu0 %vm6504_vm0, %v7747_v13  ;;  %v665_v53 = vld [vmem:[#allocation2 + $0x4e0] sm:$0xff] }
 0x1a3   :  { %v1184_v49 = vpop.f32.mrf.mxu0  ;;  %v5423_v32 = vpop.f32.mrf.mxu1  ;;  %v672_v12 = vld [vmem:[#allocation2 + $0x360] sm:$0xff] }
 0x1a4   :  { %v649_v32 = vld [vmem:[#allocation2 + $0x3e0] sm:$0xff] }
 0x1a5   :  { %v1187_v50 = vpop.f32.mrf.mxu0  ;;  %v8006_v55 = vpop.f32.mrf.mxu1  ;;  %1851 = vmatmul.mubr.f32.gmra.mxu1 %v662_v11  ;;  %5577 = vmatmul.mubr.f32.gmra.mxu0 %v640_v7 }
 0x1a6   :  { %v8009_v23 = vadd.f32 %v7950_v17, %v1187_v50  ;;  %1855 = vmatprep.mubr.f32.mxu1 %v666_v15  ;;  %5579 = vmatprep.mubr.msk.f32.mxu0 %vm6504_vm0, %v7747_v13  ;;  %v668_v17 = vld [vmem:[#allocation2 + $0x1b8] sm:$0xff] }
 0x1a7   :  { %v1189_v34 = vpop.f32.mrf.mxu0  ;;  %v5426_v26 = vpop.f32.mrf.mxu1 }
 0x1a9   :  { %v1192_v35 = vpop.f32.mrf.mxu0  ;;  %v8013_v10 = vpop.f32.mrf.mxu1  ;;  %1856 = vmatmul.mubr.f32.gmra.mxu1 %v665_v53  ;;  %5580 = vmatmul.mubr.f32.gmra.mxu0 %v643_v29  ;;  %v675_v53 = vld [vmem:[#allocation2 + $0x220] sm:$0xff] }
 0x1aa   :  { %v8016_v30 = vadd.f32 %v7957_v62, %v1192_v35  ;;  %1860 = vmatprep.mubr.f32.mxu1 %v669_v21  ;;  %5582 = vmatprep.mubr.msk.f32.mxu0 %vm6504_vm0, %v7747_v13  ;;  %v8025_v62 = vld [vmem:[#allocation2 + $0x280] sm:$0xff]  ;;  %v671_v13 = vld [vmem:[#allocation2 + $0x1f0] sm:$0xff]  ;;  %v652_v21 = vld [vmem:[#allocation2 + $0x468] sm:$0xff] }
 0x1ab   :  { %v1194_v42 = vpop.f32.mrf.mxu0  ;;  %v5429_v59 = vpop.f32.mrf.mxu1 }
 0x1ad   :  { %v1197_v11 = vpop.f32.mrf.mxu0  ;;  %v8020_v7 = vpop.f32.mrf.mxu1  ;;  %1861 = vmatmul.mubr.f32.gmra.mxu1 %v668_v17  ;;  %5583 = vmatmul.mubr.f32.gmra.mxu0 %v646_v45  ;;  %v678_v45 = vld [vmem:[#allocation2 + $0xc8] sm:$0xff] }
 0x1ae   :  { %v8023_v49 = vadd.f32 %v7964_v3, %v1197_v11  ;;  %1865 = vmatprep.mubr.f32.mxu1 %v672_v12  ;;  %5585 = vmatprep.mubr.msk.f32.mxu0 %vm6504_vm0, %v8025_v62  ;;  %v674_v3 = vld [vmem:[#allocation2 + $0x408] sm:$0xff] }
 0x1af   :  { %v1199_v15 = vpop.f32.mrf.mxu0  ;;  %v5432_v50 = vpop.f32.mrf.mxu1  ;;  %v655_v11 = vld [vmem:[#allocation2 + $0x28] sm:$0xff] }
 0x1b0   :  { %9943 = vst [vmem:[#allocation6_spill] sm:$0xff] %v8023_v49  ;;  %v681_v15 = vld [vmem:[#allocation2 + $0x198] sm:$0xff]  ;;  %v2943_v49 = vld [vmem:[#allocation2 + $0x400] sm:$0xff] }
 0x1b1   :  { %v1202_v29 = vpop.f32.mrf.mxu0  ;;  %v8029_v34 = vpop.f32.mrf.mxu1  ;;  %1866 = vmatmul.mubr.f32.gmra.mxu1 %v671_v13  ;;  %5586 = vmatmul.mubr.f32.gmra.mxu0 %v649_v32 }
 0x1b2   :  { %v8032_v26 = vadd.f32 %v7971_v58, %v1202_v29  ;;  %1870 = vmatprep.mubr.f32.mxu1 %v675_v53  ;;  %5588 = vmatprep.mubr.msk.f32.mxu0 %vm6504_vm0, %v8025_v62  ;;  %v677_v58 = vld [vmem:[#allocation2 + $0x1e8] sm:$0xff] }
 0x1b3   :  { %v1204_v35 = vpop.f32.mrf.mxu0  ;;  %v5435_v17 = vpop.f32.mrf.mxu1 }
 0x1b4   :  { %9944 = vst [vmem:[#allocation7_spill] sm:$0xff] %v8032_v26  ;;  %v684_v17 = vld [vmem:[#allocation2 + $0x4d0] sm:$0xff] }
 0x1b5   :  { %v1207_v42 = vpop.f32.mrf.mxu0  ;;  %v8036_v59 = vpop.f32.mrf.mxu1  ;;  %1871 = vmatmul.mubr.f32.gmra.mxu1 %v674_v3  ;;  %5589 = vmatmul.mubr.f32.gmra.mxu0 %v652_v21  ;;  %v658_v3 = vld [vmem:[#allocation2 + $0x218] sm:$0xff] }
 0x1b6   :  { %v8039_v12 = vadd.f32 %v7978_v9, %v1207_v42  ;;  %1875 = vmatprep.mubr.f32.mxu1 %v678_v45  ;;  %5591 = vmatprep.mubr.msk.f32.mxu0 %vm6504_vm0, %v8025_v62  ;;  %v680_v9 = vld [vmem:[#allocation2 + $0x1d0] sm:$0xff] }
 0x1b7   :  { %v1209_v13 = vpop.f32.mrf.mxu0  ;;  %v5438_v32 = vpop.f32.mrf.mxu1 }
 0x1b8   :  { %9945 = vst [vmem:[#allocation8_spill] sm:$0xff] %v8039_v12  ;;  %v2899_v12 = vld [vmem:[#allocation2 + $0xb8] sm:$0xff] }
 0x1b9   :  { %v1212_v50 = vpop.f32.mrf.mxu0  ;;  %v8043_v53 = vpop.f32.mrf.mxu1  ;;  %1876 = vmatmul.mubr.f32.gmra.mxu1 %v677_v58  ;;  %5592 = vmatmul.mubr.f32.gmra.mxu0 %v655_v11  ;;  %v661_v11 = vld [vmem:[#allocation2 + $0x540] sm:$0xff] }
 0x1ba   :  { %v8046_v29 = vadd.f32 %v7985_v31, %v1212_v50  ;;  %1880 = vmatprep.mubr.f32.mxu1 %v681_v15  ;;  %5594 = vmatprep.mubr.msk.f32.mxu0 %vm6504_vm0, %v8025_v62  ;;  %v683_v31 = vld [vmem:[#allocation2 + $0x4c8] sm:$0xff] }
 0x1bb   :  { %v1214_v21 = vpop.f32.mrf.mxu0  ;;  %v5441_v35 = vpop.f32.mrf.mxu1  ;;  %v687_v15 = vld [vmem:[#allocation2 + $0x448] sm:$0xff] }
 0x1bc   :  { %9946 = vst [vmem:[#allocation9_spill] sm:$0xff] %v8046_v29  ;;  %v2922_v29 = vld [vmem:[#allocation2 + $0x1d8] sm:$0xff] }
 0x1bd   :  { %v1217_v45 = vpop.f32.mrf.mxu0  ;;  %v8050_v42 = vpop.f32.mrf.mxu1  ;;  %1881 = vmatmul.mubr.f32.gmra.mxu1 %v680_v9  ;;  %5595 = vmatmul.mubr.f32.gmra.mxu0 %v658_v3  ;;  %v664_v3 = vld [vmem:[#allocation2 + $0x168] sm:$0xff] }
 0x1be   :  { %v8053_v58 = vadd.f32 %v7992_v61, %v1217_v45  ;;  %1885 = vmatprep.mubr.f32.mxu1 %v684_v17  ;;  %5597 = vmatprep.mubr.msk.f32.mxu0 %vm6504_vm0, %v8025_v62  ;;  %v686_v61 = vld [vmem:[#allocation2 + $0x148] sm:$0xff] }
 0x1bf   :  { %v1219_v13 = vpop.f32.mrf.mxu0  ;;  %v5444_v32 = vpop.f32.mrf.mxu1  ;;  %v690_v45 = vld [vmem:[#allocation2 + $0x1a8] sm:$0xff] }
 0x1c0   :  { %9947 = vst [vmem:[#allocation10_spill] sm:$0xff] %v8053_v58 }
 0x1c1   :  { %v1222_v50 = vpop.f32.mrf.mxu0  ;;  %v8057_v21 = vpop.f32.mrf.mxu1  ;;  %1886 = vmatmul.mubr.f32.gmra.mxu1 %v683_v31  ;;  %5598 = vmatmul.mubr.f32.gmra.mxu0 %v661_v11  ;;  %v667_v11 = vld [vmem:[#allocation2 + $0x40] sm:$0xff] }
 0x1c2   :  { %v8060_v9 = vadd.f32 %v7999_v38, %v1222_v50  ;;  %1890 = vmatprep.mubr.f32.mxu1 %v687_v15  ;;  %5600 = vmatprep.mubr.msk.f32.mxu0 %vm6504_vm0, %v8025_v62  ;;  %v689_v38 = vld [vmem:[#allocation2 + $0x300] sm:$0xff] }
 0x1c3   :  { %v1224_v35 = vpop.f32.mrf.mxu0  ;;  %v5447_v17 = vpop.f32.mrf.mxu1 }
 0x1c4   :  { %9948 = vst [vmem:[#allocation11_spill] sm:$0xff] %v8060_v9  ;;  %v693_v9 = vld [vmem:[#allocation2 + $0x80] sm:$0xff] }
 0x1c5   :  { %v1227_v13 = vpop.f32.mrf.mxu0  ;;  %v8064_v32 = vpop.f32.mrf.mxu1  ;;  %1891 = vmatmul.mubr.f32.gmra.mxu1 %v686_v61  ;;  %5601 = vmatmul.mubr.f32.gmra.mxu0 %v664_v3  ;;  %v670_v3 = vld [vmem:[#allocation2 + $0x538] sm:$0xff] }
 0x1c6   :  { %v8067_v31 = vadd.f32 %v8006_v55, %v1227_v13  ;;  %1895 = vmatprep.mubr.f32.mxu1 %v690_v45  ;;  %5603 = vmatprep.mubr.msk.f32.mxu0 %vm6504_vm0, %v8025_v62  ;;  %v692_v55 = vld [vmem:[#allocation2 + $0x508] sm:$0xff] }
 0x1c7   :  { %v1229_v15 = vpop.f32.mrf.mxu0  ;;  %v1654_v50 = vpop.f32.mrf.mxu1 }
 0x1c8   :  { %9949 = vst [vmem:[#allocation12_spill] sm:$0xff] %v8067_v31  ;;  %v2895_v31 = vld [vmem:[#allocation2 + $0xf0] sm:$0xff] }
 0x1c9   :  { %v1232_v35 = vpop.f32.mrf.mxu0  ;;  %v8071_v17 = vpop.f32.mrf.mxu1  ;;  %1896 = vmatmul.mubr.f32.gmra.mxu1 %v689_v38  ;;  %5604 = vmatmul.mubr.f32.gmra.mxu0 %v667_v11 }
 0x1ca   :  { %v8074_v61 = vadd.f32 %v8013_v10, %v1232_v35  ;;  %1900 = vmatprep.mubr.f32.mxu1 %v693_v9  ;;  %5606 = vmatprep.mubr.msk.f32.mxu0 %vm6504_vm0, %v8025_v62  ;;  %v673_v10 = vld [vmem:[#allocation2 + $0x480] sm:$0xff] }
 0x1cb   :  { %v1234_v45 = vpop.f32.mrf.mxu0  ;;  %v1659_v13 = vpop.f32.mrf.mxu1  ;;  %v2894_v9 = vld [vmem:[#allocation2 + $0x320] sm:$0xff] }
 0x1cc   :  { %9950 = vst [vmem:[#allocation13_spill] sm:$0xff] %v8074_v61  ;;  %v2860_v61 = vld [vmem:[#allocation3 + $0x378] sm:$0xff]  ;;  %v2898_v45 = vld [vmem:[#allocation2 + $0x238] sm:$0xff] }
 0x1cd   :  { %v1237_v15 = vpop.f32.mrf.mxu0  ;;  %v8078_v50 = vpop.f32.mrf.mxu1  ;;  %1901 = vmatmul.mubr.f32.gmra.mxu1 %v692_v55  ;;  %5607 = vmatmul.mubr.f32.gmra.mxu0 %v670_v3  ;;  %v2859_v55 = vld [vmem:[#allocation3 + $0x370] sm:$0xff] }
 0x1ce   :  { %v8081_v38 = vadd.f32 %v8020_v7, %v1237_v15  ;;  %5609 = vmatprep.mubr.msk.f32.mxu0 %vm6504_vm0, %v8025_v62  ;;  %3160 = vmatprep.mubr.f32.mxu1 %v2895_v31  ;;  %v676_v7 = vld [vmem:[#allocation2 + $0x190] sm:$0xff]  ;;  %v2897_v31 = vld [vmem:[#allocation2 + $0x178] sm:$0xff] }
 0x1cf   :  { %v1239_v11 = vpop.f32.mrf.mxu0  ;;  %v1664_v35 = vpop.f32.mrf.mxu1 }
 0x1d0   :  { %9951 = vst [vmem:[#allocation14_spill] sm:$0xff] %v8081_v38  ;;  %v2901_v35 = vld [vmem:[#allocation2 + $0x48] sm:$0xff] }
 0x1d1   :  { %v1242_v13 = vpop.f32.mrf.mxu0  ;;  %v8085_v58 = vpop.f32.mrf.mxu1  ;;  %5610 = vmatmul.mubr.f32.gmra.mxu0 %v673_v10  ;;  %3161 = vmatmul.mubr.f32.vlgmr.msra.gmra.mxu1 %v2894_v9  ;;  %v679_v9 = vld [vmem:[#allocation2 + $0x230] sm:$0xff] }
 0x1d2   :  { %v8088_v3 = vadd.f32 %v8029_v34, %v1242_v13  ;;  %3737 = vmatpush1.msra.mxu1 %v2860_v61  ;;  %5612 = vmatprep.mubr.msk.f32.mxu0 %vm6504_vm0, %v8025_v62  ;;  %v2858_v34 = vld [vmem:[#allocation3 + $0x368] sm:$0xff]  ;;  %v2900_v13 = vld [vmem:[#allocation2 + $0x38] sm:$0xff] }
 0x1d3   :  { %v1244_v15 = vpop.f32.mrf.mxu0  ;;  %v1669_v11 = vpop.f32.mrf.mxu1  ;;  %3165 = vmatprep.mubr.f32.mxu1 %v2898_v45  ;;  %3738 = vmatprep.subr.mxu1 %v8025_v62 }
 0x1d4   :  { %9952 = vst [vmem:[#allocation15_spill] sm:$0xff] %v8088_v3  ;;  %3739 = vmatpush1.msra.mxu1 %v2859_v55  ;;  %v2904_v11 = vld [vmem:[#allocation2 + $0x4b8] sm:$0xff] }
 0x1d5   :  { %v1247_v38 = vpop.f32.mrf.mxu0  ;;  %v8093_v10 = vpop.f32.mrf.mxu1  ;;  %5613 = vmatmul.mubr.f32.gmra.mxu0 %v676_v7  ;;  %3166 = vmatmul.mubr.f32.gmra.mxu1 %v2897_v31  ;;  %v2857_v7 = vld [vmem:[#allocation3 + $0x360] sm:$0xff]  ;;  %v2903_v31 = vld [vmem:[#allocation2 + $0x470] sm:$0xff] }
 0x1d6   :  { %v8096_v61 = vadd.f32 %v8036_v59, %v1247_v38  ;;  %5615 = vmatprep.mubr.msk.f32.mxu0 %vm6504_vm0, %v8025_v62  ;;  %3170 = vmatprep.mubr.f32.mxu1 %v2901_v35  ;;  %v682_v38 = vld [vmem:[#allocation2 + $0x4f8] sm:$0xff] }
 0x1d7   :  { %v1249_v45 = vpop.f32.mrf.mxu0  ;;  %v1674_v15 = vpop.f32.mrf.mxu1  ;;  %3740 = vmatprep.subr.mxu1 %v8025_v62 }
 0x1d8   :  { %9953 = vst [vmem:[#allocation16_spill] sm:$0xff] %v8096_v61  ;;  %3741 = vmatpush1.msra.mxu1 %v2858_v34  ;;  %v2907_v15 = vld [vmem:[#allocation2 + $0x288] sm:$0xff] }
 0x1d9   :  { %v1252_v55 = vpop.f32.mrf.mxu0  ;;  %v8101_v3 = vpop.f32.mrf.mxu1  ;;  %5616 = vmatmul.mubr.f32.gmra.mxu0 %v679_v9  ;;  %3171 = vmatmul.mubr.f32.gmra.mxu1 %v2900_v13  ;;  %v2856_v9 = vld [vmem:[#allocation3 + $0x358] sm:$0xff]  ;;  %v685_v13 = vld [vmem:[#allocation2 + $0x4a8] sm:$0xff] }
 0x1da   :  { %v8104_v59 = vadd.f32 %v8043_v53, %v1252_v55  ;;  %5618 = vmatprep.mubr.msk.f32.mxu0 %vm6504_vm0, %v8025_v62  ;;  %3175 = vmatprep.mubr.f32.mxu1 %v2904_v11  ;;  %v2906_v11 = vld [vmem:[#allocation2 + $0xd0] sm:$0xff] }
 0x1db   :  { %v1254_v35 = vpop.f32.mrf.mxu0  ;;  %v1679_v45 = vpop.f32.mrf.mxu1  ;;  %3742 = vmatprep.subr.mxu1 %v8025_v62 }
 0x1dc   :  { %9954 = vst [vmem:[#allocation17_spill] sm:$0xff] %v8104_v59  ;;  %3743 = vmatpush1.msra.mxu1 %v2857_v7  ;;  %v2910_v45 = vld [vmem:[#allocation2 + $0x78] sm:$0xff] }
 0x1dd   :  { %v1257_v34 = vpop.f32.mrf.mxu0  ;;  %v8109_v61 = vpop.f32.mrf.mxu1  ;;  %5619 = vmatmul.mubr.f32.gmra.mxu0 %v682_v38  ;;  %3176 = vmatmul.mubr.f32.gmra.mxu1 %v2903_v31  ;;  %v2855_v38 = vld [vmem:[#allocation3 + $0x350] sm:$0xff]  ;;  %v688_v31 = vld [vmem:[#allocation2 + $0x430] sm:$0xff] }
 0x1de   :  { %v8112_v53 = vadd.f32 %v8050_v42, %v1257_v34  ;;  %5621 = vmatprep.mubr.msk.f32.mxu0 %vm6504_vm0, %v8025_v62  ;;  %3180 = vmatprep.mubr.f32.mxu1 %v2907_v15  ;;  %v2909_v15 = vld [vmem:[#allocation2 + $0x1c0] sm:$0xff] }
 0x1df   :  { %v1259_v55 = vpop.f32.mrf.mxu0  ;;  %v1684_v35 = vpop.f32.mrf.mxu1  ;;  %3744 = vmatprep.subr.mxu1 %v8025_v62 }
 0x1e0   :  { %9955 = vst [vmem:[#allocation18_spill] sm:$0xff] %v8112_v53  ;;  %3745 = vmatpush1.msra.mxu1 %v2856_v9  ;;  %v2913_v35 = vld [vmem:[#allocation2 + $0x30] sm:$0xff]  ;;  %v1653_v9 = vadd.f32 %v8064_v32, %v7719_v39 }
 0x1e1   :  { %v1262_v7 = vpop.f32.mrf.mxu0  ;;  %v8117_v59 = vpop.f32.mrf.mxu1  ;;  %5622 = vmatmul.mubr.f32.gmra.mxu0 %v685_v13  ;;  %3181 = vmatmul.mubr.f32.gmra.mxu1 %v2906_v11 }
 0x1e2   :  { %v8120_v42 = vadd.f32 %v8057_v21, %v1262_v7  ;;  %5624 = vmatprep.mubr.msk.f32.mxu0 %vm6504_vm0, %v8025_v62  ;;  %3185 = vmatprep.mubr.f32.mxu1 %v2910_v45  ;;  %v8132_v21 = vld [vmem:[%s9906_s2] ss:$0 sm:$0xff] }
 0x1e3   :  { %v1264_v34 = vpop.f32.mrf.mxu0  ;;  %v1689_v55 = vpop.f32.mrf.mxu1  ;;  %3746 = vmatprep.subr.mxu1 %v8025_v62  ;;  %v2854_v45 = vld [vmem:[#allocation3 + $0x348] sm:$0xff] }
 0x1e4   :  { %9956 = vst [vmem:[#allocation19_spill] sm:$0xff] %v8120_v42  ;;  %3747 = vmatpush1.msra.mxu1 %v2855_v38  ;;  %v691_v34 = vld [vmem:[#allocation2 + $0x428] sm:$0xff]  ;;  %v2912_v55 = vld [vmem:[#allocation2 + $0x2f8] sm:$0xff]  ;;  %v1658_v42 = vadd.f32 %v8071_v17, %v7727_v47 }
 0x1e5   :  { %v8127_v13 = vpop.f32.mrf.mxu1  ;;  %v1972_v11 = vpop.f32.mrf.mxu0  ;;  %5625 = vmatmul.mubr.f32.gmra.mxu0 %v688_v31  ;;  %3186 = vmatmul.mubr.f32.gmra.mxu1 %v2909_v15  ;;  %v2916_v38 = vld [vmem:[#allocation2 + $0x98] sm:$0xff] }
 0x1e6   :  { %v1973_v7 = vadd.f32 %v1972_v11, %v1653_v9  ;;  %5627 = vmatprep.mubr.msk.f32.mxu0 %vm6504_vm0, %v8025_v62  ;;  %3190 = vmatprep.mubr.f32.mxu1 %v2913_v35  ;;  %v2853_v35 = vld [vmem:[#allocation3 + $0x340] sm:$0xff] }
 0x1e7   :  { %v1694_v39 = vpop.f32.mrf.mxu1  ;;  %v5482_v32 = vpop.f32.mrf.mxu0  ;;  %3748 = vmatprep.subr.mxu1 %v8025_v62 }
 0x1e8   :  { %v8140_v53 = vadd.f32 %v8132_v21, %v1973_v7  ;;  %3749 = vmatpush1.msra.mxu1 %v2854_v45  ;;  %v694_v39 = vld [vmem:[#allocation2 + $0x120] sm:$0xff]  ;;  %v2919_v7 = vld [vmem:[#allocation2 + $0x50] sm:$0xff]  ;;  %v1663_v45 = vadd.f32 %v8078_v50, %v7733_v2 }
 0x1e9   :  { %v8142_v31 = vpop.f32.mrf.mxu1  ;;  %v1977_v15 = vpop.f32.mrf.mxu0  ;;  %5628 = vmatmul.mubr.f32.gmra.mxu0 %v691_v34  ;;  %3191 = vmatmul.mubr.f32.gmra.mxu1 %v2912_v55  ;;  %v2915_v32 = vld [vmem:[#allocation2 + $0xa0] sm:$0xff] }
 0x1ea   :  { %v4842_v9 = vmul.f32 -1.442695, %v8140_v53  ;;  %v1978_v11 = vadd.f32 %v1977_v15, %v1658_v42  ;;  %5630 = vmatprep.mubr.msk.f32.mxu0 %vm6504_vm0, %v8025_v62  ;;  %3195 = vmatprep.mubr.f32.mxu1 %v2916_v38  ;;  %v2852_v38 = vld [vmem:[#allocation3 + $0x338] sm:$0xff]  ;;  %v2896_v2 = vld [vmem:[#allocation2 + $0x3a0] sm:$0xff] }
 0x1eb   :  { %v1699_v47 = vpop.f32.mrf.mxu1  ;;  %v5485_v17 = vpop.f32.mrf.mxu0  ;;  %3750 = vmatprep.subr.mxu1 %v8025_v62 }
 0x1ec   :  { %6040 = vpow2.f32 %v4842_v9  ;;  %v8151_v34 = vadd.f32 %v8132_v21, %v1978_v11  ;;  %3751 = vmatpush1.msra.mxu1 %v2853_v35  ;;  %v2918_v17 = vld [vmem:[#allocation2 + $0x2e8] sm:$0xff]  ;;  %v2892_v11 = vld [vmem:[#allocation3 + $0x478] sm:$0xff]  ;;  %v1668_v35 = vadd.f32 %v8085_v58, %v7742_v6 }
 0x1ed   :  { %v8153_v42 = vpop.f32.mrf.mxu1  ;;  %v1982_v55 = vpop.f32.mrf.mxu0  ;;  %5631 = vmatmul.mubr.f32.gmra.mxu0 %v694_v39  ;;  %3196 = vmatmul.mubr.f32.gmra.mxu1 %v2915_v32  ;;  %v2925_v58 = vld [vmem:[#allocation2 + $0x2d0] sm:$0xff] }
 0x1ee   :  { %v4843_v15 = vmul.f32 -1.442695, %v8151_v34  ;;  %v1983_v47 = vadd.f32 %v1982_v55, %v1663_v45  ;;  %3200 = vmatprep.mubr.f32.mxu1 %v2919_v7  ;;  %5665 = vmatprep.mubr.msk.f32.mxu0 %vm6504_vm0, %v8025_v62  ;;  %v2891_v45 = vld [vmem:[#allocation3 + $0x470] sm:$0xff] }
 0x1ef   :  { %v1704_v50 = vpop.f32.mrf.mxu1  ;;  %v5488_v9 = vpop.f32.mrf.mxu0  ;;  %3752 = vmatprep.subr.mxu1 %v8025_v62 }
 0x1f0   :  { %6042 = vpow2.f32 %v4843_v15  ;;  %v8162_v39 = vadd.f32 %v8132_v21, %v1983_v47  ;;  %3753 = vmatpush1.msra.mxu1 %v2852_v38  ;;  %v2921_v9 = vld [vmem:[#allocation2 + $0x150] sm:$0xff]  ;;  %v1673_v38 = vadd.f32 %v8093_v10, %v7754_v16  ;;  %v2924_v16 = vld [vmem:[#allocation2 + $0x1e0] sm:$0xff]  ;;  %v2902_v10 = vld [vmem:[#allocation2 + $0x398] sm:$0xff] }
 0x1f1   :  { %v8164_v32 = vpop.f32.mrf.mxu1  ;;  %v1987_v7 = vpop.f32.mrf.mxu0  ;;  %3201 = vmatmul.mubr.f32.gmra.mxu1 %v2918_v17  ;;  %5666 = vmatmul.mubr.f32.vlgmr.msra.gmra.mxu0 %v2896_v2  ;;  %v2890_v17 = vld [vmem:[#allocation3 + $0x468] sm:$0xff] }
 0x1f2   :  { %v4844_v55 = vmul.f32 -1.442695, %v8162_v39  ;;  %v1988_v50 = vadd.f32 %v1987_v7, %v1668_v35  ;;  %5819 = vmatpush3.msra.mxu0 %v2892_v11  ;;  %3205 = vmatprep.mubr.f32.mxu1 %v2922_v29  ;;  %v2851_v29 = vld [vmem:[#allocation3 + $0x330] sm:$0xff] }
 0x1f3   :  { %v1709_v26 = vpop.f32.mrf.mxu1  ;;  %v5491_v6 = vpop.f32.mrf.mxu0  ;;  %5668 = vmatprep.mubr.msk.f32.mxu0 %vm6504_vm0, %v8025_v62  ;;  %5820 = vmatprep.subr.mxu0 %v8025_v62 }
 0x1f4   :  { %6044 = vpow2.f32 %v4844_v55  ;;  %v8173_v15 = vadd.f32 %v8132_v21, %v1988_v50  ;;  %5821 = vmatpush3.msra.mxu0 %v2891_v45  ;;  %3754 = vmatprep.subr.mxu1 %v8025_v62  ;;  %v2928_v45 = vld [vmem:[#allocation2 + $0x550] sm:$0xff]  ;;  %v1678_v55 = vadd.f32 %v8101_v3, %v7763_v44  ;;  %v2850_v50 = vld [vmem:[#allocation3 + $0x328] sm:$0xff]  ;;  %v2927_v44 = vld [vmem:[#allocation2 + $0x248] sm:$0xff] }
 0x1f5   :  { %v8176_v47 = vpop.f32.mrf.mxu1  ;;  %v1992_v26 = vpop.f32.mrf.mxu0  ;;  %3206 = vmatmul.mubr.f32.gmra.mxu1 %v2921_v9  ;;  %5669 = vmatmul.mubr.f32.gmra.mxu0 %v2899_v12  ;;  %v2905_v3 = vld [vmem:[#allocation2 + $0x3a8] sm:$0xff] }
 0x1f6   :  { %v4845_v2 = vmul.f32 -1.442695, %v8173_v15  ;;  %v1993_v11 = vadd.f32 %v1992_v26, %v1673_v38  ;;  %3210 = vmatprep.mubr.f32.mxu1 %v2925_v58  ;;  %5671 = vmatprep.mubr.msk.f32.mxu0 %vm6504_vm0, %v8025_v62  ;;  %v2889_v38 = vld [vmem:[#allocation3 + $0x460] sm:$0xff] }
 0x1f7   :  { %v1714_v35 = vpop.f32.mrf.mxu1  ;;  %v5494_v7 = vpop.f32.mrf.mxu0  ;;  %5822 = vmatprep.subr.mxu0 %v8025_v62  ;;  %3755 = vmatpush1.msra.mxu1 %v2851_v29 }
 0x1f8   :  { %6046 = vpow2.f32 %v4845_v2  ;;  %v8185_v12 = vadd.f32 %v8132_v21, %v1993_v11  ;;  %5823 = vmatpush3.msra.mxu0 %v2890_v17  ;;  %3756 = vmatprep.subr.mxu1 %v8025_v62  ;;  %v2931_v11 = vld [vmem:[#allocation2 + $0x3c0] sm:$0xff]  ;;  %v2849_v7 = vld [vmem:[#allocation3 + $0x320] sm:$0xff] }
 0x1f9   :  { %v6041_v9 = vpop.eup %6040  ;;  %v8188_v6 = vpop.f32.mrf.mxu1  ;;  %3211 = vmatmul.mubr.f32.gmra.mxu1 %v2924_v16  ;;  %5672 = vmatmul.mubr.f32.gmra.mxu0 %v2902_v10  ;;  %v1683_v16 = vadd.f32 %v8109_v61, %v7772_v20  ;;  %v2930_v61 = vld [vmem:[#allocation2 + $0x110] sm:$0xff] }
 0x1fa   :  { %v1997_v58 = vpop.f32.mrf.mxu0  ;;  %v2436_v26 = vadd.f32 1.0, %v6041_v9  ;;  %v4846_v29 = vmul.f32 -1.442695, %v8185_v12  ;;  %3215 = vmatprep.mubr.f32.mxu1 %v2928_v45  ;;  %5674 = vmatprep.mubr.msk.f32.mxu0 %vm6504_vm0, %v8025_v62 }
 0x1fb   :  { %v1998_v35 = vadd.f32 %v1997_v58, %v1678_v55  ;;  %v1719_v17 = vpop.f32.mrf.mxu1  ;;  %3757 = vmatpush1.msra.mxu1 %v2850_v50  ;;  %5824 = vmatprep.subr.mxu0 %v8025_v62  ;;  %v2888_v50 = vld [vmem:[#allocation3 + $0x458] sm:$0xff] }
 0x1fc   :  { %v5497_v2 = vpop.f32.mrf.mxu0  ;;  %6048 = vrcp.f32 %v2436_v26  ;;  %3758 = vmatprep.subr.mxu1 %v8025_v62  ;;  %5825 = vmatpush3.msra.mxu0 %v2889_v38  ;;  %v2908_v26 = vld [vmem:[#allocation2 + $0x498] sm:$0xff] }
 0x1fd   :  { %v8197_v10 = vadd.f32 %v8132_v21, %v1998_v35  ;;  %v6043_v45 = vpop.eup %6042  ;;  %6050 = vpow2.f32 %v4846_v29  ;;  %v8200_v55 = vpop.f32.mrf.mxu1  ;;  %3216 = vmatmul.mubr.f32.gmra.mxu1 %v2927_v44  ;;  %5675 = vmatmul.mubr.f32.gmra.mxu0 %v2905_v3  ;;  %v2934_v2 = vld [vmem:[#allocation2 + $0x68] sm:$0xff]  ;;  %v1688_v29 = vadd.f32 %v8117_v59, %v7781_v63  ;;  %v2848_v3 = vld [vmem:[#allocation3 + $0x318] sm:$0xff]  ;;  %v2933_v59 = vld [vmem:[#allocation2 + $0x118] sm:$0xff] }
 0x1fe   :  { %v2002_v9 = vpop.f32.mrf.mxu0  ;;  %v2437_v58 = vadd.f32 1.0, %v6043_v45  ;;  %3220 = vmatprep.mubr.f32.mxu1 %v2931_v11  ;;  %5677 = vmatprep.mubr.msk.f32.mxu0 %vm6504_vm0, %v8025_v62 }
 0x1ff   :  { %v4847_v17 = vmul.f32 -1.442695, %v8197_v10  ;;  %v2003_v20 = vadd.f32 %v2002_v9, %v1683_v16  ;;  %v1724_v35 = vpop.f32.mrf.mxu1  ;;  %3759 = vmatpush1.msra.mxu1 %v2849_v7  ;;  %5826 = vmatprep.subr.mxu0 %v8025_v62  ;;  %v2887_v7 = vld [vmem:[#allocation3 + $0x450] sm:$0xff] }
 0x200   :  { %v5500_v38 = vpop.f32.mrf.mxu0  ;;  %6052 = vrcp.f32 %v2437_v58  ;;  %3760 = vmatprep.subr.mxu1 %v8025_v62  ;;  %5827 = vmatpush3.msra.mxu0 %v2888_v50  ;;  %v2911_v58 = vld [vmem:[#allocation2 + $0x390] sm:$0xff] }
 0x201   :  { %v8209_v44 = vadd.f32 %v8132_v21, %v2003_v20  ;;  %v6045_v11 = vpop.eup %6044  ;;  %6054 = vpow2.f32 %v4847_v17  ;;  %v8212_v16 = vpop.f32.mrf.mxu1  ;;  %3221 = vmatmul.mubr.f32.gmra.mxu1 %v2930_v61  ;;  %5678 = vmatmul.mubr.f32.gmra.mxu0 %v2908_v26  ;;  %v2937_v38 = vld [vmem:[#allocation2 + $0x350] sm:$0xff]  ;;  %v1693_v17 = vadd.f32 %v8127_v13, %v7790_v41  ;;  %v2847_v26 = vld [vmem:[#allocation3 + $0x310] sm:$0xff]  ;;  %v2936_v13 = vld [vmem:[#allocation2 + $0x3f8] sm:$0xff] }
 0x202   :  { %v2007_v45 = vpop.f32.mrf.mxu0  ;;  %v2438_v9 = vadd.f32 1.0, %v6045_v11  ;;  %3225 = vmatprep.mubr.f32.mxu1 %v2934_v2  ;;  %5680 = vmatprep.mubr.msk.f32.mxu0 %vm6504_vm0, %v8025_v62 }
 0x203   :  { %v4848_v35 = vmul.f32 -1.442695, %v8209_v44  ;;  %v2008_v63 = vadd.f32 %v2007_v45, %v1688_v29  ;;  %v1729_v20 = vpop.f32.mrf.mxu1  ;;  %3761 = vmatpush1.msra.mxu1 %v2848_v3  ;;  %5828 = vmatprep.subr.mxu0 %v8025_v62  ;;  %v2886_v3 = vld [vmem:[#allocation3 + $0x448] sm:$0xff] }
 0x204   :  { %v5503_v50 = vpop.f32.mrf.mxu0  ;;  %6056 = vrcp.f32 %v2438_v9  ;;  %3762 = vmatprep.subr.mxu1 %v8025_v62  ;;  %5829 = vmatpush3.msra.mxu0 %v2887_v7  ;;  %v2914_v9 = vld [vmem:[#allocation2 + $0x268] sm:$0xff] }
 0x205   :  { %v8221_v61 = vadd.f32 %v8132_v21, %v2008_v63  ;;  %v6047_v2 = vpop.eup %6046  ;;  %6058 = vpow2.f32 %v4848_v35  ;;  %v8224_v29 = vpop.f32.mrf.mxu1  ;;  %3226 = vmatmul.mubr.f32.gmra.mxu1 %v2933_v59  ;;  %5681 = vmatmul.mubr.f32.gmra.mxu0 %v2911_v58  ;;  %v2940_v50 = vld [vmem:[#allocation2 + $0x70] sm:$0xff]  ;;  %v1698_v35 = vadd.f32 %v8142_v31, %v7799_v54  ;;  %v2846_v58 = vld [vmem:[#allocation3 + $0x308] sm:$0xff] }
 0x206   :  { %v2012_v11 = vpop.f32.mrf.mxu0  ;;  %v2439_v45 = vadd.f32 1.0, %v6047_v2  ;;  %3230 = vmatprep.mubr.f32.mxu1 %v2937_v38  ;;  %5683 = vmatprep.mubr.msk.f32.mxu0 %vm6504_vm0, %v8025_v62 }
 0x207   :  { %v4849_v20 = vmul.f32 -1.442695, %v8221_v61  ;;  %v2013_v41 = vadd.f32 %v2012_v11, %v1693_v17  ;;  %v1734_v63 = vpop.f32.mrf.mxu1  ;;  %3763 = vmatpush1.msra.mxu1 %v2847_v26  ;;  %5830 = vmatprep.subr.mxu0 %v8025_v62  ;;  %v2885_v26 = vld [vmem:[#allocation3 + $0x440] sm:$0xff] }
 0x208   :  { %v5506_v7 = vpop.f32.mrf.mxu0  ;;  %6060 = vrcp.f32 %v2439_v45  ;;  %3764 = vmatprep.subr.mxu1 %v8025_v62  ;;  %5831 = vmatpush3.msra.mxu0 %v2886_v3  ;;  %v2939_v45 = vld [vmem:[#allocation2 + $0x180] sm:$0xff]  ;;  %v2917_v3 = vld [vmem:[#allocation2 + $0xd8] sm:$0xff] }
 0x209   :  { %v8233_v59 = vadd.f32 %v8132_v21, %v2013_v41  ;;  %v6049_v38 = vpop.eup %6048  ;;  %6062 = vpow2.f32 %v4849_v20  ;;  %v8236_v17 = vpop.f32.mrf.mxu1  ;;  %3231 = vmatmul.mubr.f32.gmra.mxu1 %v2936_v13  ;;  %5684 = vmatmul.mubr.f32.gmra.mxu0 %v2914_v9  ;;  %v2845_v9 = vld [vmem:[#allocation3 + $0x300] sm:$0xff] }
 0x20a   :  { %v2017_v2 = vpop.f32.mrf.mxu0  ;;  %v6051_v11 = vpop.eup %6050  ;;  %v2589_v63 = vmul.f32 %v6049_v38, %v8140_v53  ;;  %3235 = vmatprep.mubr.f32.mxu1 %v2940_v50  ;;  %5686 = vmatprep.mubr.msk.f32.mxu0 %vm6504_vm0, %v8025_v62  ;;  %v1703_v53 = vadd.f32 %v8153_v42, %v7808_v36  ;;  %v2884_v38 = vld [vmem:[#allocation3 + $0x438] sm:$0xff] }
 0x20b   :  { %v4850_v54 = vmul.f32 -1.442695, %v8233_v59  ;;  %v2018_v31 = vadd.f32 %v2017_v2, %v1698_v35  ;;  %v2440_v41 = vadd.f32 1.0, %v6051_v11  ;;  %v1739_v20 = vpop.f32.mrf.mxu1  ;;  %3765 = vmatpush1.msra.mxu1 %v2846_v58  ;;  %5832 = vmatprep.subr.mxu0 %v8025_v62 }
 0x20c   :  { %v5509_v7 = vpop.f32.mrf.mxu0  ;;  %2640 = vst [vmem:[%s9907_s3] sm:$0xff] %v2589_v63  ;;  %3766 = vmatprep.subr.mxu1 %v8025_v62  ;;  %5833 = vmatpush3.msra.mxu0 %v2885_v26  ;;  %v2942_v63 = vld [vmem:[#allocation2 + $0x380] sm:$0xff]  ;;  %v2946_v20 = vld [vmem:[#allocation2 + $0xf8] sm:$0xff] }
 0x20d   :  { %6064 = vpow2.f32 %v4850_v54  ;;  %v8249_v13 = vadd.f32 %v8132_v21, %v2018_v31  ;;  %v6053_v50 = vpop.eup %6052  ;;  %v8252_v35 = vpop.f32.mrf.mxu1  ;;  %3236 = vmatmul.mubr.f32.gmra.mxu1 %v2939_v45  ;;  %5687 = vmatmul.mubr.f32.gmra.mxu0 %v2917_v3  ;;  %v2920_v26 = vld [vmem:[#allocation2 + $0x200] sm:$0xff]  ;;  %v2876_v45 = vld [vmem:[#allocation3 + $0x3f8] sm:$0xff] }
 0x20e   :  { %6066 = vrcp.f32 %v2440_v41  ;;  %v2022_v58 = vpop.f32.mrf.mxu0  ;;  %v6055_v2 = vpop.eup %6054  ;;  %v2590_v11 = vmul.f32 %v6053_v50, %v8151_v34  ;;  %3240 = vmatprep.mubr.f32.mxu1 %v2943_v49  ;;  %5689 = vmatprep.mubr.msk.f32.mxu0 %vm6504_vm0, %v8025_v62  ;;  %v1708_v34 = vadd.f32 %v8164_v32, %v7817_v24  ;;  %v367_v3 = vld [vmem:[%s9904_s0 + $0x1b1] sm:$0xff]  ;;  %v369_v7 = vld [vmem:[%s9904_s0 + $0x1c1] sm:$0x1]  ;;  %v2883_v32 = vld [vmem:[#allocation3 + $0x430] sm:$0xff] }
 0x20f   :  { %v4851_v36 = vmul.f32 -1.442695, %v8249_v13  ;;  %v2023_v42 = vadd.f32 %v2022_v58, %v1703_v53  ;;  %v2441_v54 = vadd.f32 1.0, %v6055_v2  ;;  %v1744_v31 = vpop.f32.mrf.mxu1  ;;  %3767 = vmatpush1.msra.mxu1 %v2845_v9  ;;  %5834 = vmatprep.subr.mxu0 %v8025_v62  ;;  %424 = vst [vmem:[#allocation2 + $0x3d8] sm:$0xff] %v367_v3  ;;  %v253_v50 = vld [vmem:[%s9904_s0 + $0x1b0] sm:$0xff] }
 0x210   :  { %v5512_v41 = vpop.f32.mrf.mxu0  ;;  %2641 = vst [vmem:[%s9907_s3 + $0x8] sm:$0xff] %v2590_v11  ;;  %3768 = vmatprep.subr.mxu1 %v8025_v62  ;;  %5835 = vmatpush3.msra.mxu0 %v2884_v38  ;;  %426 = vst [vmem:[#allocation2 + $0x208] sm:$0x1] %v369_v7  ;;  %v255_v58 = vld [vmem:[%s9904_s0 + $0x1c0] sm:$0x1] }
 0x211   :  { %6068 = vpow2.f32 %v4851_v36  ;;  %v8265_v49 = vadd.f32 %v8132_v21, %v2023_v42  ;;  %v6057_v53 = vpop.eup %6056  ;;  %v8274_v9 = vpop.f32.mrf.mxu1  ;;  %3241 = vmatmul.mubr.f32.gmra.mxu1 %v2942_v63  ;;  %5690 = vmatmul.mubr.f32.gmra.mxu0 %v2920_v26  ;;  %v2945_v42 = vld [vmem:[#allocation2 + $0x348] sm:$0xff]  ;;  %v2923_v63 = vld [vmem:[#allocation2 + $0x4c0] sm:$0xff]  ;;  %310 = vst [vmem:[#allocation2 + $0x340] sm:$0xff] %v253_v50  ;;  %312 = vst [vmem:[#allocation2 + $0x280] sm:$0x1] %v255_v58 }
 0x212   :  { %6070 = vrcp.f32 %v2441_v54  ;;  %v2027_v24 = vpop.f32.mrf.mxu0  ;;  %v6059_v38 = vpop.eup %6058  ;;  %v2591_v2 = vmul.f32 %v6057_v53, %v8162_v39  ;;  %3245 = vmatprep.mubr.f32.mxu1 %v2946_v20  ;;  %5692 = vmatprep.mubr.msk.f32.mxu0 %vm6504_vm0, %v8025_v62  ;;  %v2949_v41 = vld [vmem:[#allocation2 + $0x170] sm:$0xff]  ;;  %v1713_v39 = vadd.f32 %v8176_v47, %v7826_v40  ;;  %v254_v40 = vld [vmem:[%s9904_s0 + $0x1b8] sm:$0xff] }
 0x213   :  { %v4852_v11 = vmul.f32 -1.442695, %v8265_v49  ;;  %v2028_v36 = vadd.f32 %v2027_v24, %v1708_v34  ;;  %v2442_v26 = vadd.f32 1.0, %v6059_v38  ;;  %v1749_v54 = vpop.f32.mrf.mxu1  ;;  %3769 = vmatpush2.msra.mxu1 %v2876_v45  ;;  %5836 = vmatprep.subr.mxu0 %v8025_v62  ;;  %v2875_v34 = vld [vmem:[#allocation3 + $0x3f0] sm:$0xff]  ;;  %v368_v45 = vld [vmem:[%s9904_s0 + $0x1b9] sm:$0xff]  ;;  %v2948_v58 = vld [vmem:[#allocation2 + $0x4b0] sm:$0xff] }
 0x214   :  { %v5515_v31 = vpop.f32.mrf.mxu0  ;;  %2642 = vst [vmem:[%s9907_s3 + $0x10] sm:$0xff] %v2591_v2  ;;  %3770 = vmatprep.subr.mxu1 %v8025_v62  ;;  %5837 = vmatpush3.msra.mxu0 %v2883_v32  ;;  %425 = vst [vmem:[#allocation2 + $0x130] sm:$0xff] %v368_v45  ;;  %v2926_v38 = vld [vmem:[#allocation2 + $0x240] sm:$0xff] }
 0x215   :  { %6072 = vpow2.f32 %v4852_v11  ;;  %v8293_v20 = vadd.f32 %v8132_v21, %v2028_v36  ;;  %v6061_v3 = vpop.eup %6060  ;;  %v8299_v7 = vpop.f32.mrf.mxu1  ;;  %3246 = vmatmul.mubr.f32.gmra.mxu1 %v2945_v42  ;;  %5693 = vmatmul.mubr.f32.gmra.mxu0 %v2923_v63  ;;  %311 = vst [vmem:[#allocation2 + $0x2a0] sm:$0xff] %v254_v40  ;;  %v2952_v42 = vld [vmem:[#allocation2 + $0x260] sm:$0xff] }
 0x216   :  { %6074 = vrcp.f32 %v2442_v26  ;;  %v2032_v53 = vpop.f32.mrf.mxu0  ;;  %v6063_v47 = vpop.eup %6062  ;;  %v2592_v24 = vmul.f32 %v6061_v3, %v8173_v15  ;;  %3250 = vmatprep.mubr.f32.mxu1 %v2949_v41  ;;  %5695 = vmatprep.mubr.msk.f32.mxu0 %vm6504_vm0, %v8025_v62  ;;  %v1718_v15 = vadd.f32 %v8188_v6, %v7835_v18  ;;  %v2874_v26 = vld [vmem:[#allocation3 + $0x3e8] sm:$0xff]  ;;  %v8321_v6 = vld [vmem:[#allocation2 + $0x518] sm:$0xff] }
 0x217   :  { %v4853_v32 = vmul.f32 -1.442695, %v8293_v20  ;;  %v2033_v50 = vadd.f32 %v2032_v53, %v1713_v39  ;;  %v2443_v2 = vadd.f32 1.0, %v6063_v47  ;;  %v1754_v11 = vpop.f32.mrf.mxu1  ;;  %3771 = vmatpush2.msra.mxu1 %v2875_v34  ;;  %5838 = vmatprep.subr.mxu0 %v8025_v62  ;;  %v2882_v54 = vld [vmem:[#allocation3 + $0x428] sm:$0xff] }
 0x218   :  { %v5518_v36 = vpop.f32.mrf.mxu0  ;;  %2643 = vst [vmem:[%s9907_s3 + $0x18] sm:$0xff] %v2592_v24  ;;  %3772 = vmatprep.subr.mxu1 %v8025_v62  ;;  %v2951_v62 = vld [vmem:[#allocation2 + $0x310] sm:$0xff]  ;;  %v2929_v53 = vld [vmem:[#allocation2 + $0x1a0] sm:$0xff]  ;;  %5839 = vmatpush3.msra.mxu0 %v2882_v54 }
 0x219   :  { %6076 = vpow2.f32 %v4853_v32  ;;  %v8315_v63 = vadd.f32 %v8132_v21, %v2033_v50  ;;  %v8318_v41 = vpop.f32.mrf.mxu1  ;;  %3251 = vmatmul.mubr.f32.gmra.mxu1 %v2948_v58  ;;  %5696 = vmatmul.mubr.f32.gmra.mxu0 %v2926_v38  ;;  %v2955_v32 = vld [vmem:[#allocation2 + $0x10] sm:$0xff]  ;;  %v1723_v50 = vadd.f32 %v8200_v55, %v7844_v14  ;;  %v2873_v38 = vld [vmem:[#allocation3 + $0x3e0] sm:$0xff] }
 0x21a   :  { %v6065_v31 = vpop.eup %6064  ;;  %6078 = vrcp.f32 %v2443_v2  ;;  %v2037_v39 = vpop.f32.mrf.mxu0  ;;  %3255 = vmatprep.mubr.f32.mxu1 %v2952_v42  ;;  %5698 = vmatprep.mubr.msk.f32.mxu0 %vm6504_vm0, %v8321_v6 }
 0x21b   :  { %v6067_v34 = vpop.eup %6066  ;;  %v2444_v45 = vadd.f32 1.0, %v6065_v31  ;;  %v4854_v3 = vmul.f32 -1.442695, %v8315_v63  ;;  %v2038_v18 = vadd.f32 %v2037_v39, %v1718_v15  ;;  %v1759_v47 = vpop.f32.mrf.mxu1  ;;  %3773 = vmatpush2.msra.mxu1 %v2874_v26  ;;  %5840 = vmatprep.subr.mxu0 %v8321_v6  ;;  %v2954_v15 = vld [vmem:[#allocation2 + $0x4e8] sm:$0xff]  ;;  %v2932_v26 = vld [vmem:[#allocation2 + $0x298] sm:$0xff] }
 0x21c   :  { %v2593_v40 = vmul.f32 %v6067_v34, %v8185_v12  ;;  %v5521_v24 = vpop.f32.mrf.mxu0  ;;  %3774 = vmatprep.subr.mxu1 %v8321_v6  ;;  %v2958_v34 = vld [vmem:[#allocation2 + $0x358] sm:$0xff] }
 0x21d   :  { %6080 = vrcp.f32 %v2444_v45  ;;  %v8329_v58 = vadd.f32 %v8132_v21, %v2038_v18  ;;  %v8336_v12 = vpop.f32.mrf.mxu1  ;;  %3256 = vmatmul.mubr.f32.gmra.mxu1 %v2951_v62  ;;  %5699 = vmatmul.mubr.f32.gmra.mxu0 %v2929_v53  ;;  %v1728_v45 = vadd.f32 %v8212_v16, %v7853_v25  ;;  %v2872_v18 = vld [vmem:[#allocation3 + $0x3d8] sm:$0xff]  ;;  %v2957_v24 = vld [vmem:[#allocation2 + $0x338] sm:$0xff] }
 0x21e   :  { %v6069_v2 = vpop.eup %6068  ;;  %2644 = vst [vmem:[%s9907_s3 + $0x20] sm:$0xff] %v2593_v40  ;;  %6082 = vpow2.f32 %v4854_v3  ;;  %v2042_v11 = vpop.f32.mrf.mxu0  ;;  %3260 = vmatprep.mubr.f32.mxu1 %v2955_v32  ;;  %5701 = vmatprep.mubr.msk.f32.mxu0 %vm6504_vm0, %v8321_v6  ;;  %v2935_v32 = vld [vmem:[#allocation2 + $0xa8] sm:$0xff] }
 0x21f   :  { %v6071_v14 = vpop.eup %6070  ;;  %v2445_v55 = vadd.f32 1.0, %v6069_v2  ;;  %v4855_v36 = vmul.f32 -1.442695, %v8329_v58  ;;  %v2043_v42 = vadd.f32 %v2042_v11, %v1723_v50  ;;  %v1764_v31 = vpop.f32.mrf.mxu1  ;;  %3775 = vmatpush2.msra.mxu1 %v2873_v38  ;;  %v2961_v11 = vld [vmem:[#allocation2 + $0x520] sm:$0xff] }
 0x220   :  { %v2594_v54 = vmul.f32 %v6071_v14, %v8197_v10  ;;  %v5524_v39 = vpop.f32.mrf.mxu0  ;;  %3776 = vmatprep.subr.mxu1 %v8321_v6  ;;  %v1733_v14 = vadd.f32 %v8224_v29, %v7862_v19 }
 0x221   :  { %6084 = vrcp.f32 %v2445_v55  ;;  %v8345_v3 = vadd.f32 %v8132_v21, %v2043_v42  ;;  %v8351_v10 = vpop.f32.mrf.mxu1  ;;  %3261 = vmatmul.mubr.f32.gmra.mxu1 %v2954_v15  ;;  %5702 = vmatmul.mubr.f32.gmra.mxu0 %v2932_v26  ;;  %v2881_v26 = vld [vmem:[#allocation3 + $0x420] sm:$0xff]  ;;  %v2960_v39 = vld [vmem:[#allocation2 + $0x528] sm:$0xff] }
 0x222   :  { %v6073_v62 = vpop.eup %6072  ;;  %2645 = vst [vmem:[%s9907_s3 + $0x28] sm:$0xff] %v2594_v54  ;;  %6086 = vpow2.f32 %v4855_v36  ;;  %v2047_v53 = vpop.f32.mrf.mxu0  ;;  %3265 = vmatprep.mubr.f32.mxu1 %v2958_v34  ;;  %5704 = vmatprep.mubr.msk.f32.mxu0 %vm6504_vm0, %v8321_v6  ;;  %v2871_v36 = vld [vmem:[#allocation3 + $0x3d0] sm:$0xff]  ;;  %v2938_v34 = vld [vmem:[#allocation2 + $0x250] sm:$0xff] }
 0x223   :  { %v6075_v40 = vpop.eup %6074  ;;  %v2446_v25 = vadd.f32 1.0, %v6073_v62  ;;  %v4856_v16 = vmul.f32 -1.442695, %v8345_v3  ;;  %v2048_v47 = vadd.f32 %v2047_v53, %v1728_v45  ;;  %v1769_v38 = vpop.f32.mrf.mxu1  ;;  %3777 = vmatpush2.msra.mxu1 %v2872_v18  ;;  %v2964_v53 = vld [vmem:[#allocation2 + $0x2c0] sm:$0xff]  ;;  %5841 = vmatpush3.msra.mxu0 %v2881_v26  ;;  %v2869_v26 = vld [vmem:[#allocation3 + $0x3c0] sm:$0xff] }
 0x224   :  { %v2595_v50 = vmul.f32 %v6075_v40, %v8209_v44  ;;  %v5527_v2 = vpop.f32.mrf.mxu0  ;;  %3778 = vmatprep.subr.mxu1 %v8321_v6  ;;  %v1738_v40 = vadd.f32 %v8236_v17, %v7871_v46  ;;  %5842 = vmatprep.subr.mxu0 %v8321_v6  ;;  %v2963_v38 = vld [vmem:[#allocation2 + $0x458] sm:$0xff] }
 0x225   :  { %6088 = vrcp.f32 %v2446_v25  ;;  %v8360_v55 = vadd.f32 %v8132_v21, %v2048_v47  ;;  %v8366_v44 = vpop.f32.mrf.mxu1  ;;  %3266 = vmatmul.mubr.f32.gmra.mxu1 %v2957_v24  ;;  %5705 = vmatmul.mubr.f32.gmra.mxu0 %v2935_v32  ;;  %v2941_v2 = vld [vmem:[#allocation2 + $0x138] sm:$0xff] }
 0x226   :  { %v6077_v42 = vpop.eup %6076  ;;  %2646 = vst [vmem:[%s9907_s3 + $0x30] sm:$0xff] %v2595_v50  ;;  %6090 = vpow2.f32 %v4856_v16  ;;  %v2052_v15 = vpop.f32.mrf.mxu0  ;;  %3270 = vmatprep.mubr.f32.mxu1 %v2961_v11  ;;  %5707 = vmatprep.mubr.msk.f32.mxu0 %vm6504_vm0, %v8321_v6  ;;  %v2870_v16 = vld [vmem:[#allocation3 + $0x3c8] sm:$0xff] }
 0x227   :  { %v6079_v19 = vpop.eup %6078  ;;  %v2447_v29 = vadd.f32 1.0, %v6077_v42  ;;  %v4857_v54 = vmul.f32 -1.442695, %v8360_v55  ;;  %v2053_v31 = vadd.f32 %v2052_v15, %v1733_v14  ;;  %v1774_v18 = vpop.f32.mrf.mxu1  ;;  %3779 = vmatpush2.msra.mxu1 %v2871_v36  ;;  %v2967_v42 = vld [vmem:[#allocation2 + $0x488] sm:$0xff] }
 0x228   :  { %v2596_v45 = vmul.f32 %v6079_v19, %v8221_v61  ;;  %v5530_v62 = vpop.f32.mrf.mxu0  ;;  %3780 = vmatprep.subr.mxu1 %v8321_v6 }
 0x229   :  { %6092 = vrcp.f32 %v2447_v29  ;;  %v8375_v25 = vadd.f32 %v8132_v21, %v2053_v31  ;;  %v8382_v61 = vpop.f32.mrf.mxu1  ;;  %3271 = vmatmul.mubr.f32.gmra.mxu1 %v2960_v39  ;;  %5708 = vmatmul.mubr.f32.gmra.mxu0 %v2938_v34 }
 0x22a   :  { %v6081_v47 = vpop.eup %6080  ;;  %2647 = vst [vmem:[%s9907_s3 + $0x38] sm:$0xff] %v2596_v45  ;;  %6094 = vpow2.f32 %v4857_v54  ;;  %v2057_v24 = vpop.f32.mrf.mxu0  ;;  %3275 = vmatprep.mubr.f32.mxu1 %v2964_v53  ;;  %5710 = vmatprep.mubr.msk.f32.mxu0 %vm6504_vm0, %v8321_v6  ;;  %v2944_v45 = vld [vmem:[#allocation2 + $0x228] sm:$0xff] }
 0x22b   :  { %v6083_v46 = vpop.eup %6082  ;;  %v2597_v17 = vmul.f32 %v6081_v47, %v8233_v59  ;;  %v4858_v32 = vmul.f32 -1.442695, %v8375_v25  ;;  %v2058_v50 = vadd.f32 %v2057_v24, %v1738_v40  ;;  %v1779_v14 = vpop.f32.mrf.mxu1  ;;  %3781 = vmatpush2.msra.mxu1 %v2870_v16  ;;  %v1743_v59 = vadd.f32 %v8252_v35, %v7880_v43  ;;  %v2966_v35 = vld [vmem:[#allocation2 + $0x270] sm:$0xff]  ;;  %v2970_v40 = vld [vmem:[#allocation2 + $0x60] sm:$0xff] }
 0x22c   :  { %v2448_v11 = vadd.f32 1.0, %v6083_v46  ;;  %v5533_v36 = vpop.f32.mrf.mxu0  ;;  %3782 = vmatprep.subr.mxu1 %v8321_v6  ;;  %v2868_v47 = vld [vmem:[#allocation3 + $0x3b8] sm:$0xff] }
 0x22d   :  { %2648 = vst [vmem:[%s9907_s3 + $0x40] sm:$0xff] %v2597_v17  ;;  %6096 = vpow2.f32 %v4858_v32  ;;  %v8394_v15 = vadd.f32 %v8132_v21, %v2058_v50  ;;  %v8397_v29 = vpop.f32.mrf.mxu1  ;;  %3276 = vmatmul.mubr.f32.gmra.mxu1 %v2963_v38  ;;  %5711 = vmatmul.mubr.f32.gmra.mxu0 %v2941_v2  ;;  %v2880_v24 = vld [vmem:[#allocation3 + $0x418] sm:$0xff]  ;;  %v2947_v36 = vld [vmem:[#allocation2 + $0x460] sm:$0xff] }
 0x22e   :  { %v6085_v19 = vpop.eup %6084  ;;  %6098 = vrcp.f32 %v2448_v11  ;;  %v2062_v54 = vpop.f32.mrf.mxu0  ;;  %3280 = vmatprep.mubr.f32.mxu1 %v2967_v42  ;;  %5713 = vmatprep.mubr.msk.f32.mxu0 %vm6504_vm0, %v8321_v6  ;;  %v481_v50 = vld [vmem:[%s9904_s0 + $0x1b2] sm:$0xff] }
 0x22f   :  { %v6087_v31 = vpop.eup %6086  ;;  %v2598_v39 = vmul.f32 %v6085_v19, %v8249_v13  ;;  %v4859_v34 = vmul.f32 -1.442695, %v8394_v15  ;;  %v2063_v43 = vadd.f32 %v2062_v54, %v1743_v59  ;;  %v1784_v62 = vpop.f32.mrf.mxu1  ;;  %3783 = vmatpush2.msra.mxu1 %v2869_v26  ;;  %v1748_v13 = vadd.f32 %v8274_v9, %v7888_v28  ;;  %v483_v28 = vld [vmem:[%s9904_s0 + $0x1c2] sm:$0x1]  ;;  %v2969_v14 = vld [vmem:[#allocation2 + $0xb0] sm:$0xff]  ;;  %538 = vst [vmem:[#allocation2 + $0x330] sm:$0xff] %v481_v50 }
 0x230   :  { %v2449_v18 = vadd.f32 1.0, %v6087_v31  ;;  %v5536_v53 = vpop.f32.mrf.mxu0  ;;  %3784 = vmatprep.subr.mxu1 %v8321_v6  ;;  %540 = vst [vmem:[#allocation2 + $0x518] sm:$0x1] %v483_v28  ;;  %v2973_v19 = vld [vmem:[#allocation2 + $0x1f8] sm:$0xff]  ;;  %5843 = vmatpush3.msra.mxu0 %v2880_v24  ;;  %v2867_v31 = vld [vmem:[#allocation3 + $0x3b0] sm:$0xff]  ;;  %v2950_v62 = vld [vmem:[#allocation2 + $0x160] sm:$0xff] }
 0x231   :  { %2649 = vst [vmem:[%s9907_s3 + $0x48] sm:$0xff] %v2598_v39  ;;  %6100 = vpow2.f32 %v4859_v34  ;;  %v8409_v16 = vadd.f32 %v8132_v21, %v2063_v43  ;;  %v8412_v17 = vpop.f32.mrf.mxu1  ;;  %3281 = vmatmul.mubr.f32.gmra.mxu1 %v2966_v35  ;;  %5714 = vmatmul.mubr.f32.gmra.mxu0 %v2944_v45  ;;  %v8451_v24 = vld [vmem:[%s9906_s2] ss:$0 sm:$0xff]  ;;  %v2879_v50 = vld [vmem:[#allocation3 + $0x410] sm:$0xff] }
 0x232   :  { %v6089_v46 = vpop.eup %6088  ;;  %6102 = vrcp.f32 %v2449_v18  ;;  %v2067_v32 = vpop.f32.mrf.mxu0  ;;  %3285 = vmatprep.mubr.f32.mxu1 %v2970_v40  ;;  %5716 = vmatprep.mubr.msk.f32.mxu0 %vm6504_vm0, %v8321_v6  ;;  %v2972_v18 = vld [vmem:[#allocation2 + $0x158] sm:$0xff] }
 0x233   :  { %v6091_v9 = vpop.eup %6090  ;;  %v2599_v38 = vmul.f32 %v6089_v46, %v8265_v49  ;;  %v4860_v2 = vmul.f32 -1.442695, %v8409_v16  ;;  %v2068_v11 = vadd.f32 %v2067_v32, %v1748_v13  ;;  %v1789_v59 = vpop.f32.mrf.mxu1  ;;  %3785 = vmatpush2.msra.mxu1 %v2868_v47  ;;  %v1753_v49 = vadd.f32 %v8299_v7, %v7896_v5  ;;  %5844 = vmatprep.subr.mxu0 %v8321_v6  ;;  %v482_v5 = vld [vmem:[%s9904_s0 + $0x1ba] sm:$0xff]  ;;  %v2976_v47 = vld [vmem:[#allocation2 + $0x2a8] sm:$0xff] }
 0x234   :  { %v2450_v42 = vadd.f32 1.0, %v6091_v9  ;;  %v5539_v26 = vpop.f32.mrf.mxu0  ;;  %3786 = vmatprep.subr.mxu1 %v8321_v6  ;;  %539 = vst [vmem:[#allocation2 + $0x3f0] sm:$0xff] %v482_v5  ;;  %v2866_v32 = vld [vmem:[#allocation3 + $0x3a8] sm:$0xff]  ;;  %5845 = vmatpush3.msra.mxu0 %v2879_v50  ;;  %v2877_v50 = vld [vmem:[#allocation3 + $0x400] sm:$0xff] }
 0x235   :  { %2650 = vst [vmem:[%s9907_s3 + $0x50] sm:$0xff] %v2599_v38  ;;  %6104 = vpow2.f32 %v4860_v2  ;;  %v8430_v54 = vadd.f32 %v8132_v21, %v2068_v11  ;;  %v8434_v34 = vpop.f32.mrf.mxu1  ;;  %3286 = vmatmul.mubr.f32.gmra.mxu1 %v2969_v14  ;;  %5717 = vmatmul.mubr.f32.gmra.mxu0 %v2947_v36  ;;  %v2975_v14 = vld [vmem:[#allocation2 + $0x3c8] sm:$0xff]  ;;  %v2953_v36 = vld [vmem:[#allocation2 + $0x3b8] sm:$0xff] }
 0x236   :  { %v6093_v39 = vpop.eup %6092  ;;  %6106 = vrcp.f32 %v2450_v42  ;;  %v2072_v43 = vpop.f32.mrf.mxu0  ;;  %3290 = vmatprep.mubr.f32.mxu1 %v2973_v19  ;;  %5719 = vmatprep.mubr.msk.f32.mxu0 %vm6504_vm0, %v8321_v6  ;;  %v2979_v19 = vld [vmem:[#allocation2 + $0x3d0] sm:$0xff] }
 0x237   :  { %v6095_v7 = vpop.eup %6094  ;;  %v2600_v21 = vmul.f32 %v6093_v39, %v8293_v20  ;;  %v4861_v35 = vmul.f32 -1.442695, %v8430_v54  ;;  %v2073_v45 = vadd.f32 %v2072_v43, %v1753_v49  ;;  %v1794_v40 = vpop.f32.mrf.mxu1  ;;  %3787 = vmatpush2.msra.mxu1 %v2867_v31  ;;  %v1758_v20 = vadd.f32 %v8318_v41, %v7904_v33  ;;  %v2865_v39 = vld [vmem:[#allocation3 + $0x3a0] sm:$0xff]  ;;  %5846 = vmatprep.subr.mxu0 %v8321_v6  ;;  %v2878_v43 = vld [vmem:[#allocation3 + $0x408] sm:$0xff] }
 0x238   :  { %v2451_v53 = vadd.f32 1.0, %v6095_v7  ;;  %v5542_v13 = vpop.f32.mrf.mxu0  ;;  %3788 = vmatprep.subr.mxu1 %v8321_v6  ;;  %v1763_v49 = vadd.f32 %v8336_v12, %v7912_v4  ;;  %5847 = vmatpush3.msra.mxu0 %v2878_v43 }
 0x239   :  { %2651 = vst [vmem:[%s9907_s3 + $0x58] sm:$0xff] %v2600_v21  ;;  %6108 = vpow2.f32 %v4861_v35  ;;  %v8454_v46 = vadd.f32 %v8451_v24, %v2073_v45  ;;  %v8457_v9 = vpop.f32.mrf.mxu1  ;;  %3291 = vmatmul.mubr.f32.gmra.mxu1 %v2972_v18  ;;  %5720 = vmatmul.mubr.f32.gmra.mxu0 %v2950_v62  ;;  %v2978_v45 = vld [vmem:[#allocation2 + $0x128] sm:$0xff]  ;;  %v2956_v18 = vld [vmem:[#allocation2 + $0x418] sm:$0xff]  ;;  %v2982_v13 = vld [vmem:[#allocation2 + $0x410] sm:$0xff] }
 0x23a   :  { %v6097_v28 = vpop.eup %6096  ;;  %6110 = vrcp.f32 %v2451_v53  ;;  %v2077_v38 = vpop.f32.mrf.mxu0  ;;  %3295 = vmatprep.mubr.f32.mxu1 %v2976_v47  ;;  %5722 = vmatprep.mubr.msk.f32.mxu0 %vm6504_vm0, %v8321_v6  ;;  %v1768_v47 = vadd.f32 %v8351_v10, %v7921_v57 }
 0x23b   :  { %v6099_v33 = vpop.eup %6098  ;;  %v2452_v41 = vadd.f32 1.0, %v6097_v28  ;;  %v4862_v2 = vmul.f32 -1.442695, %v8454_v46  ;;  %v2078_v11 = vadd.f32 %v2077_v38, %v1758_v20  ;;  %v1799_v59 = vpop.f32.mrf.mxu1  ;;  %3789 = vmatpush2.msra.mxu1 %v2866_v32  ;;  %v2864_v32 = vld [vmem:[#allocation3 + $0x398] sm:$0xff]  ;;  %5848 = vmatprep.subr.mxu0 %v8321_v6 }
 0x23c   :  { %v2601_v42 = vmul.f32 %v6099_v33, %v8315_v63  ;;  %v5545_v26 = vpop.f32.mrf.mxu0  ;;  %3790 = vmatprep.subr.mxu1 %v8321_v6  ;;  %v2985_v59 = vld [vmem:[#allocation2 + $0x478] sm:$0xff]  ;;  %5849 = vmatpush3.msra.mxu0 %v2877_v50 }
 0x23d   :  { %6112 = vrcp.f32 %v2452_v41  ;;  %v8466_v31 = vadd.f32 %v8451_v24, %v2078_v11  ;;  %v8473_v63 = vpop.f32.mrf.mxu1  ;;  %3296 = vmatmul.mubr.f32.gmra.mxu1 %v2975_v14  ;;  %5723 = vmatmul.mubr.f32.gmra.mxu0 %v2953_v36  ;;  %v2959_v11 = vld [vmem:[#allocation2 + $0x88] sm:$0xff]  ;;  %v1773_v26 = vadd.f32 %v8366_v44, %v7929_v48 }
 0x23e   :  { %v6101_v5 = vpop.eup %6100  ;;  %2652 = vst [vmem:[%s9907_s3 + $0x60] sm:$0xff] %v2601_v42  ;;  %6114 = vpow2.f32 %v4862_v2  ;;  %v2082_v7 = vpop.f32.mrf.mxu0  ;;  %3300 = vmatprep.mubr.f32.mxu1 %v2979_v19  ;;  %5725 = vmatprep.mubr.msk.f32.mxu0 %vm6504_vm0, %v8321_v6  ;;  %v2981_v2 = vld [vmem:[#allocation2 + $0x308] sm:$0xff] }
 0x23f   :  { %v6103_v4 = vpop.eup %6102  ;;  %v2453_v12 = vadd.f32 1.0, %v6101_v5  ;;  %v4863_v21 = vmul.f32 -1.442695, %v8466_v31  ;;  %v2083_v35 = vadd.f32 %v2082_v7, %v1763_v49  ;;  %v1804_v53 = vpop.f32.mrf.mxu1  ;;  %3791 = vmatpush2.msra.mxu1 %v2865_v39  ;;  %v2863_v49 = vld [vmem:[#allocation3 + $0x390] sm:$0xff] }
 0x240   :  { %v2602_v62 = vmul.f32 %v6103_v4, %v8329_v58  ;;  %v5548_v40 = vpop.f32.mrf.mxu0  ;;  %3792 = vmatprep.subr.mxu1 %v8321_v6  ;;  %v2984_v4 = vld [vmem:[#allocation2 + $0x210] sm:$0xff] }
 0x241   :  { %6116 = vrcp.f32 %v2453_v12  ;;  %v8482_v20 = vadd.f32 %v8451_v24, %v2083_v35  ;;  %v8489_v58 = vpop.f32.mrf.mxu1  ;;  %3301 = vmatmul.mubr.f32.gmra.mxu1 %v2978_v45  ;;  %5726 = vmatmul.mubr.f32.gmra.mxu0 %v2956_v18  ;;  %v2962_v12 = vld [vmem:[#allocation2 + $0x140] sm:$0xff] }
 0x242   :  { %v6105_v28 = vpop.eup %6104  ;;  %2653 = vst [vmem:[%s9907_s3 + $0x68] sm:$0xff] %v2602_v62  ;;  %6118 = vpow2.f32 %v4863_v21  ;;  %v2087_v38 = vpop.f32.mrf.mxu0  ;;  %3305 = vmatprep.mubr.f32.mxu1 %v2982_v13  ;;  %5728 = vmatprep.mubr.msk.f32.mxu0 %vm6504_vm0, %v8321_v6  ;;  %v2988_v18 = vld [vmem:[#allocation2] sm:$0xff]  ;;  %v1778_v62 = vadd.f32 %v8382_v61, %v7937_v52 }
 0x243   :  { %v6107_v57 = vpop.eup %6106  ;;  %v2454_v10 = vadd.f32 1.0, %v6105_v28  ;;  %v4864_v33 = vmul.f32 -1.442695, %v8482_v20  ;;  %v2088_v41 = vadd.f32 %v2087_v38, %v1768_v47  ;;  %v1809_v36 = vpop.f32.mrf.mxu1  ;;  %3793 = vmatpush2.msra.mxu1 %v2864_v32  ;;  %v2862_v40 = vld [vmem:[#allocation3 + $0x388] sm:$0xff] }
 0x244   :  { %v2603_v14 = vmul.f32 %v6107_v57, %v8345_v3  ;;  %v5551_v42 = vpop.f32.mrf.mxu0  ;;  %3794 = vmatprep.subr.mxu1 %v8321_v6  ;;  %v2987_v28 = vld [vmem:[#allocation2 + $0x4a0] sm:$0xff] }
 0x245   :  { %6120 = vrcp.f32 %v2454_v10  ;;  %v8498_v19 = vadd.f32 %v8451_v24, %v2088_v41  ;;  %v8504_v3 = vpop.f32.mrf.mxu1  ;;  %3306 = vmatmul.mubr.f32.gmra.mxu1 %v2981_v2  ;;  %5729 = vmatmul.mubr.f32.gmra.mxu0 %v2959_v11  ;;  %v2965_v38 = vld [vmem:[#allocation2 + $0x2e0] sm:$0xff]  ;;  %v2991_v41 = vld [vmem:[#allocation2 + $0x3e8] sm:$0xff]  ;;  %v2861_v11 = vld [vmem:[#allocation3 + $0x380] sm:$0xff] }
 0x246   :  { %v6109_v39 = vpop.eup %6108  ;;  %2654 = vst [vmem:[%s9907_s3 + $0x70] sm:$0xff] %v2603_v14  ;;  %6122 = vpow2.f32 %v4864_v33  ;;  %v2092_v43 = vpop.f32.mrf.mxu0  ;;  %3310 = vmatprep.mubr.f32.mxu1 %v2985_v59  ;;  %5731 = vmatprep.mubr.msk.f32.mxu0 %vm6504_vm0, %v8321_v6 }
 0x247   :  { %v6111_v5 = vpop.eup %6110  ;;  %v2455_v48 = vadd.f32 1.0, %v6109_v39  ;;  %v4865_v44 = vmul.f32 -1.442695, %v8498_v19  ;;  %v2093_v7 = vadd.f32 %v2092_v43, %v1773_v26  ;;  %v1814_v35 = vpop.f32.mrf.mxu1  ;;  %3795 = vmatpush2.msra.mxu1 %v2863_v49  ;;  %v2968_v39 = vld [vmem:[#allocation2 + $0x100] sm:$0xff] }
 0x248   :  { %v2604_v21 = vmul.f32 %v6111_v5, %v8360_v55  ;;  %v5554_v45 = vpop.f32.mrf.mxu0  ;;  %3796 = vmatprep.subr.mxu1 %v8321_v6 }
 0x249   :  { %6124 = vrcp.f32 %v2455_v48  ;;  %v8513_v53 = vadd.f32 %v8451_v24, %v2093_v7  ;;  %v8519_v55 = vpop.f32.mrf.mxu1  ;;  %3311 = vmatmul.mubr.f32.gmra.mxu1 %v2984_v4  ;;  %5732 = vmatmul.mubr.f32.gmra.mxu0 %v2962_v12 }
 0x24a   :  { %v6113_v13 = vpop.eup %6112  ;;  %2655 = vst [vmem:[%s9907_s3 + $0x78] sm:$0xff] %v2604_v21  ;;  %6126 = vpow2.f32 %v4865_v44  ;;  %v2097_v47 = vpop.f32.mrf.mxu0  ;;  %3315 = vmatprep.mubr.f32.mxu1 %v2988_v18  ;;  %5734 = vmatprep.mubr.msk.f32.mxu0 %vm6504_vm0, %v8321_v6  ;;  %v2994_v44 = vld [vmem:[#allocation2 + $0x388] sm:$0xff] }
 0x24b   :  { %v6115_v32 = vpop.eup %6114  ;;  %v2605_v52 = vmul.f32 %v6113_v13, %v8375_v25  ;;  %v4866_v61 = vmul.f32 -1.442695, %v8513_v53  ;;  %v2098_v50 = vadd.f32 %v2097_v47, %v1778_v62  ;;  %v1819_v10 = vpop.f32.mrf.mxu1  ;;  %3797 = vmatpush2.msra.mxu1 %v2862_v40  ;;  %v1783_v25 = vadd.f32 %v8397_v29, %v7945_v8  ;;  %v2990_v29 = vld [vmem:[#allocation2 + $0xc0] sm:$0xff] }
 0x24c   :  { %v2456_v57 = vadd.f32 1.0, %v6115_v32  ;;  %v5557_v33 = vpop.f32.mrf.mxu0  ;;  %3798 = vmatprep.subr.mxu1 %v8321_v6  ;;  %v2997_v32 = vld [vmem:[#allocation2 + $0x290] sm:$0xff] }
 0x24d   :  { %2656 = vst [vmem:[%s9907_s3 + $0x80] sm:$0xff] %v2605_v52  ;;  %6128 = vpow2.f32 %v4866_v61  ;;  %v8531_v2 = vadd.f32 %v8451_v24, %v2098_v50  ;;  %v8534_v36 = vpop.f32.mrf.mxu1  ;;  %3316 = vmatmul.mubr.f32.gmra.mxu1 %v2987_v28  ;;  %5735 = vmatmul.mubr.f32.gmra.mxu0 %v2965_v38 }
 0x24e   :  { %v6117_v14 = vpop.eup %6116  ;;  %6130 = vrcp.f32 %v2456_v57  ;;  %v2102_v42 = vpop.f32.mrf.mxu0  ;;  %3320 = vmatprep.mubr.f32.mxu1 %v2991_v41  ;;  %5737 = vmatprep.mubr.msk.f32.mxu0 %vm6504_vm0, %v8321_v6 }
 0x24f   :  { %v6119_v59 = vpop.eup %6118  ;;  %v2606_v26 = vmul.f32 %v6117_v14, %v8394_v15  ;;  %v4867_v49 = vmul.f32 -1.442695, %v8531_v2  ;;  %v2103_v8 = vadd.f32 %v2102_v42, %v1783_v25  ;;  %v1824_v5 = vpop.f32.mrf.mxu1  ;;  %3799 = vmatpush2.msra.mxu1 %v2861_v11  ;;  %v1788_v15 = vadd.f32 %v8412_v17, %v7953_v37  ;;  %v2993_v37 = vld [vmem:[#allocation2 + $0x1c8] sm:$0xff]  ;;  %v2971_v17 = vld [vmem:[#allocation2 + $0x20] sm:$0xff] }
 0x250   :  { %v2457_v43 = vadd.f32 1.0, %v6119_v59  ;;  %v5560_v48 = vpop.f32.mrf.mxu0  ;;  %6003 = vmatprep.subr.mxu1 %v8321_v6  ;;  %v3000_v14 = vld [vmem:[#allocation2 + $0xe8] sm:$0xff] }
 0x251   :  { %2657 = vst [vmem:[%s9907_s3 + $0x88] sm:$0xff] %v2606_v26  ;;  %6132 = vpow2.f32 %v4867_v49  ;;  %v8546_v7 = vadd.f32 %v8451_v24, %v2103_v8  ;;  %v8549_v12 = vpop.f32.mrf.mxu1  ;;  %3321 = vmatmul.mubr.f32.gmra.mxu1 %v2990_v29  ;;  %5738 = vmatmul.mubr.f32.gmra.mxu0 %v2968_v39 }
 0x252   :  { %v6121_v4 = vpop.eup %6120  ;;  %6134 = vrcp.f32 %v2457_v43  ;;  %v2107_v21 = vpop.f32.mrf.mxu0  ;;  %3325 = vmatprep.mubr.f32.mxu1 %v2994_v44  ;;  %5740 = vmatprep.mubr.msk.f32.mxu0 %vm6504_vm0, %v8321_v6 }
 0x253   :  { %v6123_v35 = vpop.eup %6122  ;;  %v2607_v45 = vmul.f32 %v6121_v4, %v8409_v16  ;;  %v4868_v18 = vmul.f32 -1.442695, %v8546_v7  ;;  %v2108_v62 = vadd.f32 %v2107_v21, %v1788_v15  ;;  %v1829_v13 = vpop.f32.mrf.mxu1  ;;  %v1793_v16 = vadd.f32 %v8434_v34, %v7960_v1  ;;  %v2996_v1 = vld [vmem:[#allocation2 + $0x2c8] sm:$0xff]  ;;  %v2974_v34 = vld [vmem:[#allocation2 + $0x90] sm:$0xff]  ;;  %v3003_v15 = vld [vmem:[#allocation2 + $0x420] sm:$0xff] }
 0x254   :  { %v2458_v40 = vadd.f32 1.0, %v6123_v35  ;;  %v5563_v47 = vpop.f32.mrf.mxu0  ;;  %v1803_v4 = vadd.f32 %v8473_v63, %v7974_v60  ;;  %v3002_v63 = vld [vmem:[#allocation2 + $0x1b8] sm:$0xff] }
 0x255   :  { %2658 = vst [vmem:[%s9907_s3 + $0x90] sm:$0xff] %v2607_v45  ;;  %6136 = vpow2.f32 %v4868_v18  ;;  %v8561_v52 = vadd.f32 %v8451_v24, %v2108_v62  ;;  %v8563_v50 = vpop.f32.mrf.mxu1  ;;  %3326 = vmatmul.mubr.f32.gmra.mxu1 %v2993_v37  ;;  %5741 = vmatmul.mubr.f32.gmra.mxu0 %v2971_v17  ;;  %v2980_v17 = vld [vmem:[#allocation2 + $0x4f0] sm:$0xff] }
 0x256   :  { %v6125_v61 = vpop.eup %6124  ;;  %6138 = vrcp.f32 %v2458_v40  ;;  %v2112_v28 = vpop.f32.mrf.mxu0  ;;  %3330 = vmatprep.mubr.f32.mxu1 %v2997_v32  ;;  %5743 = vmatprep.mubr.msk.f32.mxu0 %vm6504_vm0, %v8321_v6  ;;  %v3006_v32 = vld [vmem:[#allocation2 + $0x360] sm:$0xff] }
 0x257   :  { %v6127_v38 = vpop.eup %6126  ;;  %v2608_v57 = vmul.f32 %v6125_v61, %v8430_v54  ;;  %v4869_v10 = vmul.f32 -1.442695, %v8561_v52  ;;  %v2113_v33 = vadd.f32 %v2112_v28, %v1793_v16  ;;  %v1834_v25 = vpop.f32.mrf.mxu1  ;;  %v1798_v54 = vadd.f32 %v8457_v9, %v7967_v22  ;;  %v2999_v22 = vld [vmem:[#allocation2 + $0x4e0] sm:$0xff]  ;;  %v2977_v9 = vld [vmem:[#allocation2 + $0x370] sm:$0xff] }
 0x258   :  { %v2459_v41 = vadd.f32 1.0, %v6127_v38  ;;  %v5566_v11 = vpop.f32.mrf.mxu0  ;;  %v1808_v16 = vadd.f32 %v8489_v58, %v7981_v27  ;;  %v3005_v58 = vld [vmem:[#allocation2 + $0x1f0] sm:$0xff] }
 0x259   :  { %2659 = vst [vmem:[%s9907_s3 + $0x98] sm:$0xff] %v2608_v57  ;;  %6140 = vpow2.f32 %v4869_v10  ;;  %v8575_v42 = vadd.f32 %v8451_v24, %v2113_v33  ;;  %v8577_v26 = vpop.f32.mrf.mxu1  ;;  %3331 = vmatmul.mubr.f32.gmra.mxu1 %v2996_v1  ;;  %5744 = vmatmul.mubr.f32.gmra.mxu0 %v2974_v34  ;;  %v2983_v1 = vld [vmem:[#allocation2 + $0x3e0] sm:$0xff] }
 0x25a   :  { %v6129_v59 = vpop.eup %6128  ;;  %6142 = vrcp.f32 %v2459_v41  ;;  %v2117_v49 = vpop.f32.mrf.mxu0  ;;  %3335 = vmatprep.mubr.f32.mxu1 %v3000_v14  ;;  %5746 = vmatprep.mubr.msk.f32.mxu0 %vm6504_vm0, %v8321_v6  ;;  %v3009_v11 = vld [vmem:[#allocation2 + $0x220] sm:$0xff]  ;;  %v1813_v14 = vadd.f32 %v8504_v3, %v7988_v51  ;;  %v3008_v3 = vld [vmem:[#allocation2 + $0x408] sm:$0xff] }
 0x25b   :  { %v6131_v8 = vpop.eup %6130  ;;  %v2460_v29 = vadd.f32 1.0, %v6129_v59  ;;  %v4870_v39 = vmul.f32 -1.442695, %v8575_v42  ;;  %v2118_v43 = vadd.f32 %v2117_v49, %v1798_v54  ;;  %v1839_v48 = vpop.f32.mrf.mxu1 }
 0x25c   :  { %v2609_v5 = vmul.f32 %v6131_v8, %v8454_v46  ;;  %v5569_v44 = vpop.f32.mrf.mxu0  ;;  %v3012_v48 = vld [vmem:[#allocation2 + $0xc8] sm:$0xff] }
 0x25d   :  { %6144 = vrcp.f32 %v2460_v29  ;;  %v8586_v21 = vadd.f32 %v8451_v24, %v2118_v43  ;;  %v8591_v45 = vpop.f32.mrf.mxu1  ;;  %3336 = vmatmul.mubr.f32.gmra.mxu1 %v2999_v22  ;;  %5747 = vmatmul.mubr.f32.gmra.mxu0 %v2977_v9  ;;  %v2986_v43 = vld [vmem:[#allocation2 + $0x468] sm:$0xff]  ;;  %v1818_v44 = vadd.f32 %v8519_v55, %v7995_v56 }
 0x25e   :  { %v6133_v35 = vpop.eup %6132  ;;  %2660 = vst [vmem:[%s9907_s3 + $0xa0] sm:$0xff] %v2609_v5  ;;  %6146 = vpow2.f32 %v4870_v39  ;;  %v2122_v18 = vpop.f32.mrf.mxu0  ;;  %3340 = vmatprep.mubr.f32.mxu1 %v3003_v15  ;;  %5749 = vmatprep.mubr.msk.f32.mxu0 %vm6504_vm0, %v8321_v6 }
 0x25f   :  { %v6135_v46 = vpop.eup %6134  ;;  %v2461_v62 = vadd.f32 1.0, %v6133_v35  ;;  %v4871_v37 = vmul.f32 -1.442695, %v8586_v21  ;;  %v2123_v60 = vadd.f32 %v2122_v18, %v1803_v4  ;;  %v1844_v13 = vpop.f32.mrf.mxu1 }
 0x260   :  { %v2610_v40 = vmul.f32 %v6135_v46, %v8466_v31  ;;  %v5572_v47 = vpop.f32.mrf.mxu0 }
 0x261   :  { %6148 = vrcp.f32 %v2461_v62  ;;  %v8600_v61 = vadd.f32 %v8451_v24, %v2123_v60  ;;  %v8605_v38 = vpop.f32.mrf.mxu1  ;;  %3341 = vmatmul.mubr.f32.gmra.mxu1 %v3002_v63  ;;  %5750 = vmatmul.mubr.f32.gmra.mxu0 %v2980_v17  ;;  %v3011_v62 = vld [vmem:[#allocation2 + $0x1e8] sm:$0xff] }
 0x262   :  { %v6137_v28 = vpop.eup %6136  ;;  %2661 = vst [vmem:[%s9907_s3 + $0xa8] sm:$0xff] %v2610_v40  ;;  %6150 = vpow2.f32 %v4871_v37  ;;  %v2127_v57 = vpop.f32.mrf.mxu0  ;;  %3345 = vmatprep.mubr.f32.mxu1 %v3006_v32  ;;  %5752 = vmatprep.mubr.msk.f32.mxu0 %vm6504_vm0, %v8321_v6  ;;  %v2989_v37 = vld [vmem:[#allocation2 + $0x28] sm:$0xff]  ;;  %v3015_v40 = vld [vmem:[#allocation2 + $0x198] sm:$0xff] }
 0x263   :  { %v6139_v31 = vpop.eup %6138  ;;  %v2462_v10 = vadd.f32 1.0, %v6137_v28  ;;  %v4872_v33 = vmul.f32 -1.442695, %v8600_v61  ;;  %v2128_v27 = vadd.f32 %v2127_v57, %v1808_v16  ;;  %v1849_v41 = vpop.f32.mrf.mxu1 }
 0x264   :  { %v2611_v34 = vmul.f32 %v6139_v31, %v8482_v20  ;;  %v5575_v25 = vpop.f32.mrf.mxu0 }
 0x265   :  { %6152 = vrcp.f32 %v2462_v10  ;;  %v8614_v54 = vadd.f32 %v8451_v24, %v2128_v27  ;;  %v8619_v49 = vpop.f32.mrf.mxu1  ;;  %3346 = vmatmul.mubr.f32.gmra.mxu1 %v3005_v58  ;;  %5753 = vmatmul.mubr.f32.gmra.mxu0 %v2983_v1  ;;  %v3018_v1 = vld [vmem:[#allocation2 + $0x4d0] sm:$0xff] }
 0x266   :  { %v6141_v59 = vpop.eup %6140  ;;  %2662 = vst [vmem:[%s9907_s3 + $0xb0] sm:$0xff] %v2611_v34  ;;  %6154 = vpow2.f32 %v4872_v33  ;;  %v2132_v8 = vpop.f32.mrf.mxu0  ;;  %3350 = vmatprep.mubr.f32.mxu1 %v3009_v11  ;;  %5755 = vmatprep.mubr.msk.f32.mxu0 %vm6504_vm0, %v8321_v6 }
 0x267   :  { %v6143_v20 = vpop.eup %6142  ;;  %v2463_v29 = vadd.f32 1.0, %v6141_v59  ;;  %v4873_v39 = vmul.f32 -1.442695, %v8614_v54  ;;  %v2133_v51 = vadd.f32 %v2132_v8, %v1813_v14  ;;  %v1854_v9 = vpop.f32.mrf.mxu1 }
 0x268   :  { %v2612_v22 = vmul.f32 %v6143_v20, %v8498_v19  ;;  %v5578_v5 = vpop.f32.mrf.mxu0 }
 0x269   :  { %6156 = vrcp.f32 %v2463_v29  ;;  %v8628_v15 = vadd.f32 %v8451_v24, %v2133_v51  ;;  %v8633_v35 = vpop.f32.mrf.mxu1  ;;  %3351 = vmatmul.mubr.f32.gmra.mxu1 %v3008_v3  ;;  %5756 = vmatmul.mubr.f32.gmra.mxu0 %v2986_v43  ;;  %v3021_v3 = vld [vmem:[#allocation2 + $0x448] sm:$0xff] }
 0x26a   :  { %v6145_v4 = vpop.eup %6144  ;;  %2663 = vst [vmem:[%s9907_s3 + $0xb8] sm:$0xff] %v2612_v22  ;;  %6158 = vpow2.f32 %v4873_v39  ;;  %v2137_v18 = vpop.f32.mrf.mxu0  ;;  %3355 = vmatprep.mubr.f32.mxu1 %v3012_v48  ;;  %5758 = vmatprep.mubr.msk.f32.mxu0 %vm6504_vm0, %v8321_v6 }
 0x26b   :  { %v6147_v19 = vpop.eup %6146  ;;  %v2613_v46 = vmul.f32 %v6145_v4, %v8513_v53  ;;  %v4874_v56 = vmul.f32 -1.442695, %v8628_v15  ;;  %v2138_v55 = vadd.f32 %v2137_v18, %v1818_v44  ;;  %v1859_v63 = vpop.f32.mrf.mxu1  ;;  %v1823_v53 = vadd.f32 %v8534_v36, %v8002_v0  ;;  %v3014_v0 = vld [vmem:[#allocation2 + $0x1d0] sm:$0xff]  ;;  %v2992_v36 = vld [vmem:[#allocation2 + $0x218] sm:$0xff] }
 0x26c   :  { %v2464_v60 = vadd.f32 1.0, %v6147_v19  ;;  %v5581_v17 = vpop.f32.mrf.mxu0 }
 0x26d   :  { %2664 = vst [vmem:[%s9907_s3 + $0xc0] sm:$0xff] %v2613_v46  ;;  %6160 = vpow2.f32 %v4874_v56  ;;  %v8645_v13 = vadd.f32 %v8451_v24, %v2138_v55  ;;  %v8647_v32 = vpop.f32.mrf.mxu1  ;;  %3356 = vmatmul.mubr.f32.gmra.mxu1 %v3011_v62  ;;  %5759 = vmatmul.mubr.f32.gmra.mxu0 %v2989_v37  ;;  %v3024_v55 = vld [vmem:[#allocation2 + $0x1a8] sm:$0xff]  ;;  %v9957_v62 = vld [vmem:[#allocation6_spill] sm:$0xff] }
 0x26e   :  { %v6149_v47 = vpop.eup %6148  ;;  %6162 = vrcp.f32 %v2464_v60  ;;  %v2142_v16 = vpop.f32.mrf.mxu0  ;;  %3360 = vmatprep.mubr.f32.mxu1 %v3015_v40  ;;  %5761 = vmatprep.mubr.msk.f32.mxu0 %vm6504_vm0, %v8321_v6 }
 0x26f   :  { %v6151_v28 = vpop.eup %6150  ;;  %v2614_v57 = vmul.f32 %v6149_v47, %v8531_v2  ;;  %v4875_v31 = vmul.f32 -1.442695, %v8645_v13  ;;  %v2143_v10 = vadd.f32 %v2142_v16, %v1823_v53  ;;  %v1864_v27 = vpop.f32.mrf.mxu1  ;;  %v1828_v2 = vadd.f32 %v8549_v12, %v8009_v23  ;;  %v3017_v23 = vld [vmem:[#allocation2 + $0x4c8] sm:$0xff]  ;;  %v2995_v12 = vld [vmem:[#allocation2 + $0x540] sm:$0xff] }
 0x270   :  { %v2465_v33 = vadd.f32 1.0, %v6151_v28  ;;  %v5584_v58 = vpop.f32.mrf.mxu0  ;;  %v3001_v28 = vld [vmem:[#allocation2 + $0x40] sm:$0xff] }
 0x271   :  { %2665 = vst [vmem:[%s9907_s3 + $0xc8] sm:$0xff] %v2614_v57  ;;  %6164 = vpow2.f32 %v4875_v31  ;;  %v8659_v34 = vadd.f32 %v8451_v24, %v2143_v10  ;;  %v8661_v25 = vpop.f32.mrf.mxu1  ;;  %3361 = vmatmul.mubr.f32.gmra.mxu1 %v3014_v0  ;;  %5762 = vmatmul.mubr.f32.gmra.mxu0 %v2992_v36  ;;  %v3027_v0 = vld [vmem:[#allocation2 + $0x80] sm:$0xff] }
 0x272   :  { %v6153_v41 = vpop.eup %6152  ;;  %6166 = vrcp.f32 %v2465_v33  ;;  %v2147_v11 = vpop.f32.mrf.mxu0  ;;  %3365 = vmatprep.mubr.f32.mxu1 %v3018_v1  ;;  %5764 = vmatprep.mubr.msk.f32.mxu0 %vm6504_vm0, %v8321_v6  ;;  %v9958_v36 = vld [vmem:[#allocation7_spill] sm:$0xff] }
 0x273   :  { %v6155_v14 = vpop.eup %6154  ;;  %v2615_v59 = vmul.f32 %v6153_v41, %v8546_v7  ;;  %v4876_v8 = vmul.f32 -1.442695, %v8659_v34  ;;  %v2148_v20 = vadd.f32 %v2147_v11, %v1828_v2  ;;  %v1869_v39 = vpop.f32.mrf.mxu1  ;;  %v1833_v7 = vadd.f32 %v8563_v50, %v8016_v30  ;;  %v3020_v30 = vld [vmem:[#allocation2 + $0x148] sm:$0xff] }
 0x274   :  { %v2466_v29 = vadd.f32 1.0, %v6155_v14  ;;  %v5587_v51 = vpop.f32.mrf.mxu0  ;;  %v2998_v50 = vld [vmem:[#allocation2 + $0x168] sm:$0xff]  ;;  %v1843_v33 = vadd.f32 %v8591_v45, %v9958_v36 }
 0x275   :  { %2666 = vst [vmem:[%s9907_s3 + $0xd0] sm:$0xff] %v2615_v59  ;;  %6168 = vpow2.f32 %v4876_v8  ;;  %v8673_v43 = vadd.f32 %v8451_v24, %v2148_v20  ;;  %v8675_v9 = vpop.f32.mrf.mxu1  ;;  %3366 = vmatmul.mubr.f32.gmra.mxu1 %v3017_v23  ;;  %5765 = vmatmul.mubr.f32.gmra.mxu0 %v2995_v12  ;;  %v3026_v14 = vld [vmem:[#allocation2 + $0x508] sm:$0xff]  ;;  %v3004_v59 = vld [vmem:[#allocation2 + $0x538] sm:$0xff] }
 0x276   :  { %v6157_v22 = vpop.eup %6156  ;;  %6170 = vrcp.f32 %v2466_v29  ;;  %v2152_v5 = vpop.f32.mrf.mxu0  ;;  %3370 = vmatprep.mubr.f32.mxu1 %v3021_v3  ;;  %5767 = vmatprep.mubr.msk.f32.mxu0 %vm6504_vm0, %v8321_v6  ;;  %v3030_v12 = vld [vmem:[#allocation2 + $0x438] sm:$0xff]  ;;  %v9959_v29 = vld [vmem:[#allocation8_spill] sm:$0xff] }
 0x277   :  { %v6159_v48 = vpop.eup %6158  ;;  %v2616_v44 = vmul.f32 %v6157_v22, %v8561_v52  ;;  %v4877_v4 = vmul.f32 -1.442695, %v8673_v43  ;;  %v2153_v18 = vadd.f32 %v2152_v5, %v1833_v7  ;;  %v1874_v46 = vpop.f32.mrf.mxu1  ;;  %v1838_v52 = vadd.f32 %v8577_v26, %v9957_v62  ;;  %v3023_v26 = vld [vmem:[#allocation2 + $0x300] sm:$0xff] }
 0x278   :  { %v2467_v19 = vadd.f32 1.0, %v6159_v48  ;;  %v5590_v56 = vpop.f32.mrf.mxu0  ;;  %v1848_v39 = vadd.f32 %v8605_v38, %v9959_v29  ;;  %v9960_v46 = vld [vmem:[#allocation9_spill] sm:$0xff] }
 0x279   :  { %2667 = vst [vmem:[%s9907_s3 + $0xd8] sm:$0xff] %v2616_v44  ;;  %6172 = vpow2.f32 %v4877_v4  ;;  %v8687_v37 = vadd.f32 %v8451_v24, %v2153_v18  ;;  %v8689_v63 = vpop.f32.mrf.mxu1  ;;  %3371 = vmatmul.mubr.f32.gmra.mxu1 %v3020_v30  ;;  %5768 = vmatmul.mubr.f32.gmra.mxu0 %v2998_v50  ;;  %v3029_v44 = vld [vmem:[#allocation2 + $0x278] sm:$0xff]  ;;  %v3007_v4 = vld [vmem:[#allocation2 + $0x480] sm:$0xff]  ;;  %v1853_v56 = vadd.f32 %v8619_v49, %v9960_v46 }
 0x27a   :  { %v6161_v60 = vpop.eup %6160  ;;  %6174 = vrcp.f32 %v2467_v19  ;;  %v2157_v17 = vpop.f32.mrf.mxu0  ;;  %3375 = vmatprep.mubr.f32.mxu1 %v3024_v55  ;;  %5770 = vmatprep.mubr.msk.f32.mxu0 %vm6504_vm0, %v8321_v6  ;;  %v3033_v19 = vld [vmem:[#allocation2 + $0xe0] sm:$0xff] }
 0x27b   :  { %v6163_v40 = vpop.eup %6162  ;;  %v2468_v53 = vadd.f32 1.0, %v6161_v60  ;;  %v4878_v47 = vmul.f32 -1.442695, %v8687_v37  ;;  %v2158_v16 = vadd.f32 %v2157_v17, %v1838_v52  ;;  %v1879_v31 = vpop.f32.mrf.mxu1  ;;  %v6454_v46 = vld [vmem:[#allocation2 + $0x340] sm:$0xff] }
 0x27c   :  { %v2617_v57 = vmul.f32 %v6163_v40, %v8575_v42  ;;  %v5593_v10 = vpop.f32.mrf.mxu0  ;;  %v9961_v31 = vld [vmem:[#allocation10_spill] sm:$0xff] }
 0x27d   :  { %6176 = vrcp.f32 %v2468_v53  ;;  %v8698_v27 = vadd.f32 %v8451_v24, %v2158_v16  ;;  %v8703_v1 = vpop.f32.mrf.mxu1  ;;  %3376 = vmatmul.mubr.f32.gmra.mxu1 %v3023_v26  ;;  %5771 = vmatmul.mubr.f32.gmra.mxu0 %v3001_v28  ;;  %v3032_v53 = vld [vmem:[#allocation2 + $0x2d8] sm:$0xff]  ;;  %v1858_v10 = vadd.f32 %v8633_v35, %v9961_v31 }
 0x27e   :  { %v6165_v58 = vpop.eup %6164  ;;  %2668 = vst [vmem:[%s9907_s3 + $0xe0] sm:$0xff] %v2617_v57  ;;  %6178 = vpow2.f32 %v4878_v47  ;;  %v2162_v2 = vpop.f32.mrf.mxu0  ;;  %3380 = vmatprep.mubr.f32.mxu1 %v3027_v0  ;;  %5773 = vmatprep.mubr.msk.f32.mxu0 %vm6504_vm0, %v8321_v6  ;;  %v3010_v47 = vld [vmem:[#allocation2 + $0x190] sm:$0xff] }
 0x27f   :  { %v6167_v42 = vpop.eup %6166  ;;  %v2469_v41 = vadd.f32 1.0, %v6165_v58  ;;  %v4879_v11 = vmul.f32 -1.442695, %v8698_v27  ;;  %v2163_v45 = vadd.f32 %v2162_v2, %v1843_v33  ;;  %v1884_v20 = vpop.f32.mrf.mxu1  ;;  %v3036_v57 = vld [vmem:[#allocation2 + $0x1b0] sm:$0xff] }
 0x280   :  { %v2618_v8 = vmul.f32 %v6167_v42, %v8586_v21  ;;  %v5596_v23 = vpop.f32.mrf.mxu0 }
 0x281   :  { %6180 = vrcp.f32 %v2469_v41  ;;  %v8712_v51 = vadd.f32 %v8451_v24, %v2163_v45  ;;  %v8717_v7 = vpop.f32.mrf.mxu1  ;;  %3381 = vmatmul.mubr.f32.gmra.mxu1 %v3026_v14  ;;  %5774 = vmatmul.mubr.f32.gmra.mxu0 %v3004_v59  ;;  %v3035_v41 = vld [vmem:[#allocation2 + $0x2f0] sm:$0xff] }
 0x282   :  { %v6169_v3 = vpop.eup %6168  ;;  %2669 = vst [vmem:[%s9907_s3 + $0xe8] sm:$0xff] %v2618_v8  ;;  %6182 = vpow2.f32 %v4879_v11  ;;  %v2167_v22 = vpop.f32.mrf.mxu0  ;;  %3385 = vmatprep.mubr.f32.mxu1 %v3030_v12  ;;  %5776 = vmatprep.mubr.msk.f32.mxu0 %vm6504_vm0, %v8321_v6  ;;  %v3013_v11 = vld [vmem:[#allocation2 + $0x230] sm:$0xff]  ;;  %v9962_v8 = vld [vmem:[#allocation11_spill] sm:$0xff] }
 0x283   :  { %v6171_v21 = vpop.eup %6170  ;;  %v2470_v5 = vadd.f32 1.0, %v6169_v3  ;;  %v4880_v48 = vmul.f32 -1.442695, %v8712_v51  ;;  %v2168_v38 = vadd.f32 %v2167_v22, %v1848_v39  ;;  %v1889_v30 = vpop.f32.mrf.mxu1  ;;  %v1863_v20 = vadd.f32 %v8647_v32, %v9962_v8  ;;  %v3016_v32 = vld [vmem:[#allocation2 + $0x4f8] sm:$0xff] }
 0x284   :  { %v2619_v18 = vmul.f32 %v6171_v21, %v8600_v61  ;;  %v5599_v50 = vpop.f32.mrf.mxu0 }
 0x285   :  { %6184 = vrcp.f32 %v2470_v5  ;;  %v8726_v55 = vadd.f32 %v8451_v24, %v2168_v38  ;;  %v8731_v52 = vpop.f32.mrf.mxu1  ;;  %3386 = vmatmul.mubr.f32.gmra.mxu1 %v3029_v44  ;;  %5777 = vmatmul.mubr.f32.gmra.mxu0 %v3007_v4  ;;  %v6453_v5 = vld [vmem:[#allocation2 + $0x3d8] sm:$0xff]  ;;  %v9963_v4 = vld [vmem:[#allocation12_spill] sm:$0xff] }
 0x286   :  { %v6173_v62 = vpop.eup %6172  ;;  %2670 = vst [vmem:[%s9907_s3 + $0xf0] sm:$0xff] %v2619_v18  ;;  %6186 = vpow2.f32 %v4880_v48  ;;  %v2172_v60 = vpop.f32.mrf.mxu0  ;;  %3390 = vmatprep.mubr.f32.mxu1 %v3033_v19  ;;  %5779 = vmatprep.mubr.msk.f32.mxu0 %vm6504_vm0, %v8321_v6  ;;  %v1868_v18 = vadd.f32 %v8661_v25, %v9963_v4 }
 0x287   :  { %v6175_v61 = vpop.eup %6174  ;;  %v2471_v17 = vadd.f32 1.0, %v6173_v62  ;;  %v4881_v40 = vmul.f32 -1.442695, %v8726_v55  ;;  %v2173_v49 = vadd.f32 %v2172_v60, %v1853_v56  ;;  %v1894_v26 = vpop.f32.mrf.mxu1 }
 0x288   :  { %v2620_v16 = vmul.f32 %v6175_v61, %v8614_v54  ;;  %v5602_v28 = vpop.f32.mrf.mxu0 }
 0x289   :  { %6188 = vrcp.f32 %v2471_v17  ;;  %v8740_v0 = vadd.f32 %v8451_v24, %v2173_v49  ;;  %v8745_v33 = vpop.f32.mrf.mxu1  ;;  %3391 = vmatmul.mubr.f32.gmra.mxu1 %v3032_v53  ;;  %5780 = vmatmul.mubr.f32.gmra.mxu0 %v3010_v47  ;;  %v6455_v17 = vld [vmem:[#allocation2 + $0x130] sm:$0xff]  ;;  %v3045_v53 = vld [vmem:[#allocation2 + $0x208] sm:$0xff] }
 0x28a   :  { %v6177_v36 = vpop.eup %6176  ;;  %2671 = vst [vmem:[%s9907_s3 + $0xf8] sm:$0xff] %v2620_v16  ;;  %6190 = vpow2.f32 %v4881_v40  ;;  %v2177_v58 = vpop.f32.mrf.mxu0  ;;  %3395 = vmatprep.mubr.f32.mxu1 %v3036_v57  ;;  %5782 = vmatprep.mubr.msk.f32.mxu0 %vm6504_vm0, %v8321_v6  ;;  %v9964_v47 = vld [vmem:[#allocation13_spill] sm:$0xff]  ;;  %v8787_v16 = vld [vmem:[%s9906_s2] ss:$0 sm:$0xff] }
 0x28b   :  { %v6179_v54 = vpop.eup %6178  ;;  %v2621_v2 = vmul.f32 %v6177_v36, %v8628_v15  ;;  %v4882_v35 = vmul.f32 -1.442695, %v8740_v0  ;;  %v2178_v42 = vadd.f32 %v2177_v58, %v1858_v10  ;;  %v1899_v14 = vpop.f32.mrf.mxu1  ;;  %v6457_v10 = vld [vmem:[#allocation2 + $0x2a0] sm:$0xff] }
 0x28c   :  { %v2472_v45 = vadd.f32 1.0, %v6179_v54  ;;  %v5605_v59 = vpop.f32.mrf.mxu0  ;;  %v9965_v14 = vld [vmem:[#allocation14_spill] sm:$0xff] }
 0x28d   :  { %2672 = vst [vmem:[%s9907_s3 + $0x100] sm:$0xff] %v2621_v2  ;;  %6192 = vpow2.f32 %v4882_v35  ;;  %v8757_v15 = vadd.f32 %v8451_v24, %v2178_v42  ;;  %v8759_v12 = vpop.f32.mrf.mxu1  ;;  %3396 = vmatmul.mubr.f32.gmra.mxu1 %v3035_v41  ;;  %5783 = vmatmul.mubr.f32.gmra.mxu0 %v3013_v11  ;;  %v3044_v2 = vld [vmem:[#allocation2 + $0x280] sm:$0xff]  ;;  %v3022_v35 = vld [vmem:[#allocation2 + $0x430] sm:$0xff] }
 0x28e   :  { %v6181_v23 = vpop.eup %6180  ;;  %6194 = vrcp.f32 %v2472_v45  ;;  %v2182_v29 = vpop.f32.mrf.mxu0  ;;  %3400 = vmatprep.mubr.f32.mxu1 %v6453_v5  ;;  %5785 = vmatprep.mubr.msk.f32.mxu0 %vm6504_vm0, %v8321_v6  ;;  %v2692_v45 = vld [vmem:[#allocation2 + $0x490] sm:$0xff] }
 0x28f   :  { %v6183_v39 = vpop.eup %6182  ;;  %v2622_v3 = vmul.f32 %v6181_v23, %v8645_v13  ;;  %v4883_v22 = vmul.f32 -1.442695, %v8757_v15  ;;  %v2183_v21 = vadd.f32 %v2182_v29, %v1863_v20  ;;  %v1904_v38 = vpop.f32.mrf.mxu1 }
 0x290   :  { %v2473_v48 = vadd.f32 1.0, %v6183_v39  ;;  %v5608_v44 = vpop.f32.mrf.mxu0  ;;  %v9966_v38 = vld [vmem:[#allocation15_spill] sm:$0xff] }
 0x291   :  { %2673 = vst [vmem:[%s9907_s3 + $0x108] sm:$0xff] %v2622_v3  ;;  %6196 = vpow2.f32 %v4883_v22  ;;  %v8771_v13 = vadd.f32 %v8451_v24, %v2183_v21  ;;  %v8773_v19 = vpop.f32.mrf.mxu1  ;;  %3401 = vmatmul.mubr.f32.gmra.mxu1 %v6454_v46  ;;  %5786 = vmatmul.mubr.f32.gmra.mxu0 %v3016_v32  ;;  %v3019_v24 = vld [vmem:[#allocation2 + $0x4a8] sm:$0xff]  ;;  %v2691_v21 = vld [vmem:[#allocation2 + $0x510] sm:$0xff]  ;;  %v1883_v44 = vadd.f32 %v8703_v1, %v9966_v38  ;;  %v2704_v38 = vld [vmem:[#allocation2 + $0x238] sm:$0xff] }
 0x292   :  { %v6185_v30 = vpop.eup %6184  ;;  %6198 = vrcp.f32 %v2473_v48  ;;  %v2187_v50 = vpop.f32.mrf.mxu0  ;;  %3405 = vmatprep.mubr.f32.mxu1 %v6455_v17  ;;  %5788 = vmatprep.mubr.msk.f32.mxu0 %vm6504_vm0, %v8321_v6  ;;  %v2694_v17 = vld [vmem:[#allocation2 + $0x548] sm:$0xff] }
 0x293   :  { %v6187_v56 = vpop.eup %6186  ;;  %v2623_v62 = vmul.f32 %v6185_v30, %v8659_v34  ;;  %v4884_v60 = vmul.f32 -1.442695, %v8771_v13  ;;  %v2188_v61 = vadd.f32 %v2187_v50, %v1868_v18  ;;  %v3164_v49 = vpop.f32.mrf.mxu1  ;;  %v1873_v34 = vadd.f32 %v8675_v9, %v9964_v47  ;;  %v2695_v18 = vld [vmem:[#allocation2 + $0x500] sm:$0xff] }
 0x294   :  { %v2474_v25 = vadd.f32 1.0, %v6187_v56  ;;  %v5611_v40 = vpop.f32.mrf.mxu0  ;;  %v2698_v49 = vld [vmem:[#allocation2 + $0x530] sm:$0xff] }
 0x295   :  { %2674 = vst [vmem:[%s9907_s3 + $0x110] sm:$0xff] %v2623_v62  ;;  %6200 = vpow2.f32 %v4884_v60  ;;  %v8790_v26 = vadd.f32 %v8787_v16, %v2188_v61  ;;  %v8792_v31 = vpop.f32.mrf.mxu1  ;;  %3406 = vmatmul.mubr.f32.gmra.mxu1 %v6457_v10  ;;  %5789 = vmatmul.mubr.f32.gmra.mxu0 %v3019_v24  ;;  %v6458_v60 = vld [vmem:[#allocation3 + $0x478] sm:$0xff]  ;;  %v3028_v61 = vld [vmem:[#allocation2 + $0x120] sm:$0xff] }
 0x296   :  { %v6189_v28 = vpop.eup %6188  ;;  %6202 = vrcp.f32 %v2474_v25  ;;  %v2192_v57 = vpop.f32.mrf.mxu0  ;;  %3410 = vmatprep.mubr.f32.mxu1 %v3045_v53  ;;  %5791 = vmatprep.mubr.msk.f32.mxu0 %vm6504_vm0, %v8321_v6  ;;  %v9967_v53 = vld [vmem:[#allocation16_spill] sm:$0xff] }
 0x297   :  { %v6191_v36 = vpop.eup %6190  ;;  %v2624_v9 = vmul.f32 %v6189_v28, %v8673_v43  ;;  %v4885_v58 = vmul.f32 -1.442695, %v8790_v26  ;;  %v2193_v54 = vadd.f32 %v2192_v57, %v1873_v34  ;;  %v3169_v11 = vpop.f32.mrf.mxu1  ;;  %v1878_v43 = vadd.f32 %v8689_v63, %v9965_v14  ;;  %v3025_v63 = vld [vmem:[#allocation2 + $0x428] sm:$0xff] }
 0x298   :  { %v2475_v42 = vadd.f32 1.0, %v6191_v36  ;;  %v5614_v41 = vpop.f32.mrf.mxu0  ;;  %v1888_v47 = vadd.f32 %v8717_v7, %v9967_v53  ;;  %v6459_v28 = vld [vmem:[#allocation3 + $0x470] sm:$0xff]  ;;  %v2701_v11 = vld [vmem:[#allocation2 + $0xf0] sm:$0xff] }
 0x299   :  { %2675 = vst [vmem:[%s9907_s3 + $0x118] sm:$0xff] %v2624_v9  ;;  %6204 = vpow2.f32 %v4885_v58  ;;  %v8804_v59 = vadd.f32 %v8787_v16, %v2193_v54  ;;  %v8806_v23 = vpop.f32.mrf.mxu1  ;;  %3411 = vmatmul.mubr.f32.gmra.mxu1 %v3044_v2  ;;  %5792 = vmatmul.mubr.f32.gmra.mxu0 %v3022_v35  ;;  %v3031_v54 = vld [vmem:[#allocation2 + $0x368] sm:$0xff]  ;;  %v2697_v2 = vld [vmem:[#allocation2 + $0x2b8] sm:$0xff] }
 0x29a   :  { %v6193_v8 = vpop.eup %6192  ;;  %6206 = vrcp.f32 %v2475_v42  ;;  %v2197_v20 = vpop.f32.mrf.mxu0  ;;  %5794 = vmatprep.mubr.msk.f32.mxu0 %vm6504_vm0, %v8321_v6  ;;  %3800 = vmatprep.mubr.f32.mxu1 %v2692_v45  ;;  %v9968_v45 = vld [vmem:[#allocation17_spill] sm:$0xff] }
 0x29b   :  { %v6195_v29 = vpop.eup %6194  ;;  %v2476_v39 = vadd.f32 1.0, %v6193_v8  ;;  %v4886_v3 = vmul.f32 -1.442695, %v8804_v59  ;;  %v2198_v22 = vadd.f32 %v2197_v20, %v1878_v43  ;;  %v3174_v48 = vpop.f32.mrf.mxu1  ;;  %v1893_v14 = vadd.f32 %v8731_v52, %v9968_v45  ;;  %v6460_v8 = vld [vmem:[#allocation3 + $0x468] sm:$0xff] }
 0x29c   :  { %v2625_v5 = vmul.f32 %v6195_v29, %v8687_v37  ;;  %v5617_v32 = vpop.f32.mrf.mxu0 }
 0x29d   :  { %6208 = vrcp.f32 %v2476_v39  ;;  %v8815_v4 = vadd.f32 %v8787_v16, %v2198_v22  ;;  %v8820_v46 = vpop.f32.mrf.mxu1  ;;  %5795 = vmatmul.mubr.f32.gmra.mxu0 %v3025_v63  ;;  %3801 = vmatmul.mubr.f32.vlgmr.msra.gmra.mxu1 %v2691_v21  ;;  %v3034_v63 = vld [vmem:[#allocation2 + $0x188] sm:$0xff]  ;;  %v2700_v21 = vld [vmem:[#allocation2 + $0x320] sm:$0xff] }
 0x29e   :  { %v6197_v30 = vpop.eup %6196  ;;  %2676 = vst [vmem:[%s9907_s3 + $0x120] sm:$0xff] %v2625_v5  ;;  %6210 = vpow2.f32 %v4886_v3  ;;  %v2202_v50 = vpop.f32.mrf.mxu0  ;;  %6019 = vmatpush3.msra.mxu1 %v6458_v60  ;;  %5797 = vmatprep.mubr.msk.f32.mxu0 %vm6504_vm0, %v8321_v6 }
 0x29f   :  { %v6199_v37 = vpop.eup %6198  ;;  %v2477_v56 = vadd.f32 1.0, %v6197_v30  ;;  %v4887_v1 = vmul.f32 -1.442695, %v8815_v4  ;;  %v2203_v62 = vadd.f32 %v2202_v50, %v1883_v44  ;;  %v3179_v40 = vpop.f32.mrf.mxu1  ;;  %3805 = vmatprep.mubr.f32.mxu1 %v2695_v18  ;;  %6004 = vmatprep.subr.mxu1 %v8321_v6  ;;  %v9969_v44 = vld [vmem:[#allocation18_spill] sm:$0xff] }
 0x2a0   :  { %v2626_v24 = vmul.f32 %v6199_v37, %v8698_v27  ;;  %v5620_v25 = vpop.f32.mrf.mxu0  ;;  %6020 = vmatpush3.msra.mxu1 %v6459_v28  ;;  %v1898_v18 = vadd.f32 %v8745_v33, %v9969_v44  ;;  %v6461_v50 = vld [vmem:[#allocation3 + $0x460] sm:$0xff]  ;;  %v6462_v28 = vld [vmem:[#allocation3 + $0x458] sm:$0xff] }
 0x2a1   :  { %6212 = vrcp.f32 %v2477_v56  ;;  %v8830_v34 = vadd.f32 %v8787_v16, %v2203_v62  ;;  %v8835_v10 = vpop.f32.mrf.mxu1  ;;  %5798 = vmatmul.mubr.f32.gmra.mxu0 %v3028_v61  ;;  %3806 = vmatmul.mubr.f32.gmra.mxu1 %v2694_v17  ;;  %v3037_v61 = vld [vmem:[#allocation2 + $0x258] sm:$0xff] }
 0x2a2   :  { %v6201_v57 = vpop.eup %6200  ;;  %2677 = vst [vmem:[%s9907_s3 + $0x128] sm:$0xff] %v2626_v24  ;;  %6214 = vpow2.f32 %v4887_v1  ;;  %v2207_v27 = vpop.f32.mrf.mxu0  ;;  %5800 = vmatprep.mubr.msk.f32.mxu0 %vm6504_vm0, %v8321_v6  ;;  %3810 = vmatprep.mubr.f32.mxu1 %v2698_v49  ;;  %v2703_v17 = vld [vmem:[#allocation2 + $0x178] sm:$0xff]  ;;  %v2707_v49 = vld [vmem:[#allocation2 + $0x48] sm:$0xff] }
 0x2a3   :  { %v6203_v36 = vpop.eup %6202  ;;  %v2478_v9 = vadd.f32 1.0, %v6201_v57  ;;  %v4888_v7 = vmul.f32 -1.442695, %v8830_v34  ;;  %v2208_v58 = vadd.f32 %v2207_v27, %v1888_v47  ;;  %v3184_v41 = vpop.f32.mrf.mxu1  ;;  %6005 = vmatprep.subr.mxu1 %v8321_v6 }
 0x2a4   :  { %v2627_v35 = vmul.f32 %v6203_v36, %v8712_v51  ;;  %v5623_v42 = vpop.f32.mrf.mxu0  ;;  %6021 = vmatpush3.msra.mxu1 %v6460_v8  ;;  %v2710_v41 = vld [vmem:[#allocation2 + $0x4b8] sm:$0xff] }
 0x2a5   :  { %6216 = vrcp.f32 %v2478_v9  ;;  %v8845_v43 = vadd.f32 %v8787_v16, %v2208_v58  ;;  %v8850_v29 = vpop.f32.mrf.mxu1  ;;  %5801 = vmatmul.mubr.f32.gmra.mxu0 %v3031_v54  ;;  %3811 = vmatmul.mubr.f32.gmra.mxu1 %v2697_v2 }
 0x2a6   :  { %v6205_v20 = vpop.eup %6204  ;;  %2678 = vst [vmem:[%s9907_s3 + $0x130] sm:$0xff] %v2627_v35  ;;  %6218 = vpow2.f32 %v4888_v7  ;;  %v2212_v51 = vpop.f32.mrf.mxu0  ;;  %5803 = vmatprep.mubr.msk.f32.mxu0 %vm6504_vm0, %v8321_v6  ;;  %3815 = vmatprep.mubr.f32.mxu1 %v2701_v11  ;;  %v6463_v11 = vld [vmem:[#allocation3 + $0x450] sm:$0xff] }
 0x2a7   :  { %v6207_v39 = vpop.eup %6206  ;;  %v2479_v3 = vadd.f32 1.0, %v6205_v20  ;;  %v4889_v52 = vmul.f32 -1.442695, %v8845_v43  ;;  %v2213_v22 = vadd.f32 %v2212_v51, %v1893_v14  ;;  %v3189_v48 = vpop.f32.mrf.mxu1  ;;  %6006 = vmatprep.subr.mxu1 %v8321_v6  ;;  %v6464_v20 = vld [vmem:[#allocation2 + $0x330] sm:$0xff] }
 0x2a8   :  { %v2628_v5 = vmul.f32 %v6207_v39, %v8726_v55  ;;  %v5626_v32 = vpop.f32.mrf.mxu0  ;;  %6022 = vmatpush3.msra.mxu1 %v6461_v50 }
 0x2a9   :  { %6220 = vrcp.f32 %v2479_v3  ;;  %v8860_v30 = vadd.f32 %v8787_v16, %v2213_v22  ;;  %v8865_v56 = vpop.f32.mrf.mxu1  ;;  %5804 = vmatmul.mubr.f32.gmra.mxu0 %v3034_v63  ;;  %3816 = vmatmul.mubr.f32.gmra.mxu1 %v2700_v21 }
 0x2aa   :  { %v6209_v37 = vpop.eup %6208  ;;  %2679 = vst [vmem:[%s9907_s3 + $0x138] sm:$0xff] %v2628_v5  ;;  %6222 = vpow2.f32 %v4889_v52  ;;  %v2217_v55 = vpop.f32.mrf.mxu0  ;;  %5806 = vmatprep.mubr.msk.f32.mxu0 %vm6504_vm0, %v8321_v6  ;;  %3820 = vmatprep.mubr.f32.mxu1 %v2704_v38  ;;  %v2713_v5 = vld [vmem:[#allocation2 + $0x288] sm:$0xff]  ;;  %v6466_v38 = vld [vmem:[#allocation2 + $0x3f0] sm:$0xff] }
 0x2ab   :  { %v6211_v1 = vpop.eup %6210  ;;  %v2629_v33 = vmul.f32 %v6209_v37, %v8740_v0  ;;  %v4890_v62 = vmul.f32 -1.442695, %v8860_v30  ;;  %v2218_v60 = vadd.f32 %v2217_v55, %v1898_v18  ;;  %v3194_v40 = vpop.f32.mrf.mxu1  ;;  %6007 = vmatprep.subr.mxu1 %v8321_v6  ;;  %v9970_v0 = vld [vmem:[#allocation19_spill] sm:$0xff]  ;;  %v3046_v37 = vld [vmem:[#allocation2 + $0x518] sm:$0xff]  ;;  %v2712_v55 = vld [vmem:[#allocation2 + $0xd0] sm:$0xff] }
 0x2ac   :  { %v2480_v24 = vadd.f32 1.0, %v6211_v1  ;;  %v5629_v25 = vpop.f32.mrf.mxu0  ;;  %v1903_v53 = vadd.f32 %v8759_v12, %v9970_v0  ;;  %6023 = vmatpush3.msra.mxu1 %v6462_v28  ;;  %v2706_v12 = vld [vmem:[#allocation2 + $0x38] sm:$0xff] }
 0x2ad   :  { %2680 = vst [vmem:[%s9907_s3 + $0x140] sm:$0xff] %v2629_v33  ;;  %6224 = vpow2.f32 %v4890_v62  ;;  %v8878_v47 = vadd.f32 %v8787_v16, %v2218_v60  ;;  %v8880_v36 = vpop.f32.mrf.mxu1  ;;  %5807 = vmatmul.mubr.f32.gmra.mxu0 %v3037_v61  ;;  %3821 = vmatmul.mubr.f32.gmra.mxu1 %v2703_v17  ;;  %v2716_v60 = vld [vmem:[#allocation2 + $0x78] sm:$0xff] }
 0x2ae   :  { %v6213_v57 = vpop.eup %6212  ;;  %6226 = vrcp.f32 %v2480_v24  ;;  %v2222_v27 = vpop.f32.mrf.mxu0  ;;  %5809 = vmatprep.mubr.msk.f32.mxu0 %vm6504_vm0, %v8321_v6  ;;  %3825 = vmatprep.mubr.f32.mxu1 %v2707_v49  ;;  %v2715_v49 = vld [vmem:[#allocation2 + $0x1c0] sm:$0xff]  ;;  %v2693_v0 = vld [vmem:[#allocation2 + $0x318] sm:$0xff] }
 0x2af   :  { %v6215_v9 = vpop.eup %6214  ;;  %v2630_v7 = vmul.f32 %v6213_v57, %v8757_v15  ;;  %v4891_v58 = vmul.f32 -1.442695, %v8878_v47  ;;  %v2223_v54 = vadd.f32 %v2222_v27, %v1903_v53  ;;  %v3199_v42 = vpop.f32.mrf.mxu1  ;;  %6008 = vmatprep.subr.mxu1 %v8321_v6  ;;  %v2719_v27 = vld [vmem:[#allocation2 + $0x30] sm:$0xff] }
 0x2b0   :  { %v2481_v2 = vadd.f32 1.0, %v6215_v9  ;;  %v5632_v35 = vpop.f32.mrf.mxu0  ;;  %6024 = vmatpush3.msra.mxu1 %v6463_v11  ;;  %v6468_v9 = vld [vmem:[#allocation3 + $0x438] sm:$0xff] }
 0x2b1   :  { %2681 = vst [vmem:[%s9907_s3 + $0x148] sm:$0xff] %v2630_v7  ;;  %6228 = vpow2.f32 %v4891_v58  ;;  %v8891_v15 = vadd.f32 %v8787_v16, %v2223_v54  ;;  %v8893_v14 = vpop.f32.mrf.mxu1  ;;  %5810 = vmatmul.mubr.f32.gmra.mxu0 %v6464_v20  ;;  %3826 = vmatmul.mubr.f32.gmra.mxu1 %v2706_v12  ;;  %v2709_v16 = vld [vmem:[#allocation2 + $0x470] sm:$0xff]  ;;  %v2696_v35 = vld [vmem:[#allocation2 + $0x58] sm:$0xff] }
 0x2b2   :  { %v6217_v45 = vpop.eup %6216  ;;  %6230 = vrcp.f32 %v2481_v2  ;;  %v3482_v8 = vpop.f32.mrf.mxu0  ;;  %5812 = vmatprep.mubr.msk.f32.mxu0 %vm6504_vm0, %v8321_v6  ;;  %3830 = vmatprep.mubr.f32.mxu1 %v2710_v41  ;;  %v2718_v2 = vld [vmem:[#allocation2 + $0x2f8] sm:$0xff] }
 0x2b3   :  { %v6219_v51 = vpop.eup %6218  ;;  %v2631_v39 = vmul.f32 %v6217_v45, %v8771_v13  ;;  %v4892_v3 = vmul.f32 -1.442695, %v8891_v15  ;;  %v8898_v52 = vadd.f32 %v3482_v8, %v8773_v19  ;;  %v3204_v63 = vpop.f32.mrf.mxu1  ;;  %6009 = vmatprep.subr.mxu1 %v8321_v6  ;;  %v6465_v13 = vld [vmem:[#allocation3 + $0x448] sm:$0xff]  ;;  %v2722_v45 = vld [vmem:[#allocation2 + $0x98] sm:$0xff]  ;;  %v6469_v8 = vld [vmem:[#allocation3 + $0x430] sm:$0xff] }
 0x2b4   :  { %v2482_v22 = vadd.f32 1.0, %v6219_v51  ;;  %v5667_v21 = vpop.f32.mrf.mxu0  ;;  %6025 = vmatpush3.msra.mxu1 %v6465_v13  ;;  %v2725_v13 = vld [vmem:[#allocation2 + $0x50] sm:$0xff] }
 0x2b5   :  { %2682 = vst [vmem:[%s9907_s3 + $0x150] sm:$0xff] %v2631_v39  ;;  %6232 = vpow2.f32 %v4892_v3  ;;  %v8906_v32 = vpop.f32.mrf.mxu1  ;;  %5813 = vmatmul.mubr.f32.gmra.mxu0 %v6466_v38  ;;  %3831 = vmatmul.mubr.f32.gmra.mxu1 %v2709_v16  ;;  %v2721_v16 = vld [vmem:[#allocation2 + $0xa0] sm:$0xff] }
 0x2b6   :  { %v6221_v19 = vpop.eup %6220  ;;  %6234 = vrcp.f32 %v2482_v22  ;;  %v3487_v48 = vpop.f32.mrf.mxu0  ;;  %5815 = vmatprep.mubr.msk.f32.mxu0 %vm6504_vm0, %v8321_v6  ;;  %3835 = vmatprep.mubr.f32.mxu1 %v2713_v5  ;;  %v2699_v22 = vld [vmem:[#allocation2 + $0x8] sm:$0xff] }
 0x2b7   :  { %v6223_v44 = vpop.eup %6222  ;;  %v2632_v18 = vmul.f32 %v6221_v19, %v8790_v26  ;;  %v8910_v50 = vadd.f32 %v3487_v48, %v8792_v31  ;;  %v3209_v33 = vpop.f32.mrf.mxu1  ;;  %6010 = vmatprep.subr.mxu1 %v8321_v6  ;;  %v6467_v26 = vld [vmem:[#allocation3 + $0x440] sm:$0xff]  ;;  %v6470_v19 = vld [vmem:[#allocation3 + $0x428] sm:$0xff] }
 0x2b8   :  { %v2483_v1 = vadd.f32 1.0, %v6223_v44  ;;  %v5670_v62 = vpop.f32.mrf.mxu0  ;;  %6026 = vmatpush3.msra.mxu1 %v6467_v26  ;;  %v2724_v44 = vld [vmem:[#allocation2 + $0x2e8] sm:$0xff]  ;;  %v2728_v33 = vld [vmem:[#allocation2 + $0x1d8] sm:$0xff] }
 0x2b9   :  { %2683 = vst [vmem:[%s9907_s3 + $0x158] sm:$0xff] %v2632_v18  ;;  %v8918_v61 = vpop.f32.mrf.mxu1  ;;  %5816 = vmatmul.mubr.f32.gmra.mxu0 %v3046_v37  ;;  %3836 = vmatmul.mubr.f32.gmra.mxu1 %v2712_v55  ;;  %v2702_v18 = vld [vmem:[#allocation2 + $0x3a0] sm:$0xff]  ;;  %v6471_v62 = vld [vmem:[#allocation3 + $0x420] sm:$0xff] }
 0x2ba   :  { %v6225_v31 = vpop.eup %6224  ;;  %6236 = vrcp.f32 %v2483_v1  ;;  %v3492_v17 = vpop.f32.mrf.mxu0  ;;  %3840 = vmatprep.mubr.f32.mxu1 %v2716_v60  ;;  %5850 = vmatprep.mubr.msk.f32.mxu0 %vm6504_vm0, %v8321_v6 }
 0x2bb   :  { %v6227_v24 = vpop.eup %6226  ;;  %v2484_v25 = vadd.f32 1.0, %v6225_v31  ;;  %v8921_v40 = vadd.f32 %v3492_v17, %v8806_v23  ;;  %v3214_v28 = vpop.f32.mrf.mxu1  ;;  %6011 = vmatprep.subr.mxu1 %v8321_v6  ;;  %v2727_v17 = vld [vmem:[#allocation2 + $0x150] sm:$0xff] }
 0x2bc   :  { %v2633_v53 = vmul.f32 %v6227_v24, %v8804_v59  ;;  %v5673_v57 = vpop.f32.mrf.mxu0  ;;  %6027 = vmatpush3.msra.mxu1 %v6468_v9  ;;  %v2705_v24 = vld [vmem:[#allocation2 + $0xb8] sm:$0xff]  ;;  %v2730_v9 = vld [vmem:[#allocation2 + $0x1e0] sm:$0xff] }
 0x2bd   :  { %6238 = vrcp.f32 %v2484_v25  ;;  %v8930_v23 = vpop.f32.mrf.mxu1  ;;  %3841 = vmatmul.mubr.f32.gmra.mxu1 %v2715_v49  ;;  %5851 = vmatmul.mubr.f32.vlgmr.msra.gmra.mxu0 %v2693_v0  ;;  %v2731_v0 = vld [vmem:[#allocation2 + $0x2d0] sm:$0xff] }
 0x2be   :  { %v6229_v7 = vpop.eup %6228  ;;  %2684 = vst [vmem:[%s9907_s3 + $0x160] sm:$0xff] %v2633_v53  ;;  %v3497_v58 = vpop.f32.mrf.mxu0  ;;  %3845 = vmatprep.mubr.f32.mxu1 %v2719_v27  ;;  %5853 = vmatprep.mubr.msk.f32.mxu0 %vm6504_vm0, %v8321_v6  ;;  %v6472_v53 = vld [vmem:[#allocation3 + $0x418] sm:$0xff] }
 0x2bf   :  { %v6231_v54 = vpop.eup %6230  ;;  %v2485_v59 = vadd.f32 1.0, %v6229_v7  ;;  %v8933_v12 = vadd.f32 %v3497_v58, %v8820_v46  ;;  %v3219_v41 = vpop.f32.mrf.mxu1  ;;  %6012 = vmatprep.subr.mxu1 %v8321_v6  ;;  %v2708_v7 = vld [vmem:[#allocation2 + $0x398] sm:$0xff] }
 0x2c0   :  { %v2634_v42 = vmul.f32 %v6231_v54, %v8815_v4  ;;  %v5676_v11 = vpop.f32.mrf.mxu0  ;;  %6028 = vmatpush3.msra.mxu1 %v6469_v8 }
 0x2c1   :  { %6240 = vrcp.f32 %v2485_v59  ;;  %v8942_v46 = vpop.f32.mrf.mxu1  ;;  %3846 = vmatmul.mubr.f32.gmra.mxu1 %v2718_v2  ;;  %5854 = vmatmul.mubr.f32.gmra.mxu0 %v2696_v35  ;;  %v2734_v59 = vld [vmem:[#allocation2 + $0x550] sm:$0xff]  ;;  %v6473_v2 = vld [vmem:[#allocation3 + $0x410] sm:$0xff] }
 0x2c2   :  { %v6233_v20 = vpop.eup %6232  ;;  %2685 = vst [vmem:[%s9907_s3 + $0x168] sm:$0xff] %v2634_v42  ;;  %v3502_v51 = vpop.f32.mrf.mxu0  ;;  %3850 = vmatprep.mubr.f32.mxu1 %v2722_v45  ;;  %5856 = vmatprep.mubr.msk.f32.mxu0 %vm6504_vm0, %v8321_v6  ;;  %v2733_v11 = vld [vmem:[#allocation2 + $0x248] sm:$0xff] }
 0x2c3   :  { %v6235_v39 = vpop.eup %6234  ;;  %v2486_v4 = vadd.f32 1.0, %v6233_v20  ;;  %v8945_v3 = vadd.f32 %v3502_v51, %v8835_v10  ;;  %v3224_v21 = vpop.f32.mrf.mxu1  ;;  %6013 = vmatprep.subr.mxu1 %v8321_v6  ;;  %v2711_v45 = vld [vmem:[#allocation2 + $0x3a8] sm:$0xff]  ;;  %v2737_v51 = vld [vmem:[#allocation2 + $0x3c0] sm:$0xff] }
 0x2c4   :  { %v2635_v63 = vmul.f32 %v6235_v39, %v8830_v34  ;;  %v5679_v5 = vpop.f32.mrf.mxu0  ;;  %6029 = vmatpush3.msra.mxu1 %v6470_v19  ;;  %v6474_v39 = vld [vmem:[#allocation3 + $0x408] sm:$0xff] }
 0x2c5   :  { %6242 = vrcp.f32 %v2486_v4  ;;  %v8954_v10 = vpop.f32.mrf.mxu1  ;;  %3851 = vmatmul.mubr.f32.gmra.mxu1 %v2721_v16  ;;  %5857 = vmatmul.mubr.f32.gmra.mxu0 %v2699_v22  ;;  %v2736_v16 = vld [vmem:[#allocation2 + $0x110] sm:$0xff]  ;;  %v2714_v22 = vld [vmem:[#allocation2 + $0x498] sm:$0xff]  ;;  %v2740_v5 = vld [vmem:[#allocation2 + $0x68] sm:$0xff] }
 0x2c6   :  { %2686 = vst [vmem:[%s9907_s3 + $0x170] sm:$0xff] %v2635_v63  ;;  %v3507_v48 = vpop.f32.mrf.mxu0  ;;  %3855 = vmatprep.mubr.f32.mxu1 %v2725_v13  ;;  %5859 = vmatprep.mubr.msk.f32.mxu0 %vm6504_vm0, %v8321_v6  ;;  %v6475_v13 = vld [vmem:[#allocation3 + $0x400] sm:$0xff] }
 0x2c7   :  { %v6237_v38 = vpop.eup %6236  ;;  %v8957_v34 = vadd.f32 %v3507_v48, %v8850_v29  ;;  %v3229_v55 = vpop.f32.mrf.mxu1  ;;  %6014 = vmatprep.subr.mxu1 %v8321_v6 }
 0x2c8   :  { %v2636_v37 = vmul.f32 %v6237_v38, %v8845_v43  ;;  %v5682_v1 = vpop.f32.mrf.mxu0  ;;  %6030 = vmatpush3.msra.mxu1 %v6471_v62  ;;  %v2739_v38 = vld [vmem:[#allocation2 + $0x118] sm:$0xff]  ;;  %v2743_v55 = vld [vmem:[#allocation2 + $0x350] sm:$0xff] }
 0x2c9   :  { %v8966_v29 = vpop.f32.mrf.mxu1  ;;  %3856 = vmatmul.mubr.f32.gmra.mxu1 %v2724_v44  ;;  %5860 = vmatmul.mubr.f32.gmra.mxu0 %v2702_v18  ;;  %v2717_v44 = vld [vmem:[#allocation2 + $0x390] sm:$0xff] }
 0x2ca   :  { %v6239_v60 = vpop.eup %6238  ;;  %2687 = vst [vmem:[%s9907_s3 + $0x178] sm:$0xff] %v2636_v37  ;;  %v3512_v26 = vpop.f32.mrf.mxu0  ;;  %3860 = vmatprep.mubr.f32.mxu1 %v2728_v33  ;;  %5862 = vmatprep.mubr.msk.f32.mxu0 %vm6504_vm0, %v8321_v6 }
 0x2cb   :  { %v2637_v31 = vmul.f32 %v6239_v60, %v8860_v30  ;;  %v8970_v43 = vadd.f32 %v3512_v26, %v8865_v56  ;;  %v3234_v25 = vpop.f32.mrf.mxu1  ;;  %6015 = vmatprep.subr.mxu1 %v8321_v6  ;;  %v2720_v60 = vld [vmem:[#allocation2 + $0x268] sm:$0xff] }
 0x2cc   :  { %v5685_v49 = vpop.f32.mrf.mxu0  ;;  %6031 = vmatpush3.msra.mxu1 %v6472_v53 }
 0x2cd   :  { %2688 = vst [vmem:[%s9907_s3 + $0x180] sm:$0xff] %v2637_v31  ;;  %v8978_v56 = vpop.f32.mrf.mxu1  ;;  %3861 = vmatmul.mubr.f32.gmra.mxu1 %v2727_v17  ;;  %5863 = vmatmul.mubr.f32.gmra.mxu0 %v2705_v24  ;;  %v2746_v17 = vld [vmem:[#allocation2 + $0x70] sm:$0xff] }
 0x2ce   :  { %v6241_v30 = vpop.eup %6240  ;;  %v3517_v28 = vpop.f32.mrf.mxu0  ;;  %3865 = vmatprep.mubr.f32.mxu1 %v2731_v0  ;;  %5865 = vmatprep.mubr.msk.f32.mxu0 %vm6504_vm0, %v8321_v6  ;;  %v2723_v0 = vld [vmem:[#allocation2 + $0xd8] sm:$0xff] }
 0x2cf   :  { %v2638_v57 = vmul.f32 %v6241_v30, %v8878_v47  ;;  %v8982_v27 = vadd.f32 %v3517_v28, %v8880_v36  ;;  %v3239_v58 = vpop.f32.mrf.mxu1  ;;  %6016 = vmatprep.subr.mxu1 %v8321_v6  ;;  %v2749_v28 = vld [vmem:[#allocation2 + $0x400] sm:$0xff] }
 0x2d0   :  { %v5688_v54 = vpop.f32.mrf.mxu0  ;;  %6032 = vmatpush3.msra.mxu1 %v6473_v2  ;;  %v2726_v58 = vld [vmem:[#allocation2 + $0x200] sm:$0xff]  ;;  %v2752_v2 = vld [vmem:[#allocation2 + $0xf8] sm:$0xff] }
 0x2d1   :  { %2689 = vst [vmem:[%s9907_s3 + $0x188] sm:$0xff] %v2638_v57  ;;  %v8990_v36 = vpop.f32.mrf.mxu1  ;;  %3866 = vmatmul.mubr.f32.gmra.mxu1 %v2730_v9  ;;  %5866 = vmatmul.mubr.f32.gmra.mxu0 %v2708_v7 }
 0x2d2   :  { %v6243_v47 = vpop.eup %6242  ;;  %v3522_v35 = vpop.f32.mrf.mxu0  ;;  %3870 = vmatprep.mubr.f32.mxu1 %v2734_v59  ;;  %5868 = vmatprep.mubr.msk.f32.mxu0 %vm6504_vm0, %v8321_v6 }
 0x2d3   :  { %v2639_v42 = vmul.f32 %v6243_v47, %v8891_v15  ;;  %v8994_v41 = vadd.f32 %v3522_v35, %v8893_v14  ;;  %v3244_v8 = vpop.f32.mrf.mxu1  ;;  %6017 = vmatprep.subr.mxu1 %v8321_v6 }
 0x2d4   :  { %v5691_v20 = vpop.f32.mrf.mxu0  ;;  %6033 = vmatpush3.msra.mxu1 %v6474_v39 }
 0x2d5   :  { %2690 = vst [vmem:[%s9907_s3 + $0x190] sm:$0xff] %v2639_v42  ;;  %v9002_v15 = vpop.f32.mrf.mxu1  ;;  %3871 = vmatmul.mubr.f32.gmra.mxu1 %v2733_v11  ;;  %5869 = vmatmul.mubr.f32.gmra.mxu0 %v2711_v45  ;;  %v2729_v11 = vld [vmem:[#allocation2 + $0x4c0] sm:$0xff]  ;;  %v2755_v20 = vld [vmem:[#allocation2 + $0x170] sm:$0xff] }
 0x2d6   :  { %v3527_v14 = vpop.f32.mrf.mxu0  ;;  %3875 = vmatprep.mubr.f32.mxu1 %v2737_v51  ;;  %5871 = vmatprep.mubr.msk.f32.mxu0 %vm6504_vm0, %v8321_v6 }
 0x2d7   :  { %v9005_v4 = vadd.f32 %v3527_v14, %v8906_v32  ;;  %v3249_v63 = vpop.f32.mrf.mxu1  ;;  %6018 = vmatprep.subr.mxu1 %v8321_v6 }
 0x2d8   :  { %v5694_v21 = vpop.f32.mrf.mxu0  ;;  %6034 = vmatpush3.msra.mxu1 %v6475_v13 }
 0x2d9   :  { %v9010_v19 = vpop.f32.mrf.mxu1  ;;  %3876 = vmatmul.mubr.f32.gmra.mxu1 %v2736_v16  ;;  %5872 = vmatmul.mubr.f32.gmra.mxu0 %v2714_v22  ;;  %v2732_v16 = vld [vmem:[#allocation2 + $0x240] sm:$0xff] }
 0x2da   :  { %v3532_v48 = vpop.f32.mrf.mxu0  ;;  %3880 = vmatprep.mubr.f32.mxu1 %v2740_v5  ;;  %5874 = vmatprep.mubr.msk.f32.mxu0 %vm6504_vm0, %v8321_v6  ;;  %v2758_v21 = vld [vmem:[#allocation2 + $0x260] sm:$0xff] }
 0x2db   :  { %v9013_v32 = vadd.f32 %v3532_v48, %v8918_v61  ;;  %v3254_v18 = vpop.f32.mrf.mxu1  ;;  %v2742_v61 = vld [vmem:[#allocation2 + $0x3f8] sm:$0xff] }
 0x2dc   :  { %v5697_v37 = vpop.f32.mrf.mxu0 }
 0x2dd   :  { %v9017_v1 = vpop.f32.mrf.mxu1  ;;  %3881 = vmatmul.mubr.f32.gmra.mxu1 %v2739_v38  ;;  %5875 = vmatmul.mubr.f32.gmra.mxu0 %v2717_v44  ;;  %v2735_v38 = vld [vmem:[#allocation2 + $0x1a0] sm:$0xff]  ;;  %v2761_v37 = vld [vmem:[#allocation2 + $0x10] sm:$0xff] }
 0x2de   :  { %v3537_v33 = vpop.f32.mrf.mxu0  ;;  %3885 = vmatprep.mubr.f32.mxu1 %v2743_v55  ;;  %5877 = vmatprep.mubr.msk.f32.mxu0 %vm6504_vm0, %v8321_v6 }
 0x2df   :  { %v9020_v62 = vadd.f32 %v3537_v33, %v8930_v23  ;;  %v3259_v26 = vpop.f32.mrf.mxu1  ;;  %v2745_v23 = vld [vmem:[#allocation2 + $0x180] sm:$0xff] }
 0x2e0   :  { %v5700_v31 = vpop.f32.mrf.mxu0 }
 0x2e1   :  { %v9024_v24 = vpop.f32.mrf.mxu1  ;;  %3886 = vmatmul.mubr.f32.gmra.mxu1 %v2742_v61  ;;  %5878 = vmatmul.mubr.f32.gmra.mxu0 %v2720_v60  ;;  %v2738_v60 = vld [vmem:[#allocation2 + $0x298] sm:$0xff] }
 0x2e2   :  { %v3542_v25 = vpop.f32.mrf.mxu0  ;;  %3890 = vmatprep.mubr.f32.mxu1 %v2746_v17  ;;  %5880 = vmatprep.mubr.msk.f32.mxu0 %vm6504_vm0, %v8321_v6  ;;  %v2764_v17 = vld [vmem:[#allocation2 + $0x358] sm:$0xff] }
 0x2e3   :  { %v9027_v49 = vadd.f32 %v3542_v25, %v8942_v46  ;;  %v3264_v53 = vpop.f32.mrf.mxu1  ;;  %v2748_v46 = vld [vmem:[#allocation2 + $0x380] sm:$0xff] }
 0x2e4   :  { %v5703_v30 = vpop.f32.mrf.mxu0  ;;  %v2741_v53 = vld [vmem:[#allocation2 + $0xa8] sm:$0xff] }
 0x2e5   :  { %v9031_v57 = vpop.f32.mrf.mxu1  ;;  %3891 = vmatmul.mubr.f32.gmra.mxu1 %v2745_v23  ;;  %5881 = vmatmul.mubr.f32.gmra.mxu0 %v2723_v0 }
 0x2e6   :  { %v3547_v9 = vpop.f32.mrf.mxu0  ;;  %3895 = vmatprep.mubr.f32.mxu1 %v2749_v28  ;;  %5883 = vmatprep.mubr.msk.f32.mxu0 %vm6504_vm0, %v8321_v6 }
 0x2e7   :  { %v9034_v7 = vadd.f32 %v3547_v9, %v8954_v10  ;;  %v3269_v54 = vpop.f32.mrf.mxu1  ;;  %v2751_v10 = vld [vmem:[#allocation2 + $0x348] sm:$0xff]  ;;  %v2767_v9 = vld [vmem:[#allocation2 + $0x520] sm:$0xff] }
 0x2e8   :  { %v5706_v59 = vpop.f32.mrf.mxu0 }
 0x2e9   :  { %v9038_v47 = vpop.f32.mrf.mxu1  ;;  %3896 = vmatmul.mubr.f32.gmra.mxu1 %v2748_v46  ;;  %5884 = vmatmul.mubr.f32.gmra.mxu0 %v2726_v58  ;;  %v2744_v59 = vld [vmem:[#allocation2 + $0x250] sm:$0xff] }
 0x2ea   :  { %v3552_v35 = vpop.f32.mrf.mxu0  ;;  %3900 = vmatprep.mubr.f32.mxu1 %v2752_v2  ;;  %5886 = vmatprep.mubr.msk.f32.mxu0 %vm6504_vm0, %v8321_v6 }
 0x2eb   :  { %v9041_v42 = vadd.f32 %v3552_v35, %v8966_v29  ;;  %v3274_v45 = vpop.f32.mrf.mxu1  ;;  %v2754_v29 = vld [vmem:[#allocation2 + $0x4b0] sm:$0xff] }
 0x2ec   :  { %v5709_v8 = vpop.f32.mrf.mxu0 }
 0x2ed   :  { %v9045_v51 = vpop.f32.mrf.mxu1  ;;  %3901 = vmatmul.mubr.f32.gmra.mxu1 %v2751_v10  ;;  %5887 = vmatmul.mubr.f32.gmra.mxu0 %v2729_v11  ;;  %v2770_v10 = vld [vmem:[#allocation2 + $0x2c0] sm:$0xff] }
 0x2ee   :  { %v3557_v39 = vpop.f32.mrf.mxu0  ;;  %3905 = vmatprep.mubr.f32.mxu1 %v2755_v20  ;;  %5889 = vmatprep.mubr.msk.f32.mxu0 %vm6504_vm0, %v8321_v6  ;;  %v2747_v20 = vld [vmem:[#allocation2 + $0x138] sm:$0xff] }
 0x2ef   :  { %v9048_v14 = vadd.f32 %v3557_v39, %v8978_v56  ;;  %v3279_v22 = vpop.f32.mrf.mxu1  ;;  %v2757_v56 = vld [vmem:[#allocation2 + $0x310] sm:$0xff] }
 0x2f0   :  { %v5712_v63 = vpop.f32.mrf.mxu0 }
 0x2f1   :  { %v9052_v5 = vpop.f32.mrf.mxu1  ;;  %3906 = vmatmul.mubr.f32.gmra.mxu1 %v2754_v29  ;;  %5890 = vmatmul.mubr.f32.gmra.mxu0 %v2732_v16  ;;  %v2773_v16 = vld [vmem:[#allocation2 + $0x488] sm:$0xff] }
 0x2f2   :  { %v3562_v13 = vpop.f32.mrf.mxu0  ;;  %3910 = vmatprep.mubr.f32.mxu1 %v2758_v21  ;;  %5892 = vmatprep.mubr.msk.f32.mxu0 %vm6504_vm0, %v8321_v6 }
 0x2f3   :  { %v9055_v48 = vadd.f32 %v3562_v13, %v8990_v36  ;;  %v3284_v44 = vpop.f32.mrf.mxu1  ;;  %v2760_v36 = vld [vmem:[#allocation2 + $0x4e8] sm:$0xff] }
 0x2f4   :  { %v5715_v18 = vpop.f32.mrf.mxu0  ;;  %v2750_v13 = vld [vmem:[#allocation2 + $0x228] sm:$0xff]  ;;  %v2776_v44 = vld [vmem:[#allocation2 + $0x60] sm:$0xff] }
 0x2f5   :  { %v9059_v55 = vpop.f32.mrf.mxu1  ;;  %3911 = vmatmul.mubr.f32.gmra.mxu1 %v2757_v56  ;;  %5893 = vmatmul.mubr.f32.gmra.mxu0 %v2735_v38 }
 0x2f6   :  { %v3567_v33 = vpop.f32.mrf.mxu0  ;;  %3915 = vmatprep.mubr.f32.mxu1 %v2761_v37  ;;  %5895 = vmatprep.mubr.msk.f32.mxu0 %vm6504_vm0, %v8321_v6 }
 0x2f7   :  { %v9062_v61 = vadd.f32 %v3567_v33, %v9002_v15  ;;  %v3289_v26 = vpop.f32.mrf.mxu1  ;;  %v2763_v15 = vld [vmem:[#allocation2 + $0x338] sm:$0xff] }
 0x2f8   :  { %v5718_v31 = vpop.f32.mrf.mxu0 }
 0x2f9   :  { %v9066_v25 = vpop.f32.mrf.mxu1  ;;  %3916 = vmatmul.mubr.f32.gmra.mxu1 %v2760_v36  ;;  %5896 = vmatmul.mubr.f32.gmra.mxu0 %v2738_v60  ;;  %v2753_v36 = vld [vmem:[#allocation2 + $0x460] sm:$0xff]  ;;  %v2779_v31 = vld [vmem:[#allocation2 + $0x1f8] sm:$0xff] }
 0x2fa   :  { %v3572_v23 = vpop.f32.mrf.mxu0  ;;  %3920 = vmatprep.mubr.f32.mxu1 %v2764_v17  ;;  %5898 = vmatprep.mubr.msk.f32.mxu0 %vm6504_vm0, %v8321_v6 }
 0x2fb   :  { %v9069_v0 = vadd.f32 %v3572_v23, %v9010_v19  ;;  %v3294_v30 = vpop.f32.mrf.mxu1  ;;  %v2766_v19 = vld [vmem:[#allocation2 + $0x528] sm:$0xff] }
 0x2fc   :  { %v5721_v28 = vpop.f32.mrf.mxu0 }
 0x2fd   :  { %v9073_v46 = vpop.f32.mrf.mxu1  ;;  %3921 = vmatmul.mubr.f32.gmra.mxu1 %v2763_v15  ;;  %5899 = vmatmul.mubr.f32.gmra.mxu0 %v2741_v53  ;;  %v2756_v53 = vld [vmem:[#allocation2 + $0x160] sm:$0xff] }
 0x2fe   :  { %v3577_v58 = vpop.f32.mrf.mxu0  ;;  %3925 = vmatprep.mubr.f32.mxu1 %v2767_v9  ;;  %5901 = vmatprep.mubr.msk.f32.mxu0 %vm6504_vm0, %v8321_v6  ;;  %v2782_v9 = vld [vmem:[#allocation2 + $0x2a8] sm:$0xff] }
 0x2ff   :  { %v9076_v54 = vadd.f32 %v3577_v58, %v9017_v1  ;;  %v3299_v2 = vpop.f32.mrf.mxu1  ;;  %v2769_v1 = vld [vmem:[#allocation2 + $0x458] sm:$0xff] }
 0x300   :  { %v5724_v35 = vpop.f32.mrf.mxu0  ;;  %v2759_v2 = vld [vmem:[#allocation2 + $0x3b8] sm:$0xff] }
 0x301   :  { %v9080_v11 = vpop.f32.mrf.mxu1  ;;  %3926 = vmatmul.mubr.f32.gmra.mxu1 %v2766_v19  ;;  %5902 = vmatmul.mubr.f32.gmra.mxu0 %v2744_v59 }
 0x302   :  { %v3582_v45 = vpop.f32.mrf.mxu0  ;;  %3930 = vmatprep.mubr.f32.mxu1 %v2770_v10  ;;  %5904 = vmatprep.mubr.msk.f32.mxu0 %vm6504_vm0, %v8321_v6 }
 0x303   :  { %v9083_v8 = vadd.f32 %v3582_v45, %v9024_v24  ;;  %v3304_v39 = vpop.f32.mrf.mxu1  ;;  %v2772_v24 = vld [vmem:[#allocation2 + $0x270] sm:$0xff] }
 0x304   :  { %v5727_v29 = vpop.f32.mrf.mxu0  ;;  %v2785_v45 = vld [vmem:[#allocation2 + $0x3d0] sm:$0xff] }
 0x305   :  { %v9087_v22 = vpop.f32.mrf.mxu1  ;;  %3931 = vmatmul.mubr.f32.gmra.mxu1 %v2769_v1  ;;  %5905 = vmatmul.mubr.f32.gmra.mxu0 %v2747_v20  ;;  %v2762_v29 = vld [vmem:[#allocation2 + $0x418] sm:$0xff] }
 0x306   :  { %v3587_v63 = vpop.f32.mrf.mxu0  ;;  %3935 = vmatprep.mubr.f32.mxu1 %v2773_v16  ;;  %5907 = vmatprep.mubr.msk.f32.mxu0 %vm6504_vm0, %v8321_v6 }
 0x307   :  { %v9090_v21 = vadd.f32 %v3587_v63, %v9031_v57  ;;  %v3309_v56 = vpop.f32.mrf.mxu1  ;;  %v2775_v57 = vld [vmem:[#allocation2 + $0xb0] sm:$0xff] }
 0x308   :  { %v5730_v38 = vpop.f32.mrf.mxu0 }
 0x309   :  { %v9094_v18 = vpop.f32.mrf.mxu1  ;;  %3936 = vmatmul.mubr.f32.gmra.mxu1 %v2772_v24  ;;  %5908 = vmatmul.mubr.f32.gmra.mxu0 %v2750_v13  ;;  %v2788_v24 = vld [vmem:[#allocation2 + $0x410] sm:$0xff] }
 0x30a   :  { %v3592_v37 = vpop.f32.mrf.mxu0  ;;  %3940 = vmatprep.mubr.f32.mxu1 %v2776_v44  ;;  %5910 = vmatprep.mubr.msk.f32.mxu0 %vm6504_vm0, %v8321_v6  ;;  %v2765_v44 = vld [vmem:[#allocation2 + $0x88] sm:$0xff] }
 0x30b   :  { %v9097_v33 = vadd.f32 %v3592_v37, %v9038_v47  ;;  %v3314_v60 = vpop.f32.mrf.mxu1  ;;  %v2778_v47 = vld [vmem:[#allocation2 + $0x158] sm:$0xff] }
 0x30c   :  { %v5733_v26 = vpop.f32.mrf.mxu0 }
 0x30d   :  { %v9101_v17 = vpop.f32.mrf.mxu1  ;;  %3941 = vmatmul.mubr.f32.gmra.mxu1 %v2775_v57  ;;  %5911 = vmatmul.mubr.f32.gmra.mxu0 %v2753_v36  ;;  %v2791_v36 = vld [vmem:[#allocation2 + $0x478] sm:$0xff] }
 0x30e   :  { %v3597_v23 = vpop.f32.mrf.mxu0  ;;  %3945 = vmatprep.mubr.f32.mxu1 %v2779_v31  ;;  %5913 = vmatprep.mubr.msk.f32.mxu0 %vm6504_vm0, %v8321_v6 }
 0x30f   :  { %v9104_v15 = vadd.f32 %v3597_v23, %v9045_v51  ;;  %v3319_v30 = vpop.f32.mrf.mxu1  ;;  %v2781_v51 = vld [vmem:[#allocation2 + $0x3c8] sm:$0xff]  ;;  %v2768_v23 = vld [vmem:[#allocation2 + $0x140] sm:$0xff] }
 0x310   :  { %v5736_v28 = vpop.f32.mrf.mxu0  ;;  %v2794_v30 = vld [vmem:[#allocation2] sm:$0xff] }
 0x311   :  { %v9108_v58 = vpop.f32.mrf.mxu1  ;;  %3946 = vmatmul.mubr.f32.gmra.mxu1 %v2778_v47  ;;  %5914 = vmatmul.mubr.f32.gmra.mxu0 %v2756_v53 }
 0x312   :  { %v3602_v19 = vpop.f32.mrf.mxu0  ;;  %3950 = vmatprep.mubr.f32.mxu1 %v2782_v9  ;;  %5916 = vmatprep.mubr.msk.f32.mxu0 %vm6504_vm0, %v8321_v6 }
 0x313   :  { %v9111_v59 = vadd.f32 %v3602_v19, %v9052_v5  ;;  %v3324_v35 = vpop.f32.mrf.mxu1  ;;  %v2784_v5 = vld [vmem:[#allocation2 + $0x128] sm:$0xff] }
 0x314   :  { %v5739_v10 = vpop.f32.mrf.mxu0 }
 0x315   :  { %v9115_v1 = vpop.f32.mrf.mxu1  ;;  %3951 = vmatmul.mubr.f32.gmra.mxu1 %v2781_v51  ;;  %5917 = vmatmul.mubr.f32.gmra.mxu0 %v2759_v2  ;;  %v2771_v51 = vld [vmem:[#allocation2 + $0x2e0] sm:$0xff]  ;;  %v2797_v10 = vld [vmem:[#allocation2 + $0x3e8] sm:$0xff] }
 0x316   :  { %v3607_v20 = vpop.f32.mrf.mxu0  ;;  %3955 = vmatprep.mubr.f32.mxu1 %v2785_v45  ;;  %5919 = vmatprep.mubr.msk.f32.mxu0 %vm6504_vm0, %v8321_v6 }
 0x317   :  { %v9118_v39 = vadd.f32 %v3607_v20, %v9059_v55  ;;  %v3329_v16 = vpop.f32.mrf.mxu1  ;;  %v2787_v55 = vld [vmem:[#allocation2 + $0x308] sm:$0xff] }
 0x318   :  { %v5742_v63 = vpop.f32.mrf.mxu0 }
 0x319   :  { %v9122_v13 = vpop.f32.mrf.mxu1  ;;  %3956 = vmatmul.mubr.f32.gmra.mxu1 %v2784_v5  ;;  %5920 = vmatmul.mubr.f32.gmra.mxu0 %v2762_v29  ;;  %v2774_v29 = vld [vmem:[#allocation2 + $0x100] sm:$0xff] }
 0x31a   :  { %v3612_v56 = vpop.f32.mrf.mxu0  ;;  %3960 = vmatprep.mubr.f32.mxu1 %v2788_v24  ;;  %5922 = vmatprep.mubr.msk.f32.mxu0 %vm6504_vm0, %v8321_v6  ;;  %v2800_v24 = vld [vmem:[#allocation2 + $0x388] sm:$0xff] }
 0x31b   :  { %v9125_v38 = vadd.f32 %v3612_v56, %v9066_v25  ;;  %v3334_v37 = vpop.f32.mrf.mxu1  ;;  %v2790_v25 = vld [vmem:[#allocation2 + $0x210] sm:$0xff] }
 0x31c   :  { %v5745_v57 = vpop.f32.mrf.mxu0  ;;  %v2777_v37 = vld [vmem:[#allocation2 + $0x20] sm:$0xff] }
 0x31d   :  { %v9129_v60 = vpop.f32.mrf.mxu1  ;;  %3961 = vmatmul.mubr.f32.gmra.mxu1 %v2787_v55  ;;  %5923 = vmatmul.mubr.f32.gmra.mxu0 %v2765_v44 }
 0x31e   :  { %v3617_v26 = vpop.f32.mrf.mxu0  ;;  %3965 = vmatprep.mubr.f32.mxu1 %v2791_v36  ;;  %5925 = vmatprep.mubr.msk.f32.mxu0 %vm6504_vm0, %v8321_v6 }
 0x31f   :  { %v9132_v31 = vadd.f32 %v3617_v26, %v9073_v46  ;;  %v3339_v47 = vpop.f32.mrf.mxu1  ;;  %v2793_v46 = vld [vmem:[#allocation2 + $0x4a0] sm:$0xff]  ;;  %v2803_v26 = vld [vmem:[#allocation2 + $0x290] sm:$0xff] }
 0x320   :  { %v5748_v53 = vpop.f32.mrf.mxu0 }
 0x321   :  { %v9136_v28 = vpop.f32.mrf.mxu1  ;;  %3966 = vmatmul.mubr.f32.gmra.mxu1 %v2790_v25  ;;  %5926 = vmatmul.mubr.f32.gmra.mxu0 %v2768_v23  ;;  %v2780_v53 = vld [vmem:[#allocation2 + $0x90] sm:$0xff] }
 0x322   :  { %v3622_v9 = vpop.f32.mrf.mxu0  ;;  %3970 = vmatprep.mubr.f32.mxu1 %v2794_v30  ;;  %5928 = vmatprep.mubr.msk.f32.mxu0 %vm6504_vm0, %v8321_v6 }
 0x323   :  { %v9139_v19 = vadd.f32 %v3622_v9, %v9080_v11  ;;  %v3344_v2 = vpop.f32.mrf.mxu1  ;;  %v2796_v11 = vld [vmem:[#allocation2 + $0xc0] sm:$0xff] }
 0x324   :  { %v5751_v35 = vpop.f32.mrf.mxu0 }
 0x325   :  { %v9143_v45 = vpop.f32.mrf.mxu1  ;;  %3971 = vmatmul.mubr.f32.gmra.mxu1 %v2793_v46  ;;  %5929 = vmatmul.mubr.f32.gmra.mxu0 %v2771_v51  ;;  %v2806_v46 = vld [vmem:[#allocation2 + $0xe8] sm:$0xff] }
 0x326   :  { %v3627_v20 = vpop.f32.mrf.mxu0  ;;  %3975 = vmatprep.mubr.f32.mxu1 %v2797_v10  ;;  %5931 = vmatprep.mubr.msk.f32.mxu0 %vm6504_vm0, %v8321_v6  ;;  %v2783_v10 = vld [vmem:[#allocation2 + $0x370] sm:$0xff] }
 0x327   :  { %v9146_v5 = vadd.f32 %v3627_v20, %v9087_v22  ;;  %v3349_v16 = vpop.f32.mrf.mxu1  ;;  %v2799_v22 = vld [vmem:[#allocation2 + $0x1c8] sm:$0xff] }
 0x328   :  { %v5754_v63 = vpop.f32.mrf.mxu0 }
 0x329   :  { %v9150_v56 = vpop.f32.mrf.mxu1  ;;  %3976 = vmatmul.mubr.f32.gmra.mxu1 %v2796_v11  ;;  %5932 = vmatmul.mubr.f32.gmra.mxu0 %v2774_v29  ;;  %v2809_v29 = vld [vmem:[#allocation2 + $0x420] sm:$0xff] }
 0x32a   :  { %v3632_v55 = vpop.f32.mrf.mxu0  ;;  %3980 = vmatprep.mubr.f32.mxu1 %v2800_v24  ;;  %5934 = vmatprep.mubr.msk.f32.mxu0 %vm6504_vm0, %v8321_v6 }
 0x32b   :  { %v9153_v44 = vadd.f32 %v3632_v55, %v9094_v18  ;;  %v3354_v57 = vpop.f32.mrf.mxu1  ;;  %v2802_v18 = vld [vmem:[#allocation2 + $0x2c8] sm:$0xff]  ;;  %v2786_v55 = vld [vmem:[#allocation2 + $0x4f0] sm:$0xff] }
 0x32c   :  { %v5757_v36 = vpop.f32.mrf.mxu0  ;;  %v2812_v57 = vld [vmem:[#allocation2 + $0x360] sm:$0xff] }
 0x32d   :  { %v9157_v25 = vpop.f32.mrf.mxu1  ;;  %3981 = vmatmul.mubr.f32.gmra.mxu1 %v2799_v22  ;;  %5935 = vmatmul.mubr.f32.gmra.mxu0 %v2777_v37 }
 0x32e   :  { %v3637_v23 = vpop.f32.mrf.mxu0  ;;  %3985 = vmatprep.mubr.f32.mxu1 %v2803_v26  ;;  %5937 = vmatprep.mubr.msk.f32.mxu0 %vm6504_vm0, %v8321_v6 }
 0x32f   :  { %v9160_v47 = vadd.f32 %v3637_v23, %v9101_v17  ;;  %v3359_v30 = vpop.f32.mrf.mxu1  ;;  %v2805_v17 = vld [vmem:[#allocation2 + $0x4e0] sm:$0xff] }
 0x330   :  { %v5760_v9 = vpop.f32.mrf.mxu0 }
 0x331   :  { %v9164_v51 = vpop.f32.mrf.mxu1  ;;  %3986 = vmatmul.mubr.f32.gmra.mxu1 %v2802_v18  ;;  %5938 = vmatmul.mubr.f32.gmra.mxu0 %v2780_v53  ;;  %v2789_v18 = vld [vmem:[#allocation2 + $0x3e0] sm:$0xff] }
 0x332   :  { %v3642_v2 = vpop.f32.mrf.mxu0  ;;  %3990 = vmatprep.mubr.f32.mxu1 %v2806_v46  ;;  %5940 = vmatprep.mubr.msk.f32.mxu0 %vm6504_vm0, %v8321_v6  ;;  %v2815_v9 = vld [vmem:[#allocation2 + $0x220] sm:$0xff] }
 0x333   :  { %v9167_v35 = vadd.f32 %v3642_v2, %v9108_v58  ;;  %v3364_v20 = vpop.f32.mrf.mxu1  ;;  %v2808_v58 = vld [vmem:[#allocation2 + $0x1b8] sm:$0xff] }
 0x334   :  { %v5763_v11 = vpop.f32.mrf.mxu0 }
 0x335   :  { %v9171_v16 = vpop.f32.mrf.mxu1  ;;  %3991 = vmatmul.mubr.f32.gmra.mxu1 %v2805_v17  ;;  %5941 = vmatmul.mubr.f32.gmra.mxu0 %v2783_v10  ;;  %v2792_v10 = vld [vmem:[#allocation2 + $0x468] sm:$0xff] }
 0x336   :  { %v3647_v63 = vpop.f32.mrf.mxu0  ;;  %3995 = vmatprep.mubr.f32.mxu1 %v2809_v29  ;;  %5943 = vmatprep.mubr.msk.f32.mxu0 %vm6504_vm0, %v8321_v6  ;;  %v2818_v29 = vld [vmem:[#allocation2 + $0xc8] sm:$0xff] }
 0x337   :  { %v9174_v24 = vadd.f32 %v3647_v63, %v9115_v1  ;;  %v3369_v22 = vpop.f32.mrf.mxu1  ;;  %v2811_v1 = vld [vmem:[#allocation2 + $0x1f0] sm:$0xff] }
 0x338   :  { %v5766_v37 = vpop.f32.mrf.mxu0  ;;  %v2795_v22 = vld [vmem:[#allocation2 + $0x28] sm:$0xff] }
 0x339   :  { %v9178_v36 = vpop.f32.mrf.mxu1  ;;  %3996 = vmatmul.mubr.f32.gmra.mxu1 %v2808_v58  ;;  %5944 = vmatmul.mubr.f32.gmra.mxu0 %v2786_v55 }
 0x33a   :  { %v3652_v26 = vpop.f32.mrf.mxu0  ;;  %4000 = vmatprep.mubr.f32.mxu1 %v2812_v57  ;;  %5946 = vmatprep.mubr.msk.f32.mxu0 %vm6504_vm0, %v8321_v6 }
 0x33b   :  { %v9181_v23 = vadd.f32 %v3652_v26, %v9122_v13  ;;  %v3374_v53 = vpop.f32.mrf.mxu1  ;;  %v2814_v13 = vld [vmem:[#allocation2 + $0x408] sm:$0xff]  ;;  %v2821_v26 = vld [vmem:[#allocation2 + $0x198] sm:$0xff] }
 0x33c   :  { %v5769_v30 = vpop.f32.mrf.mxu0 }
 0x33d   :  { %v9185_v46 = vpop.f32.mrf.mxu1  ;;  %4001 = vmatmul.mubr.f32.gmra.mxu1 %v2811_v1  ;;  %5947 = vmatmul.mubr.f32.gmra.mxu0 %v2789_v18  ;;  %v2798_v30 = vld [vmem:[#allocation2 + $0x218] sm:$0xff] }
 0x33e   :  { %v3657_v2 = vpop.f32.mrf.mxu0  ;;  %4005 = vmatprep.mubr.f32.mxu1 %v2815_v9  ;;  %5949 = vmatprep.mubr.msk.f32.mxu0 %vm6504_vm0, %v8321_v6 }
 0x33f   :  { %v9188_v17 = vadd.f32 %v3657_v2, %v9129_v60  ;;  %v3379_v20 = vpop.f32.mrf.mxu1  ;;  %v2817_v60 = vld [vmem:[#allocation2 + $0x1e8] sm:$0xff] }
 0x340   :  { %v5772_v11 = vpop.f32.mrf.mxu0 }
 0x341   :  { %v9192_v63 = vpop.f32.mrf.mxu1  ;;  %4006 = vmatmul.mubr.f32.gmra.mxu1 %v2814_v13  ;;  %5950 = vmatmul.mubr.f32.gmra.mxu0 %v2792_v10  ;;  %v2824_v13 = vld [vmem:[#allocation2 + $0x4d0] sm:$0xff] }
 0x342   :  { %v3662_v58 = vpop.f32.mrf.mxu0  ;;  %4010 = vmatprep.mubr.f32.mxu1 %v2818_v29  ;;  %5952 = vmatprep.mubr.msk.f32.mxu0 %vm6504_vm0, %v8321_v6  ;;  %v2801_v29 = vld [vmem:[#allocation2 + $0x540] sm:$0xff] }
 0x343   :  { %v9195_v55 = vadd.f32 %v3662_v58, %v9136_v28  ;;  %v3384_v37 = vpop.f32.mrf.mxu1  ;;  %v2820_v28 = vld [vmem:[#allocation2 + $0x1d0] sm:$0xff] }
 0x344   :  { %v5775_v57 = vpop.f32.mrf.mxu0 }
 0x345   :  { %v9199_v1 = vpop.f32.mrf.mxu1  ;;  %4011 = vmatmul.mubr.f32.gmra.mxu1 %v2817_v60  ;;  %5953 = vmatmul.mubr.f32.gmra.mxu0 %v2795_v22  ;;  %v2827_v22 = vld [vmem:[#allocation2 + $0x448] sm:$0xff] }
 0x346   :  { %v3667_v18 = vpop.f32.mrf.mxu0  ;;  %4015 = vmatprep.mubr.f32.mxu1 %v2821_v26  ;;  %5955 = vmatprep.mubr.msk.f32.mxu0 %vm6504_vm0, %v8321_v6 }
 0x347   :  { %v9202_v53 = vadd.f32 %v3667_v18, %v9143_v45  ;;  %v3389_v9 = vpop.f32.mrf.mxu1  ;;  %v2823_v45 = vld [vmem:[#allocation2 + $0x4c8] sm:$0xff] }
 0x348   :  { %v5778_v2 = vpop.f32.mrf.mxu0  ;;  %v2804_v18 = vld [vmem:[#allocation2 + $0x168] sm:$0xff] }
 0x349   :  { %v9206_v10 = vpop.f32.mrf.mxu1  ;;  %4016 = vmatmul.mubr.f32.gmra.mxu1 %v2820_v28  ;;  %5956 = vmatmul.mubr.f32.gmra.mxu0 %v2798_v30  ;;  %v2830_v9 = vld [vmem:[#allocation2 + $0x1a8] sm:$0xff] }
 0x34a   :  { %v3672_v20 = vpop.f32.mrf.mxu0  ;;  %4020 = vmatprep.mubr.f32.mxu1 %v2824_v13  ;;  %5958 = vmatprep.mubr.msk.f32.mxu0 %vm6504_vm0, %v8321_v6 }
 0x34b   :  { %v9209_v11 = vadd.f32 %v3672_v20, %v9150_v56  ;;  %v3394_v58 = vpop.f32.mrf.mxu1  ;;  %v2826_v56 = vld [vmem:[#allocation2 + $0x148] sm:$0xff] }
 0x34c   :  { %v5781_v60 = vpop.f32.mrf.mxu0 }
 0x34d   :  { %v9213_v37 = vpop.f32.mrf.mxu1  ;;  %4021 = vmatmul.mubr.f32.gmra.mxu1 %v2823_v45  ;;  %5959 = vmatmul.mubr.f32.gmra.mxu0 %v2801_v29  ;;  %v2807_v45 = vld [vmem:[#allocation2 + $0x40] sm:$0xff] }
 0x34e   :  { %v3677_v57 = vpop.f32.mrf.mxu0  ;;  %4025 = vmatprep.mubr.f32.mxu1 %v2827_v22  ;;  %5961 = vmatprep.mubr.msk.f32.mxu0 %vm6504_vm0, %v8321_v6  ;;  %v2833_v60 = vld [vmem:[#allocation2 + $0x80] sm:$0xff] }
 0x34f   :  { %v9216_v26 = vadd.f32 %v3677_v57, %v9157_v25  ;;  %v3399_v28 = vpop.f32.mrf.mxu1  ;;  %v2829_v25 = vld [vmem:[#allocation2 + $0x300] sm:$0xff] }
 0x350   :  { %v5784_v30 = vpop.f32.mrf.mxu0 }
 0x351   :  { %v9220_v2 = vpop.f32.mrf.mxu1  ;;  %4026 = vmatmul.mubr.f32.gmra.mxu1 %v2826_v56  ;;  %5962 = vmatmul.mubr.f32.gmra.mxu0 %v2804_v18  ;;  %v2810_v18 = vld [vmem:[#allocation2 + $0x538] sm:$0xff] }
 0x352   :  { %v3682_v13 = vpop.f32.mrf.mxu0  ;;  %4030 = vmatprep.mubr.f32.mxu1 %v2830_v9  ;;  %5964 = vmatprep.mubr.msk.f32.mxu0 %vm6504_vm0, %v8321_v6  ;;  %v2836_v9 = vld [vmem:[#allocation2 + $0x438] sm:$0xff] }
 0x353   :  { %v9223_v20 = vadd.f32 %v3682_v13, %v9164_v51  ;;  %v3404_v29 = vpop.f32.mrf.mxu1  ;;  %v2832_v51 = vld [vmem:[#allocation2 + $0x508] sm:$0xff] }
 0x354   :  { %v5787_v58 = vpop.f32.mrf.mxu0 }
 0x355   :  { %9971 = vst [vmem:[#allocation6_spill] sm:$0xff] %v9223_v20  ;;  %v9227_v22 = vpop.f32.mrf.mxu1  ;;  %4031 = vmatmul.mubr.f32.gmra.mxu1 %v2829_v25  ;;  %5965 = vmatmul.mubr.f32.gmra.mxu0 %v2807_v45  ;;  %v2813_v45 = vld [vmem:[#allocation2 + $0x480] sm:$0xff] }
 0x356   :  { %v3687_v57 = vpop.f32.mrf.mxu0  ;;  %4035 = vmatprep.mubr.f32.mxu1 %v2833_v60  ;;  %5967 = vmatprep.mubr.msk.f32.mxu0 %vm6504_vm0, %v8321_v6 }
 0x357   :  { %v9230_v56 = vadd.f32 %v3687_v57, %v9171_v16  ;;  %v3409_v28 = vpop.f32.mrf.mxu1  ;;  %v2835_v16 = vld [vmem:[#allocation2 + $0x278] sm:$0xff]  ;;  %v2839_v57 = vld [vmem:[#allocation2 + $0xe0] sm:$0xff] }
 0x358   :  { %v5790_v30 = vpop.f32.mrf.mxu0 }
 0x359   :  { %9972 = vst [vmem:[#allocation7_spill] sm:$0xff] %v9230_v56  ;;  %v9234_v13 = vpop.f32.mrf.mxu1  ;;  %4036 = vmatmul.mubr.f32.gmra.mxu1 %v2832_v51  ;;  %5968 = vmatmul.mubr.f32.gmra.mxu0 %v2810_v18  ;;  %v2816_v18 = vld [vmem:[#allocation2 + $0x190] sm:$0xff] }
 0x35a   :  { %v3692_v29 = vpop.f32.mrf.mxu0  ;;  %4040 = vmatprep.mubr.f32.mxu1 %v2836_v9  ;;  %5970 = vmatprep.mubr.msk.f32.mxu0 %vm6504_vm0, %v8321_v6 }
 0x35b   :  { %v9237_v25 = vadd.f32 %v3692_v29, %v9178_v36  ;;  %v3414_v58 = vpop.f32.mrf.mxu1  ;;  %v2838_v36 = vld [vmem:[#allocation2 + $0x2d8] sm:$0xff] }
 0x35c   :  { %v5793_v60 = vpop.f32.mrf.mxu0 }
 0x35d   :  { %9973 = vst [vmem:[#allocation8_spill] sm:$0xff] %v9237_v25  ;;  %v9241_v30 = vpop.f32.mrf.mxu1  ;;  %4041 = vmatmul.mubr.f32.gmra.mxu1 %v2835_v16  ;;  %5971 = vmatmul.mubr.f32.gmra.mxu0 %v2813_v45  ;;  %v2842_v25 = vld [vmem:[#allocation2 + $0x1b0] sm:$0xff] }
 0x35e   :  { %v3697_v28 = vpop.f32.mrf.mxu0  ;;  %4045 = vmatprep.mubr.f32.mxu1 %v2839_v57  ;;  %5973 = vmatprep.mubr.msk.f32.mxu0 %vm6504_vm0, %v8321_v6  ;;  %v2819_v45 = vld [vmem:[#allocation2 + $0x230] sm:$0xff] }
 0x35f   :  { %v9244_v51 = vadd.f32 %v3697_v28, %v9185_v46  ;;  %v3804_v29 = vpop.f32.mrf.mxu1  ;;  %v2841_v46 = vld [vmem:[#allocation2 + $0x2f0] sm:$0xff] }
 0x360   :  { %v5796_v9 = vpop.f32.mrf.mxu0 }
 0x361   :  { %9974 = vst [vmem:[#allocation9_spill] sm:$0xff] %v9244_v51  ;;  %v9248_v60 = vpop.f32.mrf.mxu1  ;;  %4046 = vmatmul.mubr.f32.gmra.mxu1 %v2838_v36  ;;  %5974 = vmatmul.mubr.f32.gmra.mxu0 %v2816_v18 }
 0x362   :  { %v3702_v58 = vpop.f32.mrf.mxu0  ;;  %4050 = vmatprep.mubr.f32.mxu1 %v2842_v25  ;;  %5976 = vmatprep.mubr.msk.f32.mxu0 %vm6504_vm0, %v8321_v6  ;;  %v2834_v25 = vld [vmem:[#allocation2 + $0x120] sm:$0xff] }
 0x363   :  { %v9251_v16 = vadd.f32 %v3702_v58, %v9192_v63  ;;  %v3809_v28 = vpop.f32.mrf.mxu1  ;;  %v2822_v63 = vld [vmem:[#allocation2 + $0x4f8] sm:$0xff] }
 0x364   :  { %v5799_v57 = vpop.f32.mrf.mxu0 }
 0x365   :  { %9975 = vst [vmem:[#allocation10_spill] sm:$0xff] %v9251_v16  ;;  %v9255_v9 = vpop.f32.mrf.mxu1  ;;  %4051 = vmatmul.mubr.f32.gmra.mxu1 %v2841_v46  ;;  %5977 = vmatmul.mubr.f32.gmra.mxu0 %v2819_v45 }
 0x366   :  { %v3707_v51 = vpop.f32.mrf.mxu0  ;;  %5979 = vmatprep.mubr.msk.f32.mxu0 %vm6504_vm0, %v8321_v6  ;;  %5991 = vmatprep.mubr.msk.f32.mxu1 %vm6504_vm0, %v8321_v6 }
 0x367   :  { %v9258_v29 = vadd.f32 %v3707_v51, %v9199_v1  ;;  %v3814_v18 = vpop.f32.mrf.mxu1  ;;  %v2825_v1 = vld [vmem:[#allocation2 + $0x4a8] sm:$0xff] }
 0x368   :  { %v5802_v36 = vpop.f32.mrf.mxu0  ;;  %v2837_v51 = vld [vmem:[#allocation2 + $0x368] sm:$0xff] }
 0x369   :  { %9976 = vst [vmem:[#allocation11_spill] sm:$0xff] %v9258_v29  ;;  %v9264_v57 = vpop.f32.mrf.mxu1  ;;  %5980 = vmatmul.mubr.f32.gmra.mxu0 %v2822_v63  ;;  %5992 = vmatmul.mubr.f32.vlgmr.msra.gmra.mxu1 %v2834_v25  ;;  %v2840_v25 = vld [vmem:[#allocation2 + $0x188] sm:$0xff] }
 0x36a   :  { %v3712_v58 = vpop.f32.mrf.mxu0  ;;  %5982 = vmatprep.mubr.msk.f32.mxu0 %vm6504_vm0, %v8321_v6  ;;  %5994 = vmatprep.mubr.msk.f32.mxu1 %vm6504_vm0, %v8321_v6 }
 0x36b   :  { %v9267_v46 = vadd.f32 %v3712_v58, %v9206_v10  ;;  %v3819_v28 = vpop.f32.mrf.mxu1  ;;  %v2828_v10 = vld [vmem:[#allocation2 + $0x430] sm:$0xff] }
 0x36c   :  { %v5805_v45 = vpop.f32.mrf.mxu0 }
 0x36d   :  { %9977 = vst [vmem:[#allocation12_spill] sm:$0xff] %v9267_v46  ;;  %v9273_v18 = vpop.f32.mrf.mxu1  ;;  %5983 = vmatmul.mubr.f32.gmra.mxu0 %v2825_v1  ;;  %5995 = vmatmul.mubr.f32.gmra.mxu1 %v2837_v51  ;;  %v2843_v51 = vld [vmem:[#allocation2 + $0x258] sm:$0xff] }
 0x36e   :  { %v3717_v36 = vpop.f32.mrf.mxu0  ;;  %5985 = vmatprep.mubr.msk.f32.mxu0 %vm6504_vm0, %v8321_v6  ;;  %5997 = vmatprep.mubr.msk.f32.mxu1 %vm6504_vm0, %v8321_v6 }
 0x36f   :  { %v9276_v63 = vadd.f32 %v3717_v36, %v9213_v37  ;;  %v3824_v46 = vpop.f32.mrf.mxu1  ;;  %v2831_v37 = vld [vmem:[#allocation2 + $0x428] sm:$0xff] }
 0x370   :  { %v5808_v58 = vpop.f32.mrf.mxu0 }
 0x371   :  { %9978 = vst [vmem:[#allocation13_spill] sm:$0xff] %v9276_v63  ;;  %v9282_v28 = vpop.f32.mrf.mxu1  ;;  %5986 = vmatmul.mubr.f32.gmra.mxu0 %v2828_v10  ;;  %5998 = vmatmul.mubr.f32.gmra.mxu1 %v2840_v25 }
 0x372   :  { %v3722_v45 = vpop.f32.mrf.mxu0  ;;  %5988 = vmatprep.mubr.msk.f32.mxu0 %vm6504_vm0, %v8321_v6  ;;  %6000 = vmatprep.mubr.msk.f32.mxu1 %vm6504_vm0, %v8321_v6 }
 0x373   :  { %v9285_v1 = vadd.f32 %v3722_v45, %v9220_v2  ;;  %v3829_v29 = vpop.f32.mrf.mxu1 }
 0x374   :  { %v5811_v36 = vpop.f32.mrf.mxu0  ;;  %v3803_v29 = vadd.f32 %v9241_v30, %v8898_v52 }
 0x375   :  { %9979 = vst [vmem:[#allocation14_spill] sm:$0xff] %v9285_v1  ;;  %v9291_v46 = vpop.f32.mrf.mxu1  ;;  %5989 = vmatmul.mubr.f32.gmra.mxu0 %v2831_v37  ;;  %6001 = vmatmul.mubr.f32.gmra.mxu1 %v2843_v51 }
 0x376   :  { %v3727_v58 = vpop.f32.mrf.mxu0 }
 0x377   :  { %v9294_v10 = vadd.f32 %v3727_v58, %v9227_v22  ;;  %v3834_v25 = vpop.f32.mrf.mxu1  ;;  %v3808_v58 = vadd.f32 %v9248_v60, %v8910_v50 }
 0x378   :  { %v5814_v2 = vpop.f32.mrf.mxu0 }
 0x379   :  { %9980 = vst [vmem:[#allocation15_spill] sm:$0xff] %v9294_v10  ;;  %v9296_v1 = vpop.f32.mrf.mxu1  ;;  %v9310_v2 = vld [vmem:[%s9906_s2] ss:$0 sm:$0xff] }
 0x37a   :  { %v3732_v45 = vpop.f32.mrf.mxu0 }
 0x37b   :  { %v9299_v16 = vadd.f32 %v3732_v45, %v9234_v13  ;;  %v3839_v63 = vpop.f32.mrf.mxu1 }
 0x37c   :  { %v5817_v6 = vpop.f32.mrf.mxu0 }
 0x37d   :  { %9981 = vst [vmem:[#allocation16_spill] sm:$0xff] %v9299_v16  ;;  %v9303_v36 = vpop.f32.mrf.mxu1  ;;  %v3813_v6 = vadd.f32 %v9255_v9, %v8921_v40 }
 0x37e   :  { %v4122_v37 = vpop.f32.mrf.mxu0 }
 0x37f   :  { %v4123_v51 = vadd.f32 %v4122_v37, %v3803_v29  ;;  %v3844_v56 = vpop.f32.mrf.mxu1 }
 0x380   :  { %v5852_v22 = vpop.f32.mrf.mxu0 }
 0x381   :  { %v9313_v13 = vadd.f32 %v9310_v2, %v4123_v51  ;;  %v9315_v63 = vpop.f32.mrf.mxu1 }
 0x382   :  { %v4127_v52 = vpop.f32.mrf.mxu0 }
 0x383   :  { %v4893_v30 = vmul.f32 -1.442695, %v9313_v13  ;;  %v4128_v25 = vadd.f32 %v4127_v52, %v3808_v58  ;;  %v3849_v45 = vpop.f32.mrf.mxu1  ;;  %v3818_v58 = vadd.f32 %v9264_v57, %v8933_v12 }
 0x384   :  { %v5855_v56 = vpop.f32.mrf.mxu0 }
 0x385   :  { %6244 = vpow2.f32 %v4893_v30  ;;  %v9321_v50 = vadd.f32 %v9310_v2, %v4128_v25  ;;  %v9323_v60 = vpop.f32.mrf.mxu1 }
 0x386   :  { %v4132_v29 = vpop.f32.mrf.mxu0 }
 0x387   :  { %v4894_v37 = vmul.f32 -1.442695, %v9321_v50  ;;  %v4133_v51 = vadd.f32 %v4132_v29, %v3813_v6  ;;  %v3854_v22 = vpop.f32.mrf.mxu1  ;;  %v3823_v6 = vadd.f32 %v9273_v18, %v8945_v3 }
 0x388   :  { %v5858_v16 = vpop.f32.mrf.mxu0 }
 0x389   :  { %6246 = vpow2.f32 %v4894_v37  ;;  %v9329_v52 = vadd.f32 %v9310_v2, %v4133_v51  ;;  %v9331_v40 = vpop.f32.mrf.mxu1 }
 0x38a   :  { %v4137_v9 = vpop.f32.mrf.mxu0 }
 0x38b   :  { %v4895_v30 = vmul.f32 -1.442695, %v9329_v52  ;;  %v4138_v25 = vadd.f32 %v4137_v9, %v3818_v58  ;;  %v3859_v45 = vpop.f32.mrf.mxu1  ;;  %v3828_v58 = vadd.f32 %v9282_v28, %v8957_v34 }
 0x38c   :  { %v5861_v56 = vpop.f32.mrf.mxu0 }
 0x38d   :  { %6248 = vpow2.f32 %v4895_v30  ;;  %v9337_v16 = vadd.f32 %v9310_v2, %v4138_v25  ;;  %v9339_v12 = vpop.f32.mrf.mxu1 }
 0x38e   :  { %v4142_v57 = vpop.f32.mrf.mxu0 }
 0x38f   :  { %v4896_v29 = vmul.f32 -1.442695, %v9337_v16  ;;  %v4143_v37 = vadd.f32 %v4142_v57, %v3823_v6  ;;  %v3864_v51 = vpop.f32.mrf.mxu1  ;;  %v3833_v6 = vadd.f32 %v9291_v46, %v8970_v43 }
 0x390   :  { %v5864_v22 = vpop.f32.mrf.mxu0 }
 0x391   :  { %6250 = vpow2.f32 %v4896_v29  ;;  %v9345_v9 = vadd.f32 %v9310_v2, %v4143_v37  ;;  %v9347_v18 = vpop.f32.mrf.mxu1 }
 0x392   :  { %v6245_v3 = vpop.eup %6244  ;;  %v4147_v30 = vpop.f32.mrf.mxu0 }
 0x393   :  { %v4580_v25 = vadd.f32 1.0, %v6245_v3  ;;  %v4897_v45 = vmul.f32 -1.442695, %v9345_v9  ;;  %v4148_v56 = vadd.f32 %v4147_v30, %v3828_v58  ;;  %v3869_v10 = vpop.f32.mrf.mxu1 }
 0x394   :  { %v5867_v20 = vpop.f32.mrf.mxu0 }
 0x395   :  { %6252 = vrcp.f32 %v4580_v25  ;;  %v9353_v34 = vadd.f32 %v9310_v2, %v4148_v56  ;;  %v9355_v57 = vpop.f32.mrf.mxu1  ;;  %v3838_v20 = vadd.f32 %v9296_v1, %v8982_v27 }
 0x396   :  { %v6247_v28 = vpop.eup %6246  ;;  %6254 = vpow2.f32 %v4897_v45  ;;  %v4152_v29 = vpop.f32.mrf.mxu0 }
 0x397   :  { %v4581_v37 = vadd.f32 1.0, %v6247_v28  ;;  %v4898_v51 = vmul.f32 -1.442695, %v9353_v34  ;;  %v4153_v22 = vadd.f32 %v4152_v29, %v3833_v6  ;;  %v3874_v3 = vpop.f32.mrf.mxu1  ;;  %v3843_v29 = vadd.f32 %v9303_v36, %v8994_v41 }
 0x398   :  { %v5870_v58 = vpop.f32.mrf.mxu0 }
 0x399   :  { %6256 = vrcp.f32 %v4581_v37  ;;  %v9361_v43 = vadd.f32 %v9310_v2, %v4153_v22  ;;  %v9363_v10 = vpop.f32.mrf.mxu1 }
 0x39a   :  { %v6249_v46 = vpop.eup %6248  ;;  %6258 = vpow2.f32 %v4898_v51  ;;  %v4157_v30 = vpop.f32.mrf.mxu0 }
 0x39b   :  { %v4582_v25 = vadd.f32 1.0, %v6249_v46  ;;  %v4899_v45 = vmul.f32 -1.442695, %v9361_v43  ;;  %v4158_v56 = vadd.f32 %v4157_v30, %v3838_v20  ;;  %v3879_v28 = vpop.f32.mrf.mxu1  ;;  %v3848_v30 = vadd.f32 %v9315_v63, %v9005_v4 }
 0x39c   :  { %v5873_v6 = vpop.f32.mrf.mxu0  ;;  %v3853_v4 = vadd.f32 %v9323_v60, %v9013_v32  ;;  %v3858_v32 = vadd.f32 %v9331_v40, %v9020_v62  ;;  %v3863_v62 = vadd.f32 %v9339_v12, %v9027_v49  ;;  %v3868_v49 = vadd.f32 %v9347_v18, %v9034_v7 }
 0x39d   :  { %6260 = vrcp.f32 %v4582_v25  ;;  %v9369_v27 = vadd.f32 %v9310_v2, %v4158_v56  ;;  %v9371_v37 = vpop.f32.mrf.mxu1  ;;  %v3873_v7 = vadd.f32 %v9355_v57, %v9041_v42 }
 0x39e   :  { %v6251_v1 = vpop.eup %6250  ;;  %6262 = vpow2.f32 %v4899_v45  ;;  %v4162_v51 = vpop.f32.mrf.mxu0 }
 0x39f   :  { %v4583_v22 = vadd.f32 1.0, %v6251_v1  ;;  %v4900_v3 = vmul.f32 -1.442695, %v9369_v27  ;;  %v4163_v58 = vadd.f32 %v4162_v51, %v3843_v29  ;;  %v3884_v46 = vpop.f32.mrf.mxu1 }
 0x3a0   :  { %v5876_v20 = vpop.f32.mrf.mxu0 }
 0x3a1   :  { %6264 = vrcp.f32 %v4583_v22  ;;  %v9377_v41 = vadd.f32 %v9310_v2, %v4163_v58  ;;  %v9379_v25 = vpop.f32.mrf.mxu1 }
 0x3a2   :  { %v6253_v36 = vpop.eup %6252  ;;  %6266 = vpow2.f32 %v4900_v3  ;;  %v4167_v45 = vpop.f32.mrf.mxu0 }
 0x3a3   :  { %v6255_v56 = vpop.eup %6254  ;;  %v4733_v28 = vmul.f32 %v6253_v36, %v9313_v13  ;;  %v4901_v6 = vmul.f32 -1.442695, %v9377_v41  ;;  %v4168_v29 = vadd.f32 %v4167_v45, %v3848_v30  ;;  %v3889_v51 = vpop.f32.mrf.mxu1 }
 0x3a4   :  { %v4584_v1 = vadd.f32 1.0, %v6255_v56  ;;  %v5879_v46 = vpop.f32.mrf.mxu0 }
 0x3a5   :  { %4944 = vst [vmem:[%s9907_s3 + $0x198] sm:$0xff] %v4733_v28  ;;  %6268 = vpow2.f32 %v4901_v6  ;;  %v9389_v63 = vadd.f32 %v9310_v2, %v4168_v29  ;;  %v9391_v13 = vpop.f32.mrf.mxu1 }
 0x3a6   :  { %v6257_v22 = vpop.eup %6256  ;;  %6270 = vrcp.f32 %v4584_v1  ;;  %v4172_v3 = vpop.f32.mrf.mxu0 }
 0x3a7   :  { %v6259_v58 = vpop.eup %6258  ;;  %v4734_v20 = vmul.f32 %v6257_v22, %v9321_v50  ;;  %v4902_v30 = vmul.f32 -1.442695, %v9389_v63  ;;  %v4173_v36 = vadd.f32 %v4172_v3, %v3853_v4  ;;  %v3894_v56 = vpop.f32.mrf.mxu1 }
 0x3a8   :  { %v4585_v45 = vadd.f32 1.0, %v6259_v58  ;;  %v5882_v28 = vpop.f32.mrf.mxu0 }
 0x3a9   :  { %4945 = vst [vmem:[%s9907_s3 + $0x1a0] sm:$0xff] %v4734_v20  ;;  %6272 = vpow2.f32 %v4902_v30  ;;  %v9401_v60 = vadd.f32 %v9310_v2, %v4173_v36  ;;  %v9403_v50 = vpop.f32.mrf.mxu1 }
 0x3aa   :  { %v6261_v6 = vpop.eup %6260  ;;  %6274 = vrcp.f32 %v4585_v45  ;;  %v4177_v29 = vpop.f32.mrf.mxu0 }
 0x3ab   :  { %v6263_v1 = vpop.eup %6262  ;;  %v4735_v51 = vmul.f32 %v6261_v6, %v9329_v52  ;;  %v4903_v46 = vmul.f32 -1.442695, %v9401_v60  ;;  %v4178_v4 = vadd.f32 %v4177_v29, %v3858_v32  ;;  %v3899_v3 = vpop.f32.mrf.mxu1 }
 0x3ac   :  { %v4586_v22 = vadd.f32 1.0, %v6263_v1  ;;  %v5885_v58 = vpop.f32.mrf.mxu0 }
 0x3ad   :  { %4946 = vst [vmem:[%s9907_s3 + $0x1a8] sm:$0xff] %v4735_v51  ;;  %6276 = vpow2.f32 %v4903_v46  ;;  %v9413_v40 = vadd.f32 %v9310_v2, %v4178_v4  ;;  %v9415_v52 = vpop.f32.mrf.mxu1 }
 0x3ae   :  { %v6265_v20 = vpop.eup %6264  ;;  %6278 = vrcp.f32 %v4586_v22  ;;  %v4182_v30 = vpop.f32.mrf.mxu0 }
 0x3af   :  { %v6267_v36 = vpop.eup %6266  ;;  %v4736_v45 = vmul.f32 %v6265_v20, %v9337_v16  ;;  %v4904_v56 = vmul.f32 -1.442695, %v9413_v40  ;;  %v4183_v28 = vadd.f32 %v4182_v30, %v3863_v62  ;;  %v3904_v6 = vpop.f32.mrf.mxu1 }
 0x3b0   :  { %v4587_v32 = vadd.f32 1.0, %v6267_v36  ;;  %v5888_v29 = vpop.f32.mrf.mxu0 }
 0x3b1   :  { %4947 = vst [vmem:[%s9907_s3 + $0x1b0] sm:$0xff] %v4736_v45  ;;  %6280 = vpow2.f32 %v4904_v56  ;;  %v9425_v12 = vadd.f32 %v9310_v2, %v4183_v28  ;;  %v9427_v16 = vpop.f32.mrf.mxu1  ;;  %v3878_v29 = vadd.f32 %v9363_v10, %v9048_v14 }
 0x3b2   :  { %v6269_v1 = vpop.eup %6268  ;;  %6282 = vrcp.f32 %v4587_v32  ;;  %v4187_v51 = vpop.f32.mrf.mxu0 }
 0x3b3   :  { %v6271_v46 = vpop.eup %6270  ;;  %v4588_v4 = vadd.f32 1.0, %v6269_v1  ;;  %v4905_v22 = vmul.f32 -1.442695, %v9425_v12  ;;  %v4188_v3 = vadd.f32 %v4187_v51, %v3868_v49  ;;  %v3909_v62 = vpop.f32.mrf.mxu1 }
 0x3b4   :  { %v4737_v58 = vmul.f32 %v6271_v46, %v9345_v9  ;;  %v5891_v20 = vpop.f32.mrf.mxu0  ;;  %v3883_v62 = vadd.f32 %v9371_v37, %v9055_v48 }
 0x3b5   :  { %6284 = vrcp.f32 %v4588_v4  ;;  %v9434_v18 = vadd.f32 %v9310_v2, %v4188_v3  ;;  %v9439_v36 = vpop.f32.mrf.mxu1 }
 0x3b6   :  { %v6273_v30 = vpop.eup %6272  ;;  %4948 = vst [vmem:[%s9907_s3 + $0x1b8] sm:$0xff] %v4737_v58  ;;  %6286 = vpow2.f32 %v4905_v22  ;;  %v4192_v45 = vpop.f32.mrf.mxu0 }
 0x3b7   :  { %v6275_v56 = vpop.eup %6274  ;;  %v4589_v9 = vadd.f32 1.0, %v6273_v30  ;;  %v4906_v28 = vmul.f32 -1.442695, %v9434_v18  ;;  %v4193_v32 = vadd.f32 %v4192_v45, %v3873_v7  ;;  %v3914_v57 = vpop.f32.mrf.mxu1 }
 0x3b8   :  { %v4738_v42 = vmul.f32 %v6275_v56, %v9353_v34  ;;  %v5894_v6 = vpop.f32.mrf.mxu0 }
 0x3b9   :  { %6288 = vrcp.f32 %v4589_v9  ;;  %v9446_v49 = vadd.f32 %v9310_v2, %v4193_v32  ;;  %v9451_v51 = vpop.f32.mrf.mxu1 }
 0x3ba   :  { %v6277_v1 = vpop.eup %6276  ;;  %4949 = vst [vmem:[%s9907_s3 + $0x1c0] sm:$0xff] %v4738_v42  ;;  %6290 = vpow2.f32 %v4906_v28  ;;  %v4197_v46 = vpop.f32.mrf.mxu0  ;;  %v3888_v42 = vadd.f32 %v9379_v25, %v9062_v61 }
 0x3bb   :  { %v6279_v4 = vpop.eup %6278  ;;  %v4590_v34 = vadd.f32 1.0, %v6277_v1  ;;  %v4907_v22 = vmul.f32 -1.442695, %v9446_v49  ;;  %v4198_v3 = vadd.f32 %v4197_v46, %v3878_v29  ;;  %v3919_v10 = vpop.f32.mrf.mxu1 }
 0x3bc   :  { %v4739_v14 = vmul.f32 %v6279_v4, %v9361_v43  ;;  %v5897_v58 = vpop.f32.mrf.mxu0 }
 0x3bd   :  { %6292 = vrcp.f32 %v4590_v34  ;;  %v9458_v20 = vadd.f32 %v9310_v2, %v4198_v3  ;;  %v9463_v30 = vpop.f32.mrf.mxu1  ;;  %v3893_v3 = vadd.f32 %v9391_v13, %v9069_v0  ;;  %v3898_v0 = vadd.f32 %v9403_v50, %v9076_v54 }
 0x3be   :  { %v6281_v7 = vpop.eup %6280  ;;  %4950 = vst [vmem:[%s9907_s3 + $0x1c8] sm:$0xff] %v4739_v14  ;;  %6294 = vpow2.f32 %v4907_v22  ;;  %v4202_v45 = vpop.f32.mrf.mxu0  ;;  %v3903_v54 = vadd.f32 %v9415_v52, %v9083_v8  ;;  %v3908_v8 = vadd.f32 %v9427_v16, %v9090_v21  ;;  %v3913_v21 = vadd.f32 %v9439_v36, %v9097_v33 }
 0x3bf   :  { %v6283_v56 = vpop.eup %6282  ;;  %v4591_v43 = vadd.f32 1.0, %v6281_v7  ;;  %v4908_v9 = vmul.f32 -1.442695, %v9458_v20  ;;  %v4203_v28 = vadd.f32 %v4202_v45, %v3883_v62  ;;  %v3924_v37 = vpop.f32.mrf.mxu1 }
 0x3c0   :  { %v4740_v48 = vmul.f32 %v6283_v56, %v9369_v27  ;;  %v5900_v32 = vpop.f32.mrf.mxu0 }
 0x3c1   :  { %6296 = vrcp.f32 %v4591_v43  ;;  %v9470_v57 = vadd.f32 %v9310_v2, %v4203_v28  ;;  %v9475_v29 = vpop.f32.mrf.mxu1 }
 0x3c2   :  { %v6285_v6 = vpop.eup %6284  ;;  %4951 = vst [vmem:[%s9907_s3 + $0x1d0] sm:$0xff] %v4740_v48  ;;  %6298 = vpow2.f32 %v4908_v9  ;;  %v4207_v1 = vpop.f32.mrf.mxu0 }
 0x3c3   :  { %v6287_v46 = vpop.eup %6286  ;;  %v4741_v27 = vmul.f32 %v6285_v6, %v9377_v41  ;;  %v4909_v4 = vmul.f32 -1.442695, %v9470_v57  ;;  %v4208_v34 = vadd.f32 %v4207_v1, %v3888_v42  ;;  %v3929_v25 = vpop.f32.mrf.mxu1 }
 0x3c4   :  { %v4592_v61 = vadd.f32 1.0, %v6287_v46  ;;  %v5903_v22 = vpop.f32.mrf.mxu0 }
 0x3c5   :  { %4952 = vst [vmem:[%s9907_s3 + $0x1d8] sm:$0xff] %v4741_v27  ;;  %6300 = vpow2.f32 %v4909_v4  ;;  %v9485_v14 = vadd.f32 %v9310_v2, %v4208_v34  ;;  %v9487_v41 = vpop.f32.mrf.mxu1 }
 0x3c6   :  { %v6289_v10 = vpop.eup %6288  ;;  %6302 = vrcp.f32 %v4592_v61  ;;  %v4212_v58 = vpop.f32.mrf.mxu0 }
 0x3c7   :  { %v6291_v62 = vpop.eup %6290  ;;  %v4742_v7 = vmul.f32 %v6289_v10, %v9389_v63  ;;  %v4910_v45 = vmul.f32 -1.442695, %v9485_v14  ;;  %v4213_v56 = vadd.f32 %v4212_v58, %v3893_v3  ;;  %v3934_v9 = vpop.f32.mrf.mxu1 }
 0x3c8   :  { %v4593_v43 = vadd.f32 1.0, %v6291_v62  ;;  %v5906_v28 = vpop.f32.mrf.mxu0 }
 0x3c9   :  { %4953 = vst [vmem:[%s9907_s3 + $0x1e0] sm:$0xff] %v4742_v7  ;;  %6304 = vpow2.f32 %v4910_v45  ;;  %v9497_v13 = vadd.f32 %v9310_v2, %v4213_v56  ;;  %v9499_v63 = vpop.f32.mrf.mxu1 }
 0x3ca   :  { %v6293_v48 = vpop.eup %6292  ;;  %6306 = vrcp.f32 %v4593_v43  ;;  %v4217_v37 = vpop.f32.mrf.mxu0 }
 0x3cb   :  { %v6295_v32 = vpop.eup %6294  ;;  %v4743_v42 = vmul.f32 %v6293_v48, %v9401_v60  ;;  %v4911_v6 = vmul.f32 -1.442695, %v9497_v13  ;;  %v4218_v1 = vadd.f32 %v4217_v37, %v3898_v0  ;;  %v3939_v27 = vpop.f32.mrf.mxu1 }
 0x3cc   :  { %v4594_v46 = vadd.f32 1.0, %v6295_v32  ;;  %v5909_v4 = vpop.f32.mrf.mxu0 }
 0x3cd   :  { %4954 = vst [vmem:[%s9907_s3 + $0x1e8] sm:$0xff] %v4743_v42  ;;  %6308 = vpow2.f32 %v4911_v6  ;;  %v9509_v50 = vadd.f32 %v9310_v2, %v4218_v1  ;;  %v9511_v60 = vpop.f32.mrf.mxu1 }
 0x3ce   :  { %v6297_v34 = vpop.eup %6296  ;;  %6310 = vrcp.f32 %v4594_v46  ;;  %v4222_v61 = vpop.f32.mrf.mxu0 }
 0x3cf   :  { %v6299_v25 = vpop.eup %6298  ;;  %v4744_v22 = vmul.f32 %v6297_v34, %v9413_v40  ;;  %v4912_v3 = vmul.f32 -1.442695, %v9509_v50  ;;  %v4223_v10 = vadd.f32 %v4222_v61, %v3903_v54  ;;  %v3944_v62 = vpop.f32.mrf.mxu1  ;;  %v3918_v34 = vadd.f32 %v9451_v51, %v9104_v15 }
 0x3d0   :  { %v4595_v58 = vadd.f32 1.0, %v6299_v25  ;;  %v5912_v7 = vpop.f32.mrf.mxu0 }
 0x3d1   :  { %4955 = vst [vmem:[%s9907_s3 + $0x1f0] sm:$0xff] %v4744_v22  ;;  %6312 = vpow2.f32 %v4912_v3  ;;  %v9521_v52 = vadd.f32 %v9310_v2, %v4223_v10  ;;  %v9523_v40 = vpop.f32.mrf.mxu1 }
 0x3d2   :  { %v6301_v45 = vpop.eup %6300  ;;  %6314 = vrcp.f32 %v4595_v58  ;;  %v4227_v56 = vpop.f32.mrf.mxu0 }
 0x3d3   :  { %v6303_v43 = vpop.eup %6302  ;;  %v4596_v9 = vadd.f32 1.0, %v6301_v45  ;;  %v4913_v28 = vmul.f32 -1.442695, %v9521_v52  ;;  %v4228_v0 = vadd.f32 %v4227_v56, %v3908_v8  ;;  %v3949_v37 = vpop.f32.mrf.mxu1  ;;  %v3923_v8 = vadd.f32 %v9463_v30, %v9111_v59 }
 0x3d4   :  { %v4745_v48 = vmul.f32 %v6303_v43, %v9425_v12  ;;  %v5915_v32 = vpop.f32.mrf.mxu0 }
 0x3d5   :  { %6316 = vrcp.f32 %v4596_v9  ;;  %v9530_v16 = vadd.f32 %v9310_v2, %v4228_v0  ;;  %v9535_v6 = vpop.f32.mrf.mxu1  ;;  %v3928_v32 = vadd.f32 %v9475_v29, %v9118_v39 }
 0x3d6   :  { %v6305_v42 = vpop.eup %6304  ;;  %4956 = vst [vmem:[%s9907_s3 + $0x1f8] sm:$0xff] %v4745_v48  ;;  %6318 = vpow2.f32 %v4913_v28  ;;  %v4232_v1 = vpop.f32.mrf.mxu0 }
 0x3d7   :  { %v6307_v46 = vpop.eup %6306  ;;  %v4597_v12 = vadd.f32 1.0, %v6305_v42  ;;  %v4914_v27 = vmul.f32 -1.442695, %v9530_v16  ;;  %v4233_v4 = vadd.f32 %v4232_v1, %v3913_v21  ;;  %v3954_v36 = vpop.f32.mrf.mxu1 }
 0x3d8   :  { %v4746_v33 = vmul.f32 %v6307_v46, %v9434_v18  ;;  %v5918_v54 = vpop.f32.mrf.mxu0  ;;  %v3933_v36 = vadd.f32 %v9487_v41, %v9125_v38  ;;  %v3938_v38 = vadd.f32 %v9499_v63, %v9132_v31  ;;  %v3943_v31 = vadd.f32 %v9511_v60, %v9139_v19 }
 0x3d9   :  { %6320 = vrcp.f32 %v4597_v12  ;;  %v9542_v61 = vadd.f32 %v9310_v2, %v4233_v4  ;;  %v9547_v22 = vpop.f32.mrf.mxu1  ;;  %v3948_v19 = vadd.f32 %v9523_v40, %v9146_v5  ;;  %v3953_v5 = vadd.f32 %v9535_v6, %v9153_v44 }
 0x3da   :  { %v6309_v25 = vpop.eup %6308  ;;  %4957 = vst [vmem:[%s9907_s3 + $0x200] sm:$0xff] %v4746_v33  ;;  %6322 = vpow2.f32 %v4914_v27  ;;  %v4237_v3 = vpop.f32.mrf.mxu0 }
 0x3db   :  { %v6311_v10 = vpop.eup %6310  ;;  %v4598_v18 = vadd.f32 1.0, %v6309_v25  ;;  %v4915_v58 = vmul.f32 -1.442695, %v9542_v61  ;;  %v4238_v62 = vadd.f32 %v4237_v3, %v3918_v34  ;;  %v3959_v51 = vpop.f32.mrf.mxu1 }
 0x3dc   :  { %v4747_v15 = vmul.f32 %v6311_v10, %v9446_v49  ;;  %v5921_v7 = vpop.f32.mrf.mxu0 }
 0x3dd   :  { %6324 = vrcp.f32 %v4598_v18  ;;  %v9554_v45 = vadd.f32 %v9310_v2, %v4238_v62  ;;  %v9559_v43 = vpop.f32.mrf.mxu1 }
 0x3de   :  { %v6313_v56 = vpop.eup %6312  ;;  %4958 = vst [vmem:[%s9907_s3 + $0x208] sm:$0xff] %v4747_v15  ;;  %6326 = vpow2.f32 %v4915_v58  ;;  %v4242_v9 = vpop.f32.mrf.mxu0 }
 0x3df   :  { %v6315_v28 = vpop.eup %6314  ;;  %v4599_v49 = vadd.f32 1.0, %v6313_v56  ;;  %v4916_v0 = vmul.f32 -1.442695, %v9554_v45  ;;  %v4243_v48 = vadd.f32 %v4242_v9, %v3923_v8  ;;  %v3964_v30 = vpop.f32.mrf.mxu1 }
 0x3e0   :  { %v4748_v59 = vmul.f32 %v6315_v28, %v9458_v20  ;;  %v5924_v37 = vpop.f32.mrf.mxu0 }
 0x3e1   :  { %6328 = vrcp.f32 %v4599_v49  ;;  %v9566_v21 = vadd.f32 %v9310_v2, %v4243_v48  ;;  %v9571_v1 = vpop.f32.mrf.mxu1 }
 0x3e2   :  { %v6317_v42 = vpop.eup %6316  ;;  %4959 = vst [vmem:[%s9907_s3 + $0x210] sm:$0xff] %v4748_v59  ;;  %6330 = vpow2.f32 %v4916_v0  ;;  %v4247_v46 = vpop.f32.mrf.mxu0 }
 0x3e3   :  { %v6319_v12 = vpop.eup %6318  ;;  %v4749_v20 = vmul.f32 %v6317_v42, %v9470_v57  ;;  %v4917_v27 = vmul.f32 -1.442695, %v9566_v21  ;;  %v4248_v4 = vadd.f32 %v4247_v46, %v3928_v32  ;;  %v3969_v29 = vpop.f32.mrf.mxu1 }
 0x3e4   :  { %v4600_v39 = vadd.f32 1.0, %v6319_v12  ;;  %v5927_v33 = vpop.f32.mrf.mxu0 }
 0x3e5   :  { %4960 = vst [vmem:[%s9907_s3 + $0x218] sm:$0xff] %v4749_v20  ;;  %6332 = vpow2.f32 %v4917_v27  ;;  %v9581_v54 = vadd.f32 %v9310_v2, %v4248_v4  ;;  %v9583_v57 = vpop.f32.mrf.mxu1 }
 0x3e6   :  { %v6321_v34 = vpop.eup %6320  ;;  %6334 = vrcp.f32 %v4600_v39  ;;  %v4252_v25 = vpop.f32.mrf.mxu0 }
 0x3e7   :  { %v6323_v3 = vpop.eup %6322  ;;  %v4750_v10 = vmul.f32 %v6321_v34, %v9485_v14  ;;  %v4918_v18 = vmul.f32 -1.442695, %v9581_v54  ;;  %v4253_v58 = vadd.f32 %v4252_v25, %v3933_v36  ;;  %v3974_v15 = vpop.f32.mrf.mxu1 }
 0x3e8   :  { %v4601_v62 = vadd.f32 1.0, %v6323_v3  ;;  %v5930_v51 = vpop.f32.mrf.mxu0 }
 0x3e9   :  { %4961 = vst [vmem:[%s9907_s3 + $0x220] sm:$0xff] %v4750_v10  ;;  %6336 = vpow2.f32 %v4918_v18  ;;  %v9593_v41 = vadd.f32 %v9310_v2, %v4253_v58  ;;  %v9595_v14 = vpop.f32.mrf.mxu1 }
 0x3ea   :  { %v6325_v7 = vpop.eup %6324  ;;  %6338 = vrcp.f32 %v4601_v62  ;;  %v4257_v8 = vpop.f32.mrf.mxu0 }
 0x3eb   :  { %v6327_v56 = vpop.eup %6326  ;;  %v4751_v9 = vmul.f32 %v6325_v7, %v9497_v13  ;;  %v4919_v28 = vmul.f32 -1.442695, %v9593_v41  ;;  %v4258_v49 = vadd.f32 %v4257_v8, %v3938_v38  ;;  %v3979_v48 = vpop.f32.mrf.mxu1 }
 0x3ec   :  { %v4602_v0 = vadd.f32 1.0, %v6327_v56  ;;  %v5933_v59 = vpop.f32.mrf.mxu0  ;;  %v3958_v56 = vadd.f32 %v9547_v22, %v9160_v47 }
 0x3ed   :  { %4962 = vst [vmem:[%s9907_s3 + $0x228] sm:$0xff] %v4751_v9  ;;  %6340 = vpow2.f32 %v4919_v28  ;;  %v9605_v63 = vadd.f32 %v9310_v2, %v4258_v49  ;;  %v9607_v13 = vpop.f32.mrf.mxu1 }
 0x3ee   :  { %v6329_v30 = vpop.eup %6328  ;;  %6342 = vrcp.f32 %v4602_v0  ;;  %v4262_v37 = vpop.f32.mrf.mxu0 }
 0x3ef   :  { %v6331_v32 = vpop.eup %6330  ;;  %v4752_v42 = vmul.f32 %v6329_v30, %v9509_v50  ;;  %v4920_v46 = vmul.f32 -1.442695, %v9605_v63  ;;  %v4263_v12 = vadd.f32 %v4262_v37, %v3943_v31  ;;  %v3984_v27 = vpop.f32.mrf.mxu1  ;;  %v3963_v37 = vadd.f32 %v9559_v43, %v9167_v35 }
 0x3f0   :  { %v4603_v20 = vadd.f32 1.0, %v6331_v32  ;;  %v5936_v4 = vpop.f32.mrf.mxu0 }
 0x3f1   :  { %4963 = vst [vmem:[%s9907_s3 + $0x230] sm:$0xff] %v4752_v42  ;;  %6344 = vpow2.f32 %v4920_v46  ;;  %v9617_v60 = vadd.f32 %v9310_v2, %v4263_v12  ;;  %v9619_v50 = vpop.f32.mrf.mxu1 }
 0x3f2   :  { %v6333_v39 = vpop.eup %6332  ;;  %6346 = vrcp.f32 %v4603_v20  ;;  %v4267_v29 = vpop.f32.mrf.mxu0 }
 0x3f3   :  { %v6335_v33 = vpop.eup %6334  ;;  %v4604_v36 = vadd.f32 1.0, %v6333_v39  ;;  %v4921_v34 = vmul.f32 -1.442695, %v9617_v60  ;;  %v4268_v25 = vadd.f32 %v4267_v29, %v3948_v19  ;;  %v3989_v10 = vpop.f32.mrf.mxu1  ;;  %v3968_v39 = vadd.f32 %v9571_v1, %v9174_v24 }
 0x3f4   :  { %v4753_v3 = vmul.f32 %v6335_v33, %v9521_v52  ;;  %v5939_v18 = vpop.f32.mrf.mxu0 }
 0x3f5   :  { %6348 = vrcp.f32 %v4604_v36  ;;  %v9626_v40 = vadd.f32 %v9310_v2, %v4268_v25  ;;  %v9631_v62 = vpop.f32.mrf.mxu1 }
 0x3f6   :  { %v6337_v58 = vpop.eup %6336  ;;  %4964 = vst [vmem:[%s9907_s3 + $0x238] sm:$0xff] %v4753_v3  ;;  %6350 = vpow2.f32 %v4921_v34  ;;  %v4272_v15 = vpop.f32.mrf.mxu0 }
 0x3f7   :  { %v6339_v51 = vpop.eup %6338  ;;  %v4605_v52 = vadd.f32 1.0, %v6337_v58  ;;  %v4922_v38 = vmul.f32 -1.442695, %v9626_v40  ;;  %v4273_v7 = vadd.f32 %v4272_v15, %v3953_v5  ;;  %v3994_v6 = vpop.f32.mrf.mxu1  ;;  %v3973_v5 = vadd.f32 %v9583_v57, %v9181_v23 }
 0x3f8   :  { %v4754_v44 = vmul.f32 %v6339_v51, %v9530_v16  ;;  %v5942_v8 = vpop.f32.mrf.mxu0  ;;  %v3978_v23 = vadd.f32 %v9595_v14, %v9188_v17  ;;  %v3983_v17 = vadd.f32 %v9607_v13, %v9195_v55  ;;  %v3988_v55 = vadd.f32 %v9619_v50, %v9202_v53 }
 0x3f9   :  { %6352 = vrcp.f32 %v4605_v52  ;;  %v9638_v9 = vadd.f32 %v9310_v2, %v4273_v7  ;;  %v9643_v49 = vpop.f32.mrf.mxu1  ;;  %v3993_v53 = vadd.f32 %v9631_v62, %v9209_v11 }
 0x3fa   :  { %v6341_v28 = vpop.eup %6340  ;;  %4965 = vst [vmem:[%s9907_s3 + $0x240] sm:$0xff] %v4754_v44  ;;  %6354 = vpow2.f32 %v4922_v38  ;;  %v4277_v0 = vpop.f32.mrf.mxu0 }
 0x3fb   :  { %v6343_v48 = vpop.eup %6342  ;;  %v4606_v16 = vadd.f32 1.0, %v6341_v28  ;;  %v4923_v59 = vmul.f32 -1.442695, %v9638_v9  ;;  %v4278_v31 = vadd.f32 %v4277_v0, %v3958_v56  ;;  %v3999_v22 = vpop.f32.mrf.mxu1 }
 0x3fc   :  { %v4755_v47 = vmul.f32 %v6343_v48, %v9542_v61  ;;  %v5945_v30 = vpop.f32.mrf.mxu0 }
 0x3fd   :  { %6356 = vrcp.f32 %v4606_v16  ;;  %v9650_v32 = vadd.f32 %v9310_v2, %v4278_v31  ;;  %v9655_v46 = vpop.f32.mrf.mxu1 }
 0x3fe   :  { %v6345_v42 = vpop.eup %6344  ;;  %4966 = vst [vmem:[%s9907_s3 + $0x248] sm:$0xff] %v4755_v47  ;;  %6358 = vpow2.f32 %v4923_v59  ;;  %v4282_v12 = vpop.f32.mrf.mxu0 }
 0x3ff   :  { %v6347_v20 = vpop.eup %6346  ;;  %v4607_v61 = vadd.f32 1.0, %v6345_v42  ;;  %v4924_v27 = vmul.f32 -1.442695, %v9650_v32  ;;  %v4283_v4 = vadd.f32 %v4282_v12, %v3963_v37  ;;  %v4004_v43 = vpop.f32.mrf.mxu1 }
 0x400   :  { %v4756_v35 = vmul.f32 %v6347_v20, %v9554_v45  ;;  %v5948_v19 = vpop.f32.mrf.mxu0 }
 0x401   :  { %6360 = vrcp.f32 %v4607_v61  ;;  %v9662_v29 = vadd.f32 %v9310_v2, %v4283_v4  ;;  %v9667_v36 = vpop.f32.mrf.mxu1 }
 0x402   :  { %v6349_v33 = vpop.eup %6348  ;;  %4967 = vst [vmem:[%s9907_s3 + $0x250] sm:$0xff] %v4756_v35  ;;  %6362 = vpow2.f32 %v4924_v27  ;;  %v4287_v34 = vpop.f32.mrf.mxu0 }
 0x403   :  { %v6351_v25 = vpop.eup %6350  ;;  %v4757_v45 = vmul.f32 %v6349_v33, %v9566_v21  ;;  %v4925_v3 = vmul.f32 -1.442695, %v9662_v29  ;;  %v4288_v10 = vadd.f32 %v4287_v34, %v3968_v39  ;;  %v4009_v1 = vpop.f32.mrf.mxu1 }
 0x404   :  { %v4608_v24 = vadd.f32 1.0, %v6351_v25  ;;  %v5951_v18 = vpop.f32.mrf.mxu0 }
 0x405   :  { %4968 = vst [vmem:[%s9907_s3 + $0x258] sm:$0xff] %v4757_v45  ;;  %6364 = vpow2.f32 %v4925_v3  ;;  %v9677_v58 = vadd.f32 %v9310_v2, %v4288_v10  ;;  %v9679_v21 = vpop.f32.mrf.mxu1 }
 0x406   :  { %v6353_v15 = vpop.eup %6352  ;;  %6366 = vrcp.f32 %v4608_v24  ;;  %v4292_v51 = vpop.f32.mrf.mxu0 }
 0x407   :  { %v6355_v52 = vpop.eup %6354  ;;  %v4758_v38 = vmul.f32 %v6353_v15, %v9581_v54  ;;  %v4926_v7 = vmul.f32 -1.442695, %v9677_v58  ;;  %v4293_v44 = vadd.f32 %v4292_v51, %v3973_v5  ;;  %v4014_v8 = vpop.f32.mrf.mxu1 }
 0x408   :  { %v4609_v6 = vadd.f32 1.0, %v6355_v52  ;;  %v5954_v56 = vpop.f32.mrf.mxu0 }
 0x409   :  { %4969 = vst [vmem:[%s9907_s3 + $0x260] sm:$0xff] %v4758_v38  ;;  %6368 = vpow2.f32 %v4926_v7  ;;  %v9689_v57 = vadd.f32 %v9310_v2, %v4293_v44  ;;  %v9691_v54 = vpop.f32.mrf.mxu1  ;;  %v3998_v7 = vadd.f32 %v9643_v49, %v9216_v26 }
 0x40a   :  { %v6357_v28 = vpop.eup %6356  ;;  %6370 = vrcp.f32 %v4609_v6  ;;  %v4297_v0 = vpop.f32.mrf.mxu0 }
 0x40b   :  { %v6359_v48 = vpop.eup %6358  ;;  %v4759_v16 = vmul.f32 %v6357_v28, %v9593_v41  ;;  %v4927_v59 = vmul.f32 -1.442695, %v9689_v57  ;;  %v4298_v31 = vadd.f32 %v4297_v0, %v3978_v23  ;;  %v4019_v22 = vpop.f32.mrf.mxu1 }
 0x40c   :  { %v4610_v47 = vadd.f32 1.0, %v6359_v48  ;;  %v5957_v30 = vpop.f32.mrf.mxu0 }
 0x40d   :  { %4970 = vst [vmem:[%s9907_s3 + $0x268] sm:$0xff] %v4759_v16  ;;  %6372 = vpow2.f32 %v4927_v59  ;;  %v9701_v14 = vadd.f32 %v9310_v2, %v4298_v31  ;;  %v9703_v41 = vpop.f32.mrf.mxu1  ;;  %v9982_v16 = vld [vmem:[#allocation6_spill] sm:$0xff] }
 0x40e   :  { %v6361_v37 = vpop.eup %6360  ;;  %6374 = vrcp.f32 %v4610_v47  ;;  %v4302_v42 = vpop.f32.mrf.mxu0  ;;  %v4003_v59 = vadd.f32 %v9655_v46, %v9982_v16 }
 0x40f   :  { %v6363_v12 = vpop.eup %6362  ;;  %v4760_v20 = vmul.f32 %v6361_v37, %v9605_v63  ;;  %v4928_v61 = vmul.f32 -1.442695, %v9701_v14  ;;  %v4303_v27 = vadd.f32 %v4302_v42, %v3983_v17  ;;  %v4024_v35 = vpop.f32.mrf.mxu1 }
 0x410   :  { %v4611_v4 = vadd.f32 1.0, %v6363_v12  ;;  %v5960_v43 = vpop.f32.mrf.mxu0 }
 0x411   :  { %4971 = vst [vmem:[%s9907_s3 + $0x270] sm:$0xff] %v4760_v20  ;;  %6376 = vpow2.f32 %v4928_v61  ;;  %v9713_v13 = vadd.f32 %v9310_v2, %v4303_v27  ;;  %v9715_v63 = vpop.f32.mrf.mxu1  ;;  %v9724_v2 = vld [vmem:[%s9906_s2] ss:$0 sm:$0xff] }
 0x412   :  { %v6365_v19 = vpop.eup %6364  ;;  %6378 = vrcp.f32 %v4611_v4  ;;  %v4307_v39 = vpop.f32.mrf.mxu0  ;;  %v9983_v61 = vld [vmem:[#allocation7_spill] sm:$0xff] }
 0x413   :  { %v6367_v33 = vpop.eup %6366  ;;  %v4612_v34 = vadd.f32 1.0, %v6365_v19  ;;  %v4929_v25 = vmul.f32 -1.442695, %v9713_v13  ;;  %v4308_v45 = vadd.f32 %v4307_v39, %v3988_v55  ;;  %v4029_v10 = vpop.f32.mrf.mxu1  ;;  %v4008_v27 = vadd.f32 %v9667_v36, %v9983_v61 }
 0x414   :  { %v4761_v3 = vmul.f32 %v6367_v33, %v9617_v60  ;;  %v5963_v24 = vpop.f32.mrf.mxu0 }
 0x415   :  { %6380 = vrcp.f32 %v4612_v34  ;;  %v9727_v50 = vadd.f32 %v9724_v2, %v4308_v45  ;;  %v9732_v60 = vpop.f32.mrf.mxu1  ;;  %v9984_v45 = vld [vmem:[#allocation8_spill] sm:$0xff] }
 0x416   :  { %v6369_v1 = vpop.eup %6368  ;;  %4972 = vst [vmem:[%s9907_s3 + $0x278] sm:$0xff] %v4761_v3  ;;  %6382 = vpow2.f32 %v4929_v25  ;;  %v4312_v18 = vpop.f32.mrf.mxu0  ;;  %v4013_v3 = vadd.f32 %v9679_v21, %v9984_v45  ;;  %v9985_v21 = vld [vmem:[#allocation9_spill] sm:$0xff] }
 0x417   :  { %v6371_v5 = vpop.eup %6370  ;;  %v4613_v11 = vadd.f32 1.0, %v6369_v1  ;;  %v4930_v62 = vmul.f32 -1.442695, %v9727_v50  ;;  %v4313_v15 = vadd.f32 %v4312_v18, %v3993_v53  ;;  %v4034_v52 = vpop.f32.mrf.mxu1 }
 0x418   :  { %v4762_v51 = vmul.f32 %v6371_v5, %v9626_v40  ;;  %v5966_v38 = vpop.f32.mrf.mxu0  ;;  %v4018_v52 = vadd.f32 %v9691_v54, %v9985_v21 }
 0x419   :  { %6384 = vrcp.f32 %v4613_v11  ;;  %v9739_v44 = vadd.f32 %v9724_v2, %v4313_v15  ;;  %v4037_v8 = vpop.f32.mrf.mxu1  ;;  %v9986_v38 = vld [vmem:[#allocation13_spill] sm:$0xff] }
 0x41a   :  { %v6373_v6 = vpop.eup %6372  ;;  %4973 = vst [vmem:[%s9907_s3 + $0x280] sm:$0xff] %v4762_v51  ;;  %6386 = vpow2.f32 %v4930_v62  ;;  %v4317_v56 = vpop.f32.mrf.mxu0 }
 0x41b   :  { %v6375_v23 = vpop.eup %6374  ;;  %v4614_v28 = vadd.f32 1.0, %v6373_v6  ;;  %v4931_v40 = vmul.f32 -1.442695, %v9739_v44  ;;  %v4318_v0 = vadd.f32 %v4317_v56, %v3998_v7  ;;  %v4039_v26 = vpop.f32.mrf.mxu1  ;;  %v4038_v7 = vadd.f32 %v4037_v8, %v9986_v38  ;;  %v9987_v8 = vld [vmem:[#allocation10_spill] sm:$0xff] }
 0x41c   :  { %v4763_v48 = vmul.f32 %v6375_v23, %v9638_v9  ;;  %v5969_v49 = vpop.f32.mrf.mxu0 }
 0x41d   :  { %6388 = vrcp.f32 %v4614_v28  ;;  %v9749_v31 = vadd.f32 %v9724_v2, %v4318_v0  ;;  %v9754_v22 = vpop.f32.mrf.mxu1 }
 0x41e   :  { %v6377_v47 = vpop.eup %6376  ;;  %4974 = vst [vmem:[%s9907_s3 + $0x288] sm:$0xff] %v4763_v48  ;;  %6390 = vpow2.f32 %v4931_v40  ;;  %v4322_v30 = vpop.f32.mrf.mxu0 }
 0x41f   :  { %v6379_v17 = vpop.eup %6378  ;;  %v4615_v9 = vadd.f32 1.0, %v6377_v47  ;;  %v4932_v37 = vmul.f32 -1.442695, %v9749_v31  ;;  %v4323_v42 = vadd.f32 %v4322_v30, %v4003_v59  ;;  %v4044_v12 = vpop.f32.mrf.mxu1  ;;  %v4023_v59 = vadd.f32 %v9703_v41, %v9987_v8 }
 0x420   :  { %v4764_v46 = vmul.f32 %v6379_v17, %v9650_v32  ;;  %v5972_v20 = vpop.f32.mrf.mxu0  ;;  %v9988_v17 = vld [vmem:[#allocation14_spill] sm:$0xff] }
 0x421   :  { %6392 = vrcp.f32 %v4615_v9  ;;  %v9761_v4 = vadd.f32 %v9724_v2, %v4323_v42  ;;  %v9766_v43 = vpop.f32.mrf.mxu1  ;;  %v4043_v9 = vadd.f32 %v9754_v22, %v9988_v17 }
 0x422   :  { %v6381_v35 = vpop.eup %6380  ;;  %4975 = vst [vmem:[%s9907_s3 + $0x290] sm:$0xff] %v4764_v46  ;;  %6394 = vpow2.f32 %v4932_v37  ;;  %v4327_v55 = vpop.f32.mrf.mxu0 }
 0x423   :  { %v6383_v19 = vpop.eup %6382  ;;  %v4765_v32 = vmul.f32 %v6381_v35, %v9662_v29  ;;  %v4933_v39 = vmul.f32 -1.442695, %v9761_v4  ;;  %v4328_v33 = vadd.f32 %v4327_v55, %v4008_v27  ;;  %v4049_v34 = vpop.f32.mrf.mxu1 }
 0x424   :  { %v4616_v36 = vadd.f32 1.0, %v6383_v19  ;;  %v5975_v25 = vpop.f32.mrf.mxu0 }
 0x425   :  { %4976 = vst [vmem:[%s9907_s3 + $0x298] sm:$0xff] %v4765_v32  ;;  %6396 = vpow2.f32 %v4933_v39  ;;  %v9776_v10 = vadd.f32 %v9724_v2, %v4328_v33  ;;  %v9778_v29 = vpop.f32.mrf.mxu1  ;;  %v9989_v32 = vld [vmem:[#allocation11_spill] sm:$0xff] }
 0x426   :  { %v6385_v24 = vpop.eup %6384  ;;  %6398 = vrcp.f32 %v4616_v36  ;;  %v4332_v53 = vpop.f32.mrf.mxu0  ;;  %v4028_v22 = vadd.f32 %v9715_v63, %v9989_v32  ;;  %v9990_v33 = vld [vmem:[#allocation15_spill] sm:$0xff] }
 0x427   :  { %v6387_v1 = vpop.eup %6386  ;;  %v4766_v18 = vmul.f32 %v6385_v24, %v9677_v58  ;;  %v4934_v5 = vmul.f32 -1.442695, %v9776_v10  ;;  %v4333_v11 = vadd.f32 %v4332_v53, %v4013_v3  ;;  %v4054_v15 = vpop.f32.mrf.mxu1  ;;  %v4048_v36 = vadd.f32 %v9766_v43, %v9990_v33 }
 0x428   :  { %v4617_v62 = vadd.f32 1.0, %v6387_v1  ;;  %v5978_v51 = vpop.f32.mrf.mxu0  ;;  %v9991_v15 = vld [vmem:[#allocation12_spill] sm:$0xff] }
 0x429   :  { %4977 = vst [vmem:[%s9907_s3 + $0x2a0] sm:$0xff] %v4766_v18  ;;  %6400 = vpow2.f32 %v4934_v5  ;;  %v9789_v6 = vadd.f32 %v9724_v2, %v4333_v11  ;;  %v4357_v23 = vpop.f32.mrf.mxu1  ;;  %v4033_v43 = vadd.f32 %v9732_v60, %v9991_v15 }
 0x42a   :  { %v6389_v58 = vpop.eup %6388  ;;  %6402 = vrcp.f32 %v4617_v62  ;;  %v4337_v56 = vpop.f32.mrf.mxu0  ;;  %v4358_v26 = vadd.f32 %v4357_v23, %v4038_v7 }
 0x42b   :  { %v6391_v28 = vpop.eup %6390  ;;  %v4767_v40 = vmul.f32 %v6389_v58, %v9689_v57  ;;  %v4935_v0 = vmul.f32 -1.442695, %v9789_v6  ;;  %v4338_v48 = vadd.f32 %v4337_v56, %v4018_v52  ;;  %v5993_v54 = vpop.f32.mrf.mxu1  ;;  %v9992_v52 = vld [vmem:[#allocation16_spill] sm:$0xff] }
 0x42c   :  { %v4618_v49 = vadd.f32 1.0, %v6391_v28  ;;  %v5981_v16 = vpop.f32.mrf.mxu0  ;;  %v9802_v57 = vadd.f32 %v9724_v2, %v4358_v26 }
 0x42d   :  { %4978 = vst [vmem:[%s9907_s3 + $0x2a8] sm:$0xff] %v4767_v40  ;;  %6404 = vpow2.f32 %v4935_v0  ;;  %v9799_v47 = vadd.f32 %v9724_v2, %v4338_v48  ;;  %v4362_v42 = vpop.f32.mrf.mxu1 }
 0x42e   :  { %v6393_v30 = vpop.eup %6392  ;;  %6406 = vrcp.f32 %v4618_v49  ;;  %v4342_v37 = vpop.f32.mrf.mxu0  ;;  %v4940_v41 = vmul.f32 -1.442695, %v9802_v57  ;;  %v4363_v35 = vadd.f32 %v4362_v42, %v4043_v9 }
 0x42f   :  { %v6395_v46 = vpop.eup %6394  ;;  %v4768_v12 = vmul.f32 %v6393_v30, %v9701_v14  ;;  %v4936_v20 = vmul.f32 -1.442695, %v9799_v47  ;;  %v4343_v61 = vadd.f32 %v4342_v37, %v4023_v59  ;;  %v5996_v19 = vpop.f32.mrf.mxu1 }
 0x430   :  { %v4619_v27 = vadd.f32 1.0, %v6395_v46  ;;  %v5984_v55 = vpop.f32.mrf.mxu0  ;;  %v9820_v34 = vadd.f32 %v9724_v2, %v4363_v35 }
 0x431   :  { %4979 = vst [vmem:[%s9907_s3 + $0x2b0] sm:$0xff] %v4768_v12  ;;  %6408 = vpow2.f32 %v4936_v20  ;;  %v9815_v39 = vadd.f32 %v9724_v2, %v4343_v61  ;;  %v4367_v45 = vpop.f32.mrf.mxu1 }
 0x432   :  { %v6397_v14 = vpop.eup %6396  ;;  %6410 = vrcp.f32 %v4619_v27  ;;  %v4347_v25 = vpop.f32.mrf.mxu0  ;;  %v4941_v18 = vmul.f32 -1.442695, %v9820_v34  ;;  %v4368_v5 = vadd.f32 %v4367_v45, %v4048_v36 }
 0x433   :  { %v6399_v3 = vpop.eup %6398  ;;  %v4620_v24 = vadd.f32 1.0, %v6397_v14  ;;  %6412 = vpow2.f32 %v4940_v41  ;;  %v4937_v53 = vmul.f32 -1.442695, %v9815_v39  ;;  %v4348_v63 = vadd.f32 %v4347_v25, %v4028_v22  ;;  %v5999_v62 = vpop.f32.mrf.mxu1 }
 0x434   :  { %v4769_v1 = vmul.f32 %v6399_v3, %v9713_v13  ;;  %v5987_v11 = vpop.f32.mrf.mxu0  ;;  %v4053_v13 = vadd.f32 %v9778_v29, %v9992_v52  ;;  %v9836_v38 = vadd.f32 %v9724_v2, %v4368_v5 }
 0x435   :  { %6414 = vrcp.f32 %v4620_v24  ;;  %v9828_v51 = vadd.f32 %v9724_v2, %v4348_v63  ;;  %v4372_v58 = vpop.f32.mrf.mxu1 }
 0x436   :  { %v6401_v21 = vpop.eup %6400  ;;  %4980 = vst [vmem:[%s9907_s3 + $0x2b8] sm:$0xff] %v4769_v1  ;;  %6416 = vpow2.f32 %v4937_v53  ;;  %v4352_v7 = vpop.f32.mrf.mxu0  ;;  %v4942_v0 = vmul.f32 -1.442695, %v9836_v38  ;;  %v4373_v48 = vadd.f32 %v4372_v58, %v4053_v13 }
 0x437   :  { %v6403_v56 = vpop.eup %6402  ;;  %v4621_v60 = vadd.f32 1.0, %v6401_v21  ;;  %6418 = vpow2.f32 %v4941_v18  ;;  %v4938_v23 = vmul.f32 -1.442695, %v9828_v51  ;;  %v4353_v28 = vadd.f32 %v4352_v7, %v4033_v43  ;;  %v6002_v49 = vpop.f32.mrf.mxu1 }
 0x438   :  { %v4770_v40 = vmul.f32 %v6403_v56, %v9727_v50  ;;  %v5990_v26 = vpop.f32.mrf.mxu0  ;;  %v9848_v54 = vadd.f32 %v9724_v2, %v4373_v48 }
 0x439   :  { %6420 = vrcp.f32 %v4621_v60  ;;  %v9842_v29 = vadd.f32 %v9724_v2, %v4353_v28 }
 0x43a   :  { %v6405_v16 = vpop.eup %6404  ;;  %4981 = vst [vmem:[%s9907_s3 + $0x2c0] sm:$0xff] %v4770_v40  ;;  %6422 = vpow2.f32 %v4938_v23  ;;  %v4943_v17 = vmul.f32 -1.442695, %v9848_v54 }
 0x43b   :  { %v6407_v8 = vpop.eup %6406  ;;  %v4622_v50 = vadd.f32 1.0, %v6405_v16  ;;  %6424 = vpow2.f32 %v4942_v0  ;;  %v4939_v59 = vmul.f32 -1.442695, %v9842_v29 }
 0x43c   :  { %v4771_v30 = vmul.f32 %v6407_v8, %v9739_v44 }
 0x43d   :  { %6426 = vrcp.f32 %v4622_v50 }
 0x43e   :  { %v6409_v9 = vpop.eup %6408  ;;  %4982 = vst [vmem:[%s9907_s3 + $0x2c8] sm:$0xff] %v4771_v30  ;;  %6428 = vpow2.f32 %v4939_v59 }
 0x43f   :  { %v6411_v37 = vpop.eup %6410  ;;  %v4623_v42 = vadd.f32 1.0, %v6409_v9  ;;  %6430 = vpow2.f32 %v4943_v17 }
 0x440   :  { %v6413_v2 = vpop.eup %6412  ;;  %v4772_v46 = vmul.f32 %v6411_v37, %v9749_v31 }
 0x441   :  { %6432 = vrcp.f32 %v4623_v42  ;;  %v4627_v12 = vadd.f32 1.0, %v6413_v2 }
 0x442   :  { %v6415_v20 = vpop.eup %6414  ;;  %4983 = vst [vmem:[%s9907_s3 + $0x2d0] sm:$0xff] %v4772_v46 }
 0x443   :  { %v6417_v44 = vpop.eup %6416  ;;  %v4773_v41 = vmul.f32 %v6415_v20, %v9761_v4  ;;  %6434 = vrcp.f32 %v4627_v12 }
 0x444   :  { %v6419_v61 = vpop.eup %6418  ;;  %v4624_v27 = vadd.f32 1.0, %v6417_v44 }
 0x445   :  { %4984 = vst [vmem:[%s9907_s3 + $0x2d8] sm:$0xff] %v4773_v41  ;;  %v4628_v35 = vadd.f32 1.0, %v6419_v61 }
 0x446   :  { %v6421_v55 = vpop.eup %6420  ;;  %6436 = vrcp.f32 %v4624_v27 }
 0x447   :  { %v6423_v31 = vpop.eup %6422  ;;  %v4774_v19 = vmul.f32 %v6421_v55, %v9776_v10  ;;  %6438 = vrcp.f32 %v4628_v35 }
 0x448   :  { %v6425_v32 = vpop.eup %6424  ;;  %v4625_v22 = vadd.f32 1.0, %v6423_v31 }
 0x449   :  { %4985 = vst [vmem:[%s9907_s3 + $0x2e0] sm:$0xff] %v4774_v19  ;;  %v4629_v4 = vadd.f32 1.0, %v6425_v32 }
 0x44a   :  { %v6427_v14 = vpop.eup %6426  ;;  %6440 = vrcp.f32 %v4625_v22 }
 0x44b   :  { %v6429_v33 = vpop.eup %6428  ;;  %v4775_v36 = vmul.f32 %v6427_v14, %v9789_v6  ;;  %6442 = vrcp.f32 %v4629_v4 }
 0x44c   :  { %v6431_v25 = vpop.eup %6430  ;;  %v4626_v45 = vadd.f32 1.0, %v6429_v33 }
 0x44d   :  { %4986 = vst [vmem:[%s9907_s3 + $0x2e8] sm:$0xff] %v4775_v36  ;;  %v4630_v10 = vadd.f32 1.0, %v6431_v25 }
 0x44e   :  { %v6433_v3 = vpop.eup %6432  ;;  %6444 = vrcp.f32 %v4626_v45 }
 0x44f   :  { %v4776_v24 = vmul.f32 %v6433_v3, %v9799_v47  ;;  %6446 = vrcp.f32 %v4630_v10 }
 0x450   :  { %v6435_v53 = vpop.eup %6434 }
 0x451   :  { %4987 = vst [vmem:[%s9907_s3 + $0x2f0] sm:$0xff] %v4776_v24  ;;  %v4780_v6 = vmul.f32 %v6435_v53, %v9802_v57 }
 0x453   :  { %v6437_v63 = vpop.eup %6436  ;;  %4991 = vst [vmem:[%s9907_s3 + $0x310] sm:$0xff] %v4780_v6 }
 0x454   :  { %v6439_v1 = vpop.eup %6438  ;;  %v4777_v18 = vmul.f32 %v6437_v63, %v9815_v39 }
 0x455   :  { %v4781_v5 = vmul.f32 %v6439_v1, %v9820_v34 }
 0x456   :  { %4988 = vst [vmem:[%s9907_s3 + $0x2f8] sm:$0xff] %v4777_v18 }
 0x457   :  { %v6441_v47 = vpop.eup %6440  ;;  %4992 = vst [vmem:[%s9907_s3 + $0x318] sm:$0xff] %v4781_v5 }
 0x458   :  { %v6443_v57 = vpop.eup %6442  ;;  %v4778_v11 = vmul.f32 %v6441_v47, %v9828_v51 }
 0x459   :  { %v4782_v62 = vmul.f32 %v6443_v57, %v9836_v38 }
 0x45a   :  { %4989 = vst [vmem:[%s9907_s3 + $0x300] sm:$0xff] %v4778_v11 }
 0x45b   :  { %v6445_v39 = vpop.eup %6444  ;;  %4993 = vst [vmem:[%s9907_s3 + $0x320] sm:$0xff] %v4782_v62 }
 0x45c   :  { %v6447_v34 = vpop.eup %6446  ;;  %v4779_v15 = vmul.f32 %v6445_v39, %v9842_v29 }
 0x45d   :  { %v4783_v43 = vmul.f32 %v6447_v34, %v9848_v54 }
 0x45e   :  { %4990 = vst [vmem:[%s9907_s3 + $0x308] sm:$0xff] %v4779_v15 }
 0x45f   :  { %4994 = vst [vmem:[%s9907_s3 + $0x328] sm:$0xff] %v4783_v43 }
 0x460   :  { %4840 = vsyncpa [#allocation4], 1 }

</bundles_post_ra>
